<compile_context>
chip_gen: v6e
topology: v6e:2x2x1
jax: 0.10.0
libtpu: 0.0.40
codegen_flags: <defaults>
</compile_context>

<pallas_src>
import jax
import jax.numpy as jnp
from jax import lax
from jax.experimental import pallas as pl
from jax.experimental.pallas import tpu as pltpu


CHUNK = 8   # recurrence unroll depth == rows per full-vreg slab store


# ----------------------------------------------------------------------------
# Pallas kernel: full VAE forward (both stacked LSTMs) in one kernel.
# The sequence recurrence is serial -> empty grid, lax.fori_loop over chunks,
# matmuls on the MXU, gate nonlinearities on the EUP/VPU.
# ----------------------------------------------------------------------------
def vae_kernel(x_ref,
               e_wx0_ref, e_wh0_ref, e_b0_ref,
               e_wx1_ref, e_wh1_ref, e_b1_ref,
               d_wx0_ref, d_wh0_ref, d_b0_ref,
               d_wx1_ref, d_wh1_ref, d_b1_ref,
               out_ref,
               xp_e_ref, h0e_ref, xp_d_ref, dh0_ref):
    S = x_ref.shape[0]
    H = e_wh0_ref.shape[0]          # encoder hidden size
    D = d_wh0_ref.shape[0]          # decoder hidden size = 2*H

    def gates(g, c, hid):
        # Gate columns were permuted at wrapper time to [i, f, o | g]:
        # one sigmoid over a contiguous 3*hid slice + one tanh per cell.
        sig = jax.nn.sigmoid(g[:, :3 * hid])
        i = sig[:, 0 * hid:1 * hid]
        f = sig[:, 1 * hid:2 * hid]
        o = sig[:, 2 * hid:3 * hid]
        gg = jnp.tanh(g[:, 3 * hid:4 * hid])
        c_new = f * c + i * gg
        h_new = o * jnp.tanh(c_new)
        return h_new, c_new

    def recur_steps(xrow, wh_ref, h, c, hid, n):
        """n statically unrolled recurrent steps.

        xrow(j) -> (1, 4*hid) f32 x-side contribution for local step j.
        Only the (1,hid)@(hid,4*hid) recurrent matmul sits in the serial chain.
        Returns final (h, c) plus the list of per-step h rows (f32)."""
        rows = []
        for j in range(n):
            g = xrow(j) + jnp.dot(h.astype(jnp.bfloat16), wh_ref[...],
                                  preferred_element_type=jnp.float32)
            h, c = gates(g, c, hid)
            rows.append(h)
        return h, c, rows

    def run_layer(xp_ref, wh_ref, hid, hout_ref=None, g_base=None):
        """One serial LSTM layer over S steps.

        The x-side contribution is either the precomputed xp_ref[t] row
        ((S,4*hid) f32 scratch) or the loop-invariant g_base (1,4*hid).
        Per-step h rows are optionally written to hout_ref in CHUNK-row slabs
        (full-vreg stores)."""
        z = jnp.zeros((1, hid), jnp.float32)

        def make_xrow(t0, n):
            if g_base is not None:
                return lambda j: g_base
            xp_chunk = xp_ref[pl.ds(t0, n), :]          # (n, 4*hid) f32
            return lambda j: xp_chunk[j:j + 1, :]

        def chunk_body(p, carry):
            h, c = carry
            t0 = pl.multiple_of(p * CHUNK, CHUNK)
            h, c, rows = recur_steps(make_xrow(t0, CHUNK), wh_ref, h, c, hid, CHUNK)
            if hout_ref is not None:
                hout_ref[pl.ds(t0, CHUNK), :] = jnp.concatenate(
                    rows, axis=0).astype(hout_ref.dtype)
            return h, c

        n_chunks = S // CHUNK
        h, c = lax.fori_loop(0, n_chunks, chunk_body, (z, z))

        rem = S - n_chunks * CHUNK                      # static tail
        if rem:
            t0 = n_chunks * CHUNK
            h, c, rows = recur_steps(make_xrow(t0, rem), wh_ref, h, c, hid, rem)
            if hout_ref is not None:
                hout_ref[pl.ds(t0, rem), :] = jnp.concatenate(
                    rows, axis=0).astype(hout_ref.dtype)
        return h, c

    # ---------------- encoder (eLSTM) ----------------------------------------
    # Layer 0: one dense (S,I)@(I,4H) x-projection, then a recurrence whose
    # only per-step matmul is (1,H)@(H,4H).  Every h0_t row is buffered (bf16)
    # so layer 1's x-projection is also a single dense matmul.
    xp_e_ref[...] = (jnp.dot(x_ref[...], e_wx0_ref[...],
                             preferred_element_type=jnp.float32) + e_b0_ref[...])
    h0, _ = run_layer(xp_e_ref, e_wh0_ref, H, hout_ref=h0e_ref)

    # Layer 1: dense (S,H)@(H,4H) projection from the buffered rows (reuse the
    # xp_e scratch), then the layer-1-only recurrence.  Only final h1 is kept.
    xp_e_ref[...] = (jnp.dot(h0e_ref[...], e_wx1_ref[...],
                             preferred_element_type=jnp.float32) + e_b1_ref[...])
    h1, _ = run_layer(xp_e_ref, e_wh1_ref, H)

    # h_n.view(1, 1, -1): concat final hidden states of both encoder layers.
    dec_in = jnp.concatenate([h0, h1], axis=-1).astype(jnp.bfloat16)    # (1, D)

    # ---------------- decoder (dLSTM) -----------------------------------------
    # Decoder input is the same vector every step -> its layer-0 x-projection
    # is loop-invariant; compute it once, add it inside the recurrence.
    g0_base = (jnp.dot(dec_in, d_wx0_ref[...],
                       preferred_element_type=jnp.float32) + d_b0_ref[...])
    run_layer(None, d_wh0_ref, D, hout_ref=dh0_ref, g_base=g0_base)

    # Layer 1: dense (S,D)@(D,4D) projection of all buffered dh0 rows, then the
    # layer-1-only recurrence, writing outputs in CHUNK-row full-vreg slabs.
    xp_d_ref[...] = (jnp.dot(dh0_ref[...], d_wx1_ref[...],
                             preferred_element_type=jnp.float32) + d_b1_ref[...])
    run_layer(xp_d_ref, d_wh1_ref, D, hout_ref=out_ref)


# ----------------------------------------------------------------------------
# Deterministic parameter construction (PyTorch nn.LSTM layout, pre-transposed
# for x @ W; combined bias b_ih + b_hh as (1, 4*hid)).  PyTorch gate order.
# ----------------------------------------------------------------------------
def init_vae_params(key, input_size, hidden_size):
    H, I, D = hidden_size, input_size, 2 * hidden_size
    keys = iter(jax.random.split(key, 32))

    def u(shape, scale):
        return jax.random.uniform(next(keys), shape, jnp.float32, -scale, scale)

    def layer(in_f, hid):
        s = 1.0 / jnp.sqrt(hid)
        w_ih = u((4 * hid, in_f), s)
        w_hh = u((4 * hid, hid), s)
        b_ih = u((4 * hid,), s)
        b_hh = u((4 * hid,), s)
        return w_ih.T, w_hh.T, (b_ih + b_hh)[None, :]

    p = {}
    p["e_wx0"], p["e_wh0"], p["e_b0"] = layer(I, H)
    p["e_wx1"], p["e_wh1"], p["e_b1"] = layer(H, H)
    p["d_wx0"], p["d_wh0"], p["d_b0"] = layer(D, D)
    p["d_wx1"], p["d_wh1"], p["d_b1"] = layer(D, D)
    return p


# ----------------------------------------------------------------------------
# Wrapper
# ----------------------------------------------------------------------------
def vae_forward(x, params):
    """x: (seq_len, 1, input_size)  ->  decoded: (seq_len, 1, 2*hidden_size)."""
    S, B, I = x.shape
    assert B == 1, "batch must be 1, matching the PyTorch module"
    H = params["e_wh0"].shape[0]
    D = 2 * H
    assert I == D, "VAE requires input_size == 2 * hidden_size"

    bf16 = jnp.bfloat16

    def prep(wx, wh, b, hid):
        # Permute gate columns [i,f,g,o] -> [i,f,o,g] (value-preserving; the
        # kernel's gates() reads this layout).  bf16 matmul operands, f32 bias.
        def perm(a):
            return jnp.concatenate(
                [a[..., :2 * hid], a[..., 3 * hid:4 * hid], a[..., 2 * hid:3 * hid]],
                axis=-1)
        return perm(wx).astype(bf16), perm(wh).astype(bf16), perm(b).astype(jnp.float32)

    e_wx0, e_wh0, e_b0 = prep(params["e_wx0"], params["e_wh0"], params["e_b0"], H)
    e_wx1, e_wh1, e_b1 = prep(params["e_wx1"], params["e_wh1"], params["e_b1"], H)
    d_wx0, d_wh0, d_b0 = prep(params["d_wx0"], params["d_wh0"], params["d_b0"], D)
    d_wx1, d_wh1, d_b1 = prep(params["d_wx1"], params["d_wh1"], params["d_b1"], D)

    x2d = x.reshape(S, I).astype(bf16)

    args = (x2d,
            e_wx0, e_wh0, e_b0, e_wx1, e_wh1, e_b1,
            d_wx0, d_wh0, d_b0, d_wx1, d_wh1, d_b1)

    scratch = [
        pltpu.VMEM((S, 4 * H), jnp.float32),   # xp_e: encoder x-projections (layer 0, then reused for layer 1)
        pltpu.VMEM((S, H), bf16),              # h0e : encoder layer-0 h rows
        pltpu.VMEM((S, 4 * D), jnp.float32),   # xp_d: decoder layer-1 x-projection
        pltpu.VMEM((S, D), bf16),              # dh0 : decoder layer-0 h rows
    ]

    # Size the scoped-VMEM limit from the real footprint; empty grid +
    # full-array specs means no BlockSpec double-buffering, so ~2x headroom.
    in_bytes = sum(int(a.size) * a.dtype.itemsize for a in args)
    out_bytes = S * D * 4
    scratch_bytes = (S * 4 * H * 4) + (S * H * 2) + (S * 4 * D * 4) + (S * D * 2)
    vmem_bytes = int(min(max(2 * (in_bytes + out_bytes + scratch_bytes),
                             16 * 2**20),
                         40 * 2**20))

    out = pl.pallas_call(
        vae_kernel,
        out_shape=jax.ShapeDtypeStruct((S, D), jnp.float32),
        in_specs=[pl.BlockSpec(memory_space=pltpu.MemorySpace.VMEM)] * len(args),
        out_specs=pl.BlockSpec(memory_space=pltpu.MemorySpace.VMEM),
        scratch_shapes=scratch,
        compiler_params=pltpu.CompilerParams(vmem_limit_bytes=vmem_bytes),
    )(*args)
    return out.reshape(S, 1, D)


# ----------------------------------------------------------------------------
# Pure-JAX reference mirroring the kernel's bf16-operand / f32-accumulate math
# (PyTorch gate order; the kernel's gate permutation is value-preserving).
# ----------------------------------------------------------------------------
def _bf(v):
    return v.astype(jnp.bfloat16).astype(jnp.float32)


def vae_reference(x, p):
    S = x.shape[0]
    H = p["e_wh0"].shape[0]
    D = 2 * H
    xb = _bf(x.reshape(S, -1))
    e_wx0, e_wh0 = _bf(p["e_wx0"]), _bf(p["e_wh0"])
    e_wx1, e_wh1 = _bf(p["e_wx1"]), _bf(p["e_wh1"])
    d_wx0, d_wh0 = _bf(p["d_wx0"]), _bf(p["d_wh0"])
    d_wx1, d_wh1 = _bf(p["d_wx1"]), _bf(p["d_wh1"])
    e_b0, e_b1 = p["e_b0"], p["e_b1"]
    d_b0, d_b1 = p["d_b0"], p["d_b1"]

    def cell(g, c, hid):
        i = jax.nn.sigmoid(g[:, 0 * hid:1 * hid])
        f = jax.nn.sigmoid(g[:, 1 * hid:2 * hid])
        gg = jnp.tanh(g[:, 2 * hid:3 * hid])
        o = jax.nn.sigmoid(g[:, 3 * hid:4 * hid])
        c = f * c + i * gg
        return o * jnp.tanh(c), c

    xp = xb @ e_wx0 + e_b0
    h0 = c0 = h1 = c1 = jnp.zeros((1, H), jnp.float32)
    for t in range(S):
        g0 = xp[t:t + 1] + _bf(h0) @ e_wh0
        h0, c0 = cell(g0, c0, H)
        g1 = _bf(h0) @ e_wx1 + _bf(h1) @ e_wh1 + e_b1
        h1, c1 = cell(g1, c1, H)

    dec_in = _bf(jnp.concatenate([h0, h1], axis=-1))
    g0_base = dec_in @ d_wx0 + d_b0
    dh0 = dc0 = dh1 = dc1 = jnp.zeros((1, D), jnp.float32)
    outs = []
    for _ in range(S):
        g0 = g0_base + _bf(dh0) @ d_wh0
        dh0, dc0 = cell(g0, dc0, D)
        g1 = _bf(dh0) @ d_wx1 + _bf(dh1) @ d_wh1 + d_b1
        dh1, dc1 = cell(g1, dc1, D)
        outs.append(dh1)
    return jnp.stack(outs, axis=0)      # (S, 1, D)


if __name__ == "__main__":
    SEQ_LEN = 20                # 2 full CHUNK iterations + a static tail of 4
    HIDDEN = 64                 # decoder width D = 128 -> lane-aligned gates
    INPUT = 2 * HIDDEN          # required by the module (2048 = 2*1024 in paper)

    key = jax.random.PRNGKey(0)
    k_x, k_p = jax.random.split(key)
    x = jax.random.normal(k_x, (SEQ_LEN, 1, INPUT), jnp.float32)
    params = init_vae_params(k_p, INPUT, HIDDEN)

    decoded = jax.block_until_ready(vae_forward(x, params))
    assert decoded.shape == (SEQ_LEN, 1, 2 * HIDDEN)

    ref = vae_reference(x, params)
    err = float(jnp.max(jnp.abs(decoded - ref)))
    assert err < 2e-3, err

    print("KERNEL_OK")
</pallas_src>

<mosaic_0001>
module attributes {stable_mosaic.version = 11 : i64} {
  func.func @vae_kernel(%arg0: memref<20x128xbf16, #tpu.memory_space<vmem>>, %arg1: memref<128x256xbf16, #tpu.memory_space<vmem>>, %arg2: memref<64x256xbf16, #tpu.memory_space<vmem>>, %arg3: memref<1x256xf32, #tpu.memory_space<vmem>>, %arg4: memref<64x256xbf16, #tpu.memory_space<vmem>>, %arg5: memref<64x256xbf16, #tpu.memory_space<vmem>>, %arg6: memref<1x256xf32, #tpu.memory_space<vmem>>, %arg7: memref<128x512xbf16, #tpu.memory_space<vmem>>, %arg8: memref<128x512xbf16, #tpu.memory_space<vmem>>, %arg9: memref<1x512xf32, #tpu.memory_space<vmem>>, %arg10: memref<128x512xbf16, #tpu.memory_space<vmem>>, %arg11: memref<128x512xbf16, #tpu.memory_space<vmem>>, %arg12: memref<1x512xf32, #tpu.memory_space<vmem>>, %arg13: memref<20x128xf32, #tpu.memory_space<vmem>>, %arg14: memref<20x256xf32, #tpu.memory_space<vmem>>, %arg15: memref<20x64xbf16, #tpu.memory_space<vmem>>, %arg16: memref<20x512xf32, #tpu.memory_space<vmem>>, %arg17: memref<20x128xbf16, #tpu.memory_space<vmem>>) attributes {dimension_semantics = [], scalar_prefetch = 0 : i64, scratch_operands = 4 : i64, tpu.core_type = #tpu.core_type<tc>} {
    %c0 = arith.constant 0 : index
    %c0_0 = arith.constant 0 : index
    %0 = vector.load %arg0[%c0, %c0_0] : memref<20x128xbf16, #tpu.memory_space<vmem>>, vector<20x128xbf16>
    %c0_1 = arith.constant 0 : index
    %c0_2 = arith.constant 0 : index
    %1 = vector.load %arg1[%c0_1, %c0_2] : memref<128x256xbf16, #tpu.memory_space<vmem>>, vector<128x256xbf16>
    %cst = arith.constant dense<0.000000e+00> : vector<20x256xf32>
    %2 = tpu.matmul %0, %1, %cst {dimension_numbers = #tpu.dot_dimension_numbers<[1], [0], [0], [1], [0, 0, 1, 1], [], []>} : vector<20x128xbf16>, vector<128x256xbf16>, vector<20x256xf32> -> vector<20x256xf32>
    %c0_3 = arith.constant 0 : index
    %c0_4 = arith.constant 0 : index
    %3 = vector.load %arg3[%c0_3, %c0_4] : memref<1x256xf32, #tpu.memory_space<vmem>>, vector<1x256xf32>
    %4 = vector.broadcast %3 : vector<1x256xf32> to vector<20x256xf32>
    %5 = arith.addf %2, %4 : vector<20x256xf32>
    %c0_5 = arith.constant 0 : index
    %c0_6 = arith.constant 0 : index
    %6 = vector.load %arg14[%c0_5, %c0_6] : memref<20x256xf32, #tpu.memory_space<vmem>>, vector<20x256xf32>
    tpu.vector_store %arg14[%c0_5, %c0_6], %5 {strides = array<i32>} : memref<20x256xf32, #tpu.memory_space<vmem>>, vector<20x256xf32>,
    %cst_7 = arith.constant 0.000000e+00 : f32
    %7 = vector.broadcast %cst_7 : f32 to vector<1x64xf32>
    %c0_i32 = arith.constant 0 : i32
    %c2_i32 = arith.constant 2 : i32
    %8 = arith.addi %c0_i32, %c2_i32 : i32
    %c1_i32 = arith.constant 1 : i32
    %9:2 = scf.for %arg18 = %c0_i32 to %8 step %c1_i32 iter_args(%arg19 = %7, %arg20 = %7) -> (vector<1x64xf32>, vector<1x64xf32>)  : i32 {
      %c8_i32 = arith.constant 8 : i32
      %382 = arith.muli %arg18, %c8_i32 : i32
      %383 = tpu.assume_multiple %382, 8 : i32
      %384 = arith.index_cast %383 : i32 to index
      %c0_122 = arith.constant 0 : index
      %385 = vector.load %arg14[%384, %c0_122] : memref<20x256xf32, #tpu.memory_space<vmem>>, vector<8x256xf32>
      %386 = vector.extract_strided_slice %385 {offsets = [0, 0], sizes = [1, 256], strides = [1, 1]} : vector<8x256xf32> to vector<1x256xf32>
      %387 = arith.truncf %arg19 : vector<1x64xf32> to vector<1x64xbf16>
      %c0_123 = arith.constant 0 : index
      %c0_124 = arith.constant 0 : index
      %388 = vector.load %arg2[%c0_123, %c0_124] : memref<64x256xbf16, #tpu.memory_space<vmem>>, vector<64x256xbf16>
      %cst_125 = arith.constant dense<0.000000e+00> : vector<1x256xf32>
      %389 = tpu.matmul %387, %388, %cst_125 {dimension_numbers = #tpu.dot_dimension_numbers<[1], [0], [0], [1], [0, 0, 1, 1], [], []>} : vector<1x64xbf16>, vector<64x256xbf16>, vector<1x256xf32> -> vector<1x256xf32>
      %390 = arith.addf %386, %389 : vector<1x256xf32>
      %391 = vector.extract_strided_slice %390 {offsets = [0, 0], sizes = [1, 192], strides = [1, 1]} : vector<1x256xf32> to vector<1x192xf32>
      %392 = arith.negf %391 : vector<1x192xf32>
      %393 = math.exp %392 : vector<1x192xf32>
      %cst_126 = arith.constant 1.000000e+00 : f32
      %394 = vector.broadcast %cst_126 : f32 to vector<1x192xf32>
      %395 = arith.addf %394, %393 : vector<1x192xf32>
      %396 = arith.divf %394, %395 : vector<1x192xf32>
      %397 = vector.extract_strided_slice %396 {offsets = [0, 0], sizes = [1, 64], strides = [1, 1]} : vector<1x192xf32> to vector<1x64xf32>
      %398 = vector.extract_strided_slice %396 {offsets = [0, 64], sizes = [1, 64], strides = [1, 1]} : vector<1x192xf32> to vector<1x64xf32>
      %399 = vector.extract_strided_slice %396 {offsets = [0, 128], sizes = [1, 64], strides = [1, 1]} : vector<1x192xf32> to vector<1x64xf32>
      %400 = vector.extract_strided_slice %390 {offsets = [0, 192], sizes = [1, 64], strides = [1, 1]} : vector<1x256xf32> to vector<1x64xf32>
      %401 = math.tanh %400 : vector<1x64xf32>
      %402 = arith.mulf %398, %arg20 : vector<1x64xf32>
      %403 = arith.mulf %397, %401 : vector<1x64xf32>
      %404 = arith.addf %402, %403 : vector<1x64xf32>
      %405 = math.tanh %404 : vector<1x64xf32>
      %406 = arith.mulf %399, %405 : vector<1x64xf32>
      %407 = vector.extract_strided_slice %385 {offsets = [1, 0], sizes = [1, 256], strides = [1, 1]} : vector<8x256xf32> to vector<1x256xf32>
      %408 = arith.truncf %406 : vector<1x64xf32> to vector<1x64xbf16>
      %c0_127 = arith.constant 0 : index
      %c0_128 = arith.constant 0 : index
      %409 = vector.load %arg2[%c0_127, %c0_128] : memref<64x256xbf16, #tpu.memory_space<vmem>>, vector<64x256xbf16>
      %cst_129 = arith.constant dense<0.000000e+00> : vector<1x256xf32>
      %410 = tpu.matmul %408, %409, %cst_129 {dimension_numbers = #tpu.dot_dimension_numbers<[1], [0], [0], [1], [0, 0, 1, 1], [], []>} : vector<1x64xbf16>, vector<64x256xbf16>, vector<1x256xf32> -> vector<1x256xf32>
      %411 = arith.addf %407, %410 : vector<1x256xf32>
      %412 = vector.extract_strided_slice %411 {offsets = [0, 0], sizes = [1, 192], strides = [1, 1]} : vector<1x256xf32> to vector<1x192xf32>
      %413 = arith.negf %412 : vector<1x192xf32>
      %414 = math.exp %413 : vector<1x192xf32>
      %cst_130 = arith.constant 1.000000e+00 : f32
      %415 = vector.broadcast %cst_130 : f32 to vector<1x192xf32>
      %416 = arith.addf %415, %414 : vector<1x192xf32>
      %417 = arith.divf %415, %416 : vector<1x192xf32>
      %418 = vector.extract_strided_slice %417 {offsets = [0, 0], sizes = [1, 64], strides = [1, 1]} : vector<1x192xf32> to vector<1x64xf32>
      %419 = vector.extract_strided_slice %417 {offsets = [0, 64], sizes = [1, 64], strides = [1, 1]} : vector<1x192xf32> to vector<1x64xf32>
      %420 = vector.extract_strided_slice %417 {offsets = [0, 128], sizes = [1, 64], strides = [1, 1]} : vector<1x192xf32> to vector<1x64xf32>
      %421 = vector.extract_strided_slice %411 {offsets = [0, 192], sizes = [1, 64], strides = [1, 1]} : vector<1x256xf32> to vector<1x64xf32>
      %422 = math.tanh %421 : vector<1x64xf32>
      %423 = arith.mulf %419, %404 : vector<1x64xf32>
      %424 = arith.mulf %418, %422 : vector<1x64xf32>
      %425 = arith.addf %423, %424 : vector<1x64xf32>
      %426 = math.tanh %425 : vector<1x64xf32>
      %427 = arith.mulf %420, %426 : vector<1x64xf32>
      %428 = vector.extract_strided_slice %385 {offsets = [2, 0], sizes = [1, 256], strides = [1, 1]} : vector<8x256xf32> to vector<1x256xf32>
      %429 = arith.truncf %427 : vector<1x64xf32> to vector<1x64xbf16>
      %c0_131 = arith.constant 0 : index
      %c0_132 = arith.constant 0 : index
      %430 = vector.load %arg2[%c0_131, %c0_132] : memref<64x256xbf16, #tpu.memory_space<vmem>>, vector<64x256xbf16>
      %cst_133 = arith.constant dense<0.000000e+00> : vector<1x256xf32>
      %431 = tpu.matmul %429, %430, %cst_133 {dimension_numbers = #tpu.dot_dimension_numbers<[1], [0], [0], [1], [0, 0, 1, 1], [], []>} : vector<1x64xbf16>, vector<64x256xbf16>, vector<1x256xf32> -> vector<1x256xf32>
      %432 = arith.addf %428, %431 : vector<1x256xf32>
      %433 = vector.extract_strided_slice %432 {offsets = [0, 0], sizes = [1, 192], strides = [1, 1]} : vector<1x256xf32> to vector<1x192xf32>
      %434 = arith.negf %433 : vector<1x192xf32>
      %435 = math.exp %434 : vector<1x192xf32>
      %cst_134 = arith.constant 1.000000e+00 : f32
      %436 = vector.broadcast %cst_134 : f32 to vector<1x192xf32>
      %437 = arith.addf %436, %435 : vector<1x192xf32>
      %438 = arith.divf %436, %437 : vector<1x192xf32>
      %439 = vector.extract_strided_slice %438 {offsets = [0, 0], sizes = [1, 64], strides = [1, 1]} : vector<1x192xf32> to vector<1x64xf32>
      %440 = vector.extract_strided_slice %438 {offsets = [0, 64], sizes = [1, 64], strides = [1, 1]} : vector<1x192xf32> to vector<1x64xf32>
      %441 = vector.extract_strided_slice %438 {offsets = [0, 128], sizes = [1, 64], strides = [1, 1]} : vector<1x192xf32> to vector<1x64xf32>
      %442 = vector.extract_strided_slice %432 {offsets = [0, 192], sizes = [1, 64], strides = [1, 1]} : vector<1x256xf32> to vector<1x64xf32>
      %443 = math.tanh %442 : vector<1x64xf32>
      %444 = arith.mulf %440, %425 : vector<1x64xf32>
      %445 = arith.mulf %439, %443 : vector<1x64xf32>
      %446 = arith.addf %444, %445 : vector<1x64xf32>
      %447 = math.tanh %446 : vector<1x64xf32>
      %448 = arith.mulf %441, %447 : vector<1x64xf32>
      %449 = vector.extract_strided_slice %385 {offsets = [3, 0], sizes = [1, 256], strides = [1, 1]} : vector<8x256xf32> to vector<1x256xf32>
      %450 = arith.truncf %448 : vector<1x64xf32> to vector<1x64xbf16>
      %c0_135 = arith.constant 0 : index
      %c0_136 = arith.constant 0 : index
      %451 = vector.load %arg2[%c0_135, %c0_136] : memref<64x256xbf16, #tpu.memory_space<vmem>>, vector<64x256xbf16>
      %cst_137 = arith.constant dense<0.000000e+00> : vector<1x256xf32>
      %452 = tpu.matmul %450, %451, %cst_137 {dimension_numbers = #tpu.dot_dimension_numbers<[1], [0], [0], [1], [0, 0, 1, 1], [], []>} : vector<1x64xbf16>, vector<64x256xbf16>, vector<1x256xf32> -> vector<1x256xf32>
      %453 = arith.addf %449, %452 : vector<1x256xf32>
      %454 = vector.extract_strided_slice %453 {offsets = [0, 0], sizes = [1, 192], strides = [1, 1]} : vector<1x256xf32> to vector<1x192xf32>
      %455 = arith.negf %454 : vector<1x192xf32>
      %456 = math.exp %455 : vector<1x192xf32>
      %cst_138 = arith.constant 1.000000e+00 : f32
      %457 = vector.broadcast %cst_138 : f32 to vector<1x192xf32>
      %458 = arith.addf %457, %456 : vector<1x192xf32>
      %459 = arith.divf %457, %458 : vector<1x192xf32>
      %460 = vector.extract_strided_slice %459 {offsets = [0, 0], sizes = [1, 64], strides = [1, 1]} : vector<1x192xf32> to vector<1x64xf32>
      %461 = vector.extract_strided_slice %459 {offsets = [0, 64], sizes = [1, 64], strides = [1, 1]} : vector<1x192xf32> to vector<1x64xf32>
      %462 = vector.extract_strided_slice %459 {offsets = [0, 128], sizes = [1, 64], strides = [1, 1]} : vector<1x192xf32> to vector<1x64xf32>
      %463 = vector.extract_strided_slice %453 {offsets = [0, 192], sizes = [1, 64], strides = [1, 1]} : vector<1x256xf32> to vector<1x64xf32>
      %464 = math.tanh %463 : vector<1x64xf32>
      %465 = arith.mulf %461, %446 : vector<1x64xf32>
      %466 = arith.mulf %460, %464 : vector<1x64xf32>
      %467 = arith.addf %465, %466 : vector<1x64xf32>
      %468 = math.tanh %467 : vector<1x64xf32>
      %469 = arith.mulf %462, %468 : vector<1x64xf32>
      %470 = vector.extract_strided_slice %385 {offsets = [4, 0], sizes = [1, 256], strides = [1, 1]} : vector<8x256xf32> to vector<1x256xf32>
      %471 = arith.truncf %469 : vector<1x64xf32> to vector<1x64xbf16>
      %c0_139 = arith.constant 0 : index
      %c0_140 = arith.constant 0 : index
      %472 = vector.load %arg2[%c0_139, %c0_140] : memref<64x256xbf16, #tpu.memory_space<vmem>>, vector<64x256xbf16>
      %cst_141 = arith.constant dense<0.000000e+00> : vector<1x256xf32>
      %473 = tpu.matmul %471, %472, %cst_141 {dimension_numbers = #tpu.dot_dimension_numbers<[1], [0], [0], [1], [0, 0, 1, 1], [], []>} : vector<1x64xbf16>, vector<64x256xbf16>, vector<1x256xf32> -> vector<1x256xf32>
      %474 = arith.addf %470, %473 : vector<1x256xf32>
      %475 = vector.extract_strided_slice %474 {offsets = [0, 0], sizes = [1, 192], strides = [1, 1]} : vector<1x256xf32> to vector<1x192xf32>
      %476 = arith.negf %475 : vector<1x192xf32>
      %477 = math.exp %476 : vector<1x192xf32>
      %cst_142 = arith.constant 1.000000e+00 : f32
      %478 = vector.broadcast %cst_142 : f32 to vector<1x192xf32>
      %479 = arith.addf %478, %477 : vector<1x192xf32>
      %480 = arith.divf %478, %479 : vector<1x192xf32>
      %481 = vector.extract_strided_slice %480 {offsets = [0, 0], sizes = [1, 64], strides = [1, 1]} : vector<1x192xf32> to vector<1x64xf32>
      %482 = vector.extract_strided_slice %480 {offsets = [0, 64], sizes = [1, 64], strides = [1, 1]} : vector<1x192xf32> to vector<1x64xf32>
      %483 = vector.extract_strided_slice %480 {offsets = [0, 128], sizes = [1, 64], strides = [1, 1]} : vector<1x192xf32> to vector<1x64xf32>
      %484 = vector.extract_strided_slice %474 {offsets = [0, 192], sizes = [1, 64], strides = [1, 1]} : vector<1x256xf32> to vector<1x64xf32>
      %485 = math.tanh %484 : vector<1x64xf32>
      %486 = arith.mulf %482, %467 : vector<1x64xf32>
      %487 = arith.mulf %481, %485 : vector<1x64xf32>
      %488 = arith.addf %486, %487 : vector<1x64xf32>
      %489 = math.tanh %488 : vector<1x64xf32>
      %490 = arith.mulf %483, %489 : vector<1x64xf32>
      %491 = vector.extract_strided_slice %385 {offsets = [5, 0], sizes = [1, 256], strides = [1, 1]} : vector<8x256xf32> to vector<1x256xf32>
      %492 = arith.truncf %490 : vector<1x64xf32> to vector<1x64xbf16>
      %c0_143 = arith.constant 0 : index
      %c0_144 = arith.constant 0 : index
      %493 = vector.load %arg2[%c0_143, %c0_144] : memref<64x256xbf16, #tpu.memory_space<vmem>>, vector<64x256xbf16>
      %cst_145 = arith.constant dense<0.000000e+00> : vector<1x256xf32>
      %494 = tpu.matmul %492, %493, %cst_145 {dimension_numbers = #tpu.dot_dimension_numbers<[1], [0], [0], [1], [0, 0, 1, 1], [], []>} : vector<1x64xbf16>, vector<64x256xbf16>, vector<1x256xf32> -> vector<1x256xf32>
      %495 = arith.addf %491, %494 : vector<1x256xf32>
      %496 = vector.extract_strided_slice %495 {offsets = [0, 0], sizes = [1, 192], strides = [1, 1]} : vector<1x256xf32> to vector<1x192xf32>
      %497 = arith.negf %496 : vector<1x192xf32>
      %498 = math.exp %497 : vector<1x192xf32>
      %cst_146 = arith.constant 1.000000e+00 : f32
      %499 = vector.broadcast %cst_146 : f32 to vector<1x192xf32>
      %500 = arith.addf %499, %498 : vector<1x192xf32>
      %501 = arith.divf %499, %500 : vector<1x192xf32>
      %502 = vector.extract_strided_slice %501 {offsets = [0, 0], sizes = [1, 64], strides = [1, 1]} : vector<1x192xf32> to vector<1x64xf32>
      %503 = vector.extract_strided_slice %501 {offsets = [0, 64], sizes = [1, 64], strides = [1, 1]} : vector<1x192xf32> to vector<1x64xf32>
      %504 = vector.extract_strided_slice %501 {offsets = [0, 128], sizes = [1, 64], strides = [1, 1]} : vector<1x192xf32> to vector<1x64xf32>
      %505 = vector.extract_strided_slice %495 {offsets = [0, 192], sizes = [1, 64], strides = [1, 1]} : vector<1x256xf32> to vector<1x64xf32>
      %506 = math.tanh %505 : vector<1x64xf32>
      %507 = arith.mulf %503, %488 : vector<1x64xf32>
      %508 = arith.mulf %502, %506 : vector<1x64xf32>
      %509 = arith.addf %507, %508 : vector<1x64xf32>
      %510 = math.tanh %509 : vector<1x64xf32>
      %511 = arith.mulf %504, %510 : vector<1x64xf32>
      %512 = vector.extract_strided_slice %385 {offsets = [6, 0], sizes = [1, 256], strides = [1, 1]} : vector<8x256xf32> to vector<1x256xf32>
      %513 = arith.truncf %511 : vector<1x64xf32> to vector<1x64xbf16>
      %c0_147 = arith.constant 0 : index
      %c0_148 = arith.constant 0 : index
      %514 = vector.load %arg2[%c0_147, %c0_148] : memref<64x256xbf16, #tpu.memory_space<vmem>>, vector<64x256xbf16>
      %cst_149 = arith.constant dense<0.000000e+00> : vector<1x256xf32>
      %515 = tpu.matmul %513, %514, %cst_149 {dimension_numbers = #tpu.dot_dimension_numbers<[1], [0], [0], [1], [0, 0, 1, 1], [], []>} : vector<1x64xbf16>, vector<64x256xbf16>, vector<1x256xf32> -> vector<1x256xf32>
      %516 = arith.addf %512, %515 : vector<1x256xf32>
      %517 = vector.extract_strided_slice %516 {offsets = [0, 0], sizes = [1, 192], strides = [1, 1]} : vector<1x256xf32> to vector<1x192xf32>
      %518 = arith.negf %517 : vector<1x192xf32>
      %519 = math.exp %518 : vector<1x192xf32>
      %cst_150 = arith.constant 1.000000e+00 : f32
      %520 = vector.broadcast %cst_150 : f32 to vector<1x192xf32>
      %521 = arith.addf %520, %519 : vector<1x192xf32>
      %522 = arith.divf %520, %521 : vector<1x192xf32>
      %523 = vector.extract_strided_slice %522 {offsets = [0, 0], sizes = [1, 64], strides = [1, 1]} : vector<1x192xf32> to vector<1x64xf32>
      %524 = vector.extract_strided_slice %522 {offsets = [0, 64], sizes = [1, 64], strides = [1, 1]} : vector<1x192xf32> to vector<1x64xf32>
      %525 = vector.extract_strided_slice %522 {offsets = [0, 128], sizes = [1, 64], strides = [1, 1]} : vector<1x192xf32> to vector<1x64xf32>
      %526 = vector.extract_strided_slice %516 {offsets = [0, 192], sizes = [1, 64], strides = [1, 1]} : vector<1x256xf32> to vector<1x64xf32>
      %527 = math.tanh %526 : vector<1x64xf32>
      %528 = arith.mulf %524, %509 : vector<1x64xf32>
      %529 = arith.mulf %523, %527 : vector<1x64xf32>
      %530 = arith.addf %528, %529 : vector<1x64xf32>
      %531 = math.tanh %530 : vector<1x64xf32>
      %532 = arith.mulf %525, %531 : vector<1x64xf32>
      %533 = vector.extract_strided_slice %385 {offsets = [7, 0], sizes = [1, 256], strides = [1, 1]} : vector<8x256xf32> to vector<1x256xf32>
      %534 = arith.truncf %532 : vector<1x64xf32> to vector<1x64xbf16>
      %c0_151 = arith.constant 0 : index
      %c0_152 = arith.constant 0 : index
      %535 = vector.load %arg2[%c0_151, %c0_152] : memref<64x256xbf16, #tpu.memory_space<vmem>>, vector<64x256xbf16>
      %cst_153 = arith.constant dense<0.000000e+00> : vector<1x256xf32>
      %536 = tpu.matmul %534, %535, %cst_153 {dimension_numbers = #tpu.dot_dimension_numbers<[1], [0], [0], [1], [0, 0, 1, 1], [], []>} : vector<1x64xbf16>, vector<64x256xbf16>, vector<1x256xf32> -> vector<1x256xf32>
      %537 = arith.addf %533, %536 : vector<1x256xf32>
      %538 = vector.extract_strided_slice %537 {offsets = [0, 0], sizes = [1, 192], strides = [1, 1]} : vector<1x256xf32> to vector<1x192xf32>
      %539 = arith.negf %538 : vector<1x192xf32>
      %540 = math.exp %539 : vector<1x192xf32>
      %cst_154 = arith.constant 1.000000e+00 : f32
      %541 = vector.broadcast %cst_154 : f32 to vector<1x192xf32>
      %542 = arith.addf %541, %540 : vector<1x192xf32>
      %543 = arith.divf %541, %542 : vector<1x192xf32>
      %544 = vector.extract_strided_slice %543 {offsets = [0, 0], sizes = [1, 64], strides = [1, 1]} : vector<1x192xf32> to vector<1x64xf32>
      %545 = vector.extract_strided_slice %543 {offsets = [0, 64], sizes = [1, 64], strides = [1, 1]} : vector<1x192xf32> to vector<1x64xf32>
      %546 = vector.extract_strided_slice %543 {offsets = [0, 128], sizes = [1, 64], strides = [1, 1]} : vector<1x192xf32> to vector<1x64xf32>
      %547 = vector.extract_strided_slice %537 {offsets = [0, 192], sizes = [1, 64], strides = [1, 1]} : vector<1x256xf32> to vector<1x64xf32>
      %548 = math.tanh %547 : vector<1x64xf32>
      %549 = arith.mulf %545, %530 : vector<1x64xf32>
      %550 = arith.mulf %544, %548 : vector<1x64xf32>
      %551 = arith.addf %549, %550 : vector<1x64xf32>
      %552 = math.tanh %551 : vector<1x64xf32>
      %553 = arith.mulf %546, %552 : vector<1x64xf32>
      %554 = tpu.concatenate %406, %427, %448, %469, %490, %511, %532, %553 in 0 : vector<1x64xf32>, vector<1x64xf32>, vector<1x64xf32>, vector<1x64xf32>, vector<1x64xf32>, vector<1x64xf32>, vector<1x64xf32>, vector<1x64xf32> -> vector<8x64xf32>
      %555 = arith.truncf %554 : vector<8x64xf32> to vector<8x64xbf16>
      %556 = arith.index_cast %383 : i32 to index
      %c0_155 = arith.constant 0 : index
      %557 = vector.load %arg15[%556, %c0_155] : memref<20x64xbf16, #tpu.memory_space<vmem>>, vector<8x64xbf16>
      tpu.vector_store %arg15[%556, %c0_155], %555 {strides = array<i32>} : memref<20x64xbf16, #tpu.memory_space<vmem>>, vector<8x64xbf16>,
      scf.yield %553, %551 : vector<1x64xf32>, vector<1x64xf32>
    }
    %c2_i32_8 = arith.constant 2 : i32
    %c16 = arith.constant 16 : index
    %c0_9 = arith.constant 0 : index
    %10 = vector.load %arg14[%c16, %c0_9] : memref<20x256xf32, #tpu.memory_space<vmem>>, vector<4x256xf32>
    %11 = vector.extract_strided_slice %10 {offsets = [0, 0], sizes = [1, 256], strides = [1, 1]} : vector<4x256xf32> to vector<1x256xf32>
    %12 = arith.truncf %9#0 : vector<1x64xf32> to vector<1x64xbf16>
    %c0_10 = arith.constant 0 : index
    %c0_11 = arith.constant 0 : index
    %13 = vector.load %arg2[%c0_10, %c0_11] : memref<64x256xbf16, #tpu.memory_space<vmem>>, vector<64x256xbf16>
    %cst_12 = arith.constant dense<0.000000e+00> : vector<1x256xf32>
    %14 = tpu.matmul %12, %13, %cst_12 {dimension_numbers = #tpu.dot_dimension_numbers<[1], [0], [0], [1], [0, 0, 1, 1], [], []>} : vector<1x64xbf16>, vector<64x256xbf16>, vector<1x256xf32> -> vector<1x256xf32>
    %15 = arith.addf %11, %14 : vector<1x256xf32>
    %16 = vector.extract_strided_slice %15 {offsets = [0, 0], sizes = [1, 192], strides = [1, 1]} : vector<1x256xf32> to vector<1x192xf32>
    %17 = arith.negf %16 : vector<1x192xf32>
    %18 = math.exp %17 : vector<1x192xf32>
    %cst_13 = arith.constant 1.000000e+00 : f32
    %19 = vector.broadcast %cst_13 : f32 to vector<1x192xf32>
    %20 = arith.addf %19, %18 : vector<1x192xf32>
    %21 = arith.divf %19, %20 : vector<1x192xf32>
    %22 = vector.extract_strided_slice %21 {offsets = [0, 0], sizes = [1, 64], strides = [1, 1]} : vector<1x192xf32> to vector<1x64xf32>
    %23 = vector.extract_strided_slice %21 {offsets = [0, 64], sizes = [1, 64], strides = [1, 1]} : vector<1x192xf32> to vector<1x64xf32>
    %24 = vector.extract_strided_slice %21 {offsets = [0, 128], sizes = [1, 64], strides = [1, 1]} : vector<1x192xf32> to vector<1x64xf32>
    %25 = vector.extract_strided_slice %15 {offsets = [0, 192], sizes = [1, 64], strides = [1, 1]} : vector<1x256xf32> to vector<1x64xf32>
    %26 = math.tanh %25 : vector<1x64xf32>
    %27 = arith.mulf %23, %9#1 : vector<1x64xf32>
    %28 = arith.mulf %22, %26 : vector<1x64xf32>
    %29 = arith.addf %27, %28 : vector<1x64xf32>
    %30 = math.tanh %29 : vector<1x64xf32>
    %31 = arith.mulf %24, %30 : vector<1x64xf32>
    %32 = vector.extract_strided_slice %10 {offsets = [1, 0], sizes = [1, 256], strides = [1, 1]} : vector<4x256xf32> to vector<1x256xf32>
    %33 = arith.truncf %31 : vector<1x64xf32> to vector<1x64xbf16>
    %c0_14 = arith.constant 0 : index
    %c0_15 = arith.constant 0 : index
    %34 = vector.load %arg2[%c0_14, %c0_15] : memref<64x256xbf16, #tpu.memory_space<vmem>>, vector<64x256xbf16>
    %cst_16 = arith.constant dense<0.000000e+00> : vector<1x256xf32>
    %35 = tpu.matmul %33, %34, %cst_16 {dimension_numbers = #tpu.dot_dimension_numbers<[1], [0], [0], [1], [0, 0, 1, 1], [], []>} : vector<1x64xbf16>, vector<64x256xbf16>, vector<1x256xf32> -> vector<1x256xf32>
    %36 = arith.addf %32, %35 : vector<1x256xf32>
    %37 = vector.extract_strided_slice %36 {offsets = [0, 0], sizes = [1, 192], strides = [1, 1]} : vector<1x256xf32> to vector<1x192xf32>
    %38 = arith.negf %37 : vector<1x192xf32>
    %39 = math.exp %38 : vector<1x192xf32>
    %cst_17 = arith.constant 1.000000e+00 : f32
    %40 = vector.broadcast %cst_17 : f32 to vector<1x192xf32>
    %41 = arith.addf %40, %39 : vector<1x192xf32>
    %42 = arith.divf %40, %41 : vector<1x192xf32>
    %43 = vector.extract_strided_slice %42 {offsets = [0, 0], sizes = [1, 64], strides = [1, 1]} : vector<1x192xf32> to vector<1x64xf32>
    %44 = vector.extract_strided_slice %42 {offsets = [0, 64], sizes = [1, 64], strides = [1, 1]} : vector<1x192xf32> to vector<1x64xf32>
    %45 = vector.extract_strided_slice %42 {offsets = [0, 128], sizes = [1, 64], strides = [1, 1]} : vector<1x192xf32> to vector<1x64xf32>
    %46 = vector.extract_strided_slice %36 {offsets = [0, 192], sizes = [1, 64], strides = [1, 1]} : vector<1x256xf32> to vector<1x64xf32>
    %47 = math.tanh %46 : vector<1x64xf32>
    %48 = arith.mulf %44, %29 : vector<1x64xf32>
    %49 = arith.mulf %43, %47 : vector<1x64xf32>
    %50 = arith.addf %48, %49 : vector<1x64xf32>
    %51 = math.tanh %50 : vector<1x64xf32>
    %52 = arith.mulf %45, %51 : vector<1x64xf32>
    %53 = vector.extract_strided_slice %10 {offsets = [2, 0], sizes = [1, 256], strides = [1, 1]} : vector<4x256xf32> to vector<1x256xf32>
    %54 = arith.truncf %52 : vector<1x64xf32> to vector<1x64xbf16>
    %c0_18 = arith.constant 0 : index
    %c0_19 = arith.constant 0 : index
    %55 = vector.load %arg2[%c0_18, %c0_19] : memref<64x256xbf16, #tpu.memory_space<vmem>>, vector<64x256xbf16>
    %cst_20 = arith.constant dense<0.000000e+00> : vector<1x256xf32>
    %56 = tpu.matmul %54, %55, %cst_20 {dimension_numbers = #tpu.dot_dimension_numbers<[1], [0], [0], [1], [0, 0, 1, 1], [], []>} : vector<1x64xbf16>, vector<64x256xbf16>, vector<1x256xf32> -> vector<1x256xf32>
    %57 = arith.addf %53, %56 : vector<1x256xf32>
    %58 = vector.extract_strided_slice %57 {offsets = [0, 0], sizes = [1, 192], strides = [1, 1]} : vector<1x256xf32> to vector<1x192xf32>
    %59 = arith.negf %58 : vector<1x192xf32>
    %60 = math.exp %59 : vector<1x192xf32>
    %cst_21 = arith.constant 1.000000e+00 : f32
    %61 = vector.broadcast %cst_21 : f32 to vector<1x192xf32>
    %62 = arith.addf %61, %60 : vector<1x192xf32>
    %63 = arith.divf %61, %62 : vector<1x192xf32>
    %64 = vector.extract_strided_slice %63 {offsets = [0, 0], sizes = [1, 64], strides = [1, 1]} : vector<1x192xf32> to vector<1x64xf32>
    %65 = vector.extract_strided_slice %63 {offsets = [0, 64], sizes = [1, 64], strides = [1, 1]} : vector<1x192xf32> to vector<1x64xf32>
    %66 = vector.extract_strided_slice %63 {offsets = [0, 128], sizes = [1, 64], strides = [1, 1]} : vector<1x192xf32> to vector<1x64xf32>
    %67 = vector.extract_strided_slice %57 {offsets = [0, 192], sizes = [1, 64], strides = [1, 1]} : vector<1x256xf32> to vector<1x64xf32>
    %68 = math.tanh %67 : vector<1x64xf32>
    %69 = arith.mulf %65, %50 : vector<1x64xf32>
    %70 = arith.mulf %64, %68 : vector<1x64xf32>
    %71 = arith.addf %69, %70 : vector<1x64xf32>
    %72 = math.tanh %71 : vector<1x64xf32>
    %73 = arith.mulf %66, %72 : vector<1x64xf32>
    %74 = vector.extract_strided_slice %10 {offsets = [3, 0], sizes = [1, 256], strides = [1, 1]} : vector<4x256xf32> to vector<1x256xf32>
    %75 = arith.truncf %73 : vector<1x64xf32> to vector<1x64xbf16>
    %c0_22 = arith.constant 0 : index
    %c0_23 = arith.constant 0 : index
    %76 = vector.load %arg2[%c0_22, %c0_23] : memref<64x256xbf16, #tpu.memory_space<vmem>>, vector<64x256xbf16>
    %cst_24 = arith.constant dense<0.000000e+00> : vector<1x256xf32>
    %77 = tpu.matmul %75, %76, %cst_24 {dimension_numbers = #tpu.dot_dimension_numbers<[1], [0], [0], [1], [0, 0, 1, 1], [], []>} : vector<1x64xbf16>, vector<64x256xbf16>, vector<1x256xf32> -> vector<1x256xf32>
    %78 = arith.addf %74, %77 : vector<1x256xf32>
    %79 = vector.extract_strided_slice %78 {offsets = [0, 0], sizes = [1, 192], strides = [1, 1]} : vector<1x256xf32> to vector<1x192xf32>
    %80 = arith.negf %79 : vector<1x192xf32>
    %81 = math.exp %80 : vector<1x192xf32>
    %cst_25 = arith.constant 1.000000e+00 : f32
    %82 = vector.broadcast %cst_25 : f32 to vector<1x192xf32>
    %83 = arith.addf %82, %81 : vector<1x192xf32>
    %84 = arith.divf %82, %83 : vector<1x192xf32>
    %85 = vector.extract_strided_slice %84 {offsets = [0, 0], sizes = [1, 64], strides = [1, 1]} : vector<1x192xf32> to vector<1x64xf32>
    %86 = vector.extract_strided_slice %84 {offsets = [0, 64], sizes = [1, 64], strides = [1, 1]} : vector<1x192xf32> to vector<1x64xf32>
    %87 = vector.extract_strided_slice %84 {offsets = [0, 128], sizes = [1, 64], strides = [1, 1]} : vector<1x192xf32> to vector<1x64xf32>
    %88 = vector.extract_strided_slice %78 {offsets = [0, 192], sizes = [1, 64], strides = [1, 1]} : vector<1x256xf32> to vector<1x64xf32>
    %89 = math.tanh %88 : vector<1x64xf32>
    %90 = arith.mulf %86, %71 : vector<1x64xf32>
    %91 = arith.mulf %85, %89 : vector<1x64xf32>
    %92 = arith.addf %90, %91 : vector<1x64xf32>
    %93 = math.tanh %92 : vector<1x64xf32>
    %94 = arith.mulf %87, %93 : vector<1x64xf32>
    %95 = tpu.concatenate %31, %52, %73, %94 in 0 : vector<1x64xf32>, vector<1x64xf32>, vector<1x64xf32>, vector<1x64xf32> -> vector<4x64xf32>
    %96 = arith.truncf %95 : vector<4x64xf32> to vector<4x64xbf16>
    %c16_26 = arith.constant 16 : index
    %c0_27 = arith.constant 0 : index
    %97 = vector.load %arg15[%c16_26, %c0_27] : memref<20x64xbf16, #tpu.memory_space<vmem>>, vector<4x64xbf16>
    tpu.vector_store %arg15[%c16_26, %c0_27], %96 {strides = array<i32>} : memref<20x64xbf16, #tpu.memory_space<vmem>>, vector<4x64xbf16>,
    %c0_28 = arith.constant 0 : index
    %c0_29 = arith.constant 0 : index
    %98 = vector.load %arg15[%c0_28, %c0_29] : memref<20x64xbf16, #tpu.memory_space<vmem>>, vector<20x64xbf16>
    %c0_30 = arith.constant 0 : index
    %c0_31 = arith.constant 0 : index
    %99 = vector.load %arg4[%c0_30, %c0_31] : memref<64x256xbf16, #tpu.memory_space<vmem>>, vector<64x256xbf16>
    %cst_32 = arith.constant dense<0.000000e+00> : vector<20x256xf32>
    %100 = tpu.matmul %98, %99, %cst_32 {dimension_numbers = #tpu.dot_dimension_numbers<[1], [0], [0], [1], [0, 0, 1, 1], [], []>} : vector<20x64xbf16>, vector<64x256xbf16>, vector<20x256xf32> -> vector<20x256xf32>
    %c0_33 = arith.constant 0 : index
    %c0_34 = arith.constant 0 : index
    %101 = vector.load %arg6[%c0_33, %c0_34] : memref<1x256xf32, #tpu.memory_space<vmem>>, vector<1x256xf32>
    %102 = vector.broadcast %101 : vector<1x256xf32> to vector<20x256xf32>
    %103 = arith.addf %100, %102 : vector<20x256xf32>
    %c0_35 = arith.constant 0 : index
    %c0_36 = arith.constant 0 : index
    %104 = vector.load %arg14[%c0_35, %c0_36] : memref<20x256xf32, #tpu.memory_space<vmem>>, vector<20x256xf32>
    tpu.vector_store %arg14[%c0_35, %c0_36], %103 {strides = array<i32>} : memref<20x256xf32, #tpu.memory_space<vmem>>, vector<20x256xf32>,
    %cst_37 = arith.constant 0.000000e+00 : f32
    %105 = vector.broadcast %cst_37 : f32 to vector<1x64xf32>
    %c0_i32_38 = arith.constant 0 : i32
    %c2_i32_39 = arith.constant 2 : i32
    %106 = arith.addi %c0_i32_38, %c2_i32_39 : i32
    %c1_i32_40 = arith.constant 1 : i32
    %107:2 = scf.for %arg18 = %c0_i32_38 to %106 step %c1_i32_40 iter_args(%arg19 = %105, %arg20 = %105) -> (vector<1x64xf32>, vector<1x64xf32>)  : i32 {
      %c8_i32 = arith.constant 8 : i32
      %382 = arith.muli %arg18, %c8_i32 : i32
      %383 = tpu.assume_multiple %382, 8 : i32
      %384 = arith.index_cast %383 : i32 to index
      %c0_122 = arith.constant 0 : index
      %385 = vector.load %arg14[%384, %c0_122] : memref<20x256xf32, #tpu.memory_space<vmem>>, vector<8x256xf32>
      %386 = vector.extract_strided_slice %385 {offsets = [0, 0], sizes = [1, 256], strides = [1, 1]} : vector<8x256xf32> to vector<1x256xf32>
      %387 = arith.truncf %arg19 : vector<1x64xf32> to vector<1x64xbf16>
      %c0_123 = arith.constant 0 : index
      %c0_124 = arith.constant 0 : index
      %388 = vector.load %arg5[%c0_123, %c0_124] : memref<64x256xbf16, #tpu.memory_space<vmem>>, vector<64x256xbf16>
      %cst_125 = arith.constant dense<0.000000e+00> : vector<1x256xf32>
      %389 = tpu.matmul %387, %388, %cst_125 {dimension_numbers = #tpu.dot_dimension_numbers<[1], [0], [0], [1], [0, 0, 1, 1], [], []>} : vector<1x64xbf16>, vector<64x256xbf16>, vector<1x256xf32> -> vector<1x256xf32>
      %390 = arith.addf %386, %389 : vector<1x256xf32>
      %391 = vector.extract_strided_slice %390 {offsets = [0, 0], sizes = [1, 192], strides = [1, 1]} : vector<1x256xf32> to vector<1x192xf32>
      %392 = arith.negf %391 : vector<1x192xf32>
      %393 = math.exp %392 : vector<1x192xf32>
      %cst_126 = arith.constant 1.000000e+00 : f32
      %394 = vector.broadcast %cst_126 : f32 to vector<1x192xf32>
      %395 = arith.addf %394, %393 : vector<1x192xf32>
      %396 = arith.divf %394, %395 : vector<1x192xf32>
      %397 = vector.extract_strided_slice %396 {offsets = [0, 0], sizes = [1, 64], strides = [1, 1]} : vector<1x192xf32> to vector<1x64xf32>
      %398 = vector.extract_strided_slice %396 {offsets = [0, 64], sizes = [1, 64], strides = [1, 1]} : vector<1x192xf32> to vector<1x64xf32>
      %399 = vector.extract_strided_slice %396 {offsets = [0, 128], sizes = [1, 64], strides = [1, 1]} : vector<1x192xf32> to vector<1x64xf32>
      %400 = vector.extract_strided_slice %390 {offsets = [0, 192], sizes = [1, 64], strides = [1, 1]} : vector<1x256xf32> to vector<1x64xf32>
      %401 = math.tanh %400 : vector<1x64xf32>
      %402 = arith.mulf %398, %arg20 : vector<1x64xf32>
      %403 = arith.mulf %397, %401 : vector<1x64xf32>
      %404 = arith.addf %402, %403 : vector<1x64xf32>
      %405 = math.tanh %404 : vector<1x64xf32>
      %406 = arith.mulf %399, %405 : vector<1x64xf32>
      %407 = vector.extract_strided_slice %385 {offsets = [1, 0], sizes = [1, 256], strides = [1, 1]} : vector<8x256xf32> to vector<1x256xf32>
      %408 = arith.truncf %406 : vector<1x64xf32> to vector<1x64xbf16>
      %c0_127 = arith.constant 0 : index
      %c0_128 = arith.constant 0 : index
      %409 = vector.load %arg5[%c0_127, %c0_128] : memref<64x256xbf16, #tpu.memory_space<vmem>>, vector<64x256xbf16>
      %cst_129 = arith.constant dense<0.000000e+00> : vector<1x256xf32>
      %410 = tpu.matmul %408, %409, %cst_129 {dimension_numbers = #tpu.dot_dimension_numbers<[1], [0], [0], [1], [0, 0, 1, 1], [], []>} : vector<1x64xbf16>, vector<64x256xbf16>, vector<1x256xf32> -> vector<1x256xf32>
      %411 = arith.addf %407, %410 : vector<1x256xf32>
      %412 = vector.extract_strided_slice %411 {offsets = [0, 0], sizes = [1, 192], strides = [1, 1]} : vector<1x256xf32> to vector<1x192xf32>
      %413 = arith.negf %412 : vector<1x192xf32>
      %414 = math.exp %413 : vector<1x192xf32>
      %cst_130 = arith.constant 1.000000e+00 : f32
      %415 = vector.broadcast %cst_130 : f32 to vector<1x192xf32>
      %416 = arith.addf %415, %414 : vector<1x192xf32>
      %417 = arith.divf %415, %416 : vector<1x192xf32>
      %418 = vector.extract_strided_slice %417 {offsets = [0, 0], sizes = [1, 64], strides = [1, 1]} : vector<1x192xf32> to vector<1x64xf32>
      %419 = vector.extract_strided_slice %417 {offsets = [0, 64], sizes = [1, 64], strides = [1, 1]} : vector<1x192xf32> to vector<1x64xf32>
      %420 = vector.extract_strided_slice %417 {offsets = [0, 128], sizes = [1, 64], strides = [1, 1]} : vector<1x192xf32> to vector<1x64xf32>
      %421 = vector.extract_strided_slice %411 {offsets = [0, 192], sizes = [1, 64], strides = [1, 1]} : vector<1x256xf32> to vector<1x64xf32>
      %422 = math.tanh %421 : vector<1x64xf32>
      %423 = arith.mulf %419, %404 : vector<1x64xf32>
      %424 = arith.mulf %418, %422 : vector<1x64xf32>
      %425 = arith.addf %423, %424 : vector<1x64xf32>
      %426 = math.tanh %425 : vector<1x64xf32>
      %427 = arith.mulf %420, %426 : vector<1x64xf32>
      %428 = vector.extract_strided_slice %385 {offsets = [2, 0], sizes = [1, 256], strides = [1, 1]} : vector<8x256xf32> to vector<1x256xf32>
      %429 = arith.truncf %427 : vector<1x64xf32> to vector<1x64xbf16>
      %c0_131 = arith.constant 0 : index
      %c0_132 = arith.constant 0 : index
      %430 = vector.load %arg5[%c0_131, %c0_132] : memref<64x256xbf16, #tpu.memory_space<vmem>>, vector<64x256xbf16>
      %cst_133 = arith.constant dense<0.000000e+00> : vector<1x256xf32>
      %431 = tpu.matmul %429, %430, %cst_133 {dimension_numbers = #tpu.dot_dimension_numbers<[1], [0], [0], [1], [0, 0, 1, 1], [], []>} : vector<1x64xbf16>, vector<64x256xbf16>, vector<1x256xf32> -> vector<1x256xf32>
      %432 = arith.addf %428, %431 : vector<1x256xf32>
      %433 = vector.extract_strided_slice %432 {offsets = [0, 0], sizes = [1, 192], strides = [1, 1]} : vector<1x256xf32> to vector<1x192xf32>
      %434 = arith.negf %433 : vector<1x192xf32>
      %435 = math.exp %434 : vector<1x192xf32>
      %cst_134 = arith.constant 1.000000e+00 : f32
      %436 = vector.broadcast %cst_134 : f32 to vector<1x192xf32>
      %437 = arith.addf %436, %435 : vector<1x192xf32>
      %438 = arith.divf %436, %437 : vector<1x192xf32>
      %439 = vector.extract_strided_slice %438 {offsets = [0, 0], sizes = [1, 64], strides = [1, 1]} : vector<1x192xf32> to vector<1x64xf32>
      %440 = vector.extract_strided_slice %438 {offsets = [0, 64], sizes = [1, 64], strides = [1, 1]} : vector<1x192xf32> to vector<1x64xf32>
      %441 = vector.extract_strided_slice %438 {offsets = [0, 128], sizes = [1, 64], strides = [1, 1]} : vector<1x192xf32> to vector<1x64xf32>
      %442 = vector.extract_strided_slice %432 {offsets = [0, 192], sizes = [1, 64], strides = [1, 1]} : vector<1x256xf32> to vector<1x64xf32>
      %443 = math.tanh %442 : vector<1x64xf32>
      %444 = arith.mulf %440, %425 : vector<1x64xf32>
      %445 = arith.mulf %439, %443 : vector<1x64xf32>
      %446 = arith.addf %444, %445 : vector<1x64xf32>
      %447 = math.tanh %446 : vector<1x64xf32>
      %448 = arith.mulf %441, %447 : vector<1x64xf32>
      %449 = vector.extract_strided_slice %385 {offsets = [3, 0], sizes = [1, 256], strides = [1, 1]} : vector<8x256xf32> to vector<1x256xf32>
      %450 = arith.truncf %448 : vector<1x64xf32> to vector<1x64xbf16>
      %c0_135 = arith.constant 0 : index
      %c0_136 = arith.constant 0 : index
      %451 = vector.load %arg5[%c0_135, %c0_136] : memref<64x256xbf16, #tpu.memory_space<vmem>>, vector<64x256xbf16>
      %cst_137 = arith.constant dense<0.000000e+00> : vector<1x256xf32>
      %452 = tpu.matmul %450, %451, %cst_137 {dimension_numbers = #tpu.dot_dimension_numbers<[1], [0], [0], [1], [0, 0, 1, 1], [], []>} : vector<1x64xbf16>, vector<64x256xbf16>, vector<1x256xf32> -> vector<1x256xf32>
      %453 = arith.addf %449, %452 : vector<1x256xf32>
      %454 = vector.extract_strided_slice %453 {offsets = [0, 0], sizes = [1, 192], strides = [1, 1]} : vector<1x256xf32> to vector<1x192xf32>
      %455 = arith.negf %454 : vector<1x192xf32>
      %456 = math.exp %455 : vector<1x192xf32>
      %cst_138 = arith.constant 1.000000e+00 : f32
      %457 = vector.broadcast %cst_138 : f32 to vector<1x192xf32>
      %458 = arith.addf %457, %456 : vector<1x192xf32>
      %459 = arith.divf %457, %458 : vector<1x192xf32>
      %460 = vector.extract_strided_slice %459 {offsets = [0, 0], sizes = [1, 64], strides = [1, 1]} : vector<1x192xf32> to vector<1x64xf32>
      %461 = vector.extract_strided_slice %459 {offsets = [0, 64], sizes = [1, 64], strides = [1, 1]} : vector<1x192xf32> to vector<1x64xf32>
      %462 = vector.extract_strided_slice %459 {offsets = [0, 128], sizes = [1, 64], strides = [1, 1]} : vector<1x192xf32> to vector<1x64xf32>
      %463 = vector.extract_strided_slice %453 {offsets = [0, 192], sizes = [1, 64], strides = [1, 1]} : vector<1x256xf32> to vector<1x64xf32>
      %464 = math.tanh %463 : vector<1x64xf32>
      %465 = arith.mulf %461, %446 : vector<1x64xf32>
      %466 = arith.mulf %460, %464 : vector<1x64xf32>
      %467 = arith.addf %465, %466 : vector<1x64xf32>
      %468 = math.tanh %467 : vector<1x64xf32>
      %469 = arith.mulf %462, %468 : vector<1x64xf32>
      %470 = vector.extract_strided_slice %385 {offsets = [4, 0], sizes = [1, 256], strides = [1, 1]} : vector<8x256xf32> to vector<1x256xf32>
      %471 = arith.truncf %469 : vector<1x64xf32> to vector<1x64xbf16>
      %c0_139 = arith.constant 0 : index
      %c0_140 = arith.constant 0 : index
      %472 = vector.load %arg5[%c0_139, %c0_140] : memref<64x256xbf16, #tpu.memory_space<vmem>>, vector<64x256xbf16>
      %cst_141 = arith.constant dense<0.000000e+00> : vector<1x256xf32>
      %473 = tpu.matmul %471, %472, %cst_141 {dimension_numbers = #tpu.dot_dimension_numbers<[1], [0], [0], [1], [0, 0, 1, 1], [], []>} : vector<1x64xbf16>, vector<64x256xbf16>, vector<1x256xf32> -> vector<1x256xf32>
      %474 = arith.addf %470, %473 : vector<1x256xf32>
      %475 = vector.extract_strided_slice %474 {offsets = [0, 0], sizes = [1, 192], strides = [1, 1]} : vector<1x256xf32> to vector<1x192xf32>
      %476 = arith.negf %475 : vector<1x192xf32>
      %477 = math.exp %476 : vector<1x192xf32>
      %cst_142 = arith.constant 1.000000e+00 : f32
      %478 = vector.broadcast %cst_142 : f32 to vector<1x192xf32>
      %479 = arith.addf %478, %477 : vector<1x192xf32>
      %480 = arith.divf %478, %479 : vector<1x192xf32>
      %481 = vector.extract_strided_slice %480 {offsets = [0, 0], sizes = [1, 64], strides = [1, 1]} : vector<1x192xf32> to vector<1x64xf32>
      %482 = vector.extract_strided_slice %480 {offsets = [0, 64], sizes = [1, 64], strides = [1, 1]} : vector<1x192xf32> to vector<1x64xf32>
      %483 = vector.extract_strided_slice %480 {offsets = [0, 128], sizes = [1, 64], strides = [1, 1]} : vector<1x192xf32> to vector<1x64xf32>
      %484 = vector.extract_strided_slice %474 {offsets = [0, 192], sizes = [1, 64], strides = [1, 1]} : vector<1x256xf32> to vector<1x64xf32>
      %485 = math.tanh %484 : vector<1x64xf32>
      %486 = arith.mulf %482, %467 : vector<1x64xf32>
      %487 = arith.mulf %481, %485 : vector<1x64xf32>
      %488 = arith.addf %486, %487 : vector<1x64xf32>
      %489 = math.tanh %488 : vector<1x64xf32>
      %490 = arith.mulf %483, %489 : vector<1x64xf32>
      %491 = vector.extract_strided_slice %385 {offsets = [5, 0], sizes = [1, 256], strides = [1, 1]} : vector<8x256xf32> to vector<1x256xf32>
      %492 = arith.truncf %490 : vector<1x64xf32> to vector<1x64xbf16>
      %c0_143 = arith.constant 0 : index
      %c0_144 = arith.constant 0 : index
      %493 = vector.load %arg5[%c0_143, %c0_144] : memref<64x256xbf16, #tpu.memory_space<vmem>>, vector<64x256xbf16>
      %cst_145 = arith.constant dense<0.000000e+00> : vector<1x256xf32>
      %494 = tpu.matmul %492, %493, %cst_145 {dimension_numbers = #tpu.dot_dimension_numbers<[1], [0], [0], [1], [0, 0, 1, 1], [], []>} : vector<1x64xbf16>, vector<64x256xbf16>, vector<1x256xf32> -> vector<1x256xf32>
      %495 = arith.addf %491, %494 : vector<1x256xf32>
      %496 = vector.extract_strided_slice %495 {offsets = [0, 0], sizes = [1, 192], strides = [1, 1]} : vector<1x256xf32> to vector<1x192xf32>
      %497 = arith.negf %496 : vector<1x192xf32>
      %498 = math.exp %497 : vector<1x192xf32>
      %cst_146 = arith.constant 1.000000e+00 : f32
      %499 = vector.broadcast %cst_146 : f32 to vector<1x192xf32>
      %500 = arith.addf %499, %498 : vector<1x192xf32>
      %501 = arith.divf %499, %500 : vector<1x192xf32>
      %502 = vector.extract_strided_slice %501 {offsets = [0, 0], sizes = [1, 64], strides = [1, 1]} : vector<1x192xf32> to vector<1x64xf32>
      %503 = vector.extract_strided_slice %501 {offsets = [0, 64], sizes = [1, 64], strides = [1, 1]} : vector<1x192xf32> to vector<1x64xf32>
      %504 = vector.extract_strided_slice %501 {offsets = [0, 128], sizes = [1, 64], strides = [1, 1]} : vector<1x192xf32> to vector<1x64xf32>
      %505 = vector.extract_strided_slice %495 {offsets = [0, 192], sizes = [1, 64], strides = [1, 1]} : vector<1x256xf32> to vector<1x64xf32>
      %506 = math.tanh %505 : vector<1x64xf32>
      %507 = arith.mulf %503, %488 : vector<1x64xf32>
      %508 = arith.mulf %502, %506 : vector<1x64xf32>
      %509 = arith.addf %507, %508 : vector<1x64xf32>
      %510 = math.tanh %509 : vector<1x64xf32>
      %511 = arith.mulf %504, %510 : vector<1x64xf32>
      %512 = vector.extract_strided_slice %385 {offsets = [6, 0], sizes = [1, 256], strides = [1, 1]} : vector<8x256xf32> to vector<1x256xf32>
      %513 = arith.truncf %511 : vector<1x64xf32> to vector<1x64xbf16>
      %c0_147 = arith.constant 0 : index
      %c0_148 = arith.constant 0 : index
      %514 = vector.load %arg5[%c0_147, %c0_148] : memref<64x256xbf16, #tpu.memory_space<vmem>>, vector<64x256xbf16>
      %cst_149 = arith.constant dense<0.000000e+00> : vector<1x256xf32>
      %515 = tpu.matmul %513, %514, %cst_149 {dimension_numbers = #tpu.dot_dimension_numbers<[1], [0], [0], [1], [0, 0, 1, 1], [], []>} : vector<1x64xbf16>, vector<64x256xbf16>, vector<1x256xf32> -> vector<1x256xf32>
      %516 = arith.addf %512, %515 : vector<1x256xf32>
      %517 = vector.extract_strided_slice %516 {offsets = [0, 0], sizes = [1, 192], strides = [1, 1]} : vector<1x256xf32> to vector<1x192xf32>
      %518 = arith.negf %517 : vector<1x192xf32>
      %519 = math.exp %518 : vector<1x192xf32>
      %cst_150 = arith.constant 1.000000e+00 : f32
      %520 = vector.broadcast %cst_150 : f32 to vector<1x192xf32>
      %521 = arith.addf %520, %519 : vector<1x192xf32>
      %522 = arith.divf %520, %521 : vector<1x192xf32>
      %523 = vector.extract_strided_slice %522 {offsets = [0, 0], sizes = [1, 64], strides = [1, 1]} : vector<1x192xf32> to vector<1x64xf32>
      %524 = vector.extract_strided_slice %522 {offsets = [0, 64], sizes = [1, 64], strides = [1, 1]} : vector<1x192xf32> to vector<1x64xf32>
      %525 = vector.extract_strided_slice %522 {offsets = [0, 128], sizes = [1, 64], strides = [1, 1]} : vector<1x192xf32> to vector<1x64xf32>
      %526 = vector.extract_strided_slice %516 {offsets = [0, 192], sizes = [1, 64], strides = [1, 1]} : vector<1x256xf32> to vector<1x64xf32>
      %527 = math.tanh %526 : vector<1x64xf32>
      %528 = arith.mulf %524, %509 : vector<1x64xf32>
      %529 = arith.mulf %523, %527 : vector<1x64xf32>
      %530 = arith.addf %528, %529 : vector<1x64xf32>
      %531 = math.tanh %530 : vector<1x64xf32>
      %532 = arith.mulf %525, %531 : vector<1x64xf32>
      %533 = vector.extract_strided_slice %385 {offsets = [7, 0], sizes = [1, 256], strides = [1, 1]} : vector<8x256xf32> to vector<1x256xf32>
      %534 = arith.truncf %532 : vector<1x64xf32> to vector<1x64xbf16>
      %c0_151 = arith.constant 0 : index
      %c0_152 = arith.constant 0 : index
      %535 = vector.load %arg5[%c0_151, %c0_152] : memref<64x256xbf16, #tpu.memory_space<vmem>>, vector<64x256xbf16>
      %cst_153 = arith.constant dense<0.000000e+00> : vector<1x256xf32>
      %536 = tpu.matmul %534, %535, %cst_153 {dimension_numbers = #tpu.dot_dimension_numbers<[1], [0], [0], [1], [0, 0, 1, 1], [], []>} : vector<1x64xbf16>, vector<64x256xbf16>, vector<1x256xf32> -> vector<1x256xf32>
      %537 = arith.addf %533, %536 : vector<1x256xf32>
      %538 = vector.extract_strided_slice %537 {offsets = [0, 0], sizes = [1, 192], strides = [1, 1]} : vector<1x256xf32> to vector<1x192xf32>
      %539 = arith.negf %538 : vector<1x192xf32>
      %540 = math.exp %539 : vector<1x192xf32>
      %cst_154 = arith.constant 1.000000e+00 : f32
      %541 = vector.broadcast %cst_154 : f32 to vector<1x192xf32>
      %542 = arith.addf %541, %540 : vector<1x192xf32>
      %543 = arith.divf %541, %542 : vector<1x192xf32>
      %544 = vector.extract_strided_slice %543 {offsets = [0, 0], sizes = [1, 64], strides = [1, 1]} : vector<1x192xf32> to vector<1x64xf32>
      %545 = vector.extract_strided_slice %543 {offsets = [0, 64], sizes = [1, 64], strides = [1, 1]} : vector<1x192xf32> to vector<1x64xf32>
      %546 = vector.extract_strided_slice %543 {offsets = [0, 128], sizes = [1, 64], strides = [1, 1]} : vector<1x192xf32> to vector<1x64xf32>
      %547 = vector.extract_strided_slice %537 {offsets = [0, 192], sizes = [1, 64], strides = [1, 1]} : vector<1x256xf32> to vector<1x64xf32>
      %548 = math.tanh %547 : vector<1x64xf32>
      %549 = arith.mulf %545, %530 : vector<1x64xf32>
      %550 = arith.mulf %544, %548 : vector<1x64xf32>
      %551 = arith.addf %549, %550 : vector<1x64xf32>
      %552 = math.tanh %551 : vector<1x64xf32>
      %553 = arith.mulf %546, %552 : vector<1x64xf32>
      scf.yield %553, %551 : vector<1x64xf32>, vector<1x64xf32>
    }
    %c2_i32_41 = arith.constant 2 : i32
    %c16_42 = arith.constant 16 : index
    %c0_43 = arith.constant 0 : index
    %108 = vector.load %arg14[%c16_42, %c0_43] : memref<20x256xf32, #tpu.memory_space<vmem>>, vector<4x256xf32>
    %109 = vector.extract_strided_slice %108 {offsets = [0, 0], sizes = [1, 256], strides = [1, 1]} : vector<4x256xf32> to vector<1x256xf32>
    %110 = arith.truncf %107#0 : vector<1x64xf32> to vector<1x64xbf16>
    %c0_44 = arith.constant 0 : index
    %c0_45 = arith.constant 0 : index
    %111 = vector.load %arg5[%c0_44, %c0_45] : memref<64x256xbf16, #tpu.memory_space<vmem>>, vector<64x256xbf16>
    %cst_46 = arith.constant dense<0.000000e+00> : vector<1x256xf32>
    %112 = tpu.matmul %110, %111, %cst_46 {dimension_numbers = #tpu.dot_dimension_numbers<[1], [0], [0], [1], [0, 0, 1, 1], [], []>} : vector<1x64xbf16>, vector<64x256xbf16>, vector<1x256xf32> -> vector<1x256xf32>
    %113 = arith.addf %109, %112 : vector<1x256xf32>
    %114 = vector.extract_strided_slice %113 {offsets = [0, 0], sizes = [1, 192], strides = [1, 1]} : vector<1x256xf32> to vector<1x192xf32>
    %115 = arith.negf %114 : vector<1x192xf32>
    %116 = math.exp %115 : vector<1x192xf32>
    %cst_47 = arith.constant 1.000000e+00 : f32
    %117 = vector.broadcast %cst_47 : f32 to vector<1x192xf32>
    %118 = arith.addf %117, %116 : vector<1x192xf32>
    %119 = arith.divf %117, %118 : vector<1x192xf32>
    %120 = vector.extract_strided_slice %119 {offsets = [0, 0], sizes = [1, 64], strides = [1, 1]} : vector<1x192xf32> to vector<1x64xf32>
    %121 = vector.extract_strided_slice %119 {offsets = [0, 64], sizes = [1, 64], strides = [1, 1]} : vector<1x192xf32> to vector<1x64xf32>
    %122 = vector.extract_strided_slice %119 {offsets = [0, 128], sizes = [1, 64], strides = [1, 1]} : vector<1x192xf32> to vector<1x64xf32>
    %123 = vector.extract_strided_slice %113 {offsets = [0, 192], sizes = [1, 64], strides = [1, 1]} : vector<1x256xf32> to vector<1x64xf32>
    %124 = math.tanh %123 : vector<1x64xf32>
    %125 = arith.mulf %121, %107#1 : vector<1x64xf32>
    %126 = arith.mulf %120, %124 : vector<1x64xf32>
    %127 = arith.addf %125, %126 : vector<1x64xf32>
    %128 = math.tanh %127 : vector<1x64xf32>
    %129 = arith.mulf %122, %128 : vector<1x64xf32>
    %130 = vector.extract_strided_slice %108 {offsets = [1, 0], sizes = [1, 256], strides = [1, 1]} : vector<4x256xf32> to vector<1x256xf32>
    %131 = arith.truncf %129 : vector<1x64xf32> to vector<1x64xbf16>
    %c0_48 = arith.constant 0 : index
    %c0_49 = arith.constant 0 : index
    %132 = vector.load %arg5[%c0_48, %c0_49] : memref<64x256xbf16, #tpu.memory_space<vmem>>, vector<64x256xbf16>
    %cst_50 = arith.constant dense<0.000000e+00> : vector<1x256xf32>
    %133 = tpu.matmul %131, %132, %cst_50 {dimension_numbers = #tpu.dot_dimension_numbers<[1], [0], [0], [1], [0, 0, 1, 1], [], []>} : vector<1x64xbf16>, vector<64x256xbf16>, vector<1x256xf32> -> vector<1x256xf32>
    %134 = arith.addf %130, %133 : vector<1x256xf32>
    %135 = vector.extract_strided_slice %134 {offsets = [0, 0], sizes = [1, 192], strides = [1, 1]} : vector<1x256xf32> to vector<1x192xf32>
    %136 = arith.negf %135 : vector<1x192xf32>
    %137 = math.exp %136 : vector<1x192xf32>
    %cst_51 = arith.constant 1.000000e+00 : f32
    %138 = vector.broadcast %cst_51 : f32 to vector<1x192xf32>
    %139 = arith.addf %138, %137 : vector<1x192xf32>
    %140 = arith.divf %138, %139 : vector<1x192xf32>
    %141 = vector.extract_strided_slice %140 {offsets = [0, 0], sizes = [1, 64], strides = [1, 1]} : vector<1x192xf32> to vector<1x64xf32>
    %142 = vector.extract_strided_slice %140 {offsets = [0, 64], sizes = [1, 64], strides = [1, 1]} : vector<1x192xf32> to vector<1x64xf32>
    %143 = vector.extract_strided_slice %140 {offsets = [0, 128], sizes = [1, 64], strides = [1, 1]} : vector<1x192xf32> to vector<1x64xf32>
    %144 = vector.extract_strided_slice %134 {offsets = [0, 192], sizes = [1, 64], strides = [1, 1]} : vector<1x256xf32> to vector<1x64xf32>
    %145 = math.tanh %144 : vector<1x64xf32>
    %146 = arith.mulf %142, %127 : vector<1x64xf32>
    %147 = arith.mulf %141, %145 : vector<1x64xf32>
    %148 = arith.addf %146, %147 : vector<1x64xf32>
    %149 = math.tanh %148 : vector<1x64xf32>
    %150 = arith.mulf %143, %149 : vector<1x64xf32>
    %151 = vector.extract_strided_slice %108 {offsets = [2, 0], sizes = [1, 256], strides = [1, 1]} : vector<4x256xf32> to vector<1x256xf32>
    %152 = arith.truncf %150 : vector<1x64xf32> to vector<1x64xbf16>
    %c0_52 = arith.constant 0 : index
    %c0_53 = arith.constant 0 : index
    %153 = vector.load %arg5[%c0_52, %c0_53] : memref<64x256xbf16, #tpu.memory_space<vmem>>, vector<64x256xbf16>
    %cst_54 = arith.constant dense<0.000000e+00> : vector<1x256xf32>
    %154 = tpu.matmul %152, %153, %cst_54 {dimension_numbers = #tpu.dot_dimension_numbers<[1], [0], [0], [1], [0, 0, 1, 1], [], []>} : vector<1x64xbf16>, vector<64x256xbf16>, vector<1x256xf32> -> vector<1x256xf32>
    %155 = arith.addf %151, %154 : vector<1x256xf32>
    %156 = vector.extract_strided_slice %155 {offsets = [0, 0], sizes = [1, 192], strides = [1, 1]} : vector<1x256xf32> to vector<1x192xf32>
    %157 = arith.negf %156 : vector<1x192xf32>
    %158 = math.exp %157 : vector<1x192xf32>
    %cst_55 = arith.constant 1.000000e+00 : f32
    %159 = vector.broadcast %cst_55 : f32 to vector<1x192xf32>
    %160 = arith.addf %159, %158 : vector<1x192xf32>
    %161 = arith.divf %159, %160 : vector<1x192xf32>
    %162 = vector.extract_strided_slice %161 {offsets = [0, 0], sizes = [1, 64], strides = [1, 1]} : vector<1x192xf32> to vector<1x64xf32>
    %163 = vector.extract_strided_slice %161 {offsets = [0, 64], sizes = [1, 64], strides = [1, 1]} : vector<1x192xf32> to vector<1x64xf32>
    %164 = vector.extract_strided_slice %161 {offsets = [0, 128], sizes = [1, 64], strides = [1, 1]} : vector<1x192xf32> to vector<1x64xf32>
    %165 = vector.extract_strided_slice %155 {offsets = [0, 192], sizes = [1, 64], strides = [1, 1]} : vector<1x256xf32> to vector<1x64xf32>
    %166 = math.tanh %165 : vector<1x64xf32>
    %167 = arith.mulf %163, %148 : vector<1x64xf32>
    %168 = arith.mulf %162, %166 : vector<1x64xf32>
    %169 = arith.addf %167, %168 : vector<1x64xf32>
    %170 = math.tanh %169 : vector<1x64xf32>
    %171 = arith.mulf %164, %170 : vector<1x64xf32>
    %172 = vector.extract_strided_slice %108 {offsets = [3, 0], sizes = [1, 256], strides = [1, 1]} : vector<4x256xf32> to vector<1x256xf32>
    %173 = arith.truncf %171 : vector<1x64xf32> to vector<1x64xbf16>
    %c0_56 = arith.constant 0 : index
    %c0_57 = arith.constant 0 : index
    %174 = vector.load %arg5[%c0_56, %c0_57] : memref<64x256xbf16, #tpu.memory_space<vmem>>, vector<64x256xbf16>
    %cst_58 = arith.constant dense<0.000000e+00> : vector<1x256xf32>
    %175 = tpu.matmul %173, %174, %cst_58 {dimension_numbers = #tpu.dot_dimension_numbers<[1], [0], [0], [1], [0, 0, 1, 1], [], []>} : vector<1x64xbf16>, vector<64x256xbf16>, vector<1x256xf32> -> vector<1x256xf32>
    %176 = arith.addf %172, %175 : vector<1x256xf32>
    %177 = vector.extract_strided_slice %176 {offsets = [0, 0], sizes = [1, 192], strides = [1, 1]} : vector<1x256xf32> to vector<1x192xf32>
    %178 = arith.negf %177 : vector<1x192xf32>
    %179 = math.exp %178 : vector<1x192xf32>
    %cst_59 = arith.constant 1.000000e+00 : f32
    %180 = vector.broadcast %cst_59 : f32 to vector<1x192xf32>
    %181 = arith.addf %180, %179 : vector<1x192xf32>
    %182 = arith.divf %180, %181 : vector<1x192xf32>
    %183 = vector.extract_strided_slice %182 {offsets = [0, 0], sizes = [1, 64], strides = [1, 1]} : vector<1x192xf32> to vector<1x64xf32>
    %184 = vector.extract_strided_slice %182 {offsets = [0, 64], sizes = [1, 64], strides = [1, 1]} : vector<1x192xf32> to vector<1x64xf32>
    %185 = vector.extract_strided_slice %182 {offsets = [0, 128], sizes = [1, 64], strides = [1, 1]} : vector<1x192xf32> to vector<1x64xf32>
    %186 = vector.extract_strided_slice %176 {offsets = [0, 192], sizes = [1, 64], strides = [1, 1]} : vector<1x256xf32> to vector<1x64xf32>
    %187 = math.tanh %186 : vector<1x64xf32>
    %188 = arith.mulf %184, %169 : vector<1x64xf32>
    %189 = arith.mulf %183, %187 : vector<1x64xf32>
    %190 = arith.addf %188, %189 : vector<1x64xf32>
    %191 = math.tanh %190 : vector<1x64xf32>
    %192 = arith.mulf %185, %191 : vector<1x64xf32>
    %193 = tpu.concatenate %94, %192 in 1 : vector<1x64xf32>, vector<1x64xf32> -> vector<1x128xf32>
    %194 = arith.truncf %193 : vector<1x128xf32> to vector<1x128xbf16>
    %c0_60 = arith.constant 0 : index
    %c0_61 = arith.constant 0 : index
    %195 = vector.load %arg7[%c0_60, %c0_61] : memref<128x512xbf16, #tpu.memory_space<vmem>>, vector<128x512xbf16>
    %cst_62 = arith.constant dense<0.000000e+00> : vector<1x512xf32>
    %196 = tpu.matmul %194, %195, %cst_62 {dimension_numbers = #tpu.dot_dimension_numbers<[1], [0], [0], [1], [0, 0, 1, 1], [], []>} : vector<1x128xbf16>, vector<128x512xbf16>, vector<1x512xf32> -> vector<1x512xf32>
    %c0_63 = arith.constant 0 : index
    %c0_64 = arith.constant 0 : index
    %197 = vector.load %arg9[%c0_63, %c0_64] : memref<1x512xf32, #tpu.memory_space<vmem>>, vector<1x512xf32>
    %198 = arith.addf %196, %197 : vector<1x512xf32>
    %cst_65 = arith.constant 0.000000e+00 : f32
    %199 = vector.broadcast %cst_65 : f32 to vector<1x128xf32>
    %c0_i32_66 = arith.constant 0 : i32
    %c2_i32_67 = arith.constant 2 : i32
    %200 = arith.addi %c0_i32_66, %c2_i32_67 : i32
    %c1_i32_68 = arith.constant 1 : i32
    %201:2 = scf.for %arg18 = %c0_i32_66 to %200 step %c1_i32_68 iter_args(%arg19 = %199, %arg20 = %199) -> (vector<1x128xf32>, vector<1x128xf32>)  : i32 {
      %c8_i32 = arith.constant 8 : i32
      %382 = arith.muli %arg18, %c8_i32 : i32
      %383 = tpu.assume_multiple %382, 8 : i32
      %384 = arith.truncf %arg19 : vector<1x128xf32> to vector<1x128xbf16>
      %c0_122 = arith.constant 0 : index
      %c0_123 = arith.constant 0 : index
      %385 = vector.load %arg8[%c0_122, %c0_123] : memref<128x512xbf16, #tpu.memory_space<vmem>>, vector<128x512xbf16>
      %cst_124 = arith.constant dense<0.000000e+00> : vector<1x512xf32>
      %386 = tpu.matmul %384, %385, %cst_124 {dimension_numbers = #tpu.dot_dimension_numbers<[1], [0], [0], [1], [0, 0, 1, 1], [], []>} : vector<1x128xbf16>, vector<128x512xbf16>, vector<1x512xf32> -> vector<1x512xf32>
      %387 = arith.addf %198, %386 : vector<1x512xf32>
      %388 = vector.extract_strided_slice %387 {offsets = [0, 0], sizes = [1, 384], strides = [1, 1]} : vector<1x512xf32> to vector<1x384xf32>
      %389 = arith.negf %388 : vector<1x384xf32>
      %390 = math.exp %389 : vector<1x384xf32>
      %cst_125 = arith.constant 1.000000e+00 : f32
      %391 = vector.broadcast %cst_125 : f32 to vector<1x384xf32>
      %392 = arith.addf %391, %390 : vector<1x384xf32>
      %393 = arith.divf %391, %392 : vector<1x384xf32>
      %394 = vector.extract_strided_slice %393 {offsets = [0, 0], sizes = [1, 128], strides = [1, 1]} : vector<1x384xf32> to vector<1x128xf32>
      %395 = vector.extract_strided_slice %393 {offsets = [0, 128], sizes = [1, 128], strides = [1, 1]} : vector<1x384xf32> to vector<1x128xf32>
      %396 = vector.extract_strided_slice %393 {offsets = [0, 256], sizes = [1, 128], strides = [1, 1]} : vector<1x384xf32> to vector<1x128xf32>
      %397 = vector.extract_strided_slice %387 {offsets = [0, 384], sizes = [1, 128], strides = [1, 1]} : vector<1x512xf32> to vector<1x128xf32>
      %398 = math.tanh %397 : vector<1x128xf32>
      %399 = arith.mulf %395, %arg20 : vector<1x128xf32>
      %400 = arith.mulf %394, %398 : vector<1x128xf32>
      %401 = arith.addf %399, %400 : vector<1x128xf32>
      %402 = math.tanh %401 : vector<1x128xf32>
      %403 = arith.mulf %396, %402 : vector<1x128xf32>
      %404 = arith.truncf %403 : vector<1x128xf32> to vector<1x128xbf16>
      %c0_126 = arith.constant 0 : index
      %c0_127 = arith.constant 0 : index
      %405 = vector.load %arg8[%c0_126, %c0_127] : memref<128x512xbf16, #tpu.memory_space<vmem>>, vector<128x512xbf16>
      %cst_128 = arith.constant dense<0.000000e+00> : vector<1x512xf32>
      %406 = tpu.matmul %404, %405, %cst_128 {dimension_numbers = #tpu.dot_dimension_numbers<[1], [0], [0], [1], [0, 0, 1, 1], [], []>} : vector<1x128xbf16>, vector<128x512xbf16>, vector<1x512xf32> -> vector<1x512xf32>
      %407 = arith.addf %198, %406 : vector<1x512xf32>
      %408 = vector.extract_strided_slice %407 {offsets = [0, 0], sizes = [1, 384], strides = [1, 1]} : vector<1x512xf32> to vector<1x384xf32>
      %409 = arith.negf %408 : vector<1x384xf32>
      %410 = math.exp %409 : vector<1x384xf32>
      %cst_129 = arith.constant 1.000000e+00 : f32
      %411 = vector.broadcast %cst_129 : f32 to vector<1x384xf32>
      %412 = arith.addf %411, %410 : vector<1x384xf32>
      %413 = arith.divf %411, %412 : vector<1x384xf32>
      %414 = vector.extract_strided_slice %413 {offsets = [0, 0], sizes = [1, 128], strides = [1, 1]} : vector<1x384xf32> to vector<1x128xf32>
      %415 = vector.extract_strided_slice %413 {offsets = [0, 128], sizes = [1, 128], strides = [1, 1]} : vector<1x384xf32> to vector<1x128xf32>
      %416 = vector.extract_strided_slice %413 {offsets = [0, 256], sizes = [1, 128], strides = [1, 1]} : vector<1x384xf32> to vector<1x128xf32>
      %417 = vector.extract_strided_slice %407 {offsets = [0, 384], sizes = [1, 128], strides = [1, 1]} : vector<1x512xf32> to vector<1x128xf32>
      %418 = math.tanh %417 : vector<1x128xf32>
      %419 = arith.mulf %415, %401 : vector<1x128xf32>
      %420 = arith.mulf %414, %418 : vector<1x128xf32>
      %421 = arith.addf %419, %420 : vector<1x128xf32>
      %422 = math.tanh %421 : vector<1x128xf32>
      %423 = arith.mulf %416, %422 : vector<1x128xf32>
      %424 = arith.truncf %423 : vector<1x128xf32> to vector<1x128xbf16>
      %c0_130 = arith.constant 0 : index
      %c0_131 = arith.constant 0 : index
      %425 = vector.load %arg8[%c0_130, %c0_131] : memref<128x512xbf16, #tpu.memory_space<vmem>>, vector<128x512xbf16>
      %cst_132 = arith.constant dense<0.000000e+00> : vector<1x512xf32>
      %426 = tpu.matmul %424, %425, %cst_132 {dimension_numbers = #tpu.dot_dimension_numbers<[1], [0], [0], [1], [0, 0, 1, 1], [], []>} : vector<1x128xbf16>, vector<128x512xbf16>, vector<1x512xf32> -> vector<1x512xf32>
      %427 = arith.addf %198, %426 : vector<1x512xf32>
      %428 = vector.extract_strided_slice %427 {offsets = [0, 0], sizes = [1, 384], strides = [1, 1]} : vector<1x512xf32> to vector<1x384xf32>
      %429 = arith.negf %428 : vector<1x384xf32>
      %430 = math.exp %429 : vector<1x384xf32>
      %cst_133 = arith.constant 1.000000e+00 : f32
      %431 = vector.broadcast %cst_133 : f32 to vector<1x384xf32>
      %432 = arith.addf %431, %430 : vector<1x384xf32>
      %433 = arith.divf %431, %432 : vector<1x384xf32>
      %434 = vector.extract_strided_slice %433 {offsets = [0, 0], sizes = [1, 128], strides = [1, 1]} : vector<1x384xf32> to vector<1x128xf32>
      %435 = vector.extract_strided_slice %433 {offsets = [0, 128], sizes = [1, 128], strides = [1, 1]} : vector<1x384xf32> to vector<1x128xf32>
      %436 = vector.extract_strided_slice %433 {offsets = [0, 256], sizes = [1, 128], strides = [1, 1]} : vector<1x384xf32> to vector<1x128xf32>
      %437 = vector.extract_strided_slice %427 {offsets = [0, 384], sizes = [1, 128], strides = [1, 1]} : vector<1x512xf32> to vector<1x128xf32>
      %438 = math.tanh %437 : vector<1x128xf32>
      %439 = arith.mulf %435, %421 : vector<1x128xf32>
      %440 = arith.mulf %434, %438 : vector<1x128xf32>
      %441 = arith.addf %439, %440 : vector<1x128xf32>
      %442 = math.tanh %441 : vector<1x128xf32>
      %443 = arith.mulf %436, %442 : vector<1x128xf32>
      %444 = arith.truncf %443 : vector<1x128xf32> to vector<1x128xbf16>
      %c0_134 = arith.constant 0 : index
      %c0_135 = arith.constant 0 : index
      %445 = vector.load %arg8[%c0_134, %c0_135] : memref<128x512xbf16, #tpu.memory_space<vmem>>, vector<128x512xbf16>
      %cst_136 = arith.constant dense<0.000000e+00> : vector<1x512xf32>
      %446 = tpu.matmul %444, %445, %cst_136 {dimension_numbers = #tpu.dot_dimension_numbers<[1], [0], [0], [1], [0, 0, 1, 1], [], []>} : vector<1x128xbf16>, vector<128x512xbf16>, vector<1x512xf32> -> vector<1x512xf32>
      %447 = arith.addf %198, %446 : vector<1x512xf32>
      %448 = vector.extract_strided_slice %447 {offsets = [0, 0], sizes = [1, 384], strides = [1, 1]} : vector<1x512xf32> to vector<1x384xf32>
      %449 = arith.negf %448 : vector<1x384xf32>
      %450 = math.exp %449 : vector<1x384xf32>
      %cst_137 = arith.constant 1.000000e+00 : f32
      %451 = vector.broadcast %cst_137 : f32 to vector<1x384xf32>
      %452 = arith.addf %451, %450 : vector<1x384xf32>
      %453 = arith.divf %451, %452 : vector<1x384xf32>
      %454 = vector.extract_strided_slice %453 {offsets = [0, 0], sizes = [1, 128], strides = [1, 1]} : vector<1x384xf32> to vector<1x128xf32>
      %455 = vector.extract_strided_slice %453 {offsets = [0, 128], sizes = [1, 128], strides = [1, 1]} : vector<1x384xf32> to vector<1x128xf32>
      %456 = vector.extract_strided_slice %453 {offsets = [0, 256], sizes = [1, 128], strides = [1, 1]} : vector<1x384xf32> to vector<1x128xf32>
      %457 = vector.extract_strided_slice %447 {offsets = [0, 384], sizes = [1, 128], strides = [1, 1]} : vector<1x512xf32> to vector<1x128xf32>
      %458 = math.tanh %457 : vector<1x128xf32>
      %459 = arith.mulf %455, %441 : vector<1x128xf32>
      %460 = arith.mulf %454, %458 : vector<1x128xf32>
      %461 = arith.addf %459, %460 : vector<1x128xf32>
      %462 = math.tanh %461 : vector<1x128xf32>
      %463 = arith.mulf %456, %462 : vector<1x128xf32>
      %464 = arith.truncf %463 : vector<1x128xf32> to vector<1x128xbf16>
      %c0_138 = arith.constant 0 : index
      %c0_139 = arith.constant 0 : index
      %465 = vector.load %arg8[%c0_138, %c0_139] : memref<128x512xbf16, #tpu.memory_space<vmem>>, vector<128x512xbf16>
      %cst_140 = arith.constant dense<0.000000e+00> : vector<1x512xf32>
      %466 = tpu.matmul %464, %465, %cst_140 {dimension_numbers = #tpu.dot_dimension_numbers<[1], [0], [0], [1], [0, 0, 1, 1], [], []>} : vector<1x128xbf16>, vector<128x512xbf16>, vector<1x512xf32> -> vector<1x512xf32>
      %467 = arith.addf %198, %466 : vector<1x512xf32>
      %468 = vector.extract_strided_slice %467 {offsets = [0, 0], sizes = [1, 384], strides = [1, 1]} : vector<1x512xf32> to vector<1x384xf32>
      %469 = arith.negf %468 : vector<1x384xf32>
      %470 = math.exp %469 : vector<1x384xf32>
      %cst_141 = arith.constant 1.000000e+00 : f32
      %471 = vector.broadcast %cst_141 : f32 to vector<1x384xf32>
      %472 = arith.addf %471, %470 : vector<1x384xf32>
      %473 = arith.divf %471, %472 : vector<1x384xf32>
      %474 = vector.extract_strided_slice %473 {offsets = [0, 0], sizes = [1, 128], strides = [1, 1]} : vector<1x384xf32> to vector<1x128xf32>
      %475 = vector.extract_strided_slice %473 {offsets = [0, 128], sizes = [1, 128], strides = [1, 1]} : vector<1x384xf32> to vector<1x128xf32>
      %476 = vector.extract_strided_slice %473 {offsets = [0, 256], sizes = [1, 128], strides = [1, 1]} : vector<1x384xf32> to vector<1x128xf32>
      %477 = vector.extract_strided_slice %467 {offsets = [0, 384], sizes = [1, 128], strides = [1, 1]} : vector<1x512xf32> to vector<1x128xf32>
      %478 = math.tanh %477 : vector<1x128xf32>
      %479 = arith.mulf %475, %461 : vector<1x128xf32>
      %480 = arith.mulf %474, %478 : vector<1x128xf32>
      %481 = arith.addf %479, %480 : vector<1x128xf32>
      %482 = math.tanh %481 : vector<1x128xf32>
      %483 = arith.mulf %476, %482 : vector<1x128xf32>
      %484 = arith.truncf %483 : vector<1x128xf32> to vector<1x128xbf16>
      %c0_142 = arith.constant 0 : index
      %c0_143 = arith.constant 0 : index
      %485 = vector.load %arg8[%c0_142, %c0_143] : memref<128x512xbf16, #tpu.memory_space<vmem>>, vector<128x512xbf16>
      %cst_144 = arith.constant dense<0.000000e+00> : vector<1x512xf32>
      %486 = tpu.matmul %484, %485, %cst_144 {dimension_numbers = #tpu.dot_dimension_numbers<[1], [0], [0], [1], [0, 0, 1, 1], [], []>} : vector<1x128xbf16>, vector<128x512xbf16>, vector<1x512xf32> -> vector<1x512xf32>
      %487 = arith.addf %198, %486 : vector<1x512xf32>
      %488 = vector.extract_strided_slice %487 {offsets = [0, 0], sizes = [1, 384], strides = [1, 1]} : vector<1x512xf32> to vector<1x384xf32>
      %489 = arith.negf %488 : vector<1x384xf32>
      %490 = math.exp %489 : vector<1x384xf32>
      %cst_145 = arith.constant 1.000000e+00 : f32
      %491 = vector.broadcast %cst_145 : f32 to vector<1x384xf32>
      %492 = arith.addf %491, %490 : vector<1x384xf32>
      %493 = arith.divf %491, %492 : vector<1x384xf32>
      %494 = vector.extract_strided_slice %493 {offsets = [0, 0], sizes = [1, 128], strides = [1, 1]} : vector<1x384xf32> to vector<1x128xf32>
      %495 = vector.extract_strided_slice %493 {offsets = [0, 128], sizes = [1, 128], strides = [1, 1]} : vector<1x384xf32> to vector<1x128xf32>
      %496 = vector.extract_strided_slice %493 {offsets = [0, 256], sizes = [1, 128], strides = [1, 1]} : vector<1x384xf32> to vector<1x128xf32>
      %497 = vector.extract_strided_slice %487 {offsets = [0, 384], sizes = [1, 128], strides = [1, 1]} : vector<1x512xf32> to vector<1x128xf32>
      %498 = math.tanh %497 : vector<1x128xf32>
      %499 = arith.mulf %495, %481 : vector<1x128xf32>
      %500 = arith.mulf %494, %498 : vector<1x128xf32>
      %501 = arith.addf %499, %500 : vector<1x128xf32>
      %502 = math.tanh %501 : vector<1x128xf32>
      %503 = arith.mulf %496, %502 : vector<1x128xf32>
      %504 = arith.truncf %503 : vector<1x128xf32> to vector<1x128xbf16>
      %c0_146 = arith.constant 0 : index
      %c0_147 = arith.constant 0 : index
      %505 = vector.load %arg8[%c0_146, %c0_147] : memref<128x512xbf16, #tpu.memory_space<vmem>>, vector<128x512xbf16>
      %cst_148 = arith.constant dense<0.000000e+00> : vector<1x512xf32>
      %506 = tpu.matmul %504, %505, %cst_148 {dimension_numbers = #tpu.dot_dimension_numbers<[1], [0], [0], [1], [0, 0, 1, 1], [], []>} : vector<1x128xbf16>, vector<128x512xbf16>, vector<1x512xf32> -> vector<1x512xf32>
      %507 = arith.addf %198, %506 : vector<1x512xf32>
      %508 = vector.extract_strided_slice %507 {offsets = [0, 0], sizes = [1, 384], strides = [1, 1]} : vector<1x512xf32> to vector<1x384xf32>
      %509 = arith.negf %508 : vector<1x384xf32>
      %510 = math.exp %509 : vector<1x384xf32>
      %cst_149 = arith.constant 1.000000e+00 : f32
      %511 = vector.broadcast %cst_149 : f32 to vector<1x384xf32>
      %512 = arith.addf %511, %510 : vector<1x384xf32>
      %513 = arith.divf %511, %512 : vector<1x384xf32>
      %514 = vector.extract_strided_slice %513 {offsets = [0, 0], sizes = [1, 128], strides = [1, 1]} : vector<1x384xf32> to vector<1x128xf32>
      %515 = vector.extract_strided_slice %513 {offsets = [0, 128], sizes = [1, 128], strides = [1, 1]} : vector<1x384xf32> to vector<1x128xf32>
      %516 = vector.extract_strided_slice %513 {offsets = [0, 256], sizes = [1, 128], strides = [1, 1]} : vector<1x384xf32> to vector<1x128xf32>
      %517 = vector.extract_strided_slice %507 {offsets = [0, 384], sizes = [1, 128], strides = [1, 1]} : vector<1x512xf32> to vector<1x128xf32>
      %518 = math.tanh %517 : vector<1x128xf32>
      %519 = arith.mulf %515, %501 : vector<1x128xf32>
      %520 = arith.mulf %514, %518 : vector<1x128xf32>
      %521 = arith.addf %519, %520 : vector<1x128xf32>
      %522 = math.tanh %521 : vector<1x128xf32>
      %523 = arith.mulf %516, %522 : vector<1x128xf32>
      %524 = arith.truncf %523 : vector<1x128xf32> to vector<1x128xbf16>
      %c0_150 = arith.constant 0 : index
      %c0_151 = arith.constant 0 : index
      %525 = vector.load %arg8[%c0_150, %c0_151] : memref<128x512xbf16, #tpu.memory_space<vmem>>, vector<128x512xbf16>
      %cst_152 = arith.constant dense<0.000000e+00> : vector<1x512xf32>
      %526 = tpu.matmul %524, %525, %cst_152 {dimension_numbers = #tpu.dot_dimension_numbers<[1], [0], [0], [1], [0, 0, 1, 1], [], []>} : vector<1x128xbf16>, vector<128x512xbf16>, vector<1x512xf32> -> vector<1x512xf32>
      %527 = arith.addf %198, %526 : vector<1x512xf32>
      %528 = vector.extract_strided_slice %527 {offsets = [0, 0], sizes = [1, 384], strides = [1, 1]} : vector<1x512xf32> to vector<1x384xf32>
      %529 = arith.negf %528 : vector<1x384xf32>
      %530 = math.exp %529 : vector<1x384xf32>
      %cst_153 = arith.constant 1.000000e+00 : f32
      %531 = vector.broadcast %cst_153 : f32 to vector<1x384xf32>
      %532 = arith.addf %531, %530 : vector<1x384xf32>
      %533 = arith.divf %531, %532 : vector<1x384xf32>
      %534 = vector.extract_strided_slice %533 {offsets = [0, 0], sizes = [1, 128], strides = [1, 1]} : vector<1x384xf32> to vector<1x128xf32>
      %535 = vector.extract_strided_slice %533 {offsets = [0, 128], sizes = [1, 128], strides = [1, 1]} : vector<1x384xf32> to vector<1x128xf32>
      %536 = vector.extract_strided_slice %533 {offsets = [0, 256], sizes = [1, 128], strides = [1, 1]} : vector<1x384xf32> to vector<1x128xf32>
      %537 = vector.extract_strided_slice %527 {offsets = [0, 384], sizes = [1, 128], strides = [1, 1]} : vector<1x512xf32> to vector<1x128xf32>
      %538 = math.tanh %537 : vector<1x128xf32>
      %539 = arith.mulf %535, %521 : vector<1x128xf32>
      %540 = arith.mulf %534, %538 : vector<1x128xf32>
      %541 = arith.addf %539, %540 : vector<1x128xf32>
      %542 = math.tanh %541 : vector<1x128xf32>
      %543 = arith.mulf %536, %542 : vector<1x128xf32>
      %544 = tpu.concatenate %403, %423, %443, %463, %483, %503, %523, %543 in 0 : vector<1x128xf32>, vector<1x128xf32>, vector<1x128xf32>, vector<1x128xf32>, vector<1x128xf32>, vector<1x128xf32>, vector<1x128xf32>, vector<1x128xf32> -> vector<8x128xf32>
      %545 = arith.truncf %544 : vector<8x128xf32> to vector<8x128xbf16>
      %546 = arith.index_cast %383 : i32 to index
      %c0_154 = arith.constant 0 : index
      %547 = vector.load %arg17[%546, %c0_154] : memref<20x128xbf16, #tpu.memory_space<vmem>>, vector<8x128xbf16>
      tpu.vector_store %arg17[%546, %c0_154], %545 {strides = array<i32>} : memref<20x128xbf16, #tpu.memory_space<vmem>>, vector<8x128xbf16>,
      scf.yield %543, %541 : vector<1x128xf32>, vector<1x128xf32>
    }
    %c2_i32_69 = arith.constant 2 : i32
    %202 = arith.truncf %201#0 : vector<1x128xf32> to vector<1x128xbf16>
    %c0_70 = arith.constant 0 : index
    %c0_71 = arith.constant 0 : index
    %203 = vector.load %arg8[%c0_70, %c0_71] : memref<128x512xbf16, #tpu.memory_space<vmem>>, vector<128x512xbf16>
    %cst_72 = arith.constant dense<0.000000e+00> : vector<1x512xf32>
    %204 = tpu.matmul %202, %203, %cst_72 {dimension_numbers = #tpu.dot_dimension_numbers<[1], [0], [0], [1], [0, 0, 1, 1], [], []>} : vector<1x128xbf16>, vector<128x512xbf16>, vector<1x512xf32> -> vector<1x512xf32>
    %205 = arith.addf %198, %204 : vector<1x512xf32>
    %206 = vector.extract_strided_slice %205 {offsets = [0, 0], sizes = [1, 384], strides = [1, 1]} : vector<1x512xf32> to vector<1x384xf32>
    %207 = arith.negf %206 : vector<1x384xf32>
    %208 = math.exp %207 : vector<1x384xf32>
    %cst_73 = arith.constant 1.000000e+00 : f32
    %209 = vector.broadcast %cst_73 : f32 to vector<1x384xf32>
    %210 = arith.addf %209, %208 : vector<1x384xf32>
    %211 = arith.divf %209, %210 : vector<1x384xf32>
    %212 = vector.extract_strided_slice %211 {offsets = [0, 0], sizes = [1, 128], strides = [1, 1]} : vector<1x384xf32> to vector<1x128xf32>
    %213 = vector.extract_strided_slice %211 {offsets = [0, 128], sizes = [1, 128], strides = [1, 1]} : vector<1x384xf32> to vector<1x128xf32>
    %214 = vector.extract_strided_slice %211 {offsets = [0, 256], sizes = [1, 128], strides = [1, 1]} : vector<1x384xf32> to vector<1x128xf32>
    %215 = vector.extract_strided_slice %205 {offsets = [0, 384], sizes = [1, 128], strides = [1, 1]} : vector<1x512xf32> to vector<1x128xf32>
    %216 = math.tanh %215 : vector<1x128xf32>
    %217 = arith.mulf %213, %201#1 : vector<1x128xf32>
    %218 = arith.mulf %212, %216 : vector<1x128xf32>
    %219 = arith.addf %217, %218 : vector<1x128xf32>
    %220 = math.tanh %219 : vector<1x128xf32>
    %221 = arith.mulf %214, %220 : vector<1x128xf32>
    %222 = arith.truncf %221 : vector<1x128xf32> to vector<1x128xbf16>
    %c0_74 = arith.constant 0 : index
    %c0_75 = arith.constant 0 : index
    %223 = vector.load %arg8[%c0_74, %c0_75] : memref<128x512xbf16, #tpu.memory_space<vmem>>, vector<128x512xbf16>
    %cst_76 = arith.constant dense<0.000000e+00> : vector<1x512xf32>
    %224 = tpu.matmul %222, %223, %cst_76 {dimension_numbers = #tpu.dot_dimension_numbers<[1], [0], [0], [1], [0, 0, 1, 1], [], []>} : vector<1x128xbf16>, vector<128x512xbf16>, vector<1x512xf32> -> vector<1x512xf32>
    %225 = arith.addf %198, %224 : vector<1x512xf32>
    %226 = vector.extract_strided_slice %225 {offsets = [0, 0], sizes = [1, 384], strides = [1, 1]} : vector<1x512xf32> to vector<1x384xf32>
    %227 = arith.negf %226 : vector<1x384xf32>
    %228 = math.exp %227 : vector<1x384xf32>
    %cst_77 = arith.constant 1.000000e+00 : f32
    %229 = vector.broadcast %cst_77 : f32 to vector<1x384xf32>
    %230 = arith.addf %229, %228 : vector<1x384xf32>
    %231 = arith.divf %229, %230 : vector<1x384xf32>
    %232 = vector.extract_strided_slice %231 {offsets = [0, 0], sizes = [1, 128], strides = [1, 1]} : vector<1x384xf32> to vector<1x128xf32>
    %233 = vector.extract_strided_slice %231 {offsets = [0, 128], sizes = [1, 128], strides = [1, 1]} : vector<1x384xf32> to vector<1x128xf32>
    %234 = vector.extract_strided_slice %231 {offsets = [0, 256], sizes = [1, 128], strides = [1, 1]} : vector<1x384xf32> to vector<1x128xf32>
    %235 = vector.extract_strided_slice %225 {offsets = [0, 384], sizes = [1, 128], strides = [1, 1]} : vector<1x512xf32> to vector<1x128xf32>
    %236 = math.tanh %235 : vector<1x128xf32>
    %237 = arith.mulf %233, %219 : vector<1x128xf32>
    %238 = arith.mulf %232, %236 : vector<1x128xf32>
    %239 = arith.addf %237, %238 : vector<1x128xf32>
    %240 = math.tanh %239 : vector<1x128xf32>
    %241 = arith.mulf %234, %240 : vector<1x128xf32>
    %242 = arith.truncf %241 : vector<1x128xf32> to vector<1x128xbf16>
    %c0_78 = arith.constant 0 : index
    %c0_79 = arith.constant 0 : index
    %243 = vector.load %arg8[%c0_78, %c0_79] : memref<128x512xbf16, #tpu.memory_space<vmem>>, vector<128x512xbf16>
    %cst_80 = arith.constant dense<0.000000e+00> : vector<1x512xf32>
    %244 = tpu.matmul %242, %243, %cst_80 {dimension_numbers = #tpu.dot_dimension_numbers<[1], [0], [0], [1], [0, 0, 1, 1], [], []>} : vector<1x128xbf16>, vector<128x512xbf16>, vector<1x512xf32> -> vector<1x512xf32>
    %245 = arith.addf %198, %244 : vector<1x512xf32>
    %246 = vector.extract_strided_slice %245 {offsets = [0, 0], sizes = [1, 384], strides = [1, 1]} : vector<1x512xf32> to vector<1x384xf32>
    %247 = arith.negf %246 : vector<1x384xf32>
    %248 = math.exp %247 : vector<1x384xf32>
    %cst_81 = arith.constant 1.000000e+00 : f32
    %249 = vector.broadcast %cst_81 : f32 to vector<1x384xf32>
    %250 = arith.addf %249, %248 : vector<1x384xf32>
    %251 = arith.divf %249, %250 : vector<1x384xf32>
    %252 = vector.extract_strided_slice %251 {offsets = [0, 0], sizes = [1, 128], strides = [1, 1]} : vector<1x384xf32> to vector<1x128xf32>
    %253 = vector.extract_strided_slice %251 {offsets = [0, 128], sizes = [1, 128], strides = [1, 1]} : vector<1x384xf32> to vector<1x128xf32>
    %254 = vector.extract_strided_slice %251 {offsets = [0, 256], sizes = [1, 128], strides = [1, 1]} : vector<1x384xf32> to vector<1x128xf32>
    %255 = vector.extract_strided_slice %245 {offsets = [0, 384], sizes = [1, 128], strides = [1, 1]} : vector<1x512xf32> to vector<1x128xf32>
    %256 = math.tanh %255 : vector<1x128xf32>
    %257 = arith.mulf %253, %239 : vector<1x128xf32>
    %258 = arith.mulf %252, %256 : vector<1x128xf32>
    %259 = arith.addf %257, %258 : vector<1x128xf32>
    %260 = math.tanh %259 : vector<1x128xf32>
    %261 = arith.mulf %254, %260 : vector<1x128xf32>
    %262 = arith.truncf %261 : vector<1x128xf32> to vector<1x128xbf16>
    %c0_82 = arith.constant 0 : index
    %c0_83 = arith.constant 0 : index
    %263 = vector.load %arg8[%c0_82, %c0_83] : memref<128x512xbf16, #tpu.memory_space<vmem>>, vector<128x512xbf16>
    %cst_84 = arith.constant dense<0.000000e+00> : vector<1x512xf32>
    %264 = tpu.matmul %262, %263, %cst_84 {dimension_numbers = #tpu.dot_dimension_numbers<[1], [0], [0], [1], [0, 0, 1, 1], [], []>} : vector<1x128xbf16>, vector<128x512xbf16>, vector<1x512xf32> -> vector<1x512xf32>
    %265 = arith.addf %198, %264 : vector<1x512xf32>
    %266 = vector.extract_strided_slice %265 {offsets = [0, 0], sizes = [1, 384], strides = [1, 1]} : vector<1x512xf32> to vector<1x384xf32>
    %267 = arith.negf %266 : vector<1x384xf32>
    %268 = math.exp %267 : vector<1x384xf32>
    %cst_85 = arith.constant 1.000000e+00 : f32
    %269 = vector.broadcast %cst_85 : f32 to vector<1x384xf32>
    %270 = arith.addf %269, %268 : vector<1x384xf32>
    %271 = arith.divf %269, %270 : vector<1x384xf32>
    %272 = vector.extract_strided_slice %271 {offsets = [0, 0], sizes = [1, 128], strides = [1, 1]} : vector<1x384xf32> to vector<1x128xf32>
    %273 = vector.extract_strided_slice %271 {offsets = [0, 128], sizes = [1, 128], strides = [1, 1]} : vector<1x384xf32> to vector<1x128xf32>
    %274 = vector.extract_strided_slice %271 {offsets = [0, 256], sizes = [1, 128], strides = [1, 1]} : vector<1x384xf32> to vector<1x128xf32>
    %275 = vector.extract_strided_slice %265 {offsets = [0, 384], sizes = [1, 128], strides = [1, 1]} : vector<1x512xf32> to vector<1x128xf32>
    %276 = math.tanh %275 : vector<1x128xf32>
    %277 = arith.mulf %273, %259 : vector<1x128xf32>
    %278 = arith.mulf %272, %276 : vector<1x128xf32>
    %279 = arith.addf %277, %278 : vector<1x128xf32>
    %280 = math.tanh %279 : vector<1x128xf32>
    %281 = arith.mulf %274, %280 : vector<1x128xf32>
    %282 = tpu.concatenate %221, %241, %261, %281 in 0 : vector<1x128xf32>, vector<1x128xf32>, vector<1x128xf32>, vector<1x128xf32> -> vector<4x128xf32>
    %283 = arith.truncf %282 : vector<4x128xf32> to vector<4x128xbf16>
    %c16_86 = arith.constant 16 : index
    %c0_87 = arith.constant 0 : index
    %284 = vector.load %arg17[%c16_86, %c0_87] : memref<20x128xbf16, #tpu.memory_space<vmem>>, vector<4x128xbf16>
    tpu.vector_store %arg17[%c16_86, %c0_87], %283 {strides = array<i32>} : memref<20x128xbf16, #tpu.memory_space<vmem>>, vector<4x128xbf16>,
    %c0_88 = arith.constant 0 : index
    %c0_89 = arith.constant 0 : index
    %285 = vector.load %arg17[%c0_88, %c0_89] : memref<20x128xbf16, #tpu.memory_space<vmem>>, vector<20x128xbf16>
    %c0_90 = arith.constant 0 : index
    %c0_91 = arith.constant 0 : index
    %286 = vector.load %arg10[%c0_90, %c0_91] : memref<128x512xbf16, #tpu.memory_space<vmem>>, vector<128x512xbf16>
    %cst_92 = arith.constant dense<0.000000e+00> : vector<20x512xf32>
    %287 = tpu.matmul %285, %286, %cst_92 {dimension_numbers = #tpu.dot_dimension_numbers<[1], [0], [0], [1], [0, 0, 1, 1], [], []>} : vector<20x128xbf16>, vector<128x512xbf16>, vector<20x512xf32> -> vector<20x512xf32>
    %c0_93 = arith.constant 0 : index
    %c0_94 = arith.constant 0 : index
    %288 = vector.load %arg12[%c0_93, %c0_94] : memref<1x512xf32, #tpu.memory_space<vmem>>, vector<1x512xf32>
    %289 = vector.broadcast %288 : vector<1x512xf32> to vector<20x512xf32>
    %290 = arith.addf %287, %289 : vector<20x512xf32>
    %c0_95 = arith.constant 0 : index
    %c0_96 = arith.constant 0 : index
    %291 = vector.load %arg16[%c0_95, %c0_96] : memref<20x512xf32, #tpu.memory_space<vmem>>, vector<20x512xf32>
    tpu.vector_store %arg16[%c0_95, %c0_96], %290 {strides = array<i32>} : memref<20x512xf32, #tpu.memory_space<vmem>>, vector<20x512xf32>,
    %cst_97 = arith.constant 0.000000e+00 : f32
    %292 = vector.broadcast %cst_97 : f32 to vector<1x128xf32>
    %c0_i32_98 = arith.constant 0 : i32
    %c2_i32_99 = arith.constant 2 : i32
    %293 = arith.addi %c0_i32_98, %c2_i32_99 : i32
    %c1_i32_100 = arith.constant 1 : i32
    %294:2 = scf.for %arg18 = %c0_i32_98 to %293 step %c1_i32_100 iter_args(%arg19 = %292, %arg20 = %292) -> (vector<1x128xf32>, vector<1x128xf32>)  : i32 {
      %c8_i32 = arith.constant 8 : i32
      %382 = arith.muli %arg18, %c8_i32 : i32
      %383 = tpu.assume_multiple %382, 8 : i32
      %384 = arith.index_cast %383 : i32 to index
      %c0_122 = arith.constant 0 : index
      %385 = vector.load %arg16[%384, %c0_122] : memref<20x512xf32, #tpu.memory_space<vmem>>, vector<8x512xf32>
      %386 = vector.extract_strided_slice %385 {offsets = [0, 0], sizes = [1, 512], strides = [1, 1]} : vector<8x512xf32> to vector<1x512xf32>
      %387 = arith.truncf %arg19 : vector<1x128xf32> to vector<1x128xbf16>
      %c0_123 = arith.constant 0 : index
      %c0_124 = arith.constant 0 : index
      %388 = vector.load %arg11[%c0_123, %c0_124] : memref<128x512xbf16, #tpu.memory_space<vmem>>, vector<128x512xbf16>
      %cst_125 = arith.constant dense<0.000000e+00> : vector<1x512xf32>
      %389 = tpu.matmul %387, %388, %cst_125 {dimension_numbers = #tpu.dot_dimension_numbers<[1], [0], [0], [1], [0, 0, 1, 1], [], []>} : vector<1x128xbf16>, vector<128x512xbf16>, vector<1x512xf32> -> vector<1x512xf32>
      %390 = arith.addf %386, %389 : vector<1x512xf32>
      %391 = vector.extract_strided_slice %390 {offsets = [0, 0], sizes = [1, 384], strides = [1, 1]} : vector<1x512xf32> to vector<1x384xf32>
      %392 = arith.negf %391 : vector<1x384xf32>
      %393 = math.exp %392 : vector<1x384xf32>
      %cst_126 = arith.constant 1.000000e+00 : f32
      %394 = vector.broadcast %cst_126 : f32 to vector<1x384xf32>
      %395 = arith.addf %394, %393 : vector<1x384xf32>
      %396 = arith.divf %394, %395 : vector<1x384xf32>
      %397 = vector.extract_strided_slice %396 {offsets = [0, 0], sizes = [1, 128], strides = [1, 1]} : vector<1x384xf32> to vector<1x128xf32>
      %398 = vector.extract_strided_slice %396 {offsets = [0, 128], sizes = [1, 128], strides = [1, 1]} : vector<1x384xf32> to vector<1x128xf32>
      %399 = vector.extract_strided_slice %396 {offsets = [0, 256], sizes = [1, 128], strides = [1, 1]} : vector<1x384xf32> to vector<1x128xf32>
      %400 = vector.extract_strided_slice %390 {offsets = [0, 384], sizes = [1, 128], strides = [1, 1]} : vector<1x512xf32> to vector<1x128xf32>
      %401 = math.tanh %400 : vector<1x128xf32>
      %402 = arith.mulf %398, %arg20 : vector<1x128xf32>
      %403 = arith.mulf %397, %401 : vector<1x128xf32>
      %404 = arith.addf %402, %403 : vector<1x128xf32>
      %405 = math.tanh %404 : vector<1x128xf32>
      %406 = arith.mulf %399, %405 : vector<1x128xf32>
      %407 = vector.extract_strided_slice %385 {offsets = [1, 0], sizes = [1, 512], strides = [1, 1]} : vector<8x512xf32> to vector<1x512xf32>
      %408 = arith.truncf %406 : vector<1x128xf32> to vector<1x128xbf16>
      %c0_127 = arith.constant 0 : index
      %c0_128 = arith.constant 0 : index
      %409 = vector.load %arg11[%c0_127, %c0_128] : memref<128x512xbf16, #tpu.memory_space<vmem>>, vector<128x512xbf16>
      %cst_129 = arith.constant dense<0.000000e+00> : vector<1x512xf32>
      %410 = tpu.matmul %408, %409, %cst_129 {dimension_numbers = #tpu.dot_dimension_numbers<[1], [0], [0], [1], [0, 0, 1, 1], [], []>} : vector<1x128xbf16>, vector<128x512xbf16>, vector<1x512xf32> -> vector<1x512xf32>
      %411 = arith.addf %407, %410 : vector<1x512xf32>
      %412 = vector.extract_strided_slice %411 {offsets = [0, 0], sizes = [1, 384], strides = [1, 1]} : vector<1x512xf32> to vector<1x384xf32>
      %413 = arith.negf %412 : vector<1x384xf32>
      %414 = math.exp %413 : vector<1x384xf32>
      %cst_130 = arith.constant 1.000000e+00 : f32
      %415 = vector.broadcast %cst_130 : f32 to vector<1x384xf32>
      %416 = arith.addf %415, %414 : vector<1x384xf32>
      %417 = arith.divf %415, %416 : vector<1x384xf32>
      %418 = vector.extract_strided_slice %417 {offsets = [0, 0], sizes = [1, 128], strides = [1, 1]} : vector<1x384xf32> to vector<1x128xf32>
      %419 = vector.extract_strided_slice %417 {offsets = [0, 128], sizes = [1, 128], strides = [1, 1]} : vector<1x384xf32> to vector<1x128xf32>
      %420 = vector.extract_strided_slice %417 {offsets = [0, 256], sizes = [1, 128], strides = [1, 1]} : vector<1x384xf32> to vector<1x128xf32>
      %421 = vector.extract_strided_slice %411 {offsets = [0, 384], sizes = [1, 128], strides = [1, 1]} : vector<1x512xf32> to vector<1x128xf32>
      %422 = math.tanh %421 : vector<1x128xf32>
      %423 = arith.mulf %419, %404 : vector<1x128xf32>
      %424 = arith.mulf %418, %422 : vector<1x128xf32>
      %425 = arith.addf %423, %424 : vector<1x128xf32>
      %426 = math.tanh %425 : vector<1x128xf32>
      %427 = arith.mulf %420, %426 : vector<1x128xf32>
      %428 = vector.extract_strided_slice %385 {offsets = [2, 0], sizes = [1, 512], strides = [1, 1]} : vector<8x512xf32> to vector<1x512xf32>
      %429 = arith.truncf %427 : vector<1x128xf32> to vector<1x128xbf16>
      %c0_131 = arith.constant 0 : index
      %c0_132 = arith.constant 0 : index
      %430 = vector.load %arg11[%c0_131, %c0_132] : memref<128x512xbf16, #tpu.memory_space<vmem>>, vector<128x512xbf16>
      %cst_133 = arith.constant dense<0.000000e+00> : vector<1x512xf32>
      %431 = tpu.matmul %429, %430, %cst_133 {dimension_numbers = #tpu.dot_dimension_numbers<[1], [0], [0], [1], [0, 0, 1, 1], [], []>} : vector<1x128xbf16>, vector<128x512xbf16>, vector<1x512xf32> -> vector<1x512xf32>
      %432 = arith.addf %428, %431 : vector<1x512xf32>
      %433 = vector.extract_strided_slice %432 {offsets = [0, 0], sizes = [1, 384], strides = [1, 1]} : vector<1x512xf32> to vector<1x384xf32>
      %434 = arith.negf %433 : vector<1x384xf32>
      %435 = math.exp %434 : vector<1x384xf32>
      %cst_134 = arith.constant 1.000000e+00 : f32
      %436 = vector.broadcast %cst_134 : f32 to vector<1x384xf32>
      %437 = arith.addf %436, %435 : vector<1x384xf32>
      %438 = arith.divf %436, %437 : vector<1x384xf32>
      %439 = vector.extract_strided_slice %438 {offsets = [0, 0], sizes = [1, 128], strides = [1, 1]} : vector<1x384xf32> to vector<1x128xf32>
      %440 = vector.extract_strided_slice %438 {offsets = [0, 128], sizes = [1, 128], strides = [1, 1]} : vector<1x384xf32> to vector<1x128xf32>
      %441 = vector.extract_strided_slice %438 {offsets = [0, 256], sizes = [1, 128], strides = [1, 1]} : vector<1x384xf32> to vector<1x128xf32>
      %442 = vector.extract_strided_slice %432 {offsets = [0, 384], sizes = [1, 128], strides = [1, 1]} : vector<1x512xf32> to vector<1x128xf32>
      %443 = math.tanh %442 : vector<1x128xf32>
      %444 = arith.mulf %440, %425 : vector<1x128xf32>
      %445 = arith.mulf %439, %443 : vector<1x128xf32>
      %446 = arith.addf %444, %445 : vector<1x128xf32>
      %447 = math.tanh %446 : vector<1x128xf32>
      %448 = arith.mulf %441, %447 : vector<1x128xf32>
      %449 = vector.extract_strided_slice %385 {offsets = [3, 0], sizes = [1, 512], strides = [1, 1]} : vector<8x512xf32> to vector<1x512xf32>
      %450 = arith.truncf %448 : vector<1x128xf32> to vector<1x128xbf16>
      %c0_135 = arith.constant 0 : index
      %c0_136 = arith.constant 0 : index
      %451 = vector.load %arg11[%c0_135, %c0_136] : memref<128x512xbf16, #tpu.memory_space<vmem>>, vector<128x512xbf16>
      %cst_137 = arith.constant dense<0.000000e+00> : vector<1x512xf32>
      %452 = tpu.matmul %450, %451, %cst_137 {dimension_numbers = #tpu.dot_dimension_numbers<[1], [0], [0], [1], [0, 0, 1, 1], [], []>} : vector<1x128xbf16>, vector<128x512xbf16>, vector<1x512xf32> -> vector<1x512xf32>
      %453 = arith.addf %449, %452 : vector<1x512xf32>
      %454 = vector.extract_strided_slice %453 {offsets = [0, 0], sizes = [1, 384], strides = [1, 1]} : vector<1x512xf32> to vector<1x384xf32>
      %455 = arith.negf %454 : vector<1x384xf32>
      %456 = math.exp %455 : vector<1x384xf32>
      %cst_138 = arith.constant 1.000000e+00 : f32
      %457 = vector.broadcast %cst_138 : f32 to vector<1x384xf32>
      %458 = arith.addf %457, %456 : vector<1x384xf32>
      %459 = arith.divf %457, %458 : vector<1x384xf32>
      %460 = vector.extract_strided_slice %459 {offsets = [0, 0], sizes = [1, 128], strides = [1, 1]} : vector<1x384xf32> to vector<1x128xf32>
      %461 = vector.extract_strided_slice %459 {offsets = [0, 128], sizes = [1, 128], strides = [1, 1]} : vector<1x384xf32> to vector<1x128xf32>
      %462 = vector.extract_strided_slice %459 {offsets = [0, 256], sizes = [1, 128], strides = [1, 1]} : vector<1x384xf32> to vector<1x128xf32>
      %463 = vector.extract_strided_slice %453 {offsets = [0, 384], sizes = [1, 128], strides = [1, 1]} : vector<1x512xf32> to vector<1x128xf32>
      %464 = math.tanh %463 : vector<1x128xf32>
      %465 = arith.mulf %461, %446 : vector<1x128xf32>
      %466 = arith.mulf %460, %464 : vector<1x128xf32>
      %467 = arith.addf %465, %466 : vector<1x128xf32>
      %468 = math.tanh %467 : vector<1x128xf32>
      %469 = arith.mulf %462, %468 : vector<1x128xf32>
      %470 = vector.extract_strided_slice %385 {offsets = [4, 0], sizes = [1, 512], strides = [1, 1]} : vector<8x512xf32> to vector<1x512xf32>
      %471 = arith.truncf %469 : vector<1x128xf32> to vector<1x128xbf16>
      %c0_139 = arith.constant 0 : index
      %c0_140 = arith.constant 0 : index
      %472 = vector.load %arg11[%c0_139, %c0_140] : memref<128x512xbf16, #tpu.memory_space<vmem>>, vector<128x512xbf16>
      %cst_141 = arith.constant dense<0.000000e+00> : vector<1x512xf32>
      %473 = tpu.matmul %471, %472, %cst_141 {dimension_numbers = #tpu.dot_dimension_numbers<[1], [0], [0], [1], [0, 0, 1, 1], [], []>} : vector<1x128xbf16>, vector<128x512xbf16>, vector<1x512xf32> -> vector<1x512xf32>
      %474 = arith.addf %470, %473 : vector<1x512xf32>
      %475 = vector.extract_strided_slice %474 {offsets = [0, 0], sizes = [1, 384], strides = [1, 1]} : vector<1x512xf32> to vector<1x384xf32>
      %476 = arith.negf %475 : vector<1x384xf32>
      %477 = math.exp %476 : vector<1x384xf32>
      %cst_142 = arith.constant 1.000000e+00 : f32
      %478 = vector.broadcast %cst_142 : f32 to vector<1x384xf32>
      %479 = arith.addf %478, %477 : vector<1x384xf32>
      %480 = arith.divf %478, %479 : vector<1x384xf32>
      %481 = vector.extract_strided_slice %480 {offsets = [0, 0], sizes = [1, 128], strides = [1, 1]} : vector<1x384xf32> to vector<1x128xf32>
      %482 = vector.extract_strided_slice %480 {offsets = [0, 128], sizes = [1, 128], strides = [1, 1]} : vector<1x384xf32> to vector<1x128xf32>
      %483 = vector.extract_strided_slice %480 {offsets = [0, 256], sizes = [1, 128], strides = [1, 1]} : vector<1x384xf32> to vector<1x128xf32>
      %484 = vector.extract_strided_slice %474 {offsets = [0, 384], sizes = [1, 128], strides = [1, 1]} : vector<1x512xf32> to vector<1x128xf32>
      %485 = math.tanh %484 : vector<1x128xf32>
      %486 = arith.mulf %482, %467 : vector<1x128xf32>
      %487 = arith.mulf %481, %485 : vector<1x128xf32>
      %488 = arith.addf %486, %487 : vector<1x128xf32>
      %489 = math.tanh %488 : vector<1x128xf32>
      %490 = arith.mulf %483, %489 : vector<1x128xf32>
      %491 = vector.extract_strided_slice %385 {offsets = [5, 0], sizes = [1, 512], strides = [1, 1]} : vector<8x512xf32> to vector<1x512xf32>
      %492 = arith.truncf %490 : vector<1x128xf32> to vector<1x128xbf16>
      %c0_143 = arith.constant 0 : index
      %c0_144 = arith.constant 0 : index
      %493 = vector.load %arg11[%c0_143, %c0_144] : memref<128x512xbf16, #tpu.memory_space<vmem>>, vector<128x512xbf16>
      %cst_145 = arith.constant dense<0.000000e+00> : vector<1x512xf32>
      %494 = tpu.matmul %492, %493, %cst_145 {dimension_numbers = #tpu.dot_dimension_numbers<[1], [0], [0], [1], [0, 0, 1, 1], [], []>} : vector<1x128xbf16>, vector<128x512xbf16>, vector<1x512xf32> -> vector<1x512xf32>
      %495 = arith.addf %491, %494 : vector<1x512xf32>
      %496 = vector.extract_strided_slice %495 {offsets = [0, 0], sizes = [1, 384], strides = [1, 1]} : vector<1x512xf32> to vector<1x384xf32>
      %497 = arith.negf %496 : vector<1x384xf32>
      %498 = math.exp %497 : vector<1x384xf32>
      %cst_146 = arith.constant 1.000000e+00 : f32
      %499 = vector.broadcast %cst_146 : f32 to vector<1x384xf32>
      %500 = arith.addf %499, %498 : vector<1x384xf32>
      %501 = arith.divf %499, %500 : vector<1x384xf32>
      %502 = vector.extract_strided_slice %501 {offsets = [0, 0], sizes = [1, 128], strides = [1, 1]} : vector<1x384xf32> to vector<1x128xf32>
      %503 = vector.extract_strided_slice %501 {offsets = [0, 128], sizes = [1, 128], strides = [1, 1]} : vector<1x384xf32> to vector<1x128xf32>
      %504 = vector.extract_strided_slice %501 {offsets = [0, 256], sizes = [1, 128], strides = [1, 1]} : vector<1x384xf32> to vector<1x128xf32>
      %505 = vector.extract_strided_slice %495 {offsets = [0, 384], sizes = [1, 128], strides = [1, 1]} : vector<1x512xf32> to vector<1x128xf32>
      %506 = math.tanh %505 : vector<1x128xf32>
      %507 = arith.mulf %503, %488 : vector<1x128xf32>
      %508 = arith.mulf %502, %506 : vector<1x128xf32>
      %509 = arith.addf %507, %508 : vector<1x128xf32>
      %510 = math.tanh %509 : vector<1x128xf32>
      %511 = arith.mulf %504, %510 : vector<1x128xf32>
      %512 = vector.extract_strided_slice %385 {offsets = [6, 0], sizes = [1, 512], strides = [1, 1]} : vector<8x512xf32> to vector<1x512xf32>
      %513 = arith.truncf %511 : vector<1x128xf32> to vector<1x128xbf16>
      %c0_147 = arith.constant 0 : index
      %c0_148 = arith.constant 0 : index
      %514 = vector.load %arg11[%c0_147, %c0_148] : memref<128x512xbf16, #tpu.memory_space<vmem>>, vector<128x512xbf16>
      %cst_149 = arith.constant dense<0.000000e+00> : vector<1x512xf32>
      %515 = tpu.matmul %513, %514, %cst_149 {dimension_numbers = #tpu.dot_dimension_numbers<[1], [0], [0], [1], [0, 0, 1, 1], [], []>} : vector<1x128xbf16>, vector<128x512xbf16>, vector<1x512xf32> -> vector<1x512xf32>
      %516 = arith.addf %512, %515 : vector<1x512xf32>
      %517 = vector.extract_strided_slice %516 {offsets = [0, 0], sizes = [1, 384], strides = [1, 1]} : vector<1x512xf32> to vector<1x384xf32>
      %518 = arith.negf %517 : vector<1x384xf32>
      %519 = math.exp %518 : vector<1x384xf32>
      %cst_150 = arith.constant 1.000000e+00 : f32
      %520 = vector.broadcast %cst_150 : f32 to vector<1x384xf32>
      %521 = arith.addf %520, %519 : vector<1x384xf32>
      %522 = arith.divf %520, %521 : vector<1x384xf32>
      %523 = vector.extract_strided_slice %522 {offsets = [0, 0], sizes = [1, 128], strides = [1, 1]} : vector<1x384xf32> to vector<1x128xf32>
      %524 = vector.extract_strided_slice %522 {offsets = [0, 128], sizes = [1, 128], strides = [1, 1]} : vector<1x384xf32> to vector<1x128xf32>
      %525 = vector.extract_strided_slice %522 {offsets = [0, 256], sizes = [1, 128], strides = [1, 1]} : vector<1x384xf32> to vector<1x128xf32>
      %526 = vector.extract_strided_slice %516 {offsets = [0, 384], sizes = [1, 128], strides = [1, 1]} : vector<1x512xf32> to vector<1x128xf32>
      %527 = math.tanh %526 : vector<1x128xf32>
      %528 = arith.mulf %524, %509 : vector<1x128xf32>
      %529 = arith.mulf %523, %527 : vector<1x128xf32>
      %530 = arith.addf %528, %529 : vector<1x128xf32>
      %531 = math.tanh %530 : vector<1x128xf32>
      %532 = arith.mulf %525, %531 : vector<1x128xf32>
      %533 = vector.extract_strided_slice %385 {offsets = [7, 0], sizes = [1, 512], strides = [1, 1]} : vector<8x512xf32> to vector<1x512xf32>
      %534 = arith.truncf %532 : vector<1x128xf32> to vector<1x128xbf16>
      %c0_151 = arith.constant 0 : index
      %c0_152 = arith.constant 0 : index
      %535 = vector.load %arg11[%c0_151, %c0_152] : memref<128x512xbf16, #tpu.memory_space<vmem>>, vector<128x512xbf16>
      %cst_153 = arith.constant dense<0.000000e+00> : vector<1x512xf32>
      %536 = tpu.matmul %534, %535, %cst_153 {dimension_numbers = #tpu.dot_dimension_numbers<[1], [0], [0], [1], [0, 0, 1, 1], [], []>} : vector<1x128xbf16>, vector<128x512xbf16>, vector<1x512xf32> -> vector<1x512xf32>
      %537 = arith.addf %533, %536 : vector<1x512xf32>
      %538 = vector.extract_strided_slice %537 {offsets = [0, 0], sizes = [1, 384], strides = [1, 1]} : vector<1x512xf32> to vector<1x384xf32>
      %539 = arith.negf %538 : vector<1x384xf32>
      %540 = math.exp %539 : vector<1x384xf32>
      %cst_154 = arith.constant 1.000000e+00 : f32
      %541 = vector.broadcast %cst_154 : f32 to vector<1x384xf32>
      %542 = arith.addf %541, %540 : vector<1x384xf32>
      %543 = arith.divf %541, %542 : vector<1x384xf32>
      %544 = vector.extract_strided_slice %543 {offsets = [0, 0], sizes = [1, 128], strides = [1, 1]} : vector<1x384xf32> to vector<1x128xf32>
      %545 = vector.extract_strided_slice %543 {offsets = [0, 128], sizes = [1, 128], strides = [1, 1]} : vector<1x384xf32> to vector<1x128xf32>
      %546 = vector.extract_strided_slice %543 {offsets = [0, 256], sizes = [1, 128], strides = [1, 1]} : vector<1x384xf32> to vector<1x128xf32>
      %547 = vector.extract_strided_slice %537 {offsets = [0, 384], sizes = [1, 128], strides = [1, 1]} : vector<1x512xf32> to vector<1x128xf32>
      %548 = math.tanh %547 : vector<1x128xf32>
      %549 = arith.mulf %545, %530 : vector<1x128xf32>
      %550 = arith.mulf %544, %548 : vector<1x128xf32>
      %551 = arith.addf %549, %550 : vector<1x128xf32>
      %552 = math.tanh %551 : vector<1x128xf32>
      %553 = arith.mulf %546, %552 : vector<1x128xf32>
      %554 = tpu.concatenate %406, %427, %448, %469, %490, %511, %532, %553 in 0 : vector<1x128xf32>, vector<1x128xf32>, vector<1x128xf32>, vector<1x128xf32>, vector<1x128xf32>, vector<1x128xf32>, vector<1x128xf32>, vector<1x128xf32> -> vector<8x128xf32>
      %555 = arith.index_cast %383 : i32 to index
      %c0_155 = arith.constant 0 : index
      %556 = vector.load %arg13[%555, %c0_155] : memref<20x128xf32, #tpu.memory_space<vmem>>, vector<8x128xf32>
      tpu.vector_store %arg13[%555, %c0_155], %554 {strides = array<i32>} : memref<20x128xf32, #tpu.memory_space<vmem>>, vector<8x128xf32>,
      scf.yield %553, %551 : vector<1x128xf32>, vector<1x128xf32>
    }
    %c2_i32_101 = arith.constant 2 : i32
    %c16_102 = arith.constant 16 : index
    %c0_103 = arith.constant 0 : index
    %295 = vector.load %arg16[%c16_102, %c0_103] : memref<20x512xf32, #tpu.memory_space<vmem>>, vector<4x512xf32>
    %296 = vector.extract_strided_slice %295 {offsets = [0, 0], sizes = [1, 512], strides = [1, 1]} : vector<4x512xf32> to vector<1x512xf32>
    %297 = arith.truncf %294#0 : vector<1x128xf32> to vector<1x128xbf16>
    %c0_104 = arith.constant 0 : index
    %c0_105 = arith.constant 0 : index
    %298 = vector.load %arg11[%c0_104, %c0_105] : memref<128x512xbf16, #tpu.memory_space<vmem>>, vector<128x512xbf16>
    %cst_106 = arith.constant dense<0.000000e+00> : vector<1x512xf32>
    %299 = tpu.matmul %297, %298, %cst_106 {dimension_numbers = #tpu.dot_dimension_numbers<[1], [0], [0], [1], [0, 0, 1, 1], [], []>} : vector<1x128xbf16>, vector<128x512xbf16>, vector<1x512xf32> -> vector<1x512xf32>
    %300 = arith.addf %296, %299 : vector<1x512xf32>
    %301 = vector.extract_strided_slice %300 {offsets = [0, 0], sizes = [1, 384], strides = [1, 1]} : vector<1x512xf32> to vector<1x384xf32>
    %302 = arith.negf %301 : vector<1x384xf32>
    %303 = math.exp %302 : vector<1x384xf32>
    %cst_107 = arith.constant 1.000000e+00 : f32
    %304 = vector.broadcast %cst_107 : f32 to vector<1x384xf32>
    %305 = arith.addf %304, %303 : vector<1x384xf32>
    %306 = arith.divf %304, %305 : vector<1x384xf32>
    %307 = vector.extract_strided_slice %306 {offsets = [0, 0], sizes = [1, 128], strides = [1, 1]} : vector<1x384xf32> to vector<1x128xf32>
    %308 = vector.extract_strided_slice %306 {offsets = [0, 128], sizes = [1, 128], strides = [1, 1]} : vector<1x384xf32> to vector<1x128xf32>
    %309 = vector.extract_strided_slice %306 {offsets = [0, 256], sizes = [1, 128], strides = [1, 1]} : vector<1x384xf32> to vector<1x128xf32>
    %310 = vector.extract_strided_slice %300 {offsets = [0, 384], sizes = [1, 128], strides = [1, 1]} : vector<1x512xf32> to vector<1x128xf32>
    %311 = math.tanh %310 : vector<1x128xf32>
    %312 = arith.mulf %308, %294#1 : vector<1x128xf32>
    %313 = arith.mulf %307, %311 : vector<1x128xf32>
    %314 = arith.addf %312, %313 : vector<1x128xf32>
    %315 = math.tanh %314 : vector<1x128xf32>
    %316 = arith.mulf %309, %315 : vector<1x128xf32>
    %317 = vector.extract_strided_slice %295 {offsets = [1, 0], sizes = [1, 512], strides = [1, 1]} : vector<4x512xf32> to vector<1x512xf32>
    %318 = arith.truncf %316 : vector<1x128xf32> to vector<1x128xbf16>
    %c0_108 = arith.constant 0 : index
    %c0_109 = arith.constant 0 : index
    %319 = vector.load %arg11[%c0_108, %c0_109] : memref<128x512xbf16, #tpu.memory_space<vmem>>, vector<128x512xbf16>
    %cst_110 = arith.constant dense<0.000000e+00> : vector<1x512xf32>
    %320 = tpu.matmul %318, %319, %cst_110 {dimension_numbers = #tpu.dot_dimension_numbers<[1], [0], [0], [1], [0, 0, 1, 1], [], []>} : vector<1x128xbf16>, vector<128x512xbf16>, vector<1x512xf32> -> vector<1x512xf32>
    %321 = arith.addf %317, %320 : vector<1x512xf32>
    %322 = vector.extract_strided_slice %321 {offsets = [0, 0], sizes = [1, 384], strides = [1, 1]} : vector<1x512xf32> to vector<1x384xf32>
    %323 = arith.negf %322 : vector<1x384xf32>
    %324 = math.exp %323 : vector<1x384xf32>
    %cst_111 = arith.constant 1.000000e+00 : f32
    %325 = vector.broadcast %cst_111 : f32 to vector<1x384xf32>
    %326 = arith.addf %325, %324 : vector<1x384xf32>
    %327 = arith.divf %325, %326 : vector<1x384xf32>
    %328 = vector.extract_strided_slice %327 {offsets = [0, 0], sizes = [1, 128], strides = [1, 1]} : vector<1x384xf32> to vector<1x128xf32>
    %329 = vector.extract_strided_slice %327 {offsets = [0, 128], sizes = [1, 128], strides = [1, 1]} : vector<1x384xf32> to vector<1x128xf32>
    %330 = vector.extract_strided_slice %327 {offsets = [0, 256], sizes = [1, 128], strides = [1, 1]} : vector<1x384xf32> to vector<1x128xf32>
    %331 = vector.extract_strided_slice %321 {offsets = [0, 384], sizes = [1, 128], strides = [1, 1]} : vector<1x512xf32> to vector<1x128xf32>
    %332 = math.tanh %331 : vector<1x128xf32>
    %333 = arith.mulf %329, %314 : vector<1x128xf32>
    %334 = arith.mulf %328, %332 : vector<1x128xf32>
    %335 = arith.addf %333, %334 : vector<1x128xf32>
    %336 = math.tanh %335 : vector<1x128xf32>
    %337 = arith.mulf %330, %336 : vector<1x128xf32>
    %338 = vector.extract_strided_slice %295 {offsets = [2, 0], sizes = [1, 512], strides = [1, 1]} : vector<4x512xf32> to vector<1x512xf32>
    %339 = arith.truncf %337 : vector<1x128xf32> to vector<1x128xbf16>
    %c0_112 = arith.constant 0 : index
    %c0_113 = arith.constant 0 : index
    %340 = vector.load %arg11[%c0_112, %c0_113] : memref<128x512xbf16, #tpu.memory_space<vmem>>, vector<128x512xbf16>
    %cst_114 = arith.constant dense<0.000000e+00> : vector<1x512xf32>
    %341 = tpu.matmul %339, %340, %cst_114 {dimension_numbers = #tpu.dot_dimension_numbers<[1], [0], [0], [1], [0, 0, 1, 1], [], []>} : vector<1x128xbf16>, vector<128x512xbf16>, vector<1x512xf32> -> vector<1x512xf32>
    %342 = arith.addf %338, %341 : vector<1x512xf32>
    %343 = vector.extract_strided_slice %342 {offsets = [0, 0], sizes = [1, 384], strides = [1, 1]} : vector<1x512xf32> to vector<1x384xf32>
    %344 = arith.negf %343 : vector<1x384xf32>
    %345 = math.exp %344 : vector<1x384xf32>
    %cst_115 = arith.constant 1.000000e+00 : f32
    %346 = vector.broadcast %cst_115 : f32 to vector<1x384xf32>
    %347 = arith.addf %346, %345 : vector<1x384xf32>
    %348 = arith.divf %346, %347 : vector<1x384xf32>
    %349 = vector.extract_strided_slice %348 {offsets = [0, 0], sizes = [1, 128], strides = [1, 1]} : vector<1x384xf32> to vector<1x128xf32>
    %350 = vector.extract_strided_slice %348 {offsets = [0, 128], sizes = [1, 128], strides = [1, 1]} : vector<1x384xf32> to vector<1x128xf32>
    %351 = vector.extract_strided_slice %348 {offsets = [0, 256], sizes = [1, 128], strides = [1, 1]} : vector<1x384xf32> to vector<1x128xf32>
    %352 = vector.extract_strided_slice %342 {offsets = [0, 384], sizes = [1, 128], strides = [1, 1]} : vector<1x512xf32> to vector<1x128xf32>
    %353 = math.tanh %352 : vector<1x128xf32>
    %354 = arith.mulf %350, %335 : vector<1x128xf32>
    %355 = arith.mulf %349, %353 : vector<1x128xf32>
    %356 = arith.addf %354, %355 : vector<1x128xf32>
    %357 = math.tanh %356 : vector<1x128xf32>
    %358 = arith.mulf %351, %357 : vector<1x128xf32>
    %359 = vector.extract_strided_slice %295 {offsets = [3, 0], sizes = [1, 512], strides = [1, 1]} : vector<4x512xf32> to vector<1x512xf32>
    %360 = arith.truncf %358 : vector<1x128xf32> to vector<1x128xbf16>
    %c0_116 = arith.constant 0 : index
    %c0_117 = arith.constant 0 : index
    %361 = vector.load %arg11[%c0_116, %c0_117] : memref<128x512xbf16, #tpu.memory_space<vmem>>, vector<128x512xbf16>
    %cst_118 = arith.constant dense<0.000000e+00> : vector<1x512xf32>
    %362 = tpu.matmul %360, %361, %cst_118 {dimension_numbers = #tpu.dot_dimension_numbers<[1], [0], [0], [1], [0, 0, 1, 1], [], []>} : vector<1x128xbf16>, vector<128x512xbf16>, vector<1x512xf32> -> vector<1x512xf32>
    %363 = arith.addf %359, %362 : vector<1x512xf32>
    %364 = vector.extract_strided_slice %363 {offsets = [0, 0], sizes = [1, 384], strides = [1, 1]} : vector<1x512xf32> to vector<1x384xf32>
    %365 = arith.negf %364 : vector<1x384xf32>
    %366 = math.exp %365 : vector<1x384xf32>
    %cst_119 = arith.constant 1.000000e+00 : f32
    %367 = vector.broadcast %cst_119 : f32 to vector<1x384xf32>
    %368 = arith.addf %367, %366 : vector<1x384xf32>
    %369 = arith.divf %367, %368 : vector<1x384xf32>
    %370 = vector.extract_strided_slice %369 {offsets = [0, 0], sizes = [1, 128], strides = [1, 1]} : vector<1x384xf32> to vector<1x128xf32>
    %371 = vector.extract_strided_slice %369 {offsets = [0, 128], sizes = [1, 128], strides = [1, 1]} : vector<1x384xf32> to vector<1x128xf32>
    %372 = vector.extract_strided_slice %369 {offsets = [0, 256], sizes = [1, 128], strides = [1, 1]} : vector<1x384xf32> to vector<1x128xf32>
    %373 = vector.extract_strided_slice %363 {offsets = [0, 384], sizes = [1, 128], strides = [1, 1]} : vector<1x512xf32> to vector<1x128xf32>
    %374 = math.tanh %373 : vector<1x128xf32>
    %375 = arith.mulf %371, %356 : vector<1x128xf32>
    %376 = arith.mulf %370, %374 : vector<1x128xf32>
    %377 = arith.addf %375, %376 : vector<1x128xf32>
    %378 = math.tanh %377 : vector<1x128xf32>
    %379 = arith.mulf %372, %378 : vector<1x128xf32>
    %380 = tpu.concatenate %316, %337, %358, %379 in 0 : vector<1x128xf32>, vector<1x128xf32>, vector<1x128xf32>, vector<1x128xf32> -> vector<4x128xf32>
    %c16_120 = arith.constant 16 : index
    %c0_121 = arith.constant 0 : index
    %381 = vector.load %arg13[%c16_120, %c0_121] : memref<20x128xf32, #tpu.memory_space<vmem>>, vector<4x128xf32>
    tpu.vector_store %arg13[%c16_120, %c0_121], %380 {strides = array<i32>} : memref<20x128xf32, #tpu.memory_space<vmem>>, vector<4x128xf32>,
    return
  }
}

</mosaic_0001>

<bundles_post_ra>
// kernel: tpu_custom_call.1
= control target key start
LH: loop header
LB: loop body
LE: loop exit
PB: predicated region body
PF: predicated region fallthrough
CT: control target
= control target key end

     0   :  { %18 = vsyncpa [#allocation7], 0  ;;  %s11391_s0 = inlined_call_operand.hbm [shape: bf16[20,128], index: 0, kind: input, shape index: {}]   ;;  %s11392_s1 = inlined_call_operand.hbm [shape: bf16[128,256], index: 1, kind: input, shape index: {}]   ;;  %s11393_s2 = inlined_call_operand.hbm [shape: bf16[64,256], index: 2, kind: input, shape index: {}]   ;;  %s11394_s3 = inlined_call_operand.hbm [shape: f32[1,256], index: 3, kind: input, shape index: {}]   ;;  %s11395_s4 = inlined_call_operand.hbm [shape: bf16[64,256], index: 4, kind: input, shape index: {}]   ;;  %s11396_s5 = inlined_call_operand.hbm [shape: bf16[64,256], index: 5, kind: input, shape index: {}]   ;;  %s11397_s6 = inlined_call_operand.vmem [shape: f32[1,256], index: 6, kind: input, shape index: {}]   ;;  %s11398_s7 = inlined_call_operand.hbm [shape: bf16[128,512], index: 7, kind: input, shape index: {}]   ;;  %s11399_s8 = inlined_call_operand.hbm [shape: bf16[128,512], index: 8, kind: input, shape index: {}]   ;;  %s11400_s9 = inlined_call_operand.vmem [shape: f32[1,512], index: 9, kind: input, shape index: {}]   ;;  %s11401_s10 = inlined_call_operand.hbm [shape: bf16[128,512], index: 10, kind: input, shape index: {}]   ;;  %s11402_s11 = inlined_call_operand.hbm [shape: bf16[128,512], index: 11, kind: input, shape index: {}]   ;;  %s11403_s12 = inlined_call_operand.vmem [shape: f32[1,512], index: 12, kind: input, shape index: {}]   ;;  %s11404_s13 = inlined_call_operand.hbm [shape: f32[20,128], index: 13, kind: output, shape index: {}]  }
   0x1   :  { %19 = vsyncpa [#allocation10], 0 }
   0x2   :  { %20 = vsyncpa [#allocation13], 0 }
   0x3   :  { %21 = vsyncpa [#allocation16], 0 }
   0x4   :  { %22 = vsyncpa [#allocation19], 0 }
   0x5   :  { %23 = vsyncpa [#allocation22], 0 }
   0x6   :  { %24 = vsyncpa [#allocation8], 0  ;;  %s9295_s25 = smov [#allocation9]  }
   0x7   :  { %s42_s26 = sshll.u32 %s9295_s25, 4  ;;  %s43_s26 = int_to_ptr.vmem [resolvable:$true] %s42_s26 }
   0x8   :  { %s8973_s27 = scalar_lea.vmem %s43_s26, 2048  ;;  %p8978_p1 = scmp.lt.s32.totalorder %s43_s26, %s43_s26 }
   0x9   :  { %p8974_p0 = scmp.ne.s32.totalorder %s43_s26, %s8973_s27  ;;  %p8979_p2 = scmp.lt.s32.totalorder %s8973_s27, %s8973_s27 }
   0xb   :  { %p8980_p3 = por %p8979_p2, %p8978_p1 }
   0xd   :  { %p8981_p4 = pnand %p8980_p3, %p8974_p0 }
   0xf   :  { %8984 = shalt.err (!%p8981_p4)
}
  0x10   :  { %s9296_s28 = smov 128   ;;  %s9297_s29 = smov 8  }
  0x11   :  { %48 = dma.hbm_to_vmem [thread:$0]  %s11392_s1, 2048, %s43_s26, [#allocation10], %s9296_s28, %s9296_s28, %s9297_s29  }
  0x12   :  { %s9298_s15 = smov [#allocation12]   ;;  %s9299_s17 = smov [#allocation15]  }
  0x13   :  { %s67_s16 = sshll.u32 %s9298_s15, 4  ;;  %s88_s18 = sshll.u32 %s9299_s17, 4  ;;  %s68_s16 = int_to_ptr.vmem [resolvable:$true] %s67_s16  ;;  %s89_s18 = int_to_ptr.vmem [resolvable:$true] %s88_s18 }
  0x14   :  { %s8993_s19 = scalar_lea.vmem %s68_s16, 32  ;;  %p8998_p6 = scmp.lt.s32.totalorder %s68_s16, %s68_s16 }
  0x15   :  { %p8994_p5 = scmp.ne.s32.totalorder %s68_s16, %s8993_s19  ;;  %p8999_p7 = scmp.lt.s32.totalorder %s8993_s19, %s8993_s19 }
  0x17   :  { %p9000_p8 = por %p8999_p7, %p8998_p6 }
  0x19   :  { %p9001_p9 = pnand %p9000_p8, %p8994_p5 }
  0x1b   :  { %9004 = shalt.err (!%p9001_p9)
}
  0x1c   :  { %70 = dma.hbm_to_vmem [thread:$0]  %s11394_s3, 32, %s68_s16, [#allocation13]  }
  0x1d   :  { %s9013_s22 = scalar_lea.vmem %s89_s18, 1024  ;;  %p9018_p11 = scmp.lt.s32.totalorder %s89_s18, %s89_s18 }
  0x1e   :  { %p9014_p10 = scmp.ne.s32.totalorder %s89_s18, %s9013_s22  ;;  %p9019_p12 = scmp.lt.s32.totalorder %s9013_s22, %s9013_s22 }
  0x20   :  { %p9020_p13 = por %p9019_p12, %p9018_p11 }
  0x22   :  { %p9021_p0 = pnand %p9020_p13, %p9014_p10 }
  0x24   :  { %9024 = shalt.err (!%p9021_p0)
}
  0x25   :  { %94 = dma.hbm_to_vmem [thread:$0]  %s11396_s5, 1024, %s89_s18, [#allocation16], %s9296_s28, %s9296_s28, %s9297_s29  }
  0x26   :  { %s9300_s24 = smov [#allocation18]   ;;  %s9301_s26 = smov [#allocation6]  }
  0x27   :  { %s114_s25 = sshll.u32 %s9300_s24, 4  ;;  %s30_s3 = sshll.u32 %s9301_s26, 4  ;;  %s115_s25 = int_to_ptr.vmem [resolvable:$true] %s114_s25  ;;  %s31_s3 = int_to_ptr.vmem [resolvable:$true] %s30_s3 }
  0x28   :  { %s9033_s27 = scalar_lea.vmem %s115_s25, 4096  ;;  %p9038_p2 = scmp.lt.s32.totalorder %s115_s25, %s115_s25 }
  0x29   :  { %p9034_p1 = scmp.ne.s32.totalorder %s115_s25, %s9033_s27  ;;  %p9039_p3 = scmp.lt.s32.totalorder %s9033_s27, %s9033_s27 }
  0x2b   :  { %p9040_p4 = por %p9039_p3, %p9038_p2 }
  0x2d   :  { %p9041_p5 = pnand %p9040_p4, %p9034_p1 }
  0x2f   :  { %9044 = shalt.err (!%p9041_p5)
}
  0x30   :  { %s9302_s30 = smov 256   ;;  %s9303_s14 = smov 16  }
  0x31   :  { %120 = dma.hbm_to_vmem [thread:$0]  %s11399_s8, 4096, %s115_s25, [#allocation19], %s9302_s30, %s9302_s30, %s9303_s14  }
  0x32   :  { %s9053_s5 = scalar_lea.vmem %s31_s3, 192  ;;  %p9058_p7 = scmp.lt.s32.totalorder %s31_s3, %s31_s3 }
  0x33   :  { %p9054_p6 = scmp.ne.s32.totalorder %s31_s3, %s9053_s5  ;;  %p9059_p8 = scmp.lt.s32.totalorder %s9053_s5, %s9053_s5 }
  0x35   :  { %p9060_p9 = por %p9059_p8, %p9058_p7 }
  0x37   :  { %p9061_p10 = pnand %p9060_p9, %p9054_p6 }
  0x39   :  { %9064 = shalt.err (!%p9061_p10)
}
  0x3a   :  { %s9304_s17 = smov 64   ;;  %s9305_s18 = smov 4  }
  0x3b   :  { %36 = dma.hbm_to_vmem [thread:$0]  %s11391_s0, 192, %s31_s3, [#allocation7], %s9304_s17, %s9304_s17, %s9305_s18  }
  0x3c   :  { %s9306_s21 = smov [#allocation11]   ;;  %s9307_s8 = smov [#allocation14]  }
  0x3d   :  { %s54_s22 = sshll.u32 %s9306_s21, 4  ;;  %s76_s1 = sshll.u32 %s9307_s8, 4  ;;  %s55_s22 = int_to_ptr.vmem [resolvable:$true] %s54_s22  ;;  %s77_s1 = int_to_ptr.vmem [resolvable:$true] %s76_s1 }
  0x3e   :  { %s9073_s23 = scalar_lea.vmem %s55_s22, 1024  ;;  %p9078_p12 = scmp.lt.s32.totalorder %s55_s22, %s55_s22 }
  0x3f   :  { %p9074_p11 = scmp.ne.s32.totalorder %s55_s22, %s9073_s23  ;;  %p9079_p13 = scmp.lt.s32.totalorder %s9073_s23, %s9073_s23 }
  0x41   :  { %p9080_p0 = por %p9079_p13, %p9078_p12 }
  0x43   :  { %p9081_p1 = pnand %p9080_p0, %p9074_p11 }
  0x45   :  { %9084 = shalt.err (!%p9081_p1)
}
  0x46   :  { %60 = dma.hbm_to_vmem [thread:$0]  %s11393_s2, 1024, %s55_s22, [#allocation10], %s9296_s28, %s9296_s28, %s9297_s29  }
  0x47   :  { %s9093_s0 = scalar_lea.vmem %s77_s1, 1024  ;;  %p9098_p3 = scmp.lt.s32.totalorder %s77_s1, %s77_s1 }
  0x48   :  { %p9094_p2 = scmp.ne.s32.totalorder %s77_s1, %s9093_s0  ;;  %p9099_p4 = scmp.lt.s32.totalorder %s9093_s0, %s9093_s0 }
  0x4a   :  { %p9100_p5 = por %p9099_p4, %p9098_p3 }
  0x4c   :  { %p9101_p6 = pnand %p9100_p5, %p9094_p2 }
  0x4e   :  { %9104 = shalt.err (!%p9101_p6)
}
  0x4f   :  { %82 = dma.hbm_to_vmem [thread:$0]  %s11395_s4, 1024, %s77_s1, [#allocation13], %s9296_s28, %s9296_s28, %s9297_s29  }
  0x50   :  { %s9308_s27 = smov [#allocation17]   ;;  %s9309_s16 = smov [#allocation20]  }
  0x51   :  { %s102_s15 = sshll.u32 %s9308_s27, 4  ;;  %s128_s2 = sshll.u32 %s9309_s16, 4  ;;  %s103_s15 = int_to_ptr.vmem [resolvable:$true] %s102_s15  ;;  %s129_s2 = int_to_ptr.vmem [resolvable:$true] %s128_s2 }
  0x52   :  { %s9113_s5 = scalar_lea.vmem %s103_s15, 4096  ;;  %p9118_p8 = scmp.lt.s32.totalorder %s103_s15, %s103_s15 }
  0x53   :  { %p9114_p7 = scmp.ne.s32.totalorder %s103_s15, %s9113_s5  ;;  %p9119_p9 = scmp.lt.s32.totalorder %s9113_s5, %s9113_s5 }
  0x55   :  { %p9120_p10 = por %p9119_p9, %p9118_p8 }
  0x57   :  { %p9121_p11 = pnand %p9120_p10, %p9114_p7 }
  0x59   :  { %9124 = shalt.err (!%p9121_p11)
}
  0x5a   :  { %108 = dma.hbm_to_vmem [thread:$0]  %s11398_s7, 4096, %s103_s15, [#allocation16], %s9302_s30, %s9302_s30, %s9303_s14  }
  0x5b   :  { %s9133_s4 = scalar_lea.vmem %s129_s2, 4096  ;;  %p9138_p13 = scmp.lt.s32.totalorder %s129_s2, %s129_s2 }
  0x5c   :  { %p9134_p12 = scmp.ne.s32.totalorder %s129_s2, %s9133_s4  ;;  %p9139_p0 = scmp.lt.s32.totalorder %s9133_s4, %s9133_s4 }
  0x5e   :  { %p9140_p1 = por %p9139_p0, %p9138_p13 }
  0x60   :  { %p9141_p2 = pnand %p9140_p1, %p9134_p12 }
  0x62   :  { %9144 = shalt.err (!%p9141_p2)
}
  0x63   :  { %134 = dma.hbm_to_vmem [thread:$0]  %s11401_s10, 4096, %s129_s2, [#allocation19], %s9302_s30, %s9302_s30, %s9303_s14  }
  0x64   :  { %s9310_s22 = smov [#allocation21]  }
  0x65   :  { %s140_s8 = sshll.u32 %s9310_s22, 4  ;;  %s141_s8 = int_to_ptr.vmem [resolvable:$true] %s140_s8 }
  0x66   :  { %s9153_s1 = scalar_lea.vmem %s141_s8, 4096  ;;  %p9158_p4 = scmp.lt.s32.totalorder %s141_s8, %s141_s8 }
  0x67   :  { %p9154_p3 = scmp.ne.s32.totalorder %s141_s8, %s9153_s1  ;;  %p9159_p5 = scmp.lt.s32.totalorder %s9153_s1, %s9153_s1 }
  0x69   :  { %p9160_p6 = por %p9159_p5, %p9158_p4 }
  0x6b   :  { %p9161_p7 = pnand %p9160_p6, %p9154_p3 }
  0x6d   :  { %9164 = shalt.err (!%p9161_p7)
}
  0x6e   :  { %146 = dma.hbm_to_vmem [thread:$0]  %s11402_s11, 4096, %s141_s8, [#allocation22], %s9302_s30, %s9302_s30, %s9303_s14  }
  0x6f   :  { %9233 = dma.done.wait [#allocation7], 192  }
  0x70   :  { %9234 = vsyncadd [#allocation7], 4294967104 }
  0x71   :  { %9235 = dma.done.wait [#allocation10], 3072  }
  0x72   :  { %9236 = vsyncadd [#allocation10], 4294964224 }
  0x73   :  { %9237 = dma.done.wait [#allocation13], 1056  }
  0x74   :  { %9238 = vsyncadd [#allocation13], 4294966240 }
  0x75   :  { %9239 = dma.done.wait [#allocation16], 5120  }
  0x76   :  { %9240 = vsyncadd [#allocation16], 4294962176 }
  0x77   :  { %9241 = dma.done.wait [#allocation19], 8192  }
  0x78   :  { %9242 = vsyncadd [#allocation19], 4294959104 }
  0x79   :  { %9243 = dma.done.wait [#allocation22], 4096  }
  0x7a   :  { %9244 = vsyncadd [#allocation22], 4294963200  ;;  %v9311_v0 = vmov 0   ;;  %v7855_v1 = vld [vmem:[#allocation9 + $0x74] ss:$8 sps:$4 sm:$0xff]   ;;  %v201_v19 = vlaneseq  ;;  %v9457_v40 = vmov 0.0  }
  0x7b   :  { %333 = vmatprep.mubr.bf16.mxu0 %v9311_v0  ;;  %343 = vmatprep.mubr.bf16.mxu1 %v9311_v0  ;;  %v7857_v2 = vld [vmem:[#allocation9 + $0x70] ss:$8 sps:$4 sm:$0xff]   ;;  %v7858_v3 = vld [vmem:[#allocation9 + $0x64] ss:$8 sps:$4 sm:$0xff]   ;;  %v7860_v4 = vld [vmem:[#allocation9 + $0x60] ss:$8 sps:$4 sm:$0xff]  }
  0x7c   :  { %301 = vmatprep.subr.bf16.mxu0 %v7855_v1  ;;  %7719 = vmatprep.subr.bf16.mxu1 %v7855_v1  ;;  %v7861_v5 = vld [vmem:[#allocation9 + $0x54] ss:$8 sps:$4 sm:$0xff]   ;;  %v7863_v6 = vld [vmem:[#allocation9 + $0x50] ss:$8 sps:$4 sm:$0xff]   ;;  %v7864_v7 = vld [vmem:[#allocation9 + $0x44] ss:$8 sps:$4 sm:$0xff]  }
  0x7d   :  { %302 = vmatpush1.bf16.msra.mxu0 %v7857_v2  ;;  %7727 = vmatpush1.bf16.msra.mxu1 %v7857_v2  ;;  %v7866_v8 = vld [vmem:[#allocation9 + $0x40] ss:$8 sps:$4 sm:$0xff]   ;;  %v7867_v9 = vld [vmem:[#allocation9 + $0x34] ss:$8 sps:$4 sm:$0xff]   ;;  %v7869_v10 = vld [vmem:[#allocation9 + $0x30] ss:$8 sps:$4 sm:$0xff]  }
  0x7e   :  { %303 = vmatprep.subr.bf16.mxu0 %v7858_v3  ;;  %7720 = vmatprep.subr.bf16.mxu1 %v7858_v3  ;;  %v7870_v11 = vld [vmem:[#allocation9 + $0x24] ss:$8 sps:$4 sm:$0xff]   ;;  %v7872_v12 = vld [vmem:[#allocation9 + $0x20] ss:$8 sps:$4 sm:$0xff]   ;;  %v7873_v13 = vld [vmem:[#allocation9 + $0x14] ss:$8 sps:$4 sm:$0xff]  }
  0x7f   :  { %v7875_v14 = vld [vmem:[#allocation9 + $0x10] ss:$8 sps:$4 sm:$0xff]   ;;  %v7876_v15 = vld [vmem:[#allocation9 + $0x4] ss:$8 sps:$4 sm:$0xff]   ;;  %v7878_v16 = vld [vmem:[#allocation9] ss:$8 sps:$4 sm:$0xff]  }
  0x80   :  { %v7879_v17 = vld [vmem:[#allocation6] sm:$0xff]   ;;  %v7880_v18 = vld [vmem:[#allocation6 + $0x8] ss:$0 sps:$4 sm:$0x33]   ;;  %v9447_v20 = vshrl.u32 %v201_v19, 7  ;;  %v9459_v41 = vmov 0.0  }
  0x81   :  { %304 = vmatpush1.bf16.msra.mxu0 %v7860_v4  ;;  %7728 = vmatpush1.bf16.msra.mxu1 %v7860_v4  ;;  %v199_v22 = vld [vmem:[#allocation12] sm:$0x3]  ;;  %s9461_s10 = smov 0  }
  0x82   :  { %305 = vmatprep.subr.bf16.mxu0 %v7861_v5  ;;  %7721 = vmatprep.subr.bf16.mxu1 %v7861_v5  ;;  %v9450_v21 = vsub.s32 0, %v9447_v20  ;;  %v9453_v23 = vsub.s32 1, %v9447_v20 }
  0x84   :  { %v204_v24 = vrot.slane %v199_v22, %v9450_v21  ;;  %v208_v25 = vrot.slane %v199_v22, %v9453_v23 }
  0x85   :  { %306 = vmatpush1.bf16.msra.mxu0 %v7863_v6  ;;  %7729 = vmatpush1.bf16.msra.mxu1 %v7863_v6 }
  0x86   :  { %307 = vmatprep.subr.bf16.mxu0 %v7864_v7  ;;  %7722 = vmatprep.subr.bf16.mxu1 %v7864_v7 }
  0x89   :  { %308 = vmatpush1.bf16.msra.mxu0 %v7866_v8  ;;  %7730 = vmatpush1.bf16.msra.mxu1 %v7866_v8 }
  0x8a   :  { %309 = vmatprep.subr.bf16.mxu0 %v7867_v9  ;;  %7723 = vmatprep.subr.bf16.mxu1 %v7867_v9 }
  0x8d   :  { %310 = vmatpush1.bf16.msra.mxu0 %v7869_v10  ;;  %7731 = vmatpush1.bf16.msra.mxu1 %v7869_v10 }
  0x8e   :  { %311 = vmatprep.subr.bf16.mxu0 %v7870_v11  ;;  %7724 = vmatprep.subr.bf16.mxu1 %v7870_v11 }
  0x91   :  { %312 = vmatpush1.bf16.msra.mxu0 %v7872_v12  ;;  %7732 = vmatpush1.bf16.msra.mxu1 %v7872_v12 }
  0x92   :  { %313 = vmatprep.subr.bf16.mxu0 %v7873_v13  ;;  %7725 = vmatprep.subr.bf16.mxu1 %v7873_v13 }
  0x95   :  { %314 = vmatpush1.bf16.msra.mxu0 %v7875_v14  ;;  %7733 = vmatpush1.bf16.msra.mxu1 %v7875_v14 }
  0x96   :  { %315 = vmatprep.subr.bf16.mxu0 %v7876_v15  ;;  %7726 = vmatprep.subr.bf16.mxu1 %v7876_v15 }
  0x99   :  { %316 = vmatpush1.bf16.msra.mxu0 %v7878_v16  ;;  %7734 = vmatpush1.bf16.msra.mxu1 %v7878_v16 }
  0x9c   :  { %334 = vmatmul.mubr.bf16.vlgmr.msra.gmra.mxu0 %v7879_v17  ;;  %344 = vmatmul.mubr.bf16.vlgmr.msra.gmra.mxu1 %v7880_v18 }
 0x15c   :  { %v335_v26 = vpop.f32.mrf.mxu0  ;;  %v345_v27 = vpop.f32.mrf.mxu1 }
 0x15d   :  { %v336_v28 = vadd.f32 %v335_v26, %v204_v24  ;;  %v346_v29 = vadd.f32 %v345_v27, %v204_v24 }
 0x15e   :  { %v337_v30 = vpop.f32.mrf.mxu0  ;;  %v347_v31 = vpop.f32.mrf.mxu1 }
 0x15f   :  { %352 = vst [vmem:[#allocation2] sm:$0xff] %v336_v28  ;;  %356 = vst [vmem:[#allocation2 + $0x20] sm:$0xf] %v346_v29  ;;  %v338_v32 = vadd.f32 %v337_v30, %v208_v25  ;;  %v348_v33 = vadd.f32 %v347_v31, %v208_v25 }
 0x160   :  { %v339_v34 = vpop.f32.mrf.mxu0  ;;  %v349_v35 = vpop.f32.mrf.mxu1 }
 0x161   :  { %353 = vst [vmem:[#allocation2 + $0x8] sm:$0xff] %v338_v32  ;;  %357 = vst [vmem:[#allocation2 + $0x28] sm:$0xf] %v348_v33  ;;  %v340_v36 = vadd.f32 %v339_v34, %v204_v24 }
 0x162   :  { %v341_v37 = vpop.f32.mrf.mxu0  ;;  %v350_v38 = vpop.f32.mrf.mxu1 }
 0x163   :  { %354 = vst [vmem:[#allocation2 + $0x10] sm:$0xff] %v340_v36  ;;  %v342_v39 = vadd.f32 %v341_v37, %v208_v25 }
 0x165   :  { %355 = vst [vmem:[#allocation2 + $0x18] sm:$0xff] %v342_v39 }
 0x166 LB: > { %v9470_v42 = vld [vmem:[#allocation11 + $0x34] ss:$8 sps:$4 sm:$0xff]   ;;  %v9472_v43 = vld [vmem:[#allocation11 + $0x30] ss:$8 sps:$4 sm:$0xff]   ;;  %v9312_v44 = vmov 0   ;;  %v374_v48 = vpack.c.bf16 %v9253_v41, %v9253_v41  ;;  %vm427_vm0 = vcmask 523264   ;;  %s9257_s10 = sphi %s9461_s10, %s363_s10   ;;  %v9253_v41 = vphi %v9459_v41, %v11407_v41   ;;  %v9249_v40 = vphi %v9457_v40, %v11406_v40  }
 0x167   : > { %463 = vmatprep.mubr.bf16.mxu0 %v9312_v44  ;;  %543 = vmatprep.mubr.bf16.mxu1 %v9312_v44  ;;  %v9477_v45 = vld [vmem:[#allocation11 + $0x24] ss:$8 sps:$4 sm:$0xff]   ;;  %v9481_v46 = vld [vmem:[#allocation11 + $0x20] ss:$8 sps:$4 sm:$0xff]   ;;  %v9485_v47 = vld [vmem:[#allocation11 + $0x14] ss:$8 sps:$4 sm:$0xff]  }
 0x168   : > { %439 = vmatprep.subr.bf16.mxu0 %v9470_v42  ;;  %519 = vmatprep.subr.bf16.mxu1 %v9470_v42  ;;  %v9489_v49 = vld [vmem:[#allocation11 + $0x10] ss:$8 sps:$4 sm:$0xff]   ;;  %v9493_v50 = vld [vmem:[#allocation11 + $0x4] ss:$8 sps:$4 sm:$0xff]   ;;  %v384_v51 = vshrl.u32 %v374_v48, 16  ;;  %s7322_s11 = sshll.u32 %s9257_s10, 3 }
 0x169   : > { %440 = vmatpush1.bf16.msra.mxu0 %v9472_v43  ;;  %520 = vmatpush1.bf16.msra.mxu1 %v9472_v43  ;;  %v9497_v52 = vld [vmem:[#allocation11] ss:$8 sps:$4 sm:$0xff]   ;;  %s9517_s30 = sshra.s32 %s7322_s11, 3  ;;  %s9313_s25 = smov 64   ;;  %v488_v6 = vrot.slane %v9249_v40, 7  ;;  %vm1126_vm1 = vcmask 1040384  }
 0x16a   : > { %441 = vmatprep.subr.bf16.mxu0 %v9477_v45  ;;  %521 = vmatprep.subr.bf16.mxu1 %v9477_v45  ;;  %v386_v53 = vrot.slane %v384_v51, 3  ;;  %s7716_s14 = sshll.u32 %s9517_s30, 4  ;;  %vm1128_vm2 = vcmask 1041408   ;;  %vm1130_vm3 = vcmask 1042432   ;;  %vm1132_vm4 = vcmask 1043456   ;;  %s7357_s0 = sshll.u32 %s9517_s30, 2 }
 0x16b   : > { %s371_s24 = scalar_lea.vmem [#allocation2], %s7716_s14  ;;  %vm1134_vm5 = vcmask 1044480   ;;  %vm1136_vm6 = vcmask 1045504   ;;  %vm1138_vm7 = vcmask 1046528   ;;  %vm1143_vm8 = vcmask 519168   ;;  %s1142_s26 = scalar_lea.vmem [#allocation3], %s7357_s0 }
 0x16c   : > { %v9520_v55 = vld [vmem:[%s371_s24 + $0x8] sm:$0xff]  ;;  %v9524_v61 = vld [vmem:[%s371_s24] sm:$0xff]  ;;  %s363_s10 = sadd.s32 1, %s9257_s10  }
 0x16d   : > { %442 = vmatpush1.bf16.msra.mxu0 %v9481_v46  ;;  %522 = vmatpush1.bf16.msra.mxu1 %v9481_v46  ;;  %p360_p8 = scmp.ge.s32.totalorder %s363_s10, 2  }
 0x16e   : > { %443 = vmatprep.subr.bf16.mxu0 %v9485_v47  ;;  %523 = vmatprep.subr.bf16.mxu1 %v9485_v47  ;;  %vm1550_vm9 = vcmask (%p360_p8), 517120  }
 0x171   : > { %444 = vmatpush1.bf16.msra.mxu0 %v9489_v49  ;;  %524 = vmatpush1.bf16.msra.mxu1 %v9489_v49 }
 0x172   : > { %445 = vmatprep.subr.bf16.mxu0 %v9493_v50  ;;  %525 = vmatprep.subr.bf16.mxu1 %v9493_v50 }
 0x175   : > { %446 = vmatpush1.bf16.msra.mxu0 %v9497_v52  ;;  %526 = vmatpush1.bf16.msra.mxu1 %v9497_v52 }
 0x176   : > { %608 = vmatprep.subr.bf16.mxu0 %v9470_v42  ;;  %696 = vmatprep.subr.bf16.mxu1 %v9470_v42 }
 0x178   : > { %7333 = vmatmul.mubr.msk.bf16.vlgmr.msra.gmra.mxu0 %vm427_vm0, %v386_v53 }
 0x179   : > { %609 = vmatpush1.bf16.msra.mxu0 %v9472_v43  ;;  %632 = vmatprep.mubr.bf16.mxu0 %v9312_v44 }
 0x17a   : > { %610 = vmatprep.subr.bf16.mxu0 %v9477_v45 }
 0x17d   : > { %611 = vmatpush1.bf16.msra.mxu0 %v9481_v46 }
 0x17e   : > { %612 = vmatprep.subr.bf16.mxu0 %v9485_v47 }
 0x181   : > { %613 = vmatpush1.bf16.msra.mxu0 %v9489_v49 }
 0x182   : > { %614 = vmatprep.subr.bf16.mxu0 %v9493_v50 }
 0x185   : > { %615 = vmatpush1.bf16.msra.mxu0 %v9497_v52 }
 0x186   : > { %786 = vmatprep.subr.bf16.mxu0 %v9470_v42 }
 0x238   : > { %v465_v54 = vpop.f32.mrf.mxu0 }
 0x239   : > { %v472_v62 = vadd.f32 %v465_v54, %v9524_v61 }
 0x23a   : > { %v467_v56 = vpop.f32.mrf.mxu0 }
 0x23b   : > { %v473_v57 = vadd.f32 %v467_v56, %v9520_v55  ;;  %v7334_v63 = vmul.f32 -1.442695, %v472_v62 }
 0x23c   : > { %v469_v58 = vpop.f32.mrf.mxu0 }
 0x23d   : > { %7893 = vtanh.f32 %v473_v57  ;;  %v7335_v11 = vmul.f32 -1.442695, %v473_v57 }
 0x23e   : > { %v470_v59 = vpop.f32.mrf.mxu0  ;;  %7895 = vpow2.f32 %v7334_v63 }
 0x24a   : > { %v7894_v60 = vpop.eup %7893 }
 0x24b   : > { %492 = vrot.lane.b32.xlu0 %v7894_v60, %s9313_s25  ;;  %v7896_v1 = vpop.eup %7895 }
 0x24c   : > { %v480_v2 = vadd.f32 1.0, %v7896_v1 }
 0x24e   : > { %7897 = vrcp.f32 %v480_v2 }
 0x25b   : > { %v7898_v3 = vpop.eup %7897 }
 0x25c   : > { %v490_v7 = vmul.f32 %v7898_v3, %v488_v6 }
 0x2bd   : > { %v493_v4 = vpop.permute.xlu0 %492 }
 0x2be   : > { %v495_v5 = vmul.f32 %v7898_v3, %v493_v4 }
 0x2c0   : > { %497 = vrot.lane.b32.xlu0 %v495_v5, %s9313_s25 }
 0x332   : > { %v498_v8 = vpop.permute.xlu0 %497 }
 0x333   : > { %v500_v9 = vadd.f32 %v498_v8, %v490_v7 }
 0x335   : > { %7899 = vtanh.f32 %v500_v9  ;;  %v574_v36 = vrot.slane %v500_v9, 7 }
 0x336   : > { %7901 = vpow2.f32 %v7335_v11 }
 0x342   : > { %v7900_v10 = vpop.eup %7899 }
 0x343   : > { %503 = vrot.lane.b32.xlu1 %v7900_v10, %s9313_s25  ;;  %v7902_v12 = vpop.eup %7901 }
 0x344   : > { %v481_v13 = vadd.f32 1.0, %v7902_v12 }
 0x346   : > { %7903 = vrcp.f32 %v481_v13 }
 0x353   : > { %v7904_v14 = vpop.eup %7903 }
 0x3b5   : > { %v504_v15 = vpop.permute.xlu1 %503 }
 0x3b6   : > { %v9530_v16 = vmul.f32 %v7904_v14, %v504_v15 }
 0x3b8   : > { %v507_v17 = vpack.c.bf16 %v9530_v16, %v9530_v16 }
 0x3ba   : > { %7336 = vmatmul.mubr.msk.bf16.vlgmr.msra.gmra.mxu1 %vm427_vm0, %v507_v17 }
 0x3bb   : > { %697 = vmatpush1.bf16.msra.mxu1 %v9472_v43  ;;  %720 = vmatprep.mubr.bf16.mxu1 %v9312_v44 }
 0x3bc   : > { %698 = vmatprep.subr.bf16.mxu1 %v9477_v45 }
 0x3bf   : > { %699 = vmatpush1.bf16.msra.mxu1 %v9481_v46 }
 0x3c0   : > { %700 = vmatprep.subr.bf16.mxu1 %v9485_v47 }
 0x3c3   : > { %701 = vmatpush1.bf16.msra.mxu1 %v9489_v49 }
 0x3c4   : > { %702 = vmatprep.subr.bf16.mxu1 %v9493_v50 }
 0x3c7   : > { %703 = vmatpush1.bf16.msra.mxu1 %v9497_v52 }
 0x3c8   : > { %874 = vmatprep.subr.bf16.mxu1 %v9470_v42 }
 0x47a   : > { %v545_v18 = vpop.f32.mrf.mxu1 }
 0x47b   : > { %v554_v28 = vrot.slane %v545_v18, 7 }
 0x47c   : > { %v547_v19 = vpop.f32.mrf.mxu1 }
 0x47d   : > { %v555_v22 = vrot.slane %v547_v19, 7  ;;  %v558_v29 = vadd.f32 %v554_v28, %v9524_v61 }
 0x47e   : > { %v549_v24 = vpop.f32.mrf.mxu1 }
 0x47f   : > { %v559_v25 = vadd.f32 %v555_v22, %v9520_v55  ;;  %v7337_v30 = vmul.f32 -1.442695, %v558_v29 }
 0x480   : > { %v550_v26 = vpop.f32.mrf.mxu1 }
 0x481   : > { %7905 = vtanh.f32 %v559_v25  ;;  %v7338_v41 = vmul.f32 -1.442695, %v559_v25 }
 0x482   : > { %7907 = vpow2.f32 %v7337_v30 }
 0x48e   : > { %v7906_v27 = vpop.eup %7905 }
 0x48f   : > { %578 = vrot.lane.b32.xlu1 %v7906_v27, %s9313_s25  ;;  %v7908_v31 = vpop.eup %7907 }
 0x490   : > { %v566_v32 = vadd.f32 1.0, %v7908_v31 }
 0x492   : > { %7909 = vrcp.f32 %v566_v32 }
 0x49f   : > { %v7910_v33 = vpop.eup %7909 }
 0x4a0   : > { %v576_v37 = vmul.f32 %v7910_v33, %v574_v36 }
 0x501   : > { %v579_v34 = vpop.permute.xlu1 %578 }
 0x502   : > { %v581_v35 = vmul.f32 %v7910_v33, %v579_v34 }
 0x504   : > { %583 = vrot.lane.b32.xlu0 %v581_v35, %s9313_s25 }
 0x576   : > { %v584_v38 = vpop.permute.xlu0 %583 }
 0x577   : > { %v586_v39 = vadd.f32 %v584_v38, %v576_v37 }
 0x579   : > { %7911 = vtanh.f32 %v586_v39  ;;  %v663_v12 = vrot.slane %v586_v39, 7 }
 0x57a   : > { %7913 = vpow2.f32 %v7338_v41 }
 0x586   : > { %v7912_v40 = vpop.eup %7911 }
 0x587   : > { %589 = vrot.lane.b32.xlu1 %v7912_v40, %s9313_s25  ;;  %v7914_v48 = vpop.eup %7913 }
 0x588   : > { %v567_v51 = vadd.f32 1.0, %v7914_v48 }
 0x58a   : > { %7915 = vrcp.f32 %v567_v51 }
 0x597   : > { %v7916_v53 = vpop.eup %7915 }
 0x5f9   : > { %v590_v54 = vpop.permute.xlu1 %589 }
 0x5fa   : > { %v592_v56 = vmul.f32 %v7916_v53, %v590_v54 }
 0x5fc   : > { %v593_v57 = vpack.c.bf16 %v592_v56, %v592_v56  ;;  %v1127_v27 = vsel %vm1126_vm1, %v9530_v16, %v592_v56 }
 0x5fe   : > { %v595_v58 = vshrl.u32 %v593_v57, 16 }
 0x600   : > { %7339 = vmatmul.mubr.msk.bf16.vlgmr.msra.gmra.mxu0 %vm427_vm0, %v595_v58 }
 0x601   : > { %787 = vmatpush1.bf16.msra.mxu0 %v9472_v43  ;;  %810 = vmatprep.mubr.bf16.mxu0 %v9312_v44 }
 0x602   : > { %788 = vmatprep.subr.bf16.mxu0 %v9477_v45 }
 0x605   : > { %789 = vmatpush1.bf16.msra.mxu0 %v9481_v46 }
 0x606   : > { %790 = vmatprep.subr.bf16.mxu0 %v9485_v47 }
 0x609   : > { %791 = vmatpush1.bf16.msra.mxu0 %v9489_v49 }
 0x60a   : > { %792 = vmatprep.subr.bf16.mxu0 %v9493_v50 }
 0x60d   : > { %793 = vmatpush1.bf16.msra.mxu0 %v9497_v52 }
 0x60e   : > { %964 = vmatprep.subr.bf16.mxu0 %v9470_v42 }
 0x6c0   : > { %v634_v59 = vpop.f32.mrf.mxu0 }
 0x6c1   : > { %v643_v4 = vrot.slane %v634_v59, 6 }
 0x6c2   : > { %v636_v60 = vpop.f32.mrf.mxu0 }
 0x6c3   : > { %v644_v62 = vrot.slane %v636_v60, 6  ;;  %v647_v5 = vadd.f32 %v643_v4, %v9524_v61 }
 0x6c4   : > { %v638_v63 = vpop.f32.mrf.mxu0 }
 0x6c5   : > { %v648_v1 = vadd.f32 %v644_v62, %v9520_v55  ;;  %v7340_v6 = vmul.f32 -1.442695, %v647_v5 }
 0x6c6   : > { %v639_v2 = vpop.f32.mrf.mxu0 }
 0x6c7   : > { %7917 = vtanh.f32 %v648_v1  ;;  %v7341_v18 = vmul.f32 -1.442695, %v648_v1 }
 0x6c8   : > { %7919 = vpow2.f32 %v7340_v6 }
 0x6d4   : > { %v7918_v3 = vpop.eup %7917 }
 0x6d5   : > { %667 = vrot.lane.b32.xlu0 %v7918_v3, %s9313_s25  ;;  %v7920_v7 = vpop.eup %7919 }
 0x6d6   : > { %v655_v8 = vadd.f32 1.0, %v7920_v7 }
 0x6d8   : > { %7921 = vrcp.f32 %v655_v8 }
 0x6e5   : > { %v7922_v9 = vpop.eup %7921 }
 0x6e6   : > { %v665_v13 = vmul.f32 %v7922_v9, %v663_v12 }
 0x747   : > { %v668_v10 = vpop.permute.xlu0 %667 }
 0x748   : > { %v670_v11 = vmul.f32 %v7922_v9, %v668_v10 }
 0x74a   : > { %672 = vrot.lane.b32.xlu1 %v670_v11, %s9313_s25 }
 0x7bc   : > { %v673_v14 = vpop.permute.xlu1 %672 }
 0x7bd   : > { %v675_v15 = vadd.f32 %v673_v14, %v665_v13 }
 0x7bf   : > { %7923 = vtanh.f32 %v675_v15  ;;  %v751_v53 = vrot.slane %v675_v15, 7 }
 0x7c0   : > { %7925 = vpow2.f32 %v7341_v18 }
 0x7cc   : > { %v7924_v17 = vpop.eup %7923 }
 0x7cd   : > { %678 = vrot.lane.b32.xlu0 %v7924_v17, %s9313_s25  ;;  %v7926_v19 = vpop.eup %7925 }
 0x7ce   : > { %v656_v22 = vadd.f32 1.0, %v7926_v19 }
 0x7d0   : > { %7927 = vrcp.f32 %v656_v22 }
 0x7dd   : > { %v7928_v24 = vpop.eup %7927 }
 0x83f   : > { %v679_v25 = vpop.permute.xlu0 %678 }
 0x840   : > { %v681_v26 = vmul.f32 %v7928_v24, %v679_v25 }
 0x842   : > { %v682_v28 = vpack.c.bf16 %v681_v26, %v681_v26  ;;  %v1129_v29 = vsel %vm1128_vm2, %v1127_v27, %v681_v26 }
 0x844   : > { %v684_v30 = vrot.slane %v682_v28, 1 }
 0x846   : > { %7342 = vmatmul.mubr.msk.bf16.vlgmr.msra.gmra.mxu1 %vm427_vm0, %v684_v30 }
 0x847   : > { %875 = vmatpush1.bf16.msra.mxu1 %v9472_v43  ;;  %898 = vmatprep.mubr.bf16.mxu1 %v9312_v44 }
 0x848   : > { %876 = vmatprep.subr.bf16.mxu1 %v9477_v45 }
 0x84b   : > { %877 = vmatpush1.bf16.msra.mxu1 %v9481_v46 }
 0x84c   : > { %878 = vmatprep.subr.bf16.mxu1 %v9485_v47 }
 0x84f   : > { %879 = vmatpush1.bf16.msra.mxu1 %v9489_v49 }
 0x850   : > { %880 = vmatprep.subr.bf16.mxu1 %v9493_v50 }
 0x853   : > { %881 = vmatpush1.bf16.msra.mxu1 %v9497_v52 }
 0x854   : > { %1052 = vmatprep.subr.bf16.mxu1 %v9470_v42 }
 0x906   : > { %v722_v16 = vpop.f32.mrf.mxu1 }
 0x907   : > { %v731_v37 = vrot.slane %v722_v16, 5 }
 0x908   : > { %v724_v31 = vpop.f32.mrf.mxu1 }
 0x909   : > { %v732_v32 = vrot.slane %v724_v31, 5  ;;  %v735_v38 = vadd.f32 %v731_v37, %v9524_v61 }
 0x90a   : > { %v726_v33 = vpop.f32.mrf.mxu1 }
 0x90b   : > { %v736_v34 = vadd.f32 %v732_v32, %v9520_v55  ;;  %v7343_v39 = vmul.f32 -1.442695, %v735_v38 }
 0x90c   : > { %v727_v35 = vpop.f32.mrf.mxu1 }
 0x90d   : > { %7929 = vtanh.f32 %v736_v34  ;;  %v7344_v59 = vmul.f32 -1.442695, %v736_v34 }
 0x90e   : > { %7931 = vpow2.f32 %v7343_v39 }
 0x91a   : > { %v7930_v36 = vpop.eup %7929 }
 0x91b   : > { %755 = vrot.lane.b32.xlu1 %v7930_v36, %s9313_s25  ;;  %v7932_v40 = vpop.eup %7931 }
 0x91c   : > { %v743_v41 = vadd.f32 1.0, %v7932_v40 }
 0x91e   : > { %7933 = vrcp.f32 %v743_v41 }
 0x92b   : > { %v7934_v42 = vpop.eup %7933 }
 0x92c   : > { %v753_v54 = vmul.f32 %v7934_v42, %v751_v53 }
 0x98d   : > { %v756_v48 = vpop.permute.xlu1 %755 }
 0x98e   : > { %v758_v51 = vmul.f32 %v7934_v42, %v756_v48 }
 0x990   : > { %760 = vrot.lane.b32.xlu0 %v758_v51, %s9313_s25 }
 0xa02   : > { %v761_v56 = vpop.permute.xlu0 %760 }
 0xa03   : > { %v763_v57 = vadd.f32 %v761_v56, %v753_v54 }
 0xa05   : > { %7935 = vtanh.f32 %v763_v57  ;;  %v841_v26 = vrot.slane %v763_v57, 7 }
 0xa06   : > { %7937 = vpow2.f32 %v7344_v59 }
 0xa12   : > { %v7936_v58 = vpop.eup %7935 }
 0xa13   : > { %766 = vrot.lane.b32.xlu1 %v7936_v58, %s9313_s25  ;;  %v7938_v60 = vpop.eup %7937 }
 0xa14   : > { %v744_v62 = vadd.f32 1.0, %v7938_v60 }
 0xa16   : > { %7939 = vrcp.f32 %v744_v62 }
 0xa23   : > { %v7940_v63 = vpop.eup %7939 }
 0xa85   : > { %v767_v1 = vpop.permute.xlu1 %766 }
 0xa86   : > { %v769_v2 = vmul.f32 %v7940_v63, %v767_v1 }
 0xa88   : > { %v770_v3 = vpack.c.bf16 %v769_v2, %v769_v2  ;;  %v1131_v4 = vsel %vm1130_vm3, %v1129_v29, %v769_v2 }
 0xa8a   : > { %v772_v5 = vshrl.u32 %v770_v3, 16 }
 0xa8c   : > { %v774_v6 = vrot.slane %v772_v5, 1 }
 0xa8e   : > { %7345 = vmatmul.mubr.msk.bf16.vlgmr.msra.gmra.mxu0 %vm427_vm0, %v774_v6 }
 0xa8f   : > { %965 = vmatpush1.bf16.msra.mxu0 %v9472_v43  ;;  %988 = vmatprep.mubr.bf16.mxu0 %v9312_v44 }
 0xa90   : > { %966 = vmatprep.subr.bf16.mxu0 %v9477_v45 }
 0xa93   : > { %967 = vmatpush1.bf16.msra.mxu0 %v9481_v46 }
 0xa94   : > { %968 = vmatprep.subr.bf16.mxu0 %v9485_v47 }
 0xa97   : > { %969 = vmatpush1.bf16.msra.mxu0 %v9489_v49 }
 0xa98   : > { %970 = vmatprep.subr.bf16.mxu0 %v9493_v50 }
 0xa9b   : > { %971 = vmatpush1.bf16.msra.mxu0 %v9497_v52 }
 0xb4e   : > { %v812_v7 = vpop.f32.mrf.mxu0 }
 0xb4f   : > { %v821_v14 = vrot.slane %v812_v7, 4 }
 0xb50   : > { %v814_v8 = vpop.f32.mrf.mxu0 }
 0xb51   : > { %v822_v9 = vrot.slane %v814_v8, 4  ;;  %v825_v15 = vadd.f32 %v821_v14, %v9524_v61 }
 0xb52   : > { %v816_v10 = vpop.f32.mrf.mxu0 }
 0xb53   : > { %v826_v11 = vadd.f32 %v822_v9, %v9520_v55  ;;  %v7346_v17 = vmul.f32 -1.442695, %v825_v15 }
 0xb54   : > { %v817_v12 = vpop.f32.mrf.mxu0 }
 0xb55   : > { %7941 = vtanh.f32 %v826_v11  ;;  %v7347_v16 = vmul.f32 -1.442695, %v826_v11 }
 0xb56   : > { %7943 = vpow2.f32 %v7346_v17 }
 0xb62   : > { %v7942_v13 = vpop.eup %7941 }
 0xb63   : > { %845 = vrot.lane.b32.xlu0 %v7942_v13, %s9313_s25  ;;  %v7944_v18 = vpop.eup %7943 }
 0xb64   : > { %v833_v19 = vadd.f32 1.0, %v7944_v18 }
 0xb66   : > { %7945 = vrcp.f32 %v833_v19 }
 0xb73   : > { %v7946_v22 = vpop.eup %7945 }
 0xb74   : > { %v843_v27 = vmul.f32 %v7946_v22, %v841_v26 }
 0xbd5   : > { %v846_v24 = vpop.permute.xlu0 %845 }
 0xbd6   : > { %v848_v25 = vmul.f32 %v7946_v22, %v846_v24 }
 0xbd8   : > { %850 = vrot.lane.b32.xlu1 %v848_v25, %s9313_s25 }
 0xc4a   : > { %v851_v28 = vpop.permute.xlu1 %850 }
 0xc4b   : > { %v853_v29 = vadd.f32 %v851_v28, %v843_v27 }
 0xc4d   : > { %7947 = vtanh.f32 %v853_v29  ;;  %v929_v54 = vrot.slane %v853_v29, 7 }
 0xc4e   : > { %7949 = vpow2.f32 %v7347_v16 }
 0xc5a   : > { %v7948_v30 = vpop.eup %7947 }
 0xc5b   : > { %856 = vrot.lane.b32.xlu0 %v7948_v30, %s9313_s25  ;;  %v7950_v31 = vpop.eup %7949 }
 0xc5c   : > { %v834_v32 = vadd.f32 1.0, %v7950_v31 }
 0xc5e   : > { %7951 = vrcp.f32 %v834_v32 }
 0xc6b   : > { %v7952_v33 = vpop.eup %7951 }
 0xccd   : > { %v857_v34 = vpop.permute.xlu0 %856 }
 0xcce   : > { %v859_v35 = vmul.f32 %v7952_v33, %v857_v34 }
 0xcd0   : > { %v860_v36 = vpack.c.bf16 %v859_v35, %v859_v35  ;;  %v1133_v37 = vsel %vm1132_vm4, %v1131_v4, %v859_v35 }
 0xcd2   : > { %v862_v38 = vrot.slane %v860_v36, 2 }
 0xcd4   : > { %7348 = vmatmul.mubr.msk.bf16.vlgmr.msra.gmra.mxu1 %vm427_vm0, %v862_v38 }
 0xcd5   : > { %1053 = vmatpush1.bf16.msra.mxu1 %v9472_v43  ;;  %1076 = vmatprep.mubr.bf16.mxu1 %v9312_v44 }
 0xcd6   : > { %1054 = vmatprep.subr.bf16.mxu1 %v9477_v45 }
 0xcd9   : > { %1055 = vmatpush1.bf16.msra.mxu1 %v9481_v46 }
 0xcda   : > { %1056 = vmatprep.subr.bf16.mxu1 %v9485_v47 }
 0xcdd   : > { %1057 = vmatpush1.bf16.msra.mxu1 %v9489_v49 }
 0xcde   : > { %1058 = vmatprep.subr.bf16.mxu1 %v9493_v50 }
 0xce1   : > { %1059 = vmatpush1.bf16.msra.mxu1 %v9497_v52 }
 0xd94   : > { %v900_v39 = vpop.f32.mrf.mxu1 }
 0xd95   : > { %v909_v45 = vrot.slane %v900_v39, 3 }
 0xd96   : > { %v902_v40 = vpop.f32.mrf.mxu1 }
 0xd97   : > { %v910_v41 = vrot.slane %v902_v40, 3  ;;  %v913_v46 = vadd.f32 %v909_v45, %v9524_v61 }
 0xd98   : > { %v904_v42 = vpop.f32.mrf.mxu1 }
 0xd99   : > { %v914_v43 = vadd.f32 %v910_v41, %v9520_v55  ;;  %v7349_v47 = vmul.f32 -1.442695, %v913_v46 }
 0xd9a   : > { %v905_v48 = vpop.f32.mrf.mxu1 }
 0xd9b   : > { %7953 = vtanh.f32 %v914_v43  ;;  %v7350_v60 = vmul.f32 -1.442695, %v914_v43 }
 0xd9c   : > { %7955 = vpow2.f32 %v7349_v47 }
 0xda8   : > { %v7954_v44 = vpop.eup %7953 }
 0xda9   : > { %933 = vrot.lane.b32.xlu1 %v7954_v44, %s9313_s25  ;;  %v7956_v49 = vpop.eup %7955 }
 0xdaa   : > { %v921_v50 = vadd.f32 1.0, %v7956_v49 }
 0xdac   : > { %7957 = vrcp.f32 %v921_v50 }
 0xdb9   : > { %v7958_v52 = vpop.eup %7957 }
 0xdba   : > { %v931_v56 = vmul.f32 %v7958_v52, %v929_v54 }
 0xe1b   : > { %v934_v51 = vpop.permute.xlu1 %933 }
 0xe1c   : > { %v936_v53 = vmul.f32 %v7958_v52, %v934_v51 }
 0xe1e   : > { %938 = vrot.lane.b32.xlu0 %v936_v53, %s9313_s25 }
 0xe90   : > { %v939_v57 = vpop.permute.xlu0 %938 }
 0xe91   : > { %v941_v58 = vadd.f32 %v939_v57, %v931_v56 }
 0xe93   : > { %7959 = vtanh.f32 %v941_v58  ;;  %v1019_v27 = vrot.slane %v941_v58, 7 }
 0xe94   : > { %7961 = vpow2.f32 %v7350_v60 }
 0xea0   : > { %v7960_v59 = vpop.eup %7959 }
 0xea1   : > { %944 = vrot.lane.b32.xlu1 %v7960_v59, %s9313_s25  ;;  %v7962_v62 = vpop.eup %7961 }
 0xea2   : > { %v922_v63 = vadd.f32 1.0, %v7962_v62 }
 0xea4   : > { %7963 = vrcp.f32 %v922_v63 }
 0xeb1   : > { %v7964_v1 = vpop.eup %7963 }
 0xf13   : > { %v945_v2 = vpop.permute.xlu1 %944 }
 0xf14   : > { %v947_v3 = vmul.f32 %v7964_v1, %v945_v2 }
 0xf16   : > { %v948_v4 = vpack.c.bf16 %v947_v3, %v947_v3  ;;  %v1135_v5 = vsel %vm1134_vm5, %v1133_v37, %v947_v3 }
 0xf18   : > { %v950_v6 = vshrl.u32 %v948_v4, 16 }
 0xf1a   : > { %v952_v7 = vrot.slane %v950_v6, 2  ;;  %v9641_v6 = vld [vmem:[#allocation11 + $0x30] ss:$8 sps:$4 sm:$0xff] (%p360_p8)  }
 0xf1c   : > { %7351 = vmatmul.mubr.msk.bf16.vlgmr.msra.gmra.mxu0 %vm427_vm0, %v952_v7  ;;  %v9643_v7 = vld [vmem:[#allocation11 + $0x24] ss:$8 sps:$4 sm:$0xff] (%p360_p8)  }
 0xf1d   :  { %1405 = vmatprep.mubr.bf16.mxu0 (%p360_p8), %v9311_v0 }
 0xfdc   : > { %v990_v8 = vpop.f32.mrf.mxu0 }
 0xfdd   : > { %v999_v15 = vrot.slane %v990_v8, 2  ;;  %v9646_v8 = vld [vmem:[#allocation11 + $0x20] ss:$8 sps:$4 sm:$0xff] (%p360_p8)  }
 0xfde   : > { %v992_v9 = vpop.f32.mrf.mxu0 }
 0xfdf   : > { %v1000_v10 = vrot.slane %v992_v9, 2  ;;  %v1003_v17 = vadd.f32 %v999_v15, %v9524_v61  ;;  %v9650_v9 = vld [vmem:[#allocation11 + $0x14] ss:$8 sps:$4 sm:$0xff] (%p360_p8)  }
 0xfe0   : > { %v994_v11 = vpop.f32.mrf.mxu0 }
 0xfe1   : > { %v1004_v12 = vadd.f32 %v1000_v10, %v9520_v55  ;;  %v7352_v18 = vmul.f32 -1.442695, %v1003_v17  ;;  %v9653_v10 = vld [vmem:[#allocation11 + $0x10] ss:$8 sps:$4 sm:$0xff] (%p360_p8)   ;;  %v9655_v11 = vld [vmem:[#allocation11 + $0x4] ss:$8 sps:$4 sm:$0xff] (%p360_p8)  }
 0xfe2   : > { %v995_v13 = vpop.f32.mrf.mxu0 }
 0xfe3   : > { %7965 = vtanh.f32 %v1004_v12  ;;  %v7353_v31 = vmul.f32 -1.442695, %v1004_v12 }
 0xfe4   : > { %7967 = vpow2.f32 %v7352_v18  ;;  %v9673_v18 = vld [vmem:[#allocation2 + $0x28] sm:$0xf] (%p360_p8) }
 0xff0   : > { %v7966_v14 = vpop.eup %7965 }
 0xff1   : > { %1023 = vrot.lane.b32.xlu0 %v7966_v14, %s9313_s25  ;;  %v7968_v19 = vpop.eup %7967  ;;  %v8000_v14 = vld [vmem:[#allocation11] ss:$8 sps:$4 sm:$0xff] (%p360_p8)  }
 0xff2   : > { %v1011_v22 = vadd.f32 1.0, %v7968_v19 }
 0xff4   : > { %7969 = vrcp.f32 %v1011_v22 }
0x1001   : > { %v7970_v24 = vpop.eup %7969 }
0x1002   : > { %v1021_v28 = vmul.f32 %v7970_v24, %v1019_v27  ;;  %v9677_v27 = vld [vmem:[#allocation2 + $0x20] sm:$0xf] (%p360_p8) }
0x1063   : > { %v1024_v25 = vpop.permute.xlu0 %1023 }
0x1064   : > { %v1026_v26 = vmul.f32 %v7970_v24, %v1024_v25 }
0x1066   : > { %1028 = vrot.lane.b32.xlu1 %v1026_v26, %s9313_s25 }
0x10d8   : > { %v1029_v29 = vpop.permute.xlu1 %1028 }
0x10d9   : > { %v1031_v30 = vadd.f32 %v1029_v29, %v1021_v28 }
0x10db   : > { %7971 = vtanh.f32 %v1031_v30 }
0x10dc   : > { %7973 = vpow2.f32 %v7353_v31 }
0x10e8   : > { %v7972_v16 = vpop.eup %7971 }
0x10e9   : > { %1034 = vrot.lane.b32.xlu0 %v7972_v16, %s9313_s25  ;;  %v7974_v32 = vpop.eup %7973 }
0x10ea   : > { %v1012_v33 = vadd.f32 1.0, %v7974_v32 }
0x10ec   : > { %7975 = vrcp.f32 %v1012_v33 }
0x10f9   : > { %v7976_v34 = vpop.eup %7975 }
0x115b   : > { %v1035_v35 = vpop.permute.xlu0 %1034 }
0x115c   : > { %v1037_v36 = vmul.f32 %v7976_v34, %v1035_v35 }
0x115e   : > { %v1038_v37 = vpack.c.bf16 %v1037_v36, %v1037_v36  ;;  %v1137_v38 = vsel %vm1136_vm6, %v1135_v5, %v1037_v36  ;;  %v7989_v5 = vld [vmem:[#allocation11 + $0x34] ss:$8 sps:$4 sm:$0xff] (%p360_p8)  }
0x115f   :  { %1212 = vmatprep.subr.bf16.mxu1 (%p360_p8), %v7989_v5  ;;  %1381 = vmatprep.subr.bf16.mxu0 (%p360_p8), %v7989_v5 }
0x1160   : > { %v1040_v39 = vrot.slane %v1038_v37, 3  ;;  %1382 = vmatpush1.bf16.msra.mxu0 (%p360_p8), %v9641_v6 }
0x1161   :  { %1383 = vmatprep.subr.bf16.mxu0 (%p360_p8), %v9643_v7 }
0x1162   : > { %7354 = vmatmul.mubr.msk.bf16.vlgmr.msra.gmra.mxu1 %vm427_vm0, %v1040_v39 }
0x1163   :  { %1236 = vmatprep.mubr.bf16.mxu1 (%p360_p8), %v9311_v0  ;;  %1213 = vmatpush1.bf16.msra.mxu1 (%p360_p8), %v9641_v6 }
0x1164   :  { %1214 = vmatprep.subr.bf16.mxu1 (%p360_p8), %v9643_v7  ;;  %1384 = vmatpush1.bf16.msra.mxu0 (%p360_p8), %v9646_v8 }
0x1165   :  { %1385 = vmatprep.subr.bf16.mxu0 (%p360_p8), %v9650_v9 }
0x1167   :  { %1215 = vmatpush1.bf16.msra.mxu1 (%p360_p8), %v9646_v8 }
0x1168   :  { %1216 = vmatprep.subr.bf16.mxu1 (%p360_p8), %v9650_v9  ;;  %1386 = vmatpush1.bf16.msra.mxu0 (%p360_p8), %v9653_v10 }
0x1169   :  { %1387 = vmatprep.subr.bf16.mxu0 (%p360_p8), %v9655_v11 }
0x116b   :  { %1217 = vmatpush1.bf16.msra.mxu1 (%p360_p8), %v9653_v10 }
0x116c   :  { %1218 = vmatprep.subr.bf16.mxu1 (%p360_p8), %v9655_v11  ;;  %1388 = vmatpush1.bf16.msra.mxu0 (%p360_p8), %v8000_v14 }
0x116f   :  { %1219 = vmatpush1.bf16.msra.mxu1 (%p360_p8), %v8000_v14 }
0x1170   :  { %1292 = vmatprep.subr.bf16.mxu1 (%p360_p8), %v7989_v5 }
0x1222   : > { %v1078_v40 = vpop.f32.mrf.mxu1 }
0x1223   : > { %v1087_v46 = vrot.slane %v1078_v40, 1 }
0x1224   : > { %v1080_v41 = vpop.f32.mrf.mxu1 }
0x1225   : > { %v1088_v42 = vrot.slane %v1080_v41, 1  ;;  %v1091_v47 = vadd.f32 %v1087_v46, %v9524_v61 }
0x1226   : > { %v1082_v43 = vpop.f32.mrf.mxu1 }
0x1227   : > { %v1092_v48 = vadd.f32 %v1088_v42, %v9520_v55  ;;  %v7355_v49 = vmul.f32 -1.442695, %v1091_v47  ;;  %v1107_v55 = vrot.slane %v1031_v30, 7 }
0x1228   : > { %v1083_v44 = vpop.f32.mrf.mxu1 }
0x1229   : > { %7977 = vtanh.f32 %v1092_v48  ;;  %v7356_v61 = vmul.f32 -1.442695, %v1092_v48 }
0x122a   : > { %7979 = vpow2.f32 %v7355_v49 }
0x1236   : > { %v7978_v45 = vpop.eup %7977 }
0x1237   : > { %1111 = vrot.lane.b32.xlu1 %v7978_v45, %s9313_s25  ;;  %v7980_v50 = vpop.eup %7979 }
0x1238   : > { %v1099_v52 = vadd.f32 1.0, %v7980_v50 }
0x123a   : > { %7981 = vrcp.f32 %v1099_v52 }
0x1247   : > { %v7982_v51 = vpop.eup %7981 }
0x1248   : > { %v1109_v56 = vmul.f32 %v7982_v51, %v1107_v55 }
0x12a9   : > { %v1112_v53 = vpop.permute.xlu1 %1111 }
0x12aa   : > { %v1114_v54 = vmul.f32 %v7982_v51, %v1112_v53 }
0x12ac   : > { %1116 = vrot.lane.b32.xlu0 %v1114_v54, %s9313_s25 }
0x131e   : > { %v1117_v57 = vpop.permute.xlu0 %1116 }
0x131f   : > { %v9625_v40 = vadd.f32 %v1117_v57, %v1109_v56  }
0x1321   : > { %v11405_v58 = vmov %v9625_v40 }
0x1322   : > { %7983 = vtanh.f32 %v11405_v58  ;;  %v11406_v40 = vmov %v11405_v58  ;;  %v1261_v34 = vrot.slane (%p360_p8), %v11405_v58, 7 }
0x1323   : > { %7985 = vpow2.f32 %v7356_v61 }
0x132f   : > { %v7984_v59 = vpop.eup %7983 }
0x1330   : > { %1122 = vrot.lane.b32.xlu1 %v7984_v59, %s9313_s25  ;;  %v7986_v60 = vpop.eup %7985 }
0x1331   : > { %v1100_v62 = vadd.f32 1.0, %v7986_v60 }
0x1333   : > { %7987 = vrcp.f32 %v1100_v62 }
0x1340   : > { %v7988_v63 = vpop.eup %7987 }
0x13a2   : > { %v1123_v1 = vpop.permute.xlu1 %1122 }
0x13a3   : > { %v1125_v2 = vmul.f32 %v7988_v63, %v1123_v1  }
0x13a4   :  { %362 = sbr.rel (!%p360_p8) target bundleno = 358 (0x166), region = 146 }
0x13a5   : > { %v1139_v3 = vsel %vm1138_vm7, %v1137_v38, %v1125_v2  ;;  %v11407_v41 = vmov %v1125_v2  ;;  %v1147_v12 = vpack.c.bf16 (%p360_p8), %v1125_v2, %v1125_v2 }
0x13a6   : > { %v1140_v4 = vpack.c.bf16 %v1139_v3, %v1139_v3 }
0x13a7   :  { %v1157_v13 = vshrl.u32 (%p360_p8), %v1147_v12, 16 }
0x13a8   : > { %1144 = vst.msk [vmem:[%s1142_s26] sm:$0xf] %vm1143_vm8, %v1140_v4 }
0x13a9   :  { %v1159_v15 = vrot.slane %v1157_v13, 3 }
0x13ab   :  { %7366 = vmatmul.mubr.msk.bf16.vlgmr.msra.gmra.mxu1 %vm427_vm0, %v1159_v15 }
0x13ac   :  { %1293 = vmatpush1.bf16.msra.mxu1 %v9641_v6  ;;  %1316 = vmatprep.mubr.bf16.mxu1 %v9311_v0 }
0x13ad   :  { %1294 = vmatprep.subr.bf16.mxu1 %v9643_v7 }
0x13b0   :  { %1295 = vmatpush1.bf16.msra.mxu1 %v9646_v8 }
0x13b1   :  { %1296 = vmatprep.subr.bf16.mxu1 %v9650_v9 }
0x13b4   :  { %1297 = vmatpush1.bf16.msra.mxu1 %v9653_v10 }
0x13b5   :  { %1298 = vmatprep.subr.bf16.mxu1 %v9655_v11 }
0x13b8   :  { %1299 = vmatpush1.bf16.msra.mxu1 %v8000_v14 }
0x13b9   :  { %1469 = vmatprep.subr.bf16.mxu1 %v7989_v5 }
0x146b   :  { %v1238_v17 = vpop.f32.mrf.mxu1 }
0x146c   :  { %v1245_v28 = vadd.f32 %v1238_v17, %v9677_v27 }
0x146d   :  { %v1240_v19 = vpop.f32.mrf.mxu1 }
0x146e   :  { %v1246_v22 = vadd.f32 %v1240_v19, %v9673_v18  ;;  %v7367_v29 = vmul.f32 -1.442695, %v1245_v28 }
0x146f   :  { %v1242_v24 = vpop.f32.mrf.mxu1 }
0x1470   :  { %8015 = vtanh.f32 %v1246_v22  ;;  %v7368_v39 = vmul.f32 -1.442695, %v1246_v22 }
0x1471   :  { %v1243_v25 = vpop.f32.mrf.mxu1  ;;  %8017 = vpow2.f32 %v7367_v29 }
0x147d   :  { %v8016_v26 = vpop.eup %8015 }
0x147e   :  { %1265 = vrot.lane.b32.xlu0 %v8016_v26, %s9304_s17  ;;  %v8018_v30 = vpop.eup %8017 }
0x147f   :  { %v1253_v16 = vadd.f32 1.0, %v8018_v30 }
0x1481   :  { %8019 = vrcp.f32 %v1253_v16 }
0x148e   :  { %v8020_v31 = vpop.eup %8019 }
0x148f   :  { %v1263_v35 = vmul.f32 %v8020_v31, %v1261_v34 }
0x14f0   :  { %v1266_v32 = vpop.permute.xlu0 %1265 }
0x14f1   :  { %v1268_v33 = vmul.f32 %v8020_v31, %v1266_v32 }
0x14f3   :  { %1270 = vrot.lane.b32.xlu0 %v1268_v33, %s9304_s17 }
0x1565   :  { %v1271_v36 = vpop.permute.xlu0 %1270 }
0x1566   :  { %v1273_v37 = vadd.f32 %v1271_v36, %v1263_v35 }
0x1568   :  { %8021 = vtanh.f32 %v1273_v37  ;;  %v1347_v60 = vrot.slane %v1273_v37, 7 }
0x1569   :  { %8023 = vpow2.f32 %v7368_v39 }
0x1575   :  { %v8022_v38 = vpop.eup %8021 }
0x1576   :  { %1276 = vrot.lane.b32.xlu1 %v8022_v38, %s9304_s17  ;;  %v8024_v40 = vpop.eup %8023 }
0x1577   :  { %v1254_v41 = vadd.f32 1.0, %v8024_v40 }
0x1579   :  { %8025 = vrcp.f32 %v1254_v41 }
0x1586   :  { %v8026_v42 = vpop.eup %8025 }
0x15e8   :  { %v1277_v43 = vpop.permute.xlu1 %1276 }
0x15e9   :  { %v9683_v48 = vmul.f32 %v8026_v42, %v1277_v43 }
0x15eb   :  { %v1280_v44 = vpack.c.bf16 %v9683_v48, %v9683_v48 }
0x15ed   :  { %7369 = vmatmul.mubr.msk.bf16.vlgmr.msra.gmra.mxu1 %vm427_vm0, %v1280_v44 }
0x15ee   :  { %1470 = vmatpush1.bf16.msra.mxu1 %v9641_v6  ;;  %1493 = vmatprep.mubr.bf16.mxu1 %v9311_v0 }
0x15ef   :  { %1471 = vmatprep.subr.bf16.mxu1 %v9643_v7 }
0x15f2   :  { %1472 = vmatpush1.bf16.msra.mxu1 %v9646_v8 }
0x15f3   :  { %1473 = vmatprep.subr.bf16.mxu1 %v9650_v9 }
0x15f6   :  { %1474 = vmatpush1.bf16.msra.mxu1 %v9653_v10 }
0x15f7   :  { %1475 = vmatprep.subr.bf16.mxu1 %v9655_v11 }
0x15fa   :  { %1476 = vmatpush1.bf16.msra.mxu1 %v8000_v14 }
0x16ad   :  { %v1318_v45 = vpop.f32.mrf.mxu1 }
0x16ae   :  { %v1327_v53 = vrot.slane %v1318_v45, 7 }
0x16af   :  { %v1320_v46 = vpop.f32.mrf.mxu1 }
0x16b0   :  { %v1328_v47 = vrot.slane %v1320_v46, 7  ;;  %v1331_v54 = vadd.f32 %v1327_v53, %v9677_v27 }
0x16b1   :  { %v1322_v49 = vpop.f32.mrf.mxu1 }
0x16b2   :  { %v1332_v50 = vadd.f32 %v1328_v47, %v9673_v18  ;;  %v7370_v55 = vmul.f32 -1.442695, %v1331_v54 }
0x16b3   :  { %v1323_v52 = vpop.f32.mrf.mxu1 }
0x16b4   :  { %8027 = vtanh.f32 %v1332_v50  ;;  %v7371_v3 = vmul.f32 -1.442695, %v1332_v50 }
0x16b5   :  { %8029 = vpow2.f32 %v7370_v55 }
0x16c1   :  { %v8028_v51 = vpop.eup %8027 }
0x16c2   :  { %1351 = vrot.lane.b32.xlu1 %v8028_v51, %s9304_s17  ;;  %v8030_v56 = vpop.eup %8029 }
0x16c3   :  { %v1339_v57 = vadd.f32 1.0, %v8030_v56 }
0x16c5   :  { %8031 = vrcp.f32 %v1339_v57 }
0x16d2   :  { %v8032_v58 = vpop.eup %8031 }
0x16d3   :  { %v1349_v62 = vmul.f32 %v8032_v58, %v1347_v60  ;;  %v8001_v60 = vld [vmem:[#allocation14 + $0x30] ss:$8 sps:$4 sm:$0xff]  }
0x1734   :  { %v1352_v59 = vpop.permute.xlu1 %1351 }
0x1735   :  { %v1354_v61 = vmul.f32 %v8032_v58, %v1352_v59 }
0x1737   :  { %1356 = vrot.lane.b32.xlu0 %v1354_v61, %s9304_s17 }
0x17a9   :  { %v1357_v63 = vpop.permute.xlu0 %1356 }
0x17aa   :  { %v1359_v1 = vadd.f32 %v1357_v63, %v1349_v62  ;;  %v8006_v62 = vld [vmem:[#allocation14 + $0x24] ss:$8 sps:$4 sm:$0xff]   ;;  %v8004_v63 = vld [vmem:[#allocation14 + $0x20] ss:$8 sps:$4 sm:$0xff]  }
0x17ac   :  { %8033 = vtanh.f32 %v1359_v1  ;;  %v1436_v31 = vrot.slane %v1359_v1, 7  ;;  %v8009_v1 = vld [vmem:[#allocation14 + $0x14] ss:$8 sps:$4 sm:$0xff]  }
0x17ad   :  { %8035 = vpow2.f32 %v7371_v3  ;;  %v8010_v3 = vld [vmem:[#allocation14] ss:$8 sps:$4 sm:$0xff]  }
0x17b9   :  { %v8034_v2 = vpop.eup %8033 }
0x17ba   :  { %1362 = vrot.lane.b32.xlu1 %v8034_v2, %s9304_s17  ;;  %v8036_v4 = vpop.eup %8035  ;;  %v8012_v2 = vld [vmem:[#allocation14 + $0x4] ss:$8 sps:$4 sm:$0xff]  }
0x17bb   :  { %v1340_v5 = vadd.f32 1.0, %v8036_v4 }
0x17bd   :  { %8037 = vrcp.f32 %v1340_v5 }
0x17ca   :  { %v8038_v6 = vpop.eup %8037 }
0x182c   :  { %v1363_v7 = vpop.permute.xlu1 %1362 }
0x182d   :  { %v1365_v8 = vmul.f32 %v8038_v6, %v1363_v7 }
0x182f   :  { %v1366_v9 = vpack.c.bf16 %v1365_v8, %v1365_v8  ;;  %v1544_v42 = vsel %vm1126_vm1, %v9683_v48, %v1365_v8  ;;  %v8013_v8 = vld [vmem:[#allocation3] sm:$0xff]  }
0x1831   :  { %v1368_v10 = vshrl.u32 %v1366_v9, 16 }
0x1833   :  { %7372 = vmatmul.mubr.msk.bf16.vlgmr.msra.gmra.mxu0 %vm427_vm0, %v1368_v10 }
0x1834   :  { %1661 = vmatprep.mubr.bf16.mxu0 %v9311_v0 }
0x18f3   :  { %v1407_v11 = vpop.f32.mrf.mxu0 }
0x18f4   :  { %v1416_v22 = vrot.slane %v1407_v11, 6 }
0x18f5   :  { %v1409_v12 = vpop.f32.mrf.mxu0 }
0x18f6   :  { %v1417_v13 = vrot.slane %v1409_v12, 6  ;;  %v1420_v24 = vadd.f32 %v1416_v22, %v9677_v27 }
0x18f7   :  { %v1411_v14 = vpop.f32.mrf.mxu0 }
0x18f8   :  { %v1421_v15 = vadd.f32 %v1417_v13, %v9673_v18  ;;  %v7373_v25 = vmul.f32 -1.442695, %v1420_v24  ;;  %v1563_v24 = vld [vmem:[%s11397_s6] sm:$0x3]  ;;  %s9732_s6 = smov 0  }
0x18f9   :  { %v1412_v17 = vpop.f32.mrf.mxu0 }
0x18fa   :  { %8039 = vtanh.f32 %v1421_v15  ;;  %v7374_v36 = vmul.f32 -1.442695, %v1421_v15 }
0x18fb   :  { %8041 = vpow2.f32 %v7373_v25  ;;  %v1568_v25 = vrot.slane %v1563_v24, %v9450_v21 }
0x1907   :  { %v8040_v19 = vpop.eup %8039 }
0x1908   :  { %1440 = vrot.lane.b32.xlu0 %v8040_v19, %s9304_s17  ;;  %v8042_v26 = vpop.eup %8041 }
0x1909   :  { %v1428_v28 = vadd.f32 1.0, %v8042_v26  ;;  %v1572_v26 = vrot.slane %v1563_v24, %v9453_v23 }
0x190b   :  { %8043 = vrcp.f32 %v1428_v28 }
0x1918   :  { %v8044_v29 = vpop.eup %8043 }
0x1919   :  { %v1438_v32 = vmul.f32 %v8044_v29, %v1436_v31 }
0x197a   :  { %v1441_v30 = vpop.permute.xlu0 %1440 }
0x197b   :  { %v1443_v16 = vmul.f32 %v8044_v29, %v1441_v30 }
0x197d   :  { %1445 = vrot.lane.b32.xlu1 %v1443_v16, %s9304_s17 }
0x19ef   :  { %v1446_v33 = vpop.permute.xlu1 %1445 }
0x19f0   :  { %v1448_v34 = vadd.f32 %v1446_v33, %v1438_v32 }
0x19f2   :  { %8045 = vtanh.f32 %v1448_v34  ;;  %v1524_v4 = vrot.slane %v1448_v34, 7 }
0x19f3   :  { %8047 = vpow2.f32 %v7374_v36 }
0x19ff   :  { %v8046_v35 = vpop.eup %8045 }
0x1a00   :  { %1451 = vrot.lane.b32.xlu0 %v8046_v35, %s9304_s17  ;;  %v8048_v37 = vpop.eup %8047 }
0x1a01   :  { %v1429_v38 = vadd.f32 1.0, %v8048_v37 }
0x1a03   :  { %8049 = vrcp.f32 %v1429_v38 }
0x1a10   :  { %v8050_v39 = vpop.eup %8049 }
0x1a72   :  { %v1452_v40 = vpop.permute.xlu0 %1451 }
0x1a73   :  { %v1454_v41 = vmul.f32 %v8050_v39, %v1452_v40 }
0x1a75   :  { %v1455_v43 = vpack.c.bf16 %v1454_v41, %v1454_v41  ;;  %v1546_v44 = vsel %vm1128_vm2, %v1544_v42, %v1454_v41  ;;  %v9728_v41 = vmov 0.0   ;;  %v9730_v42 = vmov 0.0  }
0x1a77   :  { %v1457_v45 = vrot.slane %v1455_v43, 1 }
0x1a79   :  { %7375 = vmatmul.mubr.msk.bf16.vlgmr.msra.gmra.mxu1 %vm427_vm0, %v1457_v45 }
0x1b39   :  { %v1495_v46 = vpop.f32.mrf.mxu1 }
0x1b3a   :  { %v1504_v54 = vrot.slane %v1495_v46, 5 }
0x1b3b   :  { %v1497_v47 = vpop.f32.mrf.mxu1 }
0x1b3c   :  { %v1505_v49 = vrot.slane %v1497_v47, 5  ;;  %v1508_v48 = vadd.f32 %v1504_v54, %v9677_v27  ;;  %v8007_v27 = vld [vmem:[#allocation14 + $0x10] ss:$8 sps:$4 sm:$0xff]  }
0x1b3d   :  { %v1499_v50 = vpop.f32.mrf.mxu1 }
0x1b3e   :  { %v1509_v52 = vadd.f32 %v1505_v49, %v9673_v18  ;;  %v7376_v55 = vmul.f32 -1.442695, %v1508_v48  ;;  %v8003_v18 = vld [vmem:[#allocation14 + $0x34] ss:$8 sps:$4 sm:$0xff]  }
0x1b3f   :  { %v1500_v51 = vpop.f32.mrf.mxu1  ;;  %1637 = vmatprep.subr.bf16.mxu0 %v8003_v18 }
0x1b40   :  { %8051 = vtanh.f32 %v1509_v52  ;;  %1638 = vmatpush1.bf16.msra.mxu0 %v8001_v60  ;;  %v7377_v10 = vmul.f32 -1.442695, %v1509_v52 }
0x1b41   :  { %8053 = vpow2.f32 %v7376_v55  ;;  %1639 = vmatprep.subr.bf16.mxu0 %v8006_v62 }
0x1b44   :  { %1640 = vmatpush1.bf16.msra.mxu0 %v8004_v63 }
0x1b45   :  { %1641 = vmatprep.subr.bf16.mxu0 %v8009_v1 }
0x1b48   :  { %1642 = vmatpush1.bf16.msra.mxu0 %v8007_v27 }
0x1b49   :  { %1643 = vmatprep.subr.bf16.mxu0 %v8012_v2 }
0x1b4c   :  { %1644 = vmatpush1.bf16.msra.mxu0 %v8010_v3 }
0x1b4d   :  { %v8052_v53 = vpop.eup %8051 }
0x1b4e   :  { %1528 = vrot.lane.b32.xlu1 %v8052_v53, %s9304_s17  ;;  %v8054_v56 = vpop.eup %8053 }
0x1b4f   :  { %v1516_v57 = vadd.f32 1.0, %v8054_v56  ;;  %7388 = vmatmul.mubr.msk.bf16.vlgmr.msra.gmra.mxu0 %vm427_vm0, %v8013_v8 }
0x1b50   :  { %1671 = vmatprep.mubr.bf16.mxu0 %v9311_v0 }
0x1b51   :  { %8055 = vrcp.f32 %v1516_v57 }
0x1b5e   :  { %v8056_v58 = vpop.eup %8055 }
0x1b5f   :  { %v1526_v5 = vmul.f32 %v8056_v58, %v1524_v4 }
0x1bc0   :  { %v1529_v59 = vpop.permute.xlu1 %1528 }
0x1bc1   :  { %v1531_v61 = vmul.f32 %v8056_v58, %v1529_v59 }
0x1bc3   :  { %1533 = vrot.lane.b32.xlu0 %v1531_v61, %s9304_s17 }
0x1c0f   :  { %v1663_v28 = vpop.f32.mrf.mxu0 }
0x1c10   :  { %v1664_v29 = vadd.f32 %v1663_v28, %v1568_v25 }
0x1c11   :  { %v1665_v30 = vpop.f32.mrf.mxu0 }
0x1c12   :  { %1680 = vst [vmem:[#allocation2] sm:$0xff] %v1664_v29  ;;  %v1666_v16 = vadd.f32 %v1665_v30, %v1572_v26 }
0x1c13   :  { %v1667_v31 = vpop.f32.mrf.mxu0 }
0x1c14   :  { %1681 = vst [vmem:[#allocation2 + $0x8] sm:$0xff] %v1666_v16  ;;  %v1668_v32 = vadd.f32 %v1667_v31, %v1568_v25 }
0x1c15   :  { %v1669_v33 = vpop.f32.mrf.mxu0 }
0x1c16   :  { %1682 = vst [vmem:[#allocation2 + $0x10] sm:$0xff] %v1668_v32  ;;  %v1670_v34 = vadd.f32 %v1669_v33, %v1572_v26 }
0x1c18   :  { %1683 = vst [vmem:[#allocation2 + $0x18] sm:$0xff] %v1670_v34 }
0x1c35   :  { %v1534_v6 = vpop.permute.xlu0 %1533 }
0x1c36   :  { %v1536_v7 = vadd.f32 %v1534_v6, %v1526_v5 }
0x1c38   :  { %8057 = vtanh.f32 %v1536_v7 }
0x1c39   :  { %8059 = vpow2.f32 %v7377_v10 }
0x1c45   :  { %v8058_v9 = vpop.eup %8057 }
0x1c46   :  { %1539 = vrot.lane.b32.xlu1 %v8058_v9, %s9304_s17  ;;  %v8060_v11 = vpop.eup %8059 }
0x1c47   :  { %v1517_v12 = vadd.f32 1.0, %v8060_v11 }
0x1c49   :  { %8061 = vrcp.f32 %v1517_v12 }
0x1c56   :  { %v8062_v13 = vpop.eup %8061 }
0x1cb8   :  { %v1540_v14 = vpop.permute.xlu1 %1539 }
0x1cb9   :  { %v9718_v15 = vmul.f32 %v8062_v13, %v1540_v14 }
0x1cbb   :  { %v1548_v17 = vsel %vm1130_vm3, %v1546_v44, %v9718_v15 }
0x1cbc   :  { %v1549_v19 = vpack.c.bf16 %v1548_v17, %v1548_v17 }
0x1cbe   :  { %1551 = vst.msk [vmem:[#allocation3 + $0x8] sm:$0x3] %vm1550_vm9, %v1549_v19 }
0x1cc5   :  { %v8014_v22 = vld [vmem:[#allocation3 + $0x8] ss:$0 sps:$4 sm:$0x33]  }
0x1cc6   :  { %7389 = vmatmul.mubr.msk.bf16.gmra.mxu0 %vm427_vm0, %v8014_v22 }
0x1d86   :  { %v1673_v35 = vpop.f32.mrf.mxu0 }
0x1d87   :  { %v1674_v36 = vadd.f32 %v1673_v35, %v1568_v25 }
0x1d88   :  { %v1675_v37 = vpop.f32.mrf.mxu0 }
0x1d89   :  { %1684 = vst [vmem:[#allocation2 + $0x20] sm:$0xf] %v1674_v36  ;;  %v1676_v38 = vadd.f32 %v1675_v37, %v1572_v26 }
0x1d8a   :  { %v1677_v39 = vpop.f32.mrf.mxu0 }
0x1d8b   :  { %1685 = vst [vmem:[#allocation2 + $0x28] sm:$0xf] %v1676_v38 }
0x1d8c   :  { %v1678_v40 = vpop.f32.mrf.mxu0 }
0x1d8d LB: > { %v9741_v43 = vld [vmem:[#allocation15 + $0x34] ss:$8 sps:$4 sm:$0xff]   ;;  %v9743_v44 = vld [vmem:[#allocation15 + $0x30] ss:$8 sps:$4 sm:$0xff]   ;;  %v9314_v45 = vmov 0   ;;  %v1702_v50 = vpack.c.bf16 %v9265_v42, %v9265_v42  ;;  %s7390_s15 = sshll.u32 %s9269_s6, 3  ;;  %s9269_s6 = sphi %s9732_s6, %s1691_s6   ;;  %v9265_v42 = vphi %v9730_v42, %v11410_v42   ;;  %v9261_v41 = vphi %v9728_v41, %v11409_v41  }
0x1d8e   : > { %1790 = vmatprep.mubr.bf16.mxu0 %v9314_v45  ;;  %1870 = vmatprep.mubr.bf16.mxu1 %v9314_v45  ;;  %v9748_v46 = vld [vmem:[#allocation15 + $0x24] ss:$8 sps:$4 sm:$0xff]   ;;  %v9752_v47 = vld [vmem:[#allocation15 + $0x20] ss:$8 sps:$4 sm:$0xff]   ;;  %v9756_v49 = vld [vmem:[#allocation15 + $0x14] ss:$8 sps:$4 sm:$0xff]  }
0x1d8f   : > { %1766 = vmatprep.subr.bf16.mxu0 %v9741_v43  ;;  %1846 = vmatprep.subr.bf16.mxu1 %v9741_v43  ;;  %v9760_v52 = vld [vmem:[#allocation15 + $0x10] ss:$8 sps:$4 sm:$0xff]   ;;  %v9764_v51 = vld [vmem:[#allocation15 + $0x4] ss:$8 sps:$4 sm:$0xff]   ;;  %v1712_v53 = vshrl.u32 %v1702_v50, 16  ;;  %s1695_s16 = sshra.s32 %s7390_s15, 3 }
0x1d90   : > { %1767 = vmatpush1.bf16.msra.mxu0 %v9743_v44  ;;  %1847 = vmatpush1.bf16.msra.mxu1 %v9743_v44  ;;  %v9768_v54 = vld [vmem:[#allocation15] ss:$8 sps:$4 sm:$0xff]   ;;  %s7717_s2 = sshll.u32 %s1695_s16, 4  ;;  %s9315_s18 = smov 64   ;;  %v1815_v5 = vrot.slane %v9261_v41, 7 }
0x1d91   : > { %1768 = vmatprep.subr.bf16.mxu0 %v9748_v46  ;;  %1848 = vmatprep.subr.bf16.mxu1 %v9748_v46  ;;  %v1714_v48 = vrot.slane %v1712_v53, 3  ;;  %s1699_s5 = scalar_lea.vmem [#allocation2], %s7717_s2  ;;  %s1691_s6 = sadd.s32 1, %s9269_s6  }
0x1d92   : > { %v9788_v56 = vld [vmem:[%s1699_s5 + $0x8] sm:$0xff]  ;;  %v9792_v18 = vld [vmem:[%s1699_s5] sm:$0xff]  ;;  %p1688_p9 = scmp.ge.s32.totalorder %s1691_s6, 2  }
0x1d94   : > { %1769 = vmatpush1.bf16.msra.mxu0 %v9752_v47  ;;  %1849 = vmatpush1.bf16.msra.mxu1 %v9752_v47 }
0x1d95   : > { %1770 = vmatprep.subr.bf16.mxu0 %v9756_v49  ;;  %1850 = vmatprep.subr.bf16.mxu1 %v9756_v49 }
0x1d98   : > { %1771 = vmatpush1.bf16.msra.mxu0 %v9760_v52  ;;  %1851 = vmatpush1.bf16.msra.mxu1 %v9760_v52 }
0x1d99   : > { %1772 = vmatprep.subr.bf16.mxu0 %v9764_v51  ;;  %1852 = vmatprep.subr.bf16.mxu1 %v9764_v51 }
0x1d9c   : > { %1773 = vmatpush1.bf16.msra.mxu0 %v9768_v54  ;;  %1853 = vmatpush1.bf16.msra.mxu1 %v9768_v54 }
0x1d9d   : > { %1935 = vmatprep.subr.bf16.mxu0 %v9741_v43  ;;  %2023 = vmatprep.subr.bf16.mxu1 %v9741_v43 }
0x1d9f   : > { %7401 = vmatmul.mubr.msk.bf16.vlgmr.msra.gmra.mxu0 %vm427_vm0, %v1714_v48 }
0x1da0   : > { %1936 = vmatpush1.bf16.msra.mxu0 %v9743_v44  ;;  %1959 = vmatprep.mubr.bf16.mxu0 %v9314_v45 }
0x1da1   : > { %1937 = vmatprep.subr.bf16.mxu0 %v9748_v46 }
0x1da4   : > { %1938 = vmatpush1.bf16.msra.mxu0 %v9752_v47 }
0x1da5   : > { %1939 = vmatprep.subr.bf16.mxu0 %v9756_v49 }
0x1da8   : > { %1940 = vmatpush1.bf16.msra.mxu0 %v9760_v52 }
0x1da9   : > { %1941 = vmatprep.subr.bf16.mxu0 %v9764_v51 }
0x1dac   : > { %1942 = vmatpush1.bf16.msra.mxu0 %v9768_v54 }
0x1dad   : > { %2113 = vmatprep.subr.bf16.mxu0 %v9741_v43 }
0x1e5f   : > { %v1792_v55 = vpop.f32.mrf.mxu0 }
0x1e60   : > { %v1799_v62 = vadd.f32 %v1792_v55, %v9792_v18 }
0x1e61   : > { %v1794_v57 = vpop.f32.mrf.mxu0 }
0x1e62   : > { %v1800_v58 = vadd.f32 %v1794_v57, %v9788_v56  ;;  %v7402_v63 = vmul.f32 -1.442695, %v1799_v62 }
0x1e63   : > { %v1796_v59 = vpop.f32.mrf.mxu0 }
0x1e64   : > { %8075 = vtanh.f32 %v1800_v58  ;;  %v7403_v10 = vmul.f32 -1.442695, %v1800_v58 }
0x1e65   : > { %v1797_v61 = vpop.f32.mrf.mxu0  ;;  %8077 = vpow2.f32 %v7402_v63 }
0x1e71   : > { %v8076_v60 = vpop.eup %8075 }
0x1e72   : > { %1819 = vrot.lane.b32.xlu0 %v8076_v60, %s9315_s18  ;;  %v8078_v1 = vpop.eup %8077 }
0x1e73   : > { %v1807_v27 = vadd.f32 1.0, %v8078_v1 }
0x1e75   : > { %8079 = vrcp.f32 %v1807_v27 }
0x1e82   : > { %v8080_v2 = vpop.eup %8079 }
0x1e83   : > { %v1817_v6 = vmul.f32 %v8080_v2, %v1815_v5 }
0x1ee4   : > { %v1820_v3 = vpop.permute.xlu0 %1819 }
0x1ee5   : > { %v1822_v4 = vmul.f32 %v8080_v2, %v1820_v3 }
0x1ee7   : > { %1824 = vrot.lane.b32.xlu0 %v1822_v4, %s9315_s18 }
0x1f59   : > { %v1825_v7 = vpop.permute.xlu0 %1824 }
0x1f5a   : > { %v1827_v8 = vadd.f32 %v1825_v7, %v1817_v6 }
0x1f5c   : > { %8081 = vtanh.f32 %v1827_v8  ;;  %v1901_v38 = vrot.slane %v1827_v8, 7 }
0x1f5d   : > { %8083 = vpow2.f32 %v7403_v10 }
0x1f69   : > { %v8082_v9 = vpop.eup %8081 }
0x1f6a   : > { %1830 = vrot.lane.b32.xlu1 %v8082_v9, %s9315_s18  ;;  %v8084_v11 = vpop.eup %8083 }
0x1f6b   : > { %v1808_v12 = vadd.f32 1.0, %v8084_v11 }
0x1f6d   : > { %8085 = vrcp.f32 %v1808_v12 }
0x1f7a   : > { %v8086_v13 = vpop.eup %8085 }
0x1fdc   : > { %v1831_v14 = vpop.permute.xlu1 %1830 }
0x1fdd   : > { %v1833_v17 = vmul.f32 %v8086_v13, %v1831_v14 }
0x1fdf   : > { %v1834_v19 = vpack.c.bf16 %v1833_v17, %v1833_v17 }
0x1fe1   : > { %7404 = vmatmul.mubr.msk.bf16.vlgmr.msra.gmra.mxu1 %vm427_vm0, %v1834_v19 }
0x1fe2   : > { %2024 = vmatpush1.bf16.msra.mxu1 %v9743_v44  ;;  %2047 = vmatprep.mubr.bf16.mxu1 %v9314_v45 }
0x1fe3   : > { %2025 = vmatprep.subr.bf16.mxu1 %v9748_v46 }
0x1fe6   : > { %2026 = vmatpush1.bf16.msra.mxu1 %v9752_v47 }
0x1fe7   : > { %2027 = vmatprep.subr.bf16.mxu1 %v9756_v49 }
0x1fea   : > { %2028 = vmatpush1.bf16.msra.mxu1 %v9760_v52 }
0x1feb   : > { %2029 = vmatprep.subr.bf16.mxu1 %v9764_v51 }
0x1fee   : > { %2030 = vmatpush1.bf16.msra.mxu1 %v9768_v54 }
0x1fef   : > { %2201 = vmatprep.subr.bf16.mxu1 %v9741_v43 }
0x20a1   : > { %v1872_v22 = vpop.f32.mrf.mxu1 }
0x20a2   : > { %v1881_v16 = vrot.slane %v1872_v22, 7 }
0x20a3   : > { %v1874_v24 = vpop.f32.mrf.mxu1 }
0x20a4   : > { %v1882_v25 = vrot.slane %v1874_v24, 7  ;;  %v1885_v31 = vadd.f32 %v1881_v16, %v9792_v18 }
0x20a5   : > { %v1876_v26 = vpop.f32.mrf.mxu1 }
0x20a6   : > { %v1886_v28 = vadd.f32 %v1882_v25, %v9788_v56  ;;  %v7405_v32 = vmul.f32 -1.442695, %v1885_v31 }
0x20a7   : > { %v1877_v29 = vpop.f32.mrf.mxu1 }
0x20a8   : > { %8087 = vtanh.f32 %v1886_v28  ;;  %v7406_v50 = vmul.f32 -1.442695, %v1886_v28 }
0x20a9   : > { %8089 = vpow2.f32 %v7405_v32 }
0x20b5   : > { %v8088_v30 = vpop.eup %8087 }
0x20b6   : > { %1905 = vrot.lane.b32.xlu1 %v8088_v30, %s9315_s18  ;;  %v8090_v33 = vpop.eup %8089 }
0x20b7   : > { %v1893_v34 = vadd.f32 1.0, %v8090_v33 }
0x20b9   : > { %8091 = vrcp.f32 %v1893_v34 }
0x20c6   : > { %v8092_v35 = vpop.eup %8091 }
0x20c7   : > { %v1903_v39 = vmul.f32 %v8092_v35, %v1901_v38 }
0x2128   : > { %v1906_v36 = vpop.permute.xlu1 %1905 }
0x2129   : > { %v1908_v37 = vmul.f32 %v8092_v35, %v1906_v36 }
0x212b   : > { %1910 = vrot.lane.b32.xlu0 %v1908_v37, %s9315_s18 }
0x219d   : > { %v1911_v40 = vpop.permute.xlu0 %1910 }
0x219e   : > { %v1913_v41 = vadd.f32 %v1911_v40, %v1903_v39 }
0x21a0   : > { %8093 = vtanh.f32 %v1913_v41  ;;  %v1990_v12 = vrot.slane %v1913_v41, 7 }
0x21a1   : > { %8095 = vpow2.f32 %v7406_v50 }
0x21ad   : > { %v8094_v42 = vpop.eup %8093 }
0x21ae   : > { %1916 = vrot.lane.b32.xlu1 %v8094_v42, %s9315_s18  ;;  %v8096_v53 = vpop.eup %8095 }
0x21af   : > { %v1894_v48 = vadd.f32 1.0, %v8096_v53 }
0x21b1   : > { %8097 = vrcp.f32 %v1894_v48 }
0x21be   : > { %v8098_v55 = vpop.eup %8097 }
0x2220   : > { %v1917_v57 = vpop.permute.xlu1 %1916 }
0x2221   : > { %v1919_v58 = vmul.f32 %v8098_v55, %v1917_v57 }
0x2223   : > { %v1920_v59 = vpack.c.bf16 %v1919_v58, %v1919_v58 }
0x2225   : > { %v1922_v61 = vshrl.u32 %v1920_v59, 16 }
0x2227   : > { %7407 = vmatmul.mubr.msk.bf16.vlgmr.msra.gmra.mxu0 %vm427_vm0, %v1922_v61 }
0x2228   : > { %2114 = vmatpush1.bf16.msra.mxu0 %v9743_v44  ;;  %2137 = vmatprep.mubr.bf16.mxu0 %v9314_v45 }
0x2229   : > { %2115 = vmatprep.subr.bf16.mxu0 %v9748_v46 }
0x222c   : > { %2116 = vmatpush1.bf16.msra.mxu0 %v9752_v47 }
0x222d   : > { %2117 = vmatprep.subr.bf16.mxu0 %v9756_v49 }
0x2230   : > { %2118 = vmatpush1.bf16.msra.mxu0 %v9760_v52 }
0x2231   : > { %2119 = vmatprep.subr.bf16.mxu0 %v9764_v51 }
0x2234   : > { %2120 = vmatpush1.bf16.msra.mxu0 %v9768_v54 }
0x2235   : > { %2291 = vmatprep.subr.bf16.mxu0 %v9741_v43 }
0x22e7   : > { %v1961_v60 = vpop.f32.mrf.mxu0 }
0x22e8   : > { %v1970_v4 = vrot.slane %v1961_v60, 6 }
0x22e9   : > { %v1963_v62 = vpop.f32.mrf.mxu0 }
0x22ea   : > { %v1971_v63 = vrot.slane %v1963_v62, 6  ;;  %v1974_v5 = vadd.f32 %v1970_v4, %v9792_v18 }
0x22eb   : > { %v1965_v1 = vpop.f32.mrf.mxu0 }
0x22ec   : > { %v1975_v27 = vadd.f32 %v1971_v63, %v9788_v56  ;;  %v7408_v6 = vmul.f32 -1.442695, %v1974_v5 }
0x22ed   : > { %v1966_v2 = vpop.f32.mrf.mxu0 }
0x22ee   : > { %8099 = vtanh.f32 %v1975_v27  ;;  %v7409_v22 = vmul.f32 -1.442695, %v1975_v27 }
0x22ef   : > { %8101 = vpow2.f32 %v7408_v6 }
0x22fb   : > { %v8100_v3 = vpop.eup %8099 }
0x22fc   : > { %1994 = vrot.lane.b32.xlu0 %v8100_v3, %s9315_s18  ;;  %v8102_v7 = vpop.eup %8101 }
0x22fd   : > { %v1982_v8 = vadd.f32 1.0, %v8102_v7 }
0x22ff   : > { %8103 = vrcp.f32 %v1982_v8 }
0x230c   : > { %v8104_v9 = vpop.eup %8103 }
0x230d   : > { %v1992_v13 = vmul.f32 %v8104_v9, %v1990_v12 }
0x236e   : > { %v1995_v10 = vpop.permute.xlu0 %1994 }
0x236f   : > { %v1997_v11 = vmul.f32 %v8104_v9, %v1995_v10 }
0x2371   : > { %1999 = vrot.lane.b32.xlu1 %v1997_v11, %s9315_s18 }
0x23e3   : > { %v2000_v14 = vpop.permute.xlu1 %1999 }
0x23e4   : > { %v2002_v17 = vadd.f32 %v2000_v14, %v1992_v13 }
0x23e6   : > { %8105 = vtanh.f32 %v2002_v17  ;;  %v2078_v48 = vrot.slane %v2002_v17, 7 }
0x23e7   : > { %8107 = vpow2.f32 %v7409_v22 }
0x23f3   : > { %v8106_v19 = vpop.eup %8105 }
0x23f4   : > { %2005 = vrot.lane.b32.xlu0 %v8106_v19, %s9315_s18  ;;  %v8108_v24 = vpop.eup %8107 }
0x23f5   : > { %v1983_v25 = vadd.f32 1.0, %v8108_v24 }
0x23f7   : > { %8109 = vrcp.f32 %v1983_v25 }
0x2404   : > { %v8110_v26 = vpop.eup %8109 }
0x2466   : > { %v2006_v28 = vpop.permute.xlu0 %2005 }
0x2467   : > { %v2008_v29 = vmul.f32 %v8110_v26, %v2006_v28 }
0x2469   : > { %v2009_v30 = vpack.c.bf16 %v2008_v29, %v2008_v29 }
0x246b   : > { %v2011_v16 = vrot.slane %v2009_v30, 1 }
0x246d   : > { %7410 = vmatmul.mubr.msk.bf16.vlgmr.msra.gmra.mxu1 %vm427_vm0, %v2011_v16 }
0x246e   : > { %2202 = vmatpush1.bf16.msra.mxu1 %v9743_v44  ;;  %2225 = vmatprep.mubr.bf16.mxu1 %v9314_v45 }
0x246f   : > { %2203 = vmatprep.subr.bf16.mxu1 %v9748_v46 }
0x2472   : > { %2204 = vmatpush1.bf16.msra.mxu1 %v9752_v47 }
0x2473   : > { %2205 = vmatprep.subr.bf16.mxu1 %v9756_v49 }
0x2476   : > { %2206 = vmatpush1.bf16.msra.mxu1 %v9760_v52 }
0x2477   : > { %2207 = vmatprep.subr.bf16.mxu1 %v9764_v51 }
0x247a   : > { %2208 = vmatpush1.bf16.msra.mxu1 %v9768_v54 }
0x247b   : > { %2379 = vmatprep.subr.bf16.mxu1 %v9741_v43 }
0x252d   : > { %v2049_v31 = vpop.f32.mrf.mxu1 }
0x252e   : > { %v2058_v38 = vrot.slane %v2049_v31, 5 }
0x252f   : > { %v2051_v32 = vpop.f32.mrf.mxu1 }
0x2530   : > { %v2059_v33 = vrot.slane %v2051_v32, 5  ;;  %v2062_v39 = vadd.f32 %v2058_v38, %v9792_v18 }
0x2531   : > { %v2053_v34 = vpop.f32.mrf.mxu1 }
0x2532   : > { %v2063_v35 = vadd.f32 %v2059_v33, %v9788_v56  ;;  %v7411_v40 = vmul.f32 -1.442695, %v2062_v39 }
0x2533   : > { %v2054_v36 = vpop.f32.mrf.mxu1 }
0x2534   : > { %8111 = vtanh.f32 %v2063_v35  ;;  %v7412_v61 = vmul.f32 -1.442695, %v2063_v35 }
0x2535   : > { %8113 = vpow2.f32 %v7411_v40 }
0x2541   : > { %v8112_v37 = vpop.eup %8111 }
0x2542   : > { %2082 = vrot.lane.b32.xlu1 %v8112_v37, %s9315_s18  ;;  %v8114_v41 = vpop.eup %8113 }
0x2543   : > { %v2070_v42 = vadd.f32 1.0, %v8114_v41 }
0x2545   : > { %8115 = vrcp.f32 %v2070_v42 }
0x2552   : > { %v8116_v43 = vpop.eup %8115 }
0x2553   : > { %v2080_v55 = vmul.f32 %v8116_v43, %v2078_v48 }
0x25b4   : > { %v2083_v50 = vpop.permute.xlu1 %2082 }
0x25b5   : > { %v2085_v53 = vmul.f32 %v8116_v43, %v2083_v50 }
0x25b7   : > { %2087 = vrot.lane.b32.xlu0 %v2085_v53, %s9315_s18 }
0x2629   : > { %v2088_v57 = vpop.permute.xlu0 %2087 }
0x262a   : > { %v2090_v58 = vadd.f32 %v2088_v57, %v2080_v55 }
0x262c   : > { %8117 = vtanh.f32 %v2090_v58  ;;  %v2168_v26 = vrot.slane %v2090_v58, 7 }
0x262d   : > { %8119 = vpow2.f32 %v7412_v61 }
0x2639   : > { %v8118_v59 = vpop.eup %8117 }
0x263a   : > { %2093 = vrot.lane.b32.xlu1 %v8118_v59, %s9315_s18  ;;  %v8120_v60 = vpop.eup %8119 }
0x263b   : > { %v2071_v62 = vadd.f32 1.0, %v8120_v60 }
0x263d   : > { %8121 = vrcp.f32 %v2071_v62 }
0x264a   : > { %v8122_v63 = vpop.eup %8121 }
0x26ac   : > { %v2094_v1 = vpop.permute.xlu1 %2093 }
0x26ad   : > { %v2096_v27 = vmul.f32 %v8122_v63, %v2094_v1 }
0x26af   : > { %v2097_v2 = vpack.c.bf16 %v2096_v27, %v2096_v27 }
0x26b1   : > { %v2099_v3 = vshrl.u32 %v2097_v2, 16 }
0x26b3   : > { %v2101_v4 = vrot.slane %v2099_v3, 1 }
0x26b5   : > { %7413 = vmatmul.mubr.msk.bf16.vlgmr.msra.gmra.mxu0 %vm427_vm0, %v2101_v4 }
0x26b6   : > { %2292 = vmatpush1.bf16.msra.mxu0 %v9743_v44  ;;  %2315 = vmatprep.mubr.bf16.mxu0 %v9314_v45 }
0x26b7   : > { %2293 = vmatprep.subr.bf16.mxu0 %v9748_v46 }
0x26ba   : > { %2294 = vmatpush1.bf16.msra.mxu0 %v9752_v47 }
0x26bb   : > { %2295 = vmatprep.subr.bf16.mxu0 %v9756_v49 }
0x26be   : > { %2296 = vmatpush1.bf16.msra.mxu0 %v9760_v52 }
0x26bf   : > { %2297 = vmatprep.subr.bf16.mxu0 %v9764_v51 }
0x26c2   : > { %2298 = vmatpush1.bf16.msra.mxu0 %v9768_v54 }
0x2775   : > { %v2139_v5 = vpop.f32.mrf.mxu0 }
0x2776   : > { %v2148_v12 = vrot.slane %v2139_v5, 4 }
0x2777   : > { %v2141_v6 = vpop.f32.mrf.mxu0 }
0x2778   : > { %v2149_v7 = vrot.slane %v2141_v6, 4  ;;  %v2152_v13 = vadd.f32 %v2148_v12, %v9792_v18 }
0x2779   : > { %v2143_v8 = vpop.f32.mrf.mxu0 }
0x277a   : > { %v2153_v9 = vadd.f32 %v2149_v7, %v9788_v56  ;;  %v7414_v14 = vmul.f32 -1.442695, %v2152_v13 }
0x277b   : > { %v2144_v10 = vpop.f32.mrf.mxu0 }
0x277c   : > { %8123 = vtanh.f32 %v2153_v9  ;;  %v7415_v31 = vmul.f32 -1.442695, %v2153_v9 }
0x277d   : > { %8125 = vpow2.f32 %v7414_v14 }
0x2789   : > { %v8124_v11 = vpop.eup %8123 }
0x278a   : > { %2172 = vrot.lane.b32.xlu0 %v8124_v11, %s9315_s18  ;;  %v8126_v17 = vpop.eup %8125 }
0x278b   : > { %v2160_v19 = vadd.f32 1.0, %v8126_v17 }
0x278d   : > { %8127 = vrcp.f32 %v2160_v19 }
0x279a   : > { %v8128_v22 = vpop.eup %8127 }
0x279b   : > { %v2170_v28 = vmul.f32 %v8128_v22, %v2168_v26 }
0x27fc   : > { %v2173_v24 = vpop.permute.xlu0 %2172 }
0x27fd   : > { %v2175_v25 = vmul.f32 %v8128_v22, %v2173_v24 }
0x27ff   : > { %2177 = vrot.lane.b32.xlu1 %v2175_v25, %s9315_s18 }
0x2871   : > { %v2178_v29 = vpop.permute.xlu1 %2177 }
0x2872   : > { %v2180_v30 = vadd.f32 %v2178_v29, %v2170_v28 }
0x2874   : > { %8129 = vtanh.f32 %v2180_v30  ;;  %v2256_v48 = vrot.slane %v2180_v30, 7 }
0x2875   : > { %8131 = vpow2.f32 %v7415_v31 }
0x2881   : > { %v8130_v16 = vpop.eup %8129 }
0x2882   : > { %2183 = vrot.lane.b32.xlu0 %v8130_v16, %s9315_s18  ;;  %v8132_v32 = vpop.eup %8131 }
0x2883   : > { %v2161_v33 = vadd.f32 1.0, %v8132_v32 }
0x2885   : > { %8133 = vrcp.f32 %v2161_v33 }
0x2892   : > { %v8134_v34 = vpop.eup %8133 }
0x28f4   : > { %v2184_v35 = vpop.permute.xlu0 %2183 }
0x28f5   : > { %v2186_v36 = vmul.f32 %v8134_v34, %v2184_v35 }
0x28f7   : > { %v2187_v37 = vpack.c.bf16 %v2186_v36, %v2186_v36 }
0x28f9   : > { %v2189_v38 = vrot.slane %v2187_v37, 2 }
0x28fb   : > { %7416 = vmatmul.mubr.msk.bf16.vlgmr.msra.gmra.mxu1 %vm427_vm0, %v2189_v38 }
0x28fc   : > { %2380 = vmatpush1.bf16.msra.mxu1 %v9743_v44  ;;  %2403 = vmatprep.mubr.bf16.mxu1 %v9314_v45 }
0x28fd   : > { %2381 = vmatprep.subr.bf16.mxu1 %v9748_v46 }
0x2900   : > { %2382 = vmatpush1.bf16.msra.mxu1 %v9752_v47 }
0x2901   : > { %2383 = vmatprep.subr.bf16.mxu1 %v9756_v49 }
0x2904   : > { %2384 = vmatpush1.bf16.msra.mxu1 %v9760_v52 }
0x2905   : > { %2385 = vmatprep.subr.bf16.mxu1 %v9764_v51 }
0x2908   : > { %2386 = vmatpush1.bf16.msra.mxu1 %v9768_v54 }
0x29bb   : > { %v2227_v39 = vpop.f32.mrf.mxu1 }
0x29bc   : > { %v2236_v46 = vrot.slane %v2227_v39, 3 }
0x29bd   : > { %v2229_v40 = vpop.f32.mrf.mxu1 }
0x29be   : > { %v2237_v41 = vrot.slane %v2229_v40, 3  ;;  %v2240_v47 = vadd.f32 %v2236_v46, %v9792_v18 }
0x29bf   : > { %v2231_v42 = vpop.f32.mrf.mxu1 }
0x29c0   : > { %v2241_v44 = vadd.f32 %v2237_v41, %v9788_v56  ;;  %v7417_v49 = vmul.f32 -1.442695, %v2240_v47 }
0x29c1   : > { %v2232_v43 = vpop.f32.mrf.mxu1 }
0x29c2   : > { %8135 = vtanh.f32 %v2241_v44  ;;  %v7418_v61 = vmul.f32 -1.442695, %v2241_v44 }
0x29c3   : > { %8137 = vpow2.f32 %v7417_v49 }
0x29cf   : > { %v8136_v45 = vpop.eup %8135 }
0x29d0   : > { %2260 = vrot.lane.b32.xlu1 %v8136_v45, %s9315_s18  ;;  %v8138_v52 = vpop.eup %8137 }
0x29d1   : > { %v2248_v51 = vadd.f32 1.0, %v8138_v52 }
0x29d3   : > { %8139 = vrcp.f32 %v2248_v51 }
0x29e0   : > { %v8140_v54 = vpop.eup %8139 }
0x29e1   : > { %v2258_v55 = vmul.f32 %v8140_v54, %v2256_v48 }
0x2a42   : > { %v2261_v50 = vpop.permute.xlu1 %2260 }
0x2a43   : > { %v2263_v53 = vmul.f32 %v8140_v54, %v2261_v50 }
0x2a45   : > { %2265 = vrot.lane.b32.xlu0 %v2263_v53, %s9315_s18 }
0x2ab7   : > { %v2266_v57 = vpop.permute.xlu0 %2265 }
0x2ab8   : > { %v2268_v58 = vadd.f32 %v2266_v57, %v2258_v55 }
0x2aba   : > { %8141 = vtanh.f32 %v2268_v58  ;;  %v2346_v26 = vrot.slane %v2268_v58, 7 }
0x2abb   : > { %8143 = vpow2.f32 %v7418_v61 }
0x2ac7   : > { %v8142_v59 = vpop.eup %8141 }
0x2ac8   : > { %2271 = vrot.lane.b32.xlu1 %v8142_v59, %s9315_s18  ;;  %v8144_v60 = vpop.eup %8143 }
0x2ac9   : > { %v2249_v62 = vadd.f32 1.0, %v8144_v60 }
0x2acb   : > { %8145 = vrcp.f32 %v2249_v62 }
0x2ad8   : > { %v8146_v63 = vpop.eup %8145 }
0x2b3a   : > { %v2272_v1 = vpop.permute.xlu1 %2271 }
0x2b3b   : > { %v2274_v27 = vmul.f32 %v8146_v63, %v2272_v1  ;;  %v8171_v1 = vld [vmem:[#allocation15 + $0x34] ss:$8 sps:$4 sm:$0xff] (%p1688_p9)  }
0x2b3c   :  { %2519 = vmatprep.subr.bf16.mxu0 (%p1688_p9), %v8171_v1  ;;  %2599 = vmatprep.subr.bf16.mxu1 (%p1688_p9), %v8171_v1 }
0x2b3d   : > { %v2275_v2 = vpack.c.bf16 %v2274_v27, %v2274_v27  ;;  %v9896_v27 = vld [vmem:[#allocation15 + $0x30] ss:$8 sps:$4 sm:$0xff] (%p1688_p9)  }
0x2b3f   : > { %v2277_v3 = vshrl.u32 %v2275_v2, 16  ;;  %v9898_v2 = vld [vmem:[#allocation15 + $0x24] ss:$8 sps:$4 sm:$0xff] (%p1688_p9)  }
0x2b41   : > { %v2279_v4 = vrot.slane %v2277_v3, 2  ;;  %v9901_v3 = vld [vmem:[#allocation15 + $0x20] ss:$8 sps:$4 sm:$0xff] (%p1688_p9)  }
0x2b43   : > { %7419 = vmatmul.mubr.msk.bf16.vlgmr.msra.gmra.mxu0 %vm427_vm0, %v2279_v4  ;;  %v9905_v4 = vld [vmem:[#allocation15 + $0x14] ss:$8 sps:$4 sm:$0xff] (%p1688_p9)  }
0x2b44   :  { %2543 = vmatprep.mubr.bf16.mxu0 (%p1688_p9), %v9311_v0  ;;  %2520 = vmatpush1.bf16.msra.mxu0 (%p1688_p9), %v9896_v27 }
0x2b45   :  { %2521 = vmatprep.subr.bf16.mxu0 (%p1688_p9), %v9898_v2 }
0x2b48   :  { %2522 = vmatpush1.bf16.msra.mxu0 (%p1688_p9), %v9901_v3 }
0x2b49   :  { %2523 = vmatprep.subr.bf16.mxu0 (%p1688_p9), %v9905_v4 }
0x2c03   : > { %v2317_v5 = vpop.f32.mrf.mxu0 }
0x2c04   : > { %v2326_v12 = vrot.slane %v2317_v5, 2  ;;  %v9908_v5 = vld [vmem:[#allocation15 + $0x10] ss:$8 sps:$4 sm:$0xff] (%p1688_p9)  }
0x2c05   : > { %v2319_v6 = vpop.f32.mrf.mxu0  ;;  %2524 = vmatpush1.bf16.msra.mxu0 (%p1688_p9), %v9908_v5 }
0x2c06   : > { %v2327_v7 = vrot.slane %v2319_v6, 2  ;;  %v2330_v13 = vadd.f32 %v2326_v12, %v9792_v18  ;;  %v9910_v6 = vld [vmem:[#allocation15 + $0x4] ss:$8 sps:$4 sm:$0xff] (%p1688_p9)   ;;  %v9933_v12 = vld [vmem:[#allocation2 + $0x28] sm:$0xf] (%p1688_p9) }
0x2c07   : > { %v2321_v8 = vpop.f32.mrf.mxu0  ;;  %2525 = vmatprep.subr.bf16.mxu0 (%p1688_p9), %v9910_v6 }
0x2c08   : > { %v2331_v9 = vadd.f32 %v2327_v7, %v9788_v56  ;;  %v7420_v14 = vmul.f32 -1.442695, %v2330_v13  ;;  %v9916_v8 = vld [vmem:[#allocation15] ss:$8 sps:$4 sm:$0xff] (%p1688_p9)  }
0x2c09   : > { %v2322_v10 = vpop.f32.mrf.mxu0  ;;  %2526 = vmatpush1.bf16.msra.mxu0 (%p1688_p9), %v9916_v8 }
0x2c0a   : > { %8147 = vtanh.f32 %v2331_v9  ;;  %v7421_v31 = vmul.f32 -1.442695, %v2331_v9  ;;  %2688 = vmatprep.subr.bf16.mxu0 (%p1688_p9), %v8171_v1 }
0x2c0b   : > { %8149 = vpow2.f32 %v7420_v14 }
0x2c17   : > { %v8148_v11 = vpop.eup %8147 }
0x2c18   : > { %2350 = vrot.lane.b32.xlu0 %v8148_v11, %s9315_s18  ;;  %v8150_v17 = vpop.eup %8149 }
0x2c19   : > { %v2338_v19 = vadd.f32 1.0, %v8150_v17 }
0x2c1b   : > { %8151 = vrcp.f32 %v2338_v19 }
0x2c28   : > { %v8152_v22 = vpop.eup %8151 }
0x2c29   : > { %v2348_v28 = vmul.f32 %v8152_v22, %v2346_v26 }
0x2c8a   : > { %v2351_v24 = vpop.permute.xlu0 %2350 }
0x2c8b   : > { %v2353_v25 = vmul.f32 %v8152_v22, %v2351_v24  ;;  %v9937_v24 = vld [vmem:[#allocation2 + $0x20] sm:$0xf] (%p1688_p9) }
0x2c8d   : > { %2355 = vrot.lane.b32.xlu1 %v2353_v25, %s9315_s18 }
0x2cff   : > { %v2356_v29 = vpop.permute.xlu1 %2355 }
0x2d00   : > { %v2358_v30 = vadd.f32 %v2356_v29, %v2348_v28 }
0x2d02   : > { %8153 = vtanh.f32 %v2358_v30  ;;  %v2434_v48 = vrot.slane %v2358_v30, 7 }
0x2d03   : > { %8155 = vpow2.f32 %v7421_v31 }
0x2d0f   : > { %v8154_v16 = vpop.eup %8153 }
0x2d10   : > { %2361 = vrot.lane.b32.xlu0 %v8154_v16, %s9315_s18  ;;  %v8156_v32 = vpop.eup %8155 }
0x2d11   : > { %v2339_v33 = vadd.f32 1.0, %v8156_v32 }
0x2d13   : > { %8157 = vrcp.f32 %v2339_v33 }
0x2d20   : > { %v8158_v34 = vpop.eup %8157 }
0x2d82   : > { %v2362_v35 = vpop.permute.xlu0 %2361 }
0x2d83   : > { %v2364_v36 = vmul.f32 %v8158_v34, %v2362_v35 }
0x2d85   : > { %v2365_v37 = vpack.c.bf16 %v2364_v36, %v2364_v36 }
0x2d87   : > { %v2367_v38 = vrot.slane %v2365_v37, 3 }
0x2d89   : > { %7422 = vmatmul.mubr.msk.bf16.vlgmr.msra.gmra.mxu1 %vm427_vm0, %v2367_v38 }
0x2d8a   :  { %2623 = vmatprep.mubr.bf16.mxu1 (%p1688_p9), %v9311_v0  ;;  %2600 = vmatpush1.bf16.msra.mxu1 (%p1688_p9), %v9896_v27 }
0x2d8b   :  { %2601 = vmatprep.subr.bf16.mxu1 (%p1688_p9), %v9898_v2 }
0x2d8e   :  { %2602 = vmatpush1.bf16.msra.mxu1 (%p1688_p9), %v9901_v3 }
0x2d8f   :  { %2603 = vmatprep.subr.bf16.mxu1 (%p1688_p9), %v9905_v4 }
0x2d92   :  { %2604 = vmatpush1.bf16.msra.mxu1 (%p1688_p9), %v9908_v5 }
0x2d93   :  { %2605 = vmatprep.subr.bf16.mxu1 (%p1688_p9), %v9910_v6 }
0x2d96   :  { %2606 = vmatpush1.bf16.msra.mxu1 (%p1688_p9), %v9916_v8 }
0x2d97   :  { %2776 = vmatprep.subr.bf16.mxu1 (%p1688_p9), %v8171_v1 }
0x2e49   : > { %v2405_v39 = vpop.f32.mrf.mxu1 }
0x2e4a   : > { %v2414_v46 = vrot.slane %v2405_v39, 1 }
0x2e4b   : > { %v2407_v40 = vpop.f32.mrf.mxu1 }
0x2e4c   : > { %v2415_v41 = vrot.slane %v2407_v40, 1  ;;  %v2418_v47 = vadd.f32 %v2414_v46, %v9792_v18 }
0x2e4d   : > { %v2409_v42 = vpop.f32.mrf.mxu1 }
0x2e4e   : > { %v2419_v44 = vadd.f32 %v2415_v41, %v9788_v56  ;;  %v7423_v49 = vmul.f32 -1.442695, %v2418_v47 }
0x2e4f   : > { %v2410_v43 = vpop.f32.mrf.mxu1 }
0x2e50   : > { %8159 = vtanh.f32 %v2419_v44  ;;  %v7424_v18 = vmul.f32 -1.442695, %v2419_v44 }
0x2e51   : > { %8161 = vpow2.f32 %v7423_v49 }
0x2e5d   : > { %v8160_v45 = vpop.eup %8159 }
0x2e5e   : > { %2438 = vrot.lane.b32.xlu1 %v8160_v45, %s9315_s18  ;;  %v8162_v52 = vpop.eup %8161 }
0x2e5f   : > { %v2426_v51 = vadd.f32 1.0, %v8162_v52 }
0x2e61   : > { %8163 = vrcp.f32 %v2426_v51 }
0x2e6e   : > { %v8164_v54 = vpop.eup %8163 }
0x2e6f   : > { %v2436_v56 = vmul.f32 %v8164_v54, %v2434_v48 }
0x2ed0   : > { %v2439_v50 = vpop.permute.xlu1 %2438 }
0x2ed1   : > { %v2441_v53 = vmul.f32 %v8164_v54, %v2439_v50 }
0x2ed3   : > { %2443 = vrot.lane.b32.xlu0 %v2441_v53, %s9315_s18 }
0x2f45   : > { %v2444_v55 = vpop.permute.xlu0 %2443 }
0x2f46   : > { %v9882_v41 = vadd.f32 %v2444_v55, %v2436_v56  }
0x2f48   : > { %v11408_v57 = vmov %v9882_v41 }
0x2f49   : > { %8165 = vtanh.f32 %v11408_v57  ;;  %v11409_v41 = vmov %v11408_v57  ;;  %v2568_v32 = vrot.slane (%p1688_p9), %v11408_v57, 7 }
0x2f4a   : > { %8167 = vpow2.f32 %v7424_v18 }
0x2f56   : > { %v8166_v58 = vpop.eup %8165 }
0x2f57   : > { %2449 = vrot.lane.b32.xlu1 %v8166_v58, %s9315_s18  ;;  %v8168_v59 = vpop.eup %8167 }
0x2f58   : > { %v2427_v61 = vadd.f32 1.0, %v8168_v59 }
0x2f5a   : > { %8169 = vrcp.f32 %v2427_v61 }
0x2f67   : > { %v8170_v60 = vpop.eup %8169 }
0x2fc8   :  { %1690 = sbr.rel (!%p1688_p9) target bundleno = 7565 (0x1d8d), region = 157 }
0x2fc9   : > { %v2450_v62 = vpop.permute.xlu1 %2449 }
0x2fca   : > { %v2452_v63 = vmul.f32 %v8170_v60, %v2450_v62  }
0x2fcc   : > { %v11410_v42 = vmov %v2452_v63  ;;  %v2455_v7 = vpack.c.bf16 (%p1688_p9), %v2452_v63, %v2452_v63 }
0x2fce   :  { %v2465_v9 = vshrl.u32 %v2455_v7, 16 }
0x2fd0   :  { %v2467_v10 = vrot.slane %v2465_v9, 3 }
0x2fd2   :  { %7433 = vmatmul.mubr.msk.bf16.vlgmr.msra.gmra.mxu0 %vm427_vm0, %v2467_v10 }
0x2fd3   :  { %2689 = vmatpush1.bf16.msra.mxu0 %v9896_v27  ;;  %2712 = vmatprep.mubr.bf16.mxu0 %v9311_v0 }
0x2fd4   :  { %2690 = vmatprep.subr.bf16.mxu0 %v9898_v2 }
0x2fd7   :  { %2691 = vmatpush1.bf16.msra.mxu0 %v9901_v3 }
0x2fd8   :  { %2692 = vmatprep.subr.bf16.mxu0 %v9905_v4 }
0x2fdb   :  { %2693 = vmatpush1.bf16.msra.mxu0 %v9908_v5 }
0x2fdc   :  { %2694 = vmatprep.subr.bf16.mxu0 %v9910_v6 }
0x2fdf   :  { %2695 = vmatpush1.bf16.msra.mxu0 %v9916_v8 }
0x3092   :  { %v2545_v11 = vpop.f32.mrf.mxu0 }
0x3093   :  { %v2552_v25 = vadd.f32 %v2545_v11, %v9937_v24 }
0x3094   :  { %v2547_v13 = vpop.f32.mrf.mxu0 }
0x3095   :  { %v2553_v14 = vadd.f32 %v2547_v13, %v9933_v12  ;;  %v7434_v26 = vmul.f32 -1.442695, %v2552_v25 }
0x3096   :  { %v2549_v17 = vpop.f32.mrf.mxu0 }
0x3097   :  { %8231 = vtanh.f32 %v2553_v14  ;;  %v7435_v37 = vmul.f32 -1.442695, %v2553_v14 }
0x3098   :  { %v2550_v19 = vpop.f32.mrf.mxu0  ;;  %8233 = vpow2.f32 %v7434_v26 }
0x30a4   :  { %v8232_v22 = vpop.eup %8231 }
0x30a5   :  { %2572 = vrot.lane.b32.xlu0 %v8232_v22, %s9304_s17  ;;  %v8234_v28 = vpop.eup %8233 }
0x30a6   :  { %v2560_v29 = vadd.f32 1.0, %v8234_v28 }
0x30a8   :  { %8235 = vrcp.f32 %v2560_v29 }
0x30b5   :  { %v8236_v30 = vpop.eup %8235 }
0x30b6   :  { %v2570_v33 = vmul.f32 %v8236_v30, %v2568_v32 }
0x3117   :  { %v2573_v16 = vpop.permute.xlu0 %2572 }
0x3118   :  { %v2575_v31 = vmul.f32 %v8236_v30, %v2573_v16 }
0x311a   :  { %2577 = vrot.lane.b32.xlu0 %v2575_v31, %s9304_s17 }
0x318c   :  { %v2578_v34 = vpop.permute.xlu0 %2577 }
0x318d   :  { %v2580_v35 = vadd.f32 %v2578_v34, %v2570_v33 }
0x318f   :  { %8237 = vtanh.f32 %v2580_v35  ;;  %v2654_v18 = vrot.slane %v2580_v35, 7 }
0x3190   :  { %8239 = vpow2.f32 %v7435_v37 }
0x319c   :  { %v8238_v36 = vpop.eup %8237 }
0x319d   :  { %2583 = vrot.lane.b32.xlu1 %v8238_v36, %s9304_s17  ;;  %v8240_v38 = vpop.eup %8239 }
0x319e   :  { %v2561_v39 = vadd.f32 1.0, %v8240_v38 }
0x31a0   :  { %8241 = vrcp.f32 %v2561_v39 }
0x31ad   :  { %v8242_v40 = vpop.eup %8241 }
0x320f   :  { %v2584_v41 = vpop.permute.xlu1 %2583 }
0x3210   :  { %v2586_v42 = vmul.f32 %v8242_v40, %v2584_v41 }
0x3212   :  { %v2587_v44 = vpack.c.bf16 %v2586_v42, %v2586_v42 }
0x3214   :  { %7436 = vmatmul.mubr.msk.bf16.vlgmr.msra.gmra.mxu1 %vm427_vm0, %v2587_v44 }
0x3215   :  { %2777 = vmatpush1.bf16.msra.mxu1 %v9896_v27  ;;  %2800 = vmatprep.mubr.bf16.mxu1 %v9311_v0 }
0x3216   :  { %2778 = vmatprep.subr.bf16.mxu1 %v9898_v2 }
0x3219   :  { %2779 = vmatpush1.bf16.msra.mxu1 %v9901_v3 }
0x321a   :  { %2780 = vmatprep.subr.bf16.mxu1 %v9905_v4 }
0x321d   :  { %2781 = vmatpush1.bf16.msra.mxu1 %v9908_v5 }
0x321e   :  { %2782 = vmatprep.subr.bf16.mxu1 %v9910_v6 }
0x3221   :  { %2783 = vmatpush1.bf16.msra.mxu1 %v9916_v8 }
0x32d4   :  { %v2625_v43 = vpop.f32.mrf.mxu1 }
0x32d5   :  { %v2634_v54 = vrot.slane %v2625_v43, 7 }
0x32d6   :  { %v2627_v45 = vpop.f32.mrf.mxu1 }
0x32d7   :  { %v2635_v46 = vrot.slane %v2627_v45, 7  ;;  %v2638_v50 = vadd.f32 %v2634_v54, %v9937_v24 }
0x32d8   :  { %v2629_v47 = vpop.f32.mrf.mxu1 }
0x32d9   :  { %v2639_v49 = vadd.f32 %v2635_v46, %v9933_v12  ;;  %v7437_v53 = vmul.f32 -1.442695, %v2638_v50 }
0x32da   :  { %v2630_v52 = vpop.f32.mrf.mxu1 }
0x32db   :  { %8243 = vtanh.f32 %v2639_v49  ;;  %v7438_v63 = vmul.f32 -1.442695, %v2639_v49 }
0x32dc   :  { %8245 = vpow2.f32 %v7437_v53 }
0x32e8   :  { %v8244_v51 = vpop.eup %8243 }
0x32e9   :  { %2658 = vrot.lane.b32.xlu1 %v8244_v51, %s9304_s17  ;;  %v8246_v48 = vpop.eup %8245 }
0x32ea   :  { %v2646_v56 = vadd.f32 1.0, %v8246_v48 }
0x32ec   :  { %8247 = vrcp.f32 %v2646_v56 }
0x32f9   :  { %v8248_v55 = vpop.eup %8247 }
0x32fa   :  { %v2656_v59 = vmul.f32 %v8248_v55, %v2654_v18 }
0x335b   :  { %v2659_v57 = vpop.permute.xlu1 %2658 }
0x335c   :  { %v2661_v58 = vmul.f32 %v8248_v55, %v2659_v57 }
0x335e   :  { %2663 = vrot.lane.b32.xlu0 %v2661_v58, %s9304_s17 }
0x33d0   :  { %v2664_v61 = vpop.permute.xlu0 %2663 }
0x33d1   :  { %v2666_v60 = vadd.f32 %v2664_v61, %v2656_v59  ;;  %v8183_v61 = vld [vmem:[#allocation17 + $0xe0] ss:$16 sps:$4 sm:$0xff]  }
0x33d3   :  { %8249 = vtanh.f32 %v2666_v60  ;;  %v2743_v16 = vrot.slane %v2666_v60, 7  ;;  %v8185_v60 = vld [vmem:[#allocation17 + $0xe4] ss:$16 sps:$4 sm:$0xff]  }
0x33d4   :  { %8251 = vpow2.f32 %v7438_v63  ;;  %v8188_v63 = vld [vmem:[#allocation17 + $0xec] ss:$16 sps:$4 sm:$0xff]   ;;  %3075 = vmatprep.subr.bf16.mxu0 %v8185_v60 }
0x33d5   :  { %3116 = vmatprep.subr.bf16.mxu1 %v8188_v63  ;;  %v9997_v63 = vmov 0.0  }
0x33e0   :  { %v8250_v62 = vpop.eup %8249 }
0x33e1   :  { %2669 = vrot.lane.b32.xlu1 %v8250_v62, %s9304_s17  ;;  %v8252_v1 = vpop.eup %8251  ;;  %v8186_v62 = vld [vmem:[#allocation17 + $0xe8] ss:$16 sps:$4 sm:$0xff]  }
0x33e2   :  { %v2647_v27 = vadd.f32 1.0, %v8252_v1  ;;  %v8194_v1 = vld [vmem:[#allocation17 + $0xcc] ss:$16 sps:$4 sm:$0xff]  }
0x33e4   :  { %8253 = vrcp.f32 %v2647_v27  ;;  %v8189_v27 = vld [vmem:[#allocation17 + $0xc0] ss:$16 sps:$4 sm:$0xff]  }
0x33f1   :  { %v8254_v2 = vpop.eup %8253 }
0x3453   :  { %v2670_v3 = vpop.permute.xlu1 %2669 }
0x3454   :  { %v2672_v4 = vmul.f32 %v8254_v2, %v2670_v3  ;;  %v8192_v2 = vld [vmem:[#allocation17 + $0xc8] ss:$16 sps:$4 sm:$0xff]   ;;  %v8197_v3 = vld [vmem:[#allocation17 + $0xa4] ss:$16 sps:$4 sm:$0xff]  }
0x3456   :  { %v2673_v5 = vpack.c.bf16 %v2672_v4, %v2672_v4  ;;  %v8200_v4 = vld [vmem:[#allocation17 + $0xac] ss:$16 sps:$4 sm:$0xff]  }
0x3458   :  { %v2675_v6 = vshrl.u32 %v2673_v5, 16  ;;  %v8195_v5 = vld [vmem:[#allocation17 + $0xa0] ss:$16 sps:$4 sm:$0xff]  }
0x345a   :  { %7439 = vmatmul.mubr.msk.bf16.vlgmr.msra.gmra.mxu0 %vm427_vm0, %v2675_v6  ;;  %v8198_v6 = vld [vmem:[#allocation17 + $0xa8] ss:$16 sps:$4 sm:$0xff]  }
0x345b   :  { %3107 = vmatprep.mubr.bf16.mxu0 %v9311_v0  ;;  %3076 = vmatpush1.bf16.msra.mxu0 %v8183_v61 }
0x351a   :  { %v2714_v7 = vpop.f32.mrf.mxu0 }
0x351b   :  { %v2723_v17 = vrot.slane %v2714_v7, 6  ;;  %v8203_v7 = vld [vmem:[#allocation17 + $0x84] ss:$16 sps:$4 sm:$0xff]  }
0x351c   :  { %v2716_v8 = vpop.f32.mrf.mxu0 }
0x351d   :  { %v2724_v9 = vrot.slane %v2716_v8, 6  ;;  %v2727_v19 = vadd.f32 %v2723_v17, %v9937_v24  ;;  %v8206_v8 = vld [vmem:[#allocation17 + $0x8c] ss:$16 sps:$4 sm:$0xff]   ;;  %v8207_v17 = vld [vmem:[#allocation17 + $0x60] ss:$16 sps:$4 sm:$0xff]  }
0x351e   :  { %v2718_v10 = vpop.f32.mrf.mxu0 }
0x351f   :  { %v2728_v11 = vadd.f32 %v2724_v9, %v9933_v12  ;;  %v7440_v22 = vmul.f32 -1.442695, %v2727_v19  ;;  %v8201_v10 = vld [vmem:[#allocation17 + $0x80] ss:$16 sps:$4 sm:$0xff]   ;;  %v8210_v19 = vld [vmem:[#allocation17 + $0x68] ss:$16 sps:$4 sm:$0xff]  }
0x3520   :  { %v2719_v13 = vpop.f32.mrf.mxu0 }
0x3521   :  { %8255 = vtanh.f32 %v2728_v11  ;;  %v7441_v35 = vmul.f32 -1.442695, %v2728_v11  ;;  %v8204_v11 = vld [vmem:[#allocation17 + $0x88] ss:$16 sps:$4 sm:$0xff]   ;;  %v8209_v13 = vld [vmem:[#allocation17 + $0x64] ss:$16 sps:$4 sm:$0xff]  }
0x3522   :  { %8257 = vpow2.f32 %v7440_v22  ;;  %v8215_v22 = vld [vmem:[#allocation17 + $0x44] ss:$16 sps:$4 sm:$0xff]  }
0x352e   :  { %v8256_v14 = vpop.eup %8255 }
0x352f   :  { %2747 = vrot.lane.b32.xlu0 %v8256_v14, %s9304_s17  ;;  %v8258_v25 = vpop.eup %8257  ;;  %v8212_v14 = vld [vmem:[#allocation17 + $0x6c] ss:$16 sps:$4 sm:$0xff]  }
0x3530   :  { %v2735_v26 = vadd.f32 1.0, %v8258_v25  ;;  %v8218_v25 = vld [vmem:[#allocation17 + $0x4c] ss:$16 sps:$4 sm:$0xff]  }
0x3532   :  { %8259 = vrcp.f32 %v2735_v26  ;;  %v8213_v26 = vld [vmem:[#allocation17 + $0x40] ss:$16 sps:$4 sm:$0xff]  }
0x353f   :  { %v8260_v28 = vpop.eup %8259 }
0x3540   :  { %v2745_v31 = vmul.f32 %v8260_v28, %v2743_v16  ;;  %v8219_v16 = vld [vmem:[#allocation17 + $0x20] ss:$16 sps:$4 sm:$0xff]  }
0x35a1   :  { %v2748_v29 = vpop.permute.xlu0 %2747 }
0x35a2   :  { %v2750_v30 = vmul.f32 %v8260_v28, %v2748_v29  ;;  %v8216_v28 = vld [vmem:[#allocation17 + $0x48] ss:$16 sps:$4 sm:$0xff]   ;;  %v8221_v29 = vld [vmem:[#allocation17 + $0x24] ss:$16 sps:$4 sm:$0xff]  }
0x35a4   :  { %2752 = vrot.lane.b32.xlu1 %v2750_v30, %s9304_s17  ;;  %v8224_v30 = vld [vmem:[#allocation17 + $0x2c] ss:$16 sps:$4 sm:$0xff]  }
0x3616   :  { %v2753_v32 = vpop.permute.xlu1 %2752 }
0x3617   :  { %v2755_v33 = vadd.f32 %v2753_v32, %v2745_v31  ;;  %v8222_v31 = vld [vmem:[#allocation17 + $0x28] ss:$16 sps:$4 sm:$0xff]  }
0x3619   :  { %8261 = vtanh.f32 %v2755_v33 }
0x361a   :  { %8263 = vpow2.f32 %v7441_v35  ;;  %v8227_v35 = vld [vmem:[#allocation17 + $0x4] ss:$16 sps:$4 sm:$0xff]  }
0x3626   :  { %v8262_v34 = vpop.eup %8261 }
0x3627   :  { %2758 = vrot.lane.b32.xlu0 %v8262_v34, %s9304_s17  ;;  %v8264_v36 = vpop.eup %8263 }
0x3628   :  { %v2736_v37 = vadd.f32 1.0, %v8264_v36  ;;  %v8230_v36 = vld [vmem:[#allocation17 + $0xc] ss:$16 sps:$4 sm:$0xff]  }
0x362a   :  { %8265 = vrcp.f32 %v2736_v37  ;;  %v8225_v37 = vld [vmem:[#allocation17] ss:$16 sps:$4 sm:$0xff]  }
0x3637   :  { %v8266_v38 = vpop.eup %8265 }
0x3699   :  { %v2759_v39 = vpop.permute.xlu0 %2758 }
0x369a   :  { %v2761_v40 = vmul.f32 %v8266_v38, %v2759_v39  ;;  %v8228_v38 = vld [vmem:[#allocation17 + $0x8] ss:$16 sps:$4 sm:$0xff]  }
0x369c   :  { %v2762_v41 = vpack.c.bf16 %v2761_v40, %v2761_v40 }
0x369e   :  { %v2764_v42 = vrot.slane %v2762_v41, 1 }
0x36a0   :  { %7442 = vmatmul.mubr.msk.bf16.vlgmr.msra.gmra.mxu1 %vm427_vm0, %v2764_v42 }
0x36a1   :  { %3148 = vmatprep.mubr.bf16.mxu1 %v9311_v0  ;;  %3117 = vmatpush1.bf16.msra.mxu1 %v8186_v62 }
0x36a2   :  { %3118 = vmatprep.subr.bf16.mxu1 %v8194_v1 }
0x36a5   :  { %3119 = vmatpush1.bf16.msra.mxu1 %v8192_v2 }
0x36a6   :  { %3120 = vmatprep.subr.bf16.mxu1 %v8200_v4 }
0x36a9   :  { %3121 = vmatpush1.bf16.msra.mxu1 %v8198_v6 }
0x36aa   :  { %3122 = vmatprep.subr.bf16.mxu1 %v8206_v8 }
0x36ad   :  { %3123 = vmatpush1.bf16.msra.mxu1 %v8204_v11 }
0x36ae   :  { %3124 = vmatprep.subr.bf16.mxu1 %v8212_v14 }
0x36b1   :  { %3125 = vmatpush1.bf16.msra.mxu1 %v8210_v19 }
0x36b2   :  { %3126 = vmatprep.subr.bf16.mxu1 %v8218_v25 }
0x36b5   :  { %3127 = vmatpush1.bf16.msra.mxu1 %v8216_v28 }
0x36b6   :  { %3128 = vmatprep.subr.bf16.mxu1 %v8224_v30 }
0x36b9   :  { %3129 = vmatpush1.bf16.msra.mxu1 %v8222_v31 }
0x36ba   :  { %3130 = vmatprep.subr.bf16.mxu1 %v8230_v36 }
0x36bd   :  { %3131 = vmatpush1.bf16.msra.mxu1 %v8228_v38 }
0x3760   :  { %v2802_v44 = vpop.f32.mrf.mxu1 }
0x3761   :  { %v2811_v51 = vrot.slane %v2802_v44, 5 }
0x3762   :  { %v2804_v43 = vpop.f32.mrf.mxu1 }
0x3763   :  { %v2812_v45 = vrot.slane %v2804_v43, 5  ;;  %v2815_v54 = vadd.f32 %v2811_v51, %v9937_v24  ;;  %v8191_v24 = vld [vmem:[#allocation17 + $0xc4] ss:$16 sps:$4 sm:$0xff]  }
0x3764   :  { %v2806_v46 = vpop.f32.mrf.mxu1  ;;  %3077 = vmatprep.subr.bf16.mxu0 %v8191_v24  ;;  %v9999_v24 = vmov 0.0  }
0x3765   :  { %v9967_v47 = vadd.f32 %v2812_v45, %v9933_v12  ;;  %v7443_v50 = vmul.f32 -1.442695, %v2815_v54  ;;  %v2831_v12 = vrot.slane %v2755_v33, 7  ;;  %3078 = vmatpush1.bf16.msra.mxu0 %v8189_v27 }
0x3766   :  { %v2807_v49 = vpop.f32.mrf.mxu1  ;;  %3079 = vmatprep.subr.bf16.mxu0 %v8197_v3 }
0x3767   :  { %8267 = vtanh.f32 %v9967_v47  ;;  %v7444_v32 = vmul.f32 -1.442695, %v9967_v47  ;;  %v3065_v47 = vsub.s32 2, %v9447_v20  ;;  %v2888_v49 = vld [vmem:[%s11400_s9] sm:$0xf]  ;;  %s10001_s9 = smov 0  }
0x3768   :  { %8269 = vpow2.f32 %v7443_v50  ;;  %v3058_v51 = vrot.slane %v2888_v49, %v9450_v21 }
0x3769   :  { %3080 = vmatpush1.bf16.msra.mxu0 %v8195_v5  ;;  %v3066_v54 = vrot.slane %v2888_v49, %v3065_v47 }
0x376a   :  { %3081 = vmatprep.subr.bf16.mxu0 %v8203_v7 }
0x376d   :  { %3082 = vmatpush1.bf16.msra.mxu0 %v8201_v10 }
0x376e   :  { %3083 = vmatprep.subr.bf16.mxu0 %v8209_v13 }
0x3771   :  { %3084 = vmatpush1.bf16.msra.mxu0 %v8207_v17 }
0x3772   :  { %3085 = vmatprep.subr.bf16.mxu0 %v8215_v22 }
0x3774   :  { %v8268_v52 = vpop.eup %8267 }
0x3775   :  { %2835 = vrot.lane.b32.xlu1 %v8268_v52, %s9304_s17  ;;  %v8270_v53 = vpop.eup %8269  ;;  %3086 = vmatpush1.bf16.msra.mxu0 %v8213_v26  ;;  %v3069_v52 = vsub.s32 3, %v9447_v20 }
0x3776   :  { %v2823_v48 = vadd.f32 1.0, %v8270_v53  ;;  %3087 = vmatprep.subr.bf16.mxu0 %v8221_v29 }
0x3777   :  { %v3070_v50 = vrot.slane %v2888_v49, %v3069_v52 }
0x3778   :  { %8271 = vrcp.f32 %v2823_v48 }
0x3779   :  { %3088 = vmatpush1.bf16.msra.mxu0 %v8219_v16 }
0x377a   :  { %3089 = vmatprep.subr.bf16.mxu0 %v8227_v35 }
0x377d   :  { %3090 = vmatpush1.bf16.msra.mxu0 %v8225_v37 }
0x3785   :  { %v8272_v56 = vpop.eup %8271 }
0x3786   :  { %v2833_v58 = vmul.f32 %v8272_v56, %v2831_v12 }
0x37e7   :  { %v2836_v55 = vpop.permute.xlu1 %2835 }
0x37e8   :  { %v2838_v57 = vmul.f32 %v8272_v56, %v2836_v55 }
0x37ea   :  { %2840 = vrot.lane.b32.xlu0 %v2838_v57, %s9304_s17 }
0x385c   :  { %v2841_v18 = vpop.permute.xlu0 %2840 }
0x385d   :  { %v2843_v59 = vadd.f32 %v2841_v18, %v2833_v58 }
0x385f   :  { %8273 = vtanh.f32 %v2843_v59 }
0x3860   :  { %8275 = vpow2.f32 %v7444_v32 }
0x386c   :  { %v8274_v9 = vpop.eup %8273 }
0x386d   :  { %2846 = vrot.lane.b32.xlu1 %v8274_v9, %s9304_s17  ;;  %v8276_v33 = vpop.eup %8275 }
0x386e   :  { %v2824_v34 = vadd.f32 1.0, %v8276_v33 }
0x3870   :  { %8277 = vrcp.f32 %v2824_v34 }
0x387d   :  { %v8278_v39 = vpop.eup %8277 }
0x38df   :  { %v2847_v40 = vpop.permute.xlu1 %2846 }
0x38e0   :  { %v2849_v41 = vmul.f32 %v8278_v39, %v2847_v40 }
0x38e2   :  { %2851 = vrot.lane.b32.xlu0 %v2849_v41, %s9304_s17 }
0x3954   :  { %v2852_v42 = vpop.permute.xlu0 %2851 }
0x3955   :  { %v2854_v44 = vsel %vm427_vm0, %v9718_v15, %v2852_v42  ;;  %v3062_v15 = vrot.slane %v2888_v49, %v9453_v23 }
0x3956   :  { %v2855_v43 = vpack.c.bf16 %v2854_v44, %v2854_v44 }
0x3958   :  { %v2890_v45 = vshrl.u32 %v2855_v43, 16 }
0x395a   :  { %v2892_v46 = vrot.slane %v2890_v45, 1 }
0x395c   :  { %3108 = vmatmul.mubr.bf16.vlgmr.msra.gmra.mxu0 %v2892_v46  ;;  %3149 = vmatmul.mubr.bf16.vlgmr.msra.gmra.mxu1 %v2892_v46 }
0x3a1c   :  { %v3109_v53 = vpop.f32.mrf.mxu0  ;;  %v3150_v48 = vpop.f32.mrf.mxu1 }
0x3a1d   :  { %v9989_v56 = vadd.f32 %v3109_v53, %v3058_v51  ;;  %v9991_v55 = vadd.f32 %v3150_v48, %v3066_v54 }
0x3a1e   :  { %v3111_v57 = vpop.f32.mrf.mxu0  ;;  %v3152_v12 = vpop.f32.mrf.mxu1 }
0x3a1f   :  { %v9993_v58 = vadd.f32 %v3111_v57, %v3062_v15  ;;  %v9995_v18 = vadd.f32 %v3152_v12, %v3070_v50 }
0x3a20   :  { %v3113_v59 = vpop.f32.mrf.mxu0  ;;  %v3154_v61 = vpop.f32.mrf.mxu1 }
0x3a22   :  { %v3114_v60 = vpop.f32.mrf.mxu0  ;;  %v3155_v62 = vpop.f32.mrf.mxu1 }
0x3a23 LB: > { %v10012_v1 = vld [vmem:[#allocation18 + $0xe4] ss:$16 sps:$4 sm:$0xff]   ;;  %v10014_v27 = vld [vmem:[#allocation18 + $0xe0] ss:$16 sps:$4 sm:$0xff]   ;;  %v9316_v2 = vmov 0   ;;  %v3166_v40 = vpack.c.bf16 %v9277_v24, %v9277_v24  ;;  %s7477_s17 = sshll.u32 %s9281_s9, 3  ;;  %s9281_s9 = sphi %s10001_s9, %s3162_s9   ;;  %v9277_v24 = vphi %v9999_v24, %v11414_v24   ;;  %v9273_v63 = vphi %v9997_v63, %v11413_v63  }
0x3a24   : > { %3391 = vmatprep.mubr.bf16.mxu0 %v9316_v2  ;;  %3432 = vmatprep.mubr.bf16.mxu1 %v9316_v2  ;;  %v10019_v3 = vld [vmem:[#allocation18 + $0xc4] ss:$16 sps:$4 sm:$0xff]   ;;  %v10022_v4 = vld [vmem:[#allocation18 + $0xc0] ss:$16 sps:$4 sm:$0xff]   ;;  %v10027_v6 = vld [vmem:[#allocation18 + $0xec] ss:$16 sps:$4 sm:$0xff]  }
0x3a25   : > { %3359 = vmatprep.subr.bf16.mxu0 %v10012_v1  ;;  %v10025_v5 = vld [vmem:[#allocation18 + $0xa4] ss:$16 sps:$4 sm:$0xff]   ;;  %v10029_v7 = vld [vmem:[#allocation18 + $0xe8] ss:$16 sps:$4 sm:$0xff]   ;;  %v10032_v8 = vld [vmem:[#allocation18 + $0xa0] ss:$16 sps:$4 sm:$0xff]   ;;  %3400 = vmatprep.subr.bf16.mxu1 %v10027_v6 }
0x3a26   : > { %3360 = vmatpush1.bf16.msra.mxu0 %v10014_v27  ;;  %v10036_v9 = vld [vmem:[#allocation18 + $0x84] ss:$16 sps:$4 sm:$0xff]   ;;  %3401 = vmatpush1.bf16.msra.mxu1 %v10029_v7  ;;  %v10039_v10 = vld [vmem:[#allocation18 + $0xcc] ss:$16 sps:$4 sm:$0xff]   ;;  %v10041_v11 = vld [vmem:[#allocation18 + $0xc8] ss:$16 sps:$4 sm:$0xff]  }
0x3a27   : > { %3361 = vmatprep.subr.bf16.mxu0 %v10019_v3  ;;  %3402 = vmatprep.subr.bf16.mxu1 %v10039_v10  ;;  %v10045_v13 = vld [vmem:[#allocation18 + $0x80] ss:$16 sps:$4 sm:$0xff]   ;;  %v10047_v14 = vld [vmem:[#allocation18 + $0x64] ss:$16 sps:$4 sm:$0xff]   ;;  %v10049_v17 = vld [vmem:[#allocation18 + $0xac] ss:$16 sps:$4 sm:$0xff]  }
0x3a28   : > { %v10053_v19 = vld [vmem:[#allocation18 + $0xa8] ss:$16 sps:$4 sm:$0xff]   ;;  %v10056_v22 = vld [vmem:[#allocation18 + $0x8c] ss:$16 sps:$4 sm:$0xff]   ;;  %v10059_v25 = vld [vmem:[#allocation18 + $0x60] ss:$16 sps:$4 sm:$0xff]  }
0x3a29   : > { %v10062_v26 = vld [vmem:[#allocation18 + $0x44] ss:$16 sps:$4 sm:$0xff]   ;;  %v10065_v28 = vld [vmem:[#allocation18 + $0x88] ss:$16 sps:$4 sm:$0xff]   ;;  %v10068_v29 = vld [vmem:[#allocation18 + $0x6c] ss:$16 sps:$4 sm:$0xff]  }
0x3a2a   : > { %3362 = vmatpush1.bf16.msra.mxu0 %v10022_v4  ;;  %3403 = vmatpush1.bf16.msra.mxu1 %v10041_v11  ;;  %v10071_v30 = vld [vmem:[#allocation18 + $0x40] ss:$16 sps:$4 sm:$0xff]   ;;  %v10073_v16 = vld [vmem:[#allocation18 + $0x24] ss:$16 sps:$4 sm:$0xff]   ;;  %v10077_v31 = vld [vmem:[#allocation18 + $0x68] ss:$16 sps:$4 sm:$0xff]  }
0x3a2b   : > { %3363 = vmatprep.subr.bf16.mxu0 %v10025_v5  ;;  %3404 = vmatprep.subr.bf16.mxu1 %v10049_v17  ;;  %v10080_v32 = vld [vmem:[#allocation18 + $0x4c] ss:$16 sps:$4 sm:$0xff]   ;;  %v10083_v33 = vld [vmem:[#allocation18 + $0x20] ss:$16 sps:$4 sm:$0xff]   ;;  %v10086_v34 = vld [vmem:[#allocation18 + $0x4] ss:$16 sps:$4 sm:$0xff]  }
0x3a2c   : > { %v10089_v35 = vld [vmem:[#allocation18 + $0x48] ss:$16 sps:$4 sm:$0xff]   ;;  %v10092_v36 = vld [vmem:[#allocation18 + $0x2c] ss:$16 sps:$4 sm:$0xff]   ;;  %v10095_v37 = vld [vmem:[#allocation18] ss:$16 sps:$4 sm:$0xff]  }
0x3a2d   : > { %v10099_v38 = vld [vmem:[#allocation18 + $0x28] ss:$16 sps:$4 sm:$0xff]   ;;  %v10102_v39 = vld [vmem:[#allocation18 + $0xc] ss:$16 sps:$4 sm:$0xff]   ;;  %s4279_s20 = sshra.s32 %s7477_s17, 3  ;;  %s3162_s9 = sadd.s32 1, %s9281_s9  }
0x3a2e   : > { %3364 = vmatpush1.bf16.msra.mxu0 %v10032_v8  ;;  %3405 = vmatpush1.bf16.msra.mxu1 %v10053_v19  ;;  %v10108_v41 = vld [vmem:[#allocation18 + $0x8] ss:$16 sps:$4 sm:$0xff]   ;;  %s7534_s21 = sshll.u32 %s4279_s20, 2  ;;  %p3159_p10 = scmp.ge.s32.totalorder %s3162_s9, 2  }
0x3a2f   : > { %3365 = vmatprep.subr.bf16.mxu0 %v10036_v9  ;;  %3406 = vmatprep.subr.bf16.mxu1 %v10056_v22  ;;  %s4282_s22 = scalar_lea.vmem [#allocation5], %s7534_s21 }
0x3a32   : > { %3366 = vmatpush1.bf16.msra.mxu0 %v10045_v13  ;;  %3407 = vmatpush1.bf16.msra.mxu1 %v10065_v28 }
0x3a33   : > { %3367 = vmatprep.subr.bf16.mxu0 %v10047_v14  ;;  %3408 = vmatprep.subr.bf16.mxu1 %v10068_v29 }
0x3a36   : > { %3368 = vmatpush1.bf16.msra.mxu0 %v10059_v25  ;;  %3409 = vmatpush1.bf16.msra.mxu1 %v10077_v31 }
0x3a37   : > { %3369 = vmatprep.subr.bf16.mxu0 %v10062_v26  ;;  %3410 = vmatprep.subr.bf16.mxu1 %v10080_v32 }
0x3a3a   : > { %3370 = vmatpush1.bf16.msra.mxu0 %v10071_v30  ;;  %3411 = vmatpush1.bf16.msra.mxu1 %v10089_v35 }
0x3a3b   : > { %3371 = vmatprep.subr.bf16.mxu0 %v10073_v16  ;;  %3412 = vmatprep.subr.bf16.mxu1 %v10092_v36 }
0x3a3e   : > { %3372 = vmatpush1.bf16.msra.mxu0 %v10083_v33  ;;  %3413 = vmatpush1.bf16.msra.mxu1 %v10099_v38 }
0x3a3f   : > { %3373 = vmatprep.subr.bf16.mxu0 %v10086_v34  ;;  %3414 = vmatprep.subr.bf16.mxu1 %v10102_v39 }
0x3a42   : > { %3374 = vmatpush1.bf16.msra.mxu0 %v10095_v37  ;;  %3415 = vmatpush1.bf16.msra.mxu1 %v10108_v41 }
0x3a43   : > { %3470 = vmatprep.subr.bf16.mxu0 %v10012_v1  ;;  %3511 = vmatprep.subr.bf16.mxu1 %v10027_v6 }
0x3a45   : > { %3392 = vmatmul.mubr.bf16.vlgmr.msra.gmra.mxu0 %v3166_v40  ;;  %3433 = vmatmul.mubr.bf16.vlgmr.msra.gmra.mxu1 %v3166_v40 }
0x3a46   : > { %3471 = vmatpush1.bf16.msra.mxu0 %v10014_v27  ;;  %3502 = vmatprep.mubr.bf16.mxu0 %v9316_v2 }
0x3a47   : > { %3472 = vmatprep.subr.bf16.mxu0 %v10019_v3  ;;  %3512 = vmatpush1.bf16.msra.mxu1 %v10029_v7 }
0x3a48   : > { %3513 = vmatprep.subr.bf16.mxu1 %v10039_v10  ;;  %3543 = vmatprep.mubr.bf16.mxu1 %v9316_v2 }
0x3a4a   : > { %3473 = vmatpush1.bf16.msra.mxu0 %v10022_v4 }
0x3a4b   : > { %3474 = vmatprep.subr.bf16.mxu0 %v10025_v5  ;;  %3514 = vmatpush1.bf16.msra.mxu1 %v10041_v11 }
0x3a4c   : > { %3515 = vmatprep.subr.bf16.mxu1 %v10049_v17 }
0x3a4e   : > { %3475 = vmatpush1.bf16.msra.mxu0 %v10032_v8 }
0x3a4f   : > { %3476 = vmatprep.subr.bf16.mxu0 %v10036_v9  ;;  %3516 = vmatpush1.bf16.msra.mxu1 %v10053_v19 }
0x3a50   : > { %3517 = vmatprep.subr.bf16.mxu1 %v10056_v22 }
0x3a52   : > { %3477 = vmatpush1.bf16.msra.mxu0 %v10045_v13 }
0x3a53   : > { %3478 = vmatprep.subr.bf16.mxu0 %v10047_v14  ;;  %3518 = vmatpush1.bf16.msra.mxu1 %v10065_v28 }
0x3a54   : > { %3519 = vmatprep.subr.bf16.mxu1 %v10068_v29 }
0x3a56   : > { %3479 = vmatpush1.bf16.msra.mxu0 %v10059_v25 }
0x3a57   : > { %3480 = vmatprep.subr.bf16.mxu0 %v10062_v26  ;;  %3520 = vmatpush1.bf16.msra.mxu1 %v10077_v31 }
0x3a58   : > { %3521 = vmatprep.subr.bf16.mxu1 %v10080_v32 }
0x3a5a   : > { %3481 = vmatpush1.bf16.msra.mxu0 %v10071_v30 }
0x3a5b   : > { %3482 = vmatprep.subr.bf16.mxu0 %v10073_v16  ;;  %3522 = vmatpush1.bf16.msra.mxu1 %v10089_v35 }
0x3a5c   : > { %3523 = vmatprep.subr.bf16.mxu1 %v10092_v36 }
0x3a5e   : > { %3483 = vmatpush1.bf16.msra.mxu0 %v10083_v33 }
0x3a5f   : > { %3484 = vmatprep.subr.bf16.mxu0 %v10086_v34  ;;  %3524 = vmatpush1.bf16.msra.mxu1 %v10099_v38 }
0x3a60   : > { %3525 = vmatprep.subr.bf16.mxu1 %v10102_v39 }
0x3a62   : > { %3485 = vmatpush1.bf16.msra.mxu0 %v10095_v37 }
0x3a63   : > { %3581 = vmatprep.subr.bf16.mxu0 %v10012_v1  ;;  %3526 = vmatpush1.bf16.msra.mxu1 %v10108_v41 }
0x3a64   : > { %3622 = vmatprep.subr.bf16.mxu1 %v10027_v6 }
0x3b05   : > { %v3393_v42 = vpop.f32.mrf.mxu0  ;;  %v3434_v54 = vpop.f32.mrf.mxu1 }
0x3b06   : > { %v3441_v44 = vadd.f32 %v3393_v42, %v9989_v56  ;;  %v3443_v48 = vadd.f32 %v3434_v54, %v9991_v55 }
0x3b07   : > { %v3395_v43 = vpop.f32.mrf.mxu0  ;;  %v3436_v50 = vpop.f32.mrf.mxu1 }
0x3b08   : > { %v7510_v45 = vmul.f32 -1.442695, %v3441_v44  ;;  %v3442_v46 = vadd.f32 %v3395_v43, %v9993_v58  ;;  %v7512_v12 = vmul.f32 -1.442695, %v3443_v48  ;;  %v3444_v59 = vadd.f32 %v3436_v50, %v9995_v18 }
0x3b09   : > { %v3397_v49 = vpop.f32.mrf.mxu0  ;;  %v3438_v53 = vpop.f32.mrf.mxu1 }
0x3b0a   : > { %8327 = vpow2.f32 %v7510_v45  ;;  %v7511_v51 = vmul.f32 -1.442695, %v3442_v46 }
0x3b0b   : > { %v3398_v15 = vpop.f32.mrf.mxu0  ;;  %v3439_v57 = vpop.f32.mrf.mxu1 }
0x3b0c   : > { %8329 = vpow2.f32 %v7511_v51 }
0x3b0d   : > { %8331 = vpow2.f32 %v7512_v12 }
0x3b0e   : > { %8333 = vtanh.f32 %v3444_v59 }
0x3b17   : > { %v8328_v61 = vpop.eup %8327 }
0x3b18   : > { %v3454_v60 = vadd.f32 1.0, %v8328_v61 }
0x3b19   : > { %v8330_v62 = vpop.eup %8329 }
0x3b1a   : > { %8335 = vrcp.f32 %v3454_v60  ;;  %v3455_v24 = vadd.f32 1.0, %v8330_v62  ;;  %v8332_v40 = vpop.eup %8331 }
0x3b1b   : > { %v8334_v42 = vpop.eup %8333  ;;  %v3456_v45 = vadd.f32 1.0, %v8332_v40 }
0x3b1c   : > { %8337 = vrcp.f32 %v3455_v24 }
0x3b1d   : > { %8339 = vrcp.f32 %v3456_v45 }
0x3b27   : > { %v8336_v44 = vpop.eup %8335 }
0x3b28   : > { %v3465_v49 = vmul.f32 %v8336_v44, %v8334_v42 }
0x3b29   : > { %v8338_v43 = vpop.eup %8337 }
0x3b2a   : > { %v3464_v46 = vmul.f32 %v9273_v63, %v8338_v43  ;;  %v8340_v54 = vpop.eup %8339 }
0x3b2c   : > { %v10153_v51 = vadd.f32 %v3465_v49, %v3464_v46 }
0x3b2e   : > { %8341 = vtanh.f32 %v10153_v51 }
0x3b3b   : > { %v8342_v15 = vpop.eup %8341 }
0x3b3c   : > { %v10156_v50 = vmul.f32 %v8342_v15, %v8340_v54 }
0x3b3e   : > { %v3469_v53 = vpack.c.bf16 %v10156_v50, %v10156_v50 }
0x3b40   : > { %3503 = vmatmul.mubr.bf16.vlgmr.msra.gmra.mxu0 %v3469_v53  ;;  %3544 = vmatmul.mubr.bf16.vlgmr.msra.gmra.mxu1 %v3469_v53 }
0x3b41   : > { %3582 = vmatpush1.bf16.msra.mxu0 %v10014_v27  ;;  %3623 = vmatpush1.bf16.msra.mxu1 %v10029_v7 }
0x3b42   : > { %3583 = vmatprep.subr.bf16.mxu0 %v10019_v3  ;;  %3624 = vmatprep.subr.bf16.mxu1 %v10039_v10 }
0x3b43   : > { %3613 = vmatprep.mubr.bf16.mxu0 %v9316_v2  ;;  %3654 = vmatprep.mubr.bf16.mxu1 %v9316_v2 }
0x3b45   : > { %3584 = vmatpush1.bf16.msra.mxu0 %v10022_v4  ;;  %3625 = vmatpush1.bf16.msra.mxu1 %v10041_v11 }
0x3b46   : > { %3585 = vmatprep.subr.bf16.mxu0 %v10025_v5  ;;  %3626 = vmatprep.subr.bf16.mxu1 %v10049_v17 }
0x3b49   : > { %3586 = vmatpush1.bf16.msra.mxu0 %v10032_v8  ;;  %3627 = vmatpush1.bf16.msra.mxu1 %v10053_v19 }
0x3b4a   : > { %3587 = vmatprep.subr.bf16.mxu0 %v10036_v9  ;;  %3628 = vmatprep.subr.bf16.mxu1 %v10056_v22 }
0x3b4d   : > { %3588 = vmatpush1.bf16.msra.mxu0 %v10045_v13  ;;  %3629 = vmatpush1.bf16.msra.mxu1 %v10065_v28 }
0x3b4e   : > { %3589 = vmatprep.subr.bf16.mxu0 %v10047_v14  ;;  %3630 = vmatprep.subr.bf16.mxu1 %v10068_v29 }
0x3b51   : > { %3590 = vmatpush1.bf16.msra.mxu0 %v10059_v25  ;;  %3631 = vmatpush1.bf16.msra.mxu1 %v10077_v31 }
0x3b52   : > { %3591 = vmatprep.subr.bf16.mxu0 %v10062_v26  ;;  %3632 = vmatprep.subr.bf16.mxu1 %v10080_v32 }
0x3b55   : > { %3592 = vmatpush1.bf16.msra.mxu0 %v10071_v30  ;;  %3633 = vmatpush1.bf16.msra.mxu1 %v10089_v35 }
0x3b56   : > { %3593 = vmatprep.subr.bf16.mxu0 %v10073_v16  ;;  %3634 = vmatprep.subr.bf16.mxu1 %v10092_v36 }
0x3b59   : > { %3594 = vmatpush1.bf16.msra.mxu0 %v10083_v33  ;;  %3635 = vmatpush1.bf16.msra.mxu1 %v10099_v38 }
0x3b5a   : > { %3595 = vmatprep.subr.bf16.mxu0 %v10086_v34  ;;  %3636 = vmatprep.subr.bf16.mxu1 %v10102_v39 }
0x3b5d   : > { %3596 = vmatpush1.bf16.msra.mxu0 %v10095_v37  ;;  %3637 = vmatpush1.bf16.msra.mxu1 %v10108_v41 }
0x3b5e   : > { %3692 = vmatprep.subr.bf16.mxu0 %v10012_v1  ;;  %3733 = vmatprep.subr.bf16.mxu1 %v10027_v6 }
0x3c00   : > { %v3504_v63 = vpop.f32.mrf.mxu0  ;;  %v3545_v48 = vpop.f32.mrf.mxu1 }
0x3c01   : > { %v3552_v57 = vadd.f32 %v3504_v63, %v9989_v56  ;;  %v3554_v43 = vadd.f32 %v3545_v48, %v9991_v55 }
0x3c02   : > { %v3506_v12 = vpop.f32.mrf.mxu0  ;;  %v3547_v59 = vpop.f32.mrf.mxu1 }
0x3c03   : > { %v7513_v61 = vmul.f32 -1.442695, %v3552_v57  ;;  %v3553_v60 = vadd.f32 %v3506_v12, %v9993_v58  ;;  %v7515_v45 = vmul.f32 -1.442695, %v3554_v43  ;;  %v3555_v49 = vadd.f32 %v3547_v59, %v9995_v18 }
0x3c04   : > { %v3508_v62 = vpop.f32.mrf.mxu0  ;;  %v3549_v24 = vpop.f32.mrf.mxu1 }
0x3c05   : > { %8343 = vpow2.f32 %v7513_v61  ;;  %v7514_v40 = vmul.f32 -1.442695, %v3553_v60 }
0x3c06   : > { %v3509_v42 = vpop.f32.mrf.mxu0  ;;  %v3550_v44 = vpop.f32.mrf.mxu1 }
0x3c07   : > { %8345 = vpow2.f32 %v7514_v40 }
0x3c08   : > { %8347 = vpow2.f32 %v7515_v45 }
0x3c12   : > { %v8344_v46 = vpop.eup %8343 }
0x3c13   : > { %v3565_v54 = vadd.f32 1.0, %v8344_v46 }
0x3c14   : > { %v8346_v15 = vpop.eup %8345 }
0x3c15   : > { %8349 = vrcp.f32 %v3565_v54  ;;  %v3566_v53 = vadd.f32 1.0, %v8346_v15  ;;  %v8348_v63 = vpop.eup %8347 }
0x3c16   : > { %8351 = vtanh.f32 %v3555_v49  ;;  %v3567_v60 = vadd.f32 1.0, %v8348_v63 }
0x3c17   : > { %8353 = vrcp.f32 %v3566_v53 }
0x3c18   : > { %8355 = vrcp.f32 %v3567_v60 }
0x3c22   : > { %v8350_v57 = vpop.eup %8349 }
0x3c23   : > { %v8352_v12 = vpop.eup %8351 }
0x3c24   : > { %v8354_v61 = vpop.eup %8353  ;;  %v3576_v24 = vmul.f32 %v8352_v12, %v8350_v57 }
0x3c25   : > { %v3575_v62 = vmul.f32 %v8354_v61, %v10153_v51  ;;  %v8356_v59 = vpop.eup %8355 }
0x3c27   : > { %v10199_v48 = vadd.f32 %v3576_v24, %v3575_v62 }
0x3c29   : > { %8357 = vtanh.f32 %v10199_v48 }
0x3c36   : > { %v8358_v40 = vpop.eup %8357 }
0x3c37   : > { %v10202_v42 = vmul.f32 %v8358_v40, %v8356_v59 }
0x3c39   : > { %v3580_v44 = vpack.c.bf16 %v10202_v42, %v10202_v42 }
0x3c3b   : > { %3614 = vmatmul.mubr.bf16.vlgmr.msra.gmra.mxu0 %v3580_v44  ;;  %3655 = vmatmul.mubr.bf16.vlgmr.msra.gmra.mxu1 %v3580_v44 }
0x3c3c   : > { %3693 = vmatpush1.bf16.msra.mxu0 %v10014_v27  ;;  %3734 = vmatpush1.bf16.msra.mxu1 %v10029_v7 }
0x3c3d   : > { %3694 = vmatprep.subr.bf16.mxu0 %v10019_v3  ;;  %3735 = vmatprep.subr.bf16.mxu1 %v10039_v10 }
0x3c3e   : > { %3724 = vmatprep.mubr.bf16.mxu0 %v9316_v2  ;;  %3765 = vmatprep.mubr.bf16.mxu1 %v9316_v2 }
0x3c40   : > { %3695 = vmatpush1.bf16.msra.mxu0 %v10022_v4  ;;  %3736 = vmatpush1.bf16.msra.mxu1 %v10041_v11 }
0x3c41   : > { %3696 = vmatprep.subr.bf16.mxu0 %v10025_v5  ;;  %3737 = vmatprep.subr.bf16.mxu1 %v10049_v17 }
0x3c44   : > { %3697 = vmatpush1.bf16.msra.mxu0 %v10032_v8  ;;  %3738 = vmatpush1.bf16.msra.mxu1 %v10053_v19 }
0x3c45   : > { %3698 = vmatprep.subr.bf16.mxu0 %v10036_v9  ;;  %3739 = vmatprep.subr.bf16.mxu1 %v10056_v22 }
0x3c48   : > { %3699 = vmatpush1.bf16.msra.mxu0 %v10045_v13  ;;  %3740 = vmatpush1.bf16.msra.mxu1 %v10065_v28 }
0x3c49   : > { %3700 = vmatprep.subr.bf16.mxu0 %v10047_v14  ;;  %3741 = vmatprep.subr.bf16.mxu1 %v10068_v29 }
0x3c4c   : > { %3701 = vmatpush1.bf16.msra.mxu0 %v10059_v25  ;;  %3742 = vmatpush1.bf16.msra.mxu1 %v10077_v31 }
0x3c4d   : > { %3702 = vmatprep.subr.bf16.mxu0 %v10062_v26  ;;  %3743 = vmatprep.subr.bf16.mxu1 %v10080_v32 }
0x3c50   : > { %3703 = vmatpush1.bf16.msra.mxu0 %v10071_v30  ;;  %3744 = vmatpush1.bf16.msra.mxu1 %v10089_v35 }
0x3c51   : > { %3704 = vmatprep.subr.bf16.mxu0 %v10073_v16  ;;  %3745 = vmatprep.subr.bf16.mxu1 %v10092_v36 }
0x3c54   : > { %3705 = vmatpush1.bf16.msra.mxu0 %v10083_v33  ;;  %3746 = vmatpush1.bf16.msra.mxu1 %v10099_v38 }
0x3c55   : > { %3706 = vmatprep.subr.bf16.mxu0 %v10086_v34  ;;  %3747 = vmatprep.subr.bf16.mxu1 %v10102_v39 }
0x3c58   : > { %3707 = vmatpush1.bf16.msra.mxu0 %v10095_v37  ;;  %3748 = vmatpush1.bf16.msra.mxu1 %v10108_v41 }
0x3c59   : > { %3803 = vmatprep.subr.bf16.mxu0 %v10012_v1  ;;  %3844 = vmatprep.subr.bf16.mxu1 %v10027_v6 }
0x3cfb   : > { %v3615_v51 = vpop.f32.mrf.mxu0  ;;  %v3656_v43 = vpop.f32.mrf.mxu1 }
0x3cfc   : > { %v3663_v45 = vadd.f32 %v3615_v51, %v9989_v56  ;;  %v3665_v60 = vadd.f32 %v3656_v43, %v9991_v55 }
0x3cfd   : > { %v3617_v46 = vpop.f32.mrf.mxu0  ;;  %v3658_v49 = vpop.f32.mrf.mxu1 }
0x3cfe   : > { %v7516_v54 = vmul.f32 -1.442695, %v3663_v45  ;;  %v3664_v15 = vadd.f32 %v3617_v46, %v9993_v58  ;;  %v7518_v62 = vmul.f32 -1.442695, %v3665_v60  ;;  %v3666_v59 = vadd.f32 %v3658_v49, %v9995_v18 }
0x3cff   : > { %v3619_v53 = vpop.f32.mrf.mxu0  ;;  %v3660_v63 = vpop.f32.mrf.mxu1 }
0x3d00   : > { %8359 = vpow2.f32 %v7516_v54  ;;  %v7517_v57 = vmul.f32 -1.442695, %v3664_v15 }
0x3d01   : > { %v3620_v12 = vpop.f32.mrf.mxu0  ;;  %v3661_v61 = vpop.f32.mrf.mxu1 }
0x3d02   : > { %8361 = vpow2.f32 %v7517_v57  ;;  %v4247_v61 = vrot.slane %v10202_v42, 7 }
0x3d03   : > { %8363 = vpow2.f32 %v7518_v62 }
0x3d0d   : > { %v8360_v24 = vpop.eup %8359 }
0x3d0e   : > { %v3676_v40 = vadd.f32 1.0, %v8360_v24 }
0x3d0f   : > { %v8362_v44 = vpop.eup %8361 }
0x3d10   : > { %8365 = vrcp.f32 %v3676_v40  ;;  %v3677_v51 = vadd.f32 1.0, %v8362_v44  ;;  %v8364_v45 = vpop.eup %8363 }
0x3d11   : > { %8367 = vtanh.f32 %v3666_v59  ;;  %v3678_v53 = vadd.f32 1.0, %v8364_v45  ;;  %v4267_v59 = vsel %vm1126_vm1, %v10156_v50, %v4247_v61 }
0x3d12   : > { %8369 = vrcp.f32 %v3677_v51 }
0x3d13   : > { %8371 = vrcp.f32 %v3678_v53 }
0x3d1d   : > { %v8366_v46 = vpop.eup %8365 }
0x3d1e   : > { %v8368_v54 = vpop.eup %8367 }
0x3d1f   : > { %v8370_v15 = vpop.eup %8369  ;;  %v3687_v57 = vmul.f32 %v8368_v54, %v8366_v46 }
0x3d20   : > { %v3686_v63 = vmul.f32 %v8370_v15, %v10199_v48  ;;  %v8372_v49 = vpop.eup %8371 }
0x3d22   : > { %v10245_v43 = vadd.f32 %v3687_v57, %v3686_v63 }
0x3d24   : > { %8373 = vtanh.f32 %v10245_v43 }
0x3d31   : > { %v8374_v12 = vpop.eup %8373 }
0x3d32   : > { %v3690_v60 = vmul.f32 %v8374_v12, %v8372_v49 }
0x3d34   : > { %v3691_v62 = vpack.c.bf16 %v3690_v60, %v3690_v60  ;;  %v4250_v24 = vrot.slane %v3690_v60, 6 }
0x3d36   : > { %3725 = vmatmul.mubr.bf16.vlgmr.msra.gmra.mxu0 %v3691_v62  ;;  %v10252_v40 = vsel %vm1128_vm2, %v4267_v59, %v4250_v24  ;;  %3766 = vmatmul.mubr.bf16.vlgmr.msra.gmra.mxu1 %v3691_v62 }
0x3d37   : > { %3804 = vmatpush1.bf16.msra.mxu0 %v10014_v27  ;;  %3845 = vmatpush1.bf16.msra.mxu1 %v10029_v7 }
0x3d38   : > { %3805 = vmatprep.subr.bf16.mxu0 %v10019_v3  ;;  %3846 = vmatprep.subr.bf16.mxu1 %v10039_v10 }
0x3d39   : > { %3835 = vmatprep.mubr.bf16.mxu0 %v9316_v2  ;;  %3876 = vmatprep.mubr.bf16.mxu1 %v9316_v2 }
0x3d3b   : > { %3806 = vmatpush1.bf16.msra.mxu0 %v10022_v4  ;;  %3847 = vmatpush1.bf16.msra.mxu1 %v10041_v11 }
0x3d3c   : > { %3807 = vmatprep.subr.bf16.mxu0 %v10025_v5  ;;  %3848 = vmatprep.subr.bf16.mxu1 %v10049_v17 }
0x3d3f   : > { %3808 = vmatpush1.bf16.msra.mxu0 %v10032_v8  ;;  %3849 = vmatpush1.bf16.msra.mxu1 %v10053_v19 }
0x3d40   : > { %3809 = vmatprep.subr.bf16.mxu0 %v10036_v9  ;;  %3850 = vmatprep.subr.bf16.mxu1 %v10056_v22 }
0x3d43   : > { %3810 = vmatpush1.bf16.msra.mxu0 %v10045_v13  ;;  %3851 = vmatpush1.bf16.msra.mxu1 %v10065_v28 }
0x3d44   : > { %3811 = vmatprep.subr.bf16.mxu0 %v10047_v14  ;;  %3852 = vmatprep.subr.bf16.mxu1 %v10068_v29 }
0x3d47   : > { %3812 = vmatpush1.bf16.msra.mxu0 %v10059_v25  ;;  %3853 = vmatpush1.bf16.msra.mxu1 %v10077_v31 }
0x3d48   : > { %3813 = vmatprep.subr.bf16.mxu0 %v10062_v26  ;;  %3854 = vmatprep.subr.bf16.mxu1 %v10080_v32 }
0x3d4b   : > { %3814 = vmatpush1.bf16.msra.mxu0 %v10071_v30  ;;  %3855 = vmatpush1.bf16.msra.mxu1 %v10089_v35 }
0x3d4c   : > { %3815 = vmatprep.subr.bf16.mxu0 %v10073_v16  ;;  %3856 = vmatprep.subr.bf16.mxu1 %v10092_v36 }
0x3d4f   : > { %3816 = vmatpush1.bf16.msra.mxu0 %v10083_v33  ;;  %3857 = vmatpush1.bf16.msra.mxu1 %v10099_v38 }
0x3d50   : > { %3817 = vmatprep.subr.bf16.mxu0 %v10086_v34  ;;  %3858 = vmatprep.subr.bf16.mxu1 %v10102_v39 }
0x3d53   : > { %3818 = vmatpush1.bf16.msra.mxu0 %v10095_v37  ;;  %3859 = vmatpush1.bf16.msra.mxu1 %v10108_v41 }
0x3d54   : > { %3914 = vmatprep.subr.bf16.mxu0 %v10012_v1  ;;  %3955 = vmatprep.subr.bf16.mxu1 %v10027_v6 }
0x3df6   : > { %v3726_v50 = vpop.f32.mrf.mxu0  ;;  %v3767_v48 = vpop.f32.mrf.mxu1 }
0x3df7   : > { %v3774_v42 = vadd.f32 %v3726_v50, %v9989_v56  ;;  %v3776_v49 = vadd.f32 %v3767_v48, %v9991_v55 }
0x3df8   : > { %v3728_v44 = vpop.f32.mrf.mxu0  ;;  %v3769_v51 = vpop.f32.mrf.mxu1 }
0x3df9   : > { %v7519_v45 = vmul.f32 -1.442695, %v3774_v42  ;;  %v3775_v46 = vadd.f32 %v3728_v44, %v9993_v58  ;;  %v7521_v12 = vmul.f32 -1.442695, %v3776_v49  ;;  %v3777_v60 = vadd.f32 %v3769_v51, %v9995_v18 }
0x3dfa   : > { %v3730_v54 = vpop.f32.mrf.mxu0  ;;  %v3771_v15 = vpop.f32.mrf.mxu1 }
0x3dfb   : > { %8375 = vpow2.f32 %v7519_v45  ;;  %v7520_v53 = vmul.f32 -1.442695, %v3775_v46 }
0x3dfc   : > { %v3731_v63 = vpop.f32.mrf.mxu0  ;;  %v3772_v57 = vpop.f32.mrf.mxu1 }
0x3dfd   : > { %8377 = vpow2.f32 %v7520_v53 }
0x3dfe   : > { %8379 = vpow2.f32 %v7521_v12 }
0x3e08   : > { %v8376_v61 = vpop.eup %8375 }
0x3e09   : > { %v3787_v62 = vadd.f32 1.0, %v8376_v61 }
0x3e0a   : > { %v8378_v24 = vpop.eup %8377 }
0x3e0b   : > { %8381 = vrcp.f32 %v3787_v62  ;;  %v3788_v59 = vadd.f32 1.0, %v8378_v24  ;;  %v8380_v50 = vpop.eup %8379 }
0x3e0c   : > { %8383 = vtanh.f32 %v3777_v60  ;;  %v3789_v46 = vadd.f32 1.0, %v8380_v50 }
0x3e0d   : > { %8385 = vrcp.f32 %v3788_v59 }
0x3e0e   : > { %8387 = vrcp.f32 %v3789_v46 }
0x3e18   : > { %v8382_v42 = vpop.eup %8381 }
0x3e19   : > { %v8384_v44 = vpop.eup %8383 }
0x3e1a   : > { %v8386_v45 = vpop.eup %8385  ;;  %v3798_v15 = vmul.f32 %v8384_v44, %v8382_v42 }
0x3e1b   : > { %v3797_v54 = vmul.f32 %v8386_v45, %v10245_v43  ;;  %v8388_v51 = vpop.eup %8387 }
0x3e1d   : > { %v10293_v48 = vadd.f32 %v3798_v15, %v3797_v54 }
0x3e1f   : > { %8389 = vtanh.f32 %v10293_v48 }
0x3e2c   : > { %v8390_v53 = vpop.eup %8389 }
0x3e2d   : > { %v3801_v63 = vmul.f32 %v8390_v53, %v8388_v51 }
0x3e2f   : > { %v3802_v57 = vpack.c.bf16 %v3801_v63, %v3801_v63  ;;  %v4253_v49 = vrot.slane %v3801_v63, 5 }
0x3e31   : > { %3836 = vmatmul.mubr.bf16.vlgmr.msra.gmra.mxu0 %v3802_v57  ;;  %v10298_v12 = vsel %vm1130_vm3, %v10252_v40, %v4253_v49  ;;  %3877 = vmatmul.mubr.bf16.vlgmr.msra.gmra.mxu1 %v3802_v57 }
0x3e32   : > { %3915 = vmatpush1.bf16.msra.mxu0 %v10014_v27  ;;  %3956 = vmatpush1.bf16.msra.mxu1 %v10029_v7 }
0x3e33   : > { %3916 = vmatprep.subr.bf16.mxu0 %v10019_v3  ;;  %3957 = vmatprep.subr.bf16.mxu1 %v10039_v10 }
0x3e34   : > { %3946 = vmatprep.mubr.bf16.mxu0 %v9316_v2  ;;  %3987 = vmatprep.mubr.bf16.mxu1 %v9316_v2 }
0x3e36   : > { %3917 = vmatpush1.bf16.msra.mxu0 %v10022_v4  ;;  %3958 = vmatpush1.bf16.msra.mxu1 %v10041_v11 }
0x3e37   : > { %3918 = vmatprep.subr.bf16.mxu0 %v10025_v5  ;;  %3959 = vmatprep.subr.bf16.mxu1 %v10049_v17 }
0x3e3a   : > { %3919 = vmatpush1.bf16.msra.mxu0 %v10032_v8  ;;  %3960 = vmatpush1.bf16.msra.mxu1 %v10053_v19 }
0x3e3b   : > { %3920 = vmatprep.subr.bf16.mxu0 %v10036_v9  ;;  %3961 = vmatprep.subr.bf16.mxu1 %v10056_v22 }
0x3e3e   : > { %3921 = vmatpush1.bf16.msra.mxu0 %v10045_v13  ;;  %3962 = vmatpush1.bf16.msra.mxu1 %v10065_v28 }
0x3e3f   : > { %3922 = vmatprep.subr.bf16.mxu0 %v10047_v14  ;;  %3963 = vmatprep.subr.bf16.mxu1 %v10068_v29 }
0x3e42   : > { %3923 = vmatpush1.bf16.msra.mxu0 %v10059_v25  ;;  %3964 = vmatpush1.bf16.msra.mxu1 %v10077_v31 }
0x3e43   : > { %3924 = vmatprep.subr.bf16.mxu0 %v10062_v26  ;;  %3965 = vmatprep.subr.bf16.mxu1 %v10080_v32 }
0x3e46   : > { %3925 = vmatpush1.bf16.msra.mxu0 %v10071_v30  ;;  %3966 = vmatpush1.bf16.msra.mxu1 %v10089_v35 }
0x3e47   : > { %3926 = vmatprep.subr.bf16.mxu0 %v10073_v16  ;;  %3967 = vmatprep.subr.bf16.mxu1 %v10092_v36 }
0x3e4a   : > { %3927 = vmatpush1.bf16.msra.mxu0 %v10083_v33  ;;  %3968 = vmatpush1.bf16.msra.mxu1 %v10099_v38 }
0x3e4b   : > { %3928 = vmatprep.subr.bf16.mxu0 %v10086_v34  ;;  %3969 = vmatprep.subr.bf16.mxu1 %v10102_v39 }
0x3e4e   : > { %3929 = vmatpush1.bf16.msra.mxu0 %v10095_v37  ;;  %3970 = vmatpush1.bf16.msra.mxu1 %v10108_v41 }
0x3e4f   : > { %4025 = vmatprep.subr.bf16.mxu0 %v10012_v1  ;;  %4066 = vmatprep.subr.bf16.mxu1 %v10027_v6 }
0x3ef1   : > { %v3837_v43 = vpop.f32.mrf.mxu0  ;;  %v3878_v40 = vpop.f32.mrf.mxu1 }
0x3ef2   : > { %v3885_v61 = vadd.f32 %v3837_v43, %v9989_v56  ;;  %v3887_v1 = vadd.f32 %v3878_v40, %v9991_v55 }
0x3ef3   : > { %v3839_v60 = vpop.f32.mrf.mxu0  ;;  %v3880_v62 = vpop.f32.mrf.mxu1 }
0x3ef4   : > { %v7522_v24 = vmul.f32 -1.442695, %v3885_v61  ;;  %v3886_v59 = vadd.f32 %v3839_v60, %v9993_v58  ;;  %v7524_v54 = vmul.f32 -1.442695, %v3887_v1  ;;  %v3888_v51 = vadd.f32 %v3880_v62, %v9995_v18 }
0x3ef5   : > { %v3841_v50 = vpop.f32.mrf.mxu0  ;;  %v3882_v42 = vpop.f32.mrf.mxu1 }
0x3ef6   : > { %8391 = vpow2.f32 %v7522_v24  ;;  %v7523_v44 = vmul.f32 -1.442695, %v3886_v59 }
0x3ef7   : > { %v3842_v45 = vpop.f32.mrf.mxu0  ;;  %v3883_v46 = vpop.f32.mrf.mxu1 }
0x3ef8   : > { %8393 = vpow2.f32 %v7523_v44 }
0x3ef9   : > { %8395 = vpow2.f32 %v7524_v54 }
0x3f03   : > { %v8392_v15 = vpop.eup %8391 }
0x3f04   : > { %v3898_v53 = vadd.f32 1.0, %v8392_v15 }
0x3f05   : > { %v8394_v63 = vpop.eup %8393 }
0x3f06   : > { %8397 = vrcp.f32 %v3898_v53  ;;  %v3899_v57 = vadd.f32 1.0, %v8394_v63  ;;  %v8396_v49 = vpop.eup %8395 }
0x3f07   : > { %8399 = vtanh.f32 %v3888_v51  ;;  %v3900_v24 = vadd.f32 1.0, %v8396_v49 }
0x3f08   : > { %8401 = vrcp.f32 %v3899_v57 }
0x3f09   : > { %8403 = vrcp.f32 %v3900_v24  ;;  %v8458_v24 = vld [vmem:[#allocation18 + $0xc4] ss:$16 sps:$4 sm:$0xff]  }
0x3f13   : > { %v8398_v43 = vpop.eup %8397 }
0x3f14   : > { %v8400_v61 = vpop.eup %8399 }
0x3f15   : > { %v8402_v60 = vpop.eup %8401  ;;  %v3909_v50 = vmul.f32 %v8400_v61, %v8398_v43  ;;  %v8456_v61 = vld [vmem:[#allocation18 + $0xe0] ss:$16 sps:$4 sm:$0xff]  }
0x3f16   : > { %v3908_v59 = vmul.f32 %v8402_v60, %v10293_v48  ;;  %v8404_v62 = vpop.eup %8403  ;;  %v8457_v60 = vld [vmem:[#allocation18 + $0xe8] ss:$16 sps:$4 sm:$0xff]  }
0x3f18   : > { %v10339_v40 = vadd.f32 %v3909_v50, %v3908_v59  ;;  %v8459_v59 = vld [vmem:[#allocation18 + $0xcc] ss:$16 sps:$4 sm:$0xff]   ;;  %v8460_v50 = vld [vmem:[#allocation18 + $0xc0] ss:$16 sps:$4 sm:$0xff]  }
0x3f1a   : > { %8405 = vtanh.f32 %v10339_v40 }
0x3f27   : > { %v8406_v42 = vpop.eup %8405 }
0x3f28   : > { %v3912_v44 = vmul.f32 %v8406_v42, %v8404_v62  ;;  %v8462_v62 = vld [vmem:[#allocation18 + $0xa4] ss:$16 sps:$4 sm:$0xff]   ;;  %v8463_v42 = vld [vmem:[#allocation18 + $0xac] ss:$16 sps:$4 sm:$0xff]  }
0x3f2a   : > { %v3913_v45 = vpack.c.bf16 %v3912_v44, %v3912_v44  ;;  %v4256_v46 = vrot.slane %v3912_v44, 4  ;;  %v8464_v44 = vld [vmem:[#allocation18 + $0xa0] ss:$16 sps:$4 sm:$0xff]  }
0x3f2c   : > { %3947 = vmatmul.mubr.bf16.vlgmr.msra.gmra.mxu0 %v3913_v45  ;;  %v10344_v1 = vsel %vm1132_vm4, %v10298_v12, %v4256_v46  ;;  %3988 = vmatmul.mubr.bf16.vlgmr.msra.gmra.mxu1 %v3913_v45  ;;  %v8465_v45 = vld [vmem:[#allocation18 + $0xa8] ss:$16 sps:$4 sm:$0xff]   ;;  %v8466_v46 = vld [vmem:[#allocation18 + $0x84] ss:$16 sps:$4 sm:$0xff]  }
0x3f2d   : > { %4026 = vmatpush1.bf16.msra.mxu0 %v10014_v27  ;;  %4067 = vmatpush1.bf16.msra.mxu1 %v10029_v7  ;;  %v8455_v27 = vld [vmem:[#allocation18 + $0xe4] ss:$16 sps:$4 sm:$0xff]  }
0x3f2e   : > { %4027 = vmatprep.subr.bf16.mxu0 %v10019_v3  ;;  %4068 = vmatprep.subr.bf16.mxu1 %v10039_v10 }
0x3f2f   : > { %4057 = vmatprep.mubr.bf16.mxu0 %v9316_v2  ;;  %4098 = vmatprep.mubr.bf16.mxu1 %v9316_v2 }
0x3f31   : > { %4028 = vmatpush1.bf16.msra.mxu0 %v10022_v4  ;;  %4069 = vmatpush1.bf16.msra.mxu1 %v10041_v11 }
0x3f32   : > { %4029 = vmatprep.subr.bf16.mxu0 %v10025_v5  ;;  %4070 = vmatprep.subr.bf16.mxu1 %v10049_v17 }
0x3f35   : > { %4030 = vmatpush1.bf16.msra.mxu0 %v10032_v8  ;;  %4071 = vmatpush1.bf16.msra.mxu1 %v10053_v19 }
0x3f36   : > { %4031 = vmatprep.subr.bf16.mxu0 %v10036_v9  ;;  %4072 = vmatprep.subr.bf16.mxu1 %v10056_v22 }
0x3f39   : > { %4032 = vmatpush1.bf16.msra.mxu0 %v10045_v13  ;;  %4073 = vmatpush1.bf16.msra.mxu1 %v10065_v28 }
0x3f3a   : > { %4033 = vmatprep.subr.bf16.mxu0 %v10047_v14  ;;  %4074 = vmatprep.subr.bf16.mxu1 %v10068_v29 }
0x3f3d   : > { %4034 = vmatpush1.bf16.msra.mxu0 %v10059_v25  ;;  %4075 = vmatpush1.bf16.msra.mxu1 %v10077_v31 }
0x3f3e   : > { %4035 = vmatprep.subr.bf16.mxu0 %v10062_v26  ;;  %4076 = vmatprep.subr.bf16.mxu1 %v10080_v32 }
0x3f41   : > { %4036 = vmatpush1.bf16.msra.mxu0 %v10071_v30  ;;  %4077 = vmatpush1.bf16.msra.mxu1 %v10089_v35 }
0x3f42   : > { %4037 = vmatprep.subr.bf16.mxu0 %v10073_v16  ;;  %4078 = vmatprep.subr.bf16.mxu1 %v10092_v36 }
0x3f45   : > { %4038 = vmatpush1.bf16.msra.mxu0 %v10083_v33  ;;  %4079 = vmatpush1.bf16.msra.mxu1 %v10099_v38 }
0x3f46   : > { %4039 = vmatprep.subr.bf16.mxu0 %v10086_v34  ;;  %4080 = vmatprep.subr.bf16.mxu1 %v10102_v39 }
0x3f49   : > { %4040 = vmatpush1.bf16.msra.mxu0 %v10095_v37  ;;  %4081 = vmatpush1.bf16.msra.mxu1 %v10108_v41 }
0x3f4a   : > { %4136 = vmatprep.subr.bf16.mxu0 %v8455_v27  ;;  %4177 = vmatprep.subr.bf16.mxu1 %v10027_v6  ;;  %v8468_v27 = vld [vmem:[#allocation18 + $0x80] ss:$16 sps:$4 sm:$0xff]  }
0x3fec   : > { %v3948_v3 = vpop.f32.mrf.mxu0  ;;  %v3989_v4 = vpop.f32.mrf.mxu1 }
0x3fed   : > { %v3996_v5 = vadd.f32 %v3948_v3, %v9989_v56  ;;  %v3998_v22 = vadd.f32 %v3989_v4, %v9991_v55  ;;  %v8469_v3 = vld [vmem:[#allocation18 + $0x88] ss:$16 sps:$4 sm:$0xff]   ;;  %v8471_v4 = vld [vmem:[#allocation18 + $0x6c] ss:$16 sps:$4 sm:$0xff]  }
0x3fee   : > { %v3950_v7 = vpop.f32.mrf.mxu0  ;;  %v3991_v8 = vpop.f32.mrf.mxu1 }
0x3fef   : > { %v7525_v9 = vmul.f32 -1.442695, %v3996_v5  ;;  %v3997_v10 = vadd.f32 %v3950_v7, %v9993_v58  ;;  %v7527_v25 = vmul.f32 -1.442695, %v3998_v22  ;;  %v3999_v26 = vadd.f32 %v3991_v8, %v9995_v18  ;;  %v8472_v5 = vld [vmem:[#allocation18 + $0x60] ss:$16 sps:$4 sm:$0xff]  }
0x3ff0   : > { %v3952_v11 = vpop.f32.mrf.mxu0  ;;  %v3993_v13 = vpop.f32.mrf.mxu1  ;;  %v8473_v7 = vld [vmem:[#allocation18 + $0x68] ss:$16 sps:$4 sm:$0xff]   ;;  %v8474_v8 = vld [vmem:[#allocation18 + $0x44] ss:$16 sps:$4 sm:$0xff]  }
0x3ff1   : > { %8407 = vpow2.f32 %v7525_v9  ;;  %v7526_v14 = vmul.f32 -1.442695, %v3997_v10  ;;  %v8475_v9 = vld [vmem:[#allocation18 + $0x40] ss:$16 sps:$4 sm:$0xff]   ;;  %v8476_v10 = vld [vmem:[#allocation18 + $0x24] ss:$16 sps:$4 sm:$0xff]  }
0x3ff2   : > { %v3953_v17 = vpop.f32.mrf.mxu0  ;;  %v3994_v19 = vpop.f32.mrf.mxu1  ;;  %v8477_v11 = vld [vmem:[#allocation18 + $0x20] ss:$16 sps:$4 sm:$0xff]   ;;  %v8478_v13 = vld [vmem:[#allocation18 + $0x4] ss:$16 sps:$4 sm:$0xff]  }
0x3ff3   : > { %8409 = vpow2.f32 %v7526_v14 }
0x3ff4   : > { %8411 = vpow2.f32 %v7527_v25 }
0x3ffe   : > { %v8408_v6 = vpop.eup %8407 }
0x3fff   : > { %v4009_v28 = vadd.f32 1.0, %v8408_v6 }
0x4000   : > { %v8410_v29 = vpop.eup %8409 }
0x4001   : > { %8413 = vrcp.f32 %v4009_v28  ;;  %v4010_v30 = vadd.f32 1.0, %v8410_v29  ;;  %v8412_v16 = vpop.eup %8411 }
0x4002   : > { %8415 = vtanh.f32 %v3999_v26  ;;  %v4011_v48 = vadd.f32 1.0, %v8412_v16 }
0x4003   : > { %8417 = vrcp.f32 %v4010_v30 }
0x4004   : > { %8419 = vrcp.f32 %v4011_v48 }
0x400e   : > { %v8414_v31 = vpop.eup %8413 }
0x400f   : > { %v8416_v33 = vpop.eup %8415 }
0x4010   : > { %v8418_v34 = vpop.eup %8417  ;;  %v4020_v54 = vmul.f32 %v8416_v33, %v8414_v31 }
0x4011   : > { %v4019_v12 = vmul.f32 %v8418_v34, %v10339_v40  ;;  %v8420_v51 = vpop.eup %8419  ;;  %v8461_v40 = vld [vmem:[#allocation18 + $0xc8] ss:$16 sps:$4 sm:$0xff]  }
0x4013   : > { %v10384_v15 = vadd.f32 %v4020_v54, %v4019_v12 }
0x4015   : > { %8421 = vtanh.f32 %v10384_v15 }
0x4022   : > { %v8422_v53 = vpop.eup %8421 }
0x4023   : > { %v4023_v63 = vmul.f32 %v8422_v53, %v8420_v51 }
0x4025   : > { %v4024_v57 = vpack.c.bf16 %v4023_v63, %v4023_v63  ;;  %v4259_v49 = vrot.slane %v4023_v63, 3 }
0x4027   : > { %4058 = vmatmul.mubr.bf16.vlgmr.msra.gmra.mxu0 %v4024_v57  ;;  %v10389_v43 = vsel %vm1134_vm5, %v10344_v1, %v4259_v49  ;;  %4099 = vmatmul.mubr.bf16.vlgmr.msra.gmra.mxu1 %v4024_v57  ;;  %v8467_v1 = vld [vmem:[#allocation18 + $0x8c] ss:$16 sps:$4 sm:$0xff]  }
0x4028   : > { %4137 = vmatpush1.bf16.msra.mxu0 %v8456_v61  ;;  %4178 = vmatpush1.bf16.msra.mxu1 %v8457_v60 }
0x4029   : > { %4138 = vmatprep.subr.bf16.mxu0 %v8458_v24  ;;  %4179 = vmatprep.subr.bf16.mxu1 %v8459_v59 }
0x402a   : > { %4168 = vmatprep.mubr.bf16.mxu0 %v9316_v2  ;;  %4209 = vmatprep.mubr.bf16.mxu1 %v9316_v2  ;;  %v8470_v2 = vld [vmem:[#allocation18 + $0x64] ss:$16 sps:$4 sm:$0xff]  }
0x402c   : > { %4139 = vmatpush1.bf16.msra.mxu0 %v8460_v50  ;;  %4180 = vmatpush1.bf16.msra.mxu1 %v8461_v40 }
0x402d   : > { %4140 = vmatprep.subr.bf16.mxu0 %v8462_v62  ;;  %4181 = vmatprep.subr.bf16.mxu1 %v8463_v42 }
0x4030   : > { %4141 = vmatpush1.bf16.msra.mxu0 %v8464_v44  ;;  %4182 = vmatpush1.bf16.msra.mxu1 %v8465_v45 }
0x4031   : > { %4142 = vmatprep.subr.bf16.mxu0 %v8466_v46  ;;  %4183 = vmatprep.subr.bf16.mxu1 %v8467_v1 }
0x4034   : > { %4143 = vmatpush1.bf16.msra.mxu0 %v8468_v27  ;;  %4184 = vmatpush1.bf16.msra.mxu1 %v8469_v3 }
0x4035   : > { %4144 = vmatprep.subr.bf16.mxu0 %v8470_v2  ;;  %4185 = vmatprep.subr.bf16.mxu1 %v8471_v4 }
0x4038   : > { %4145 = vmatpush1.bf16.msra.mxu0 %v8472_v5  ;;  %4186 = vmatpush1.bf16.msra.mxu1 %v8473_v7 }
0x4039   : > { %4146 = vmatprep.subr.bf16.mxu0 %v8474_v8  ;;  %4187 = vmatprep.subr.bf16.mxu1 %v10080_v32 }
0x403c   : > { %4147 = vmatpush1.bf16.msra.mxu0 %v8475_v9  ;;  %4188 = vmatpush1.bf16.msra.mxu1 %v10089_v35 }
0x403d   : > { %4148 = vmatprep.subr.bf16.mxu0 %v8476_v10  ;;  %4189 = vmatprep.subr.bf16.mxu1 %v10092_v36 }
0x4040   : > { %4149 = vmatpush1.bf16.msra.mxu0 %v8477_v11  ;;  %4190 = vmatpush1.bf16.msra.mxu1 %v10099_v38 }
0x4041   : > { %4150 = vmatprep.subr.bf16.mxu0 %v8478_v13  ;;  %4191 = vmatprep.subr.bf16.mxu1 %v10102_v39 }
0x4044   : > { %4151 = vmatpush1.bf16.msra.mxu0 %v10095_v37  ;;  %4192 = vmatpush1.bf16.msra.mxu1 %v10108_v41 }
0x40e7   : > { %v4059_v32 = vpop.f32.mrf.mxu0  ;;  %v4100_v14 = vpop.f32.mrf.mxu1 }
0x40e8   : > { %v4107_v35 = vadd.f32 %v4059_v32, %v9989_v56  ;;  %v4109_v37 = vadd.f32 %v4100_v14, %v9991_v55 }
0x40e9   : > { %v4061_v17 = vpop.f32.mrf.mxu0  ;;  %v4102_v19 = vpop.f32.mrf.mxu1 }
0x40ea   : > { %v7528_v22 = vmul.f32 -1.442695, %v4107_v35  ;;  %v4108_v36 = vadd.f32 %v4061_v17, %v9993_v58  ;;  %v7530_v39 = vmul.f32 -1.442695, %v4109_v37  ;;  %v4110_v29 = vadd.f32 %v4102_v19, %v9995_v18  ;;  %v10428_v37 = vld [vmem:[#allocation18 + $0xe4] ss:$16 sps:$4 sm:$0xff] (%p3159_p10)  }
0x40eb   : > { %v4063_v25 = vpop.f32.mrf.mxu0  ;;  %v4104_v6 = vpop.f32.mrf.mxu1  ;;  %4477 = vmatprep.subr.bf16.mxu0 (%p3159_p10), %v10428_v37 }
0x40ec   : > { %8423 = vpow2.f32 %v7528_v22  ;;  %v7529_v38 = vmul.f32 -1.442695, %v4108_v36 }
0x40ed   : > { %v4064_v26 = vpop.f32.mrf.mxu0  ;;  %v4105_v28 = vpop.f32.mrf.mxu1 }
0x40ee   : > { %8425 = vpow2.f32 %v7529_v38 }
0x40ef   : > { %8427 = vpow2.f32 %v7530_v39  ;;  %v10432_v39 = vld [vmem:[#allocation18 + $0xe0] ss:$16 sps:$4 sm:$0xff] (%p3159_p10)  }
0x40f9   : > { %v8424_v41 = vpop.eup %8423 }
0x40fa   : > { %v4120_v30 = vadd.f32 1.0, %v8424_v41  ;;  %v10435_v41 = vld [vmem:[#allocation18 + $0xc4] ss:$16 sps:$4 sm:$0xff] (%p3159_p10)  }
0x40fb   : > { %v8426_v16 = vpop.eup %8425 }
0x40fc   : > { %8429 = vrcp.f32 %v4120_v30  ;;  %v4121_v31 = vadd.f32 1.0, %v8426_v16  ;;  %v8428_v33 = vpop.eup %8427  ;;  %v10441_v30 = vld [vmem:[#allocation18 + $0xa4] ss:$16 sps:$4 sm:$0xff] (%p3159_p10)   ;;  %v10443_v16 = vld [vmem:[#allocation18 + $0xec] ss:$16 sps:$4 sm:$0xff] (%p3159_p10)  }
0x40fd   : > { %8431 = vtanh.f32 %v4110_v29  ;;  %v4122_v54 = vadd.f32 1.0, %v8428_v33  ;;  %v10438_v29 = vld [vmem:[#allocation18 + $0xc0] ss:$16 sps:$4 sm:$0xff] (%p3159_p10)   ;;  %4518 = vmatprep.subr.bf16.mxu1 (%p3159_p10), %v10443_v16 }
0x40fe   : > { %8433 = vrcp.f32 %v4121_v31  ;;  %v10445_v31 = vld [vmem:[#allocation18 + $0xe8] ss:$16 sps:$4 sm:$0xff] (%p3159_p10)   ;;  %v10448_v33 = vld [vmem:[#allocation18 + $0xa0] ss:$16 sps:$4 sm:$0xff] (%p3159_p10)  }
0x40ff   : > { %8435 = vrcp.f32 %v4122_v54  ;;  %v10461_v54 = vld [vmem:[#allocation18 + $0x80] ss:$16 sps:$4 sm:$0xff] (%p3159_p10)  }
0x4109   : > { %v8430_v34 = vpop.eup %8429 }
0x410a   : > { %v8432_v48 = vpop.eup %8431 }
0x410b   : > { %v8434_v12 = vpop.eup %8433  ;;  %v4131_v53 = vmul.f32 %v8432_v48, %v8430_v34  ;;  %v10452_v34 = vld [vmem:[#allocation18 + $0x84] ss:$16 sps:$4 sm:$0xff] (%p3159_p10)   ;;  %v10455_v48 = vld [vmem:[#allocation18 + $0xcc] ss:$16 sps:$4 sm:$0xff] (%p3159_p10)  }
0x410c   : > { %v4130_v51 = vmul.f32 %v8434_v12, %v10384_v15  ;;  %v8436_v57 = vpop.eup %8435  ;;  %v10457_v12 = vld [vmem:[#allocation18 + $0xc8] ss:$16 sps:$4 sm:$0xff] (%p3159_p10)  }
0x410e   : > { %v4132_v63 = vadd.f32 %v4131_v53, %v4130_v51  ;;  %v10463_v51 = vld [vmem:[#allocation18 + $0x64] ss:$16 sps:$4 sm:$0xff] (%p3159_p10)   ;;  %v10465_v53 = vld [vmem:[#allocation18 + $0xac] ss:$16 sps:$4 sm:$0xff] (%p3159_p10)  }
0x4110   : > { %8437 = vtanh.f32 %v4132_v63 }
0x411d   : > { %v8438_v49 = vpop.eup %8437 }
0x411e   : > { %v4134_v61 = vmul.f32 %v8438_v49, %v8436_v57  ;;  %v10472_v57 = vld [vmem:[#allocation18 + $0x8c] ss:$16 sps:$4 sm:$0xff] (%p3159_p10)   ;;  %v10475_v49 = vld [vmem:[#allocation18 + $0x60] ss:$16 sps:$4 sm:$0xff] (%p3159_p10)  }
0x4120   : > { %v4135_v60 = vpack.c.bf16 %v4134_v61, %v4134_v61  ;;  %v4262_v24 = vrot.slane %v4134_v61, 2  ;;  %v10478_v61 = vld [vmem:[#allocation18 + $0x44] ss:$16 sps:$4 sm:$0xff] (%p3159_p10)  }
0x4122   : > { %4169 = vmatmul.mubr.bf16.vlgmr.msra.gmra.mxu0 %v4135_v60  ;;  %v4275_v59 = vsel %vm1136_vm6, %v10389_v43, %v4262_v24  ;;  %4210 = vmatmul.mubr.bf16.vlgmr.msra.gmra.mxu1 %v4135_v60  ;;  %v10481_v60 = vld [vmem:[#allocation18 + $0x88] ss:$16 sps:$4 sm:$0xff] (%p3159_p10)  }
0x4123   :  { %4509 = vmatprep.mubr.bf16.mxu0 (%p3159_p10), %v9311_v0  ;;  %4550 = vmatprep.mubr.bf16.mxu1 (%p3159_p10), %v9311_v0 }
0x4124   :  { %4478 = vmatpush1.bf16.msra.mxu0 (%p3159_p10), %v10432_v39  ;;  %4519 = vmatpush1.bf16.msra.mxu1 (%p3159_p10), %v10445_v31 }
0x4125   :  { %4479 = vmatprep.subr.bf16.mxu0 (%p3159_p10), %v10435_v41  ;;  %4520 = vmatprep.subr.bf16.mxu1 (%p3159_p10), %v10455_v48 }
0x4128   :  { %4480 = vmatpush1.bf16.msra.mxu0 (%p3159_p10), %v10438_v29  ;;  %4521 = vmatpush1.bf16.msra.mxu1 (%p3159_p10), %v10457_v12 }
0x4129   :  { %4481 = vmatprep.subr.bf16.mxu0 (%p3159_p10), %v10441_v30  ;;  %4522 = vmatprep.subr.bf16.mxu1 (%p3159_p10), %v10465_v53 }
0x412c   :  { %4482 = vmatpush1.bf16.msra.mxu0 (%p3159_p10), %v10448_v33 }
0x412d   :  { %4483 = vmatprep.subr.bf16.mxu0 (%p3159_p10), %v10452_v34 }
0x4130   :  { %4484 = vmatpush1.bf16.msra.mxu0 (%p3159_p10), %v10461_v54 }
0x4131   :  { %4485 = vmatprep.subr.bf16.mxu0 (%p3159_p10), %v10463_v51 }
0x4134   :  { %4486 = vmatpush1.bf16.msra.mxu0 (%p3159_p10), %v10475_v49 }
0x4135   :  { %4487 = vmatprep.subr.bf16.mxu0 (%p3159_p10), %v10478_v61 }
0x41e2   : > { %v4170_v50 = vpop.f32.mrf.mxu0  ;;  %v4211_v40 = vpop.f32.mrf.mxu1 }
0x41e3   : > { %v4218_v62 = vadd.f32 %v4170_v50, %v9989_v56  ;;  %v4220_v4 = vadd.f32 %v4211_v40, %v9991_v55  ;;  %v10489_v50 = vld [vmem:[#allocation18 + $0x24] ss:$16 sps:$4 sm:$0xff] (%p3159_p10)   ;;  %v10493_v40 = vld [vmem:[#allocation18 + $0x68] ss:$16 sps:$4 sm:$0xff] (%p3159_p10)  }
0x41e4   : > { %v4172_v42 = vpop.f32.mrf.mxu0  ;;  %v4213_v15 = vpop.f32.mrf.mxu1 }
0x41e5   : > { %v7531_v44 = vmul.f32 -1.442695, %v4218_v62  ;;  %v4219_v45 = vadd.f32 %v4172_v42, %v9993_v58  ;;  %v7533_v43 = vmul.f32 -1.442695, %v4220_v4  ;;  %v4221_v7 = vadd.f32 %v4213_v15, %v9995_v18  ;;  %v10495_v62 = vld [vmem:[#allocation18 + $0x20] ss:$16 sps:$4 sm:$0xff] (%p3159_p10)  }
0x41e6   : > { %v4174_v46 = vpop.f32.mrf.mxu0  ;;  %v4215_v1 = vpop.f32.mrf.mxu1  ;;  %v10498_v42 = vld [vmem:[#allocation18 + $0x4c] ss:$16 sps:$4 sm:$0xff] (%p3159_p10)   ;;  %v10500_v15 = vld [vmem:[#allocation18 + $0x4] ss:$16 sps:$4 sm:$0xff] (%p3159_p10)  }
0x41e7   : > { %8439 = vpow2.f32 %v7531_v44  ;;  %v7532_v27 = vmul.f32 -1.442695, %v4219_v45  ;;  %v10502_v44 = vld [vmem:[#allocation18 + $0x48] ss:$16 sps:$4 sm:$0xff] (%p3159_p10)   ;;  %v10505_v45 = vld [vmem:[#allocation18 + $0x2c] ss:$16 sps:$4 sm:$0xff] (%p3159_p10)  }
0x41e8   : > { %v4175_v3 = vpop.f32.mrf.mxu0  ;;  %v4216_v2 = vpop.f32.mrf.mxu1  ;;  %v10509_v46 = vld [vmem:[#allocation18] ss:$16 sps:$4 sm:$0xff] (%p3159_p10)   ;;  %v10512_v1 = vld [vmem:[#allocation18 + $0x28] ss:$16 sps:$4 sm:$0xff] (%p3159_p10)  }
0x41e9   : > { %8441 = vpow2.f32 %v7532_v27  ;;  %v10515_v27 = vld [vmem:[#allocation18 + $0xc] ss:$16 sps:$4 sm:$0xff] (%p3159_p10)   ;;  %v10524_v2 = vld [vmem:[#allocation18 + $0x8] ss:$16 sps:$4 sm:$0xff] (%p3159_p10)  }
0x41ea   : > { %8443 = vpow2.f32 %v7533_v43 }
0x41f4   : > { %v8440_v5 = vpop.eup %8439 }
0x41f5   : > { %v4231_v8 = vadd.f32 1.0, %v8440_v5 }
0x41f6   : > { %v8442_v9 = vpop.eup %8441 }
0x41f7   : > { %8445 = vrcp.f32 %v4231_v8  ;;  %v4232_v10 = vadd.f32 1.0, %v8442_v9  ;;  %v8444_v11 = vpop.eup %8443 }
0x41f8   : > { %8447 = vtanh.f32 %v4221_v7  ;;  %v4233_v35 = vadd.f32 1.0, %v8444_v11 }
0x41f9   : > { %8449 = vrcp.f32 %v4232_v10 }
0x41fa   : > { %8451 = vrcp.f32 %v4233_v35 }
0x4204   : > { %v8446_v13 = vpop.eup %8445 }
0x4205   : > { %v8448_v32 = vpop.eup %8447 }
0x4206   : > { %v8450_v14 = vpop.eup %8449  ;;  %v4242_v19 = vmul.f32 %v8448_v32, %v8446_v13 }
0x4207   : > { %v4241_v17 = vmul.f32 %v8450_v14, %v4132_v63  ;;  %v8452_v36 = vpop.eup %8451 }
0x4209   : > { %v10411_v63 = vadd.f32 %v4242_v19, %v4241_v17  }
0x420b   : > { %v11411_v22 = vmov %v10411_v63 }
0x420c   : > { %8453 = vtanh.f32 %v11411_v22  ;;  %v11413_v63 = vmov %v11411_v22 }
0x420d   :  { %v10469_v63 = vld [vmem:[#allocation18 + $0xa8] ss:$16 sps:$4 sm:$0xff] (%p3159_p10)  }
0x420e   :  { %4523 = vmatpush1.bf16.msra.mxu1 (%p3159_p10), %v10469_v63 }
0x420f   :  { %4524 = vmatprep.subr.bf16.mxu1 (%p3159_p10), %v10472_v57 }
0x4212   :  { %4525 = vmatpush1.bf16.msra.mxu1 (%p3159_p10), %v10481_v60 }
0x4219   : > { %v8454_v25 = vpop.eup %8453 }
0x421a   : > { %v10415_v24 = vmul.f32 %v8454_v25, %v8452_v36  }
0x421c   : > { %v11412_v6 = vmov %v10415_v24 }
0x421d   : > { %v4265_v38 = vrot.slane %v11412_v6, 1  ;;  %v11414_v24 = vmov %v11412_v6  ;;  %v4284_v3 = vpack.c.bf16 (%p3159_p10), %v11412_v6, %v11412_v6 }
0x421e   :  { %3161 = sbr.rel (!%p3159_p10) target bundleno = 14883 (0x3a23), region = 168  ;;  %v10484_v24 = vld [vmem:[#allocation18 + $0x6c] ss:$16 sps:$4 sm:$0xff] (%p3159_p10)  }
0x421f   : > { %v4277_v26 = vsel %vm1138_vm7, %v4275_v59, %v4265_v38  ;;  %v10487_v59 = vld [vmem:[#allocation18 + $0x40] ss:$16 sps:$4 sm:$0xff] (%p3159_p10)   ;;  %4526 = vmatprep.subr.bf16.mxu1 (%p3159_p10), %v10484_v24 }
0x4220   : > { %v4278_v28 = vpack.c.bf16 %v4277_v26, %v4277_v26  ;;  %4488 = vmatpush1.bf16.msra.mxu0 (%p3159_p10), %v10487_v59  ;;  %4527 = vmatpush1.bf16.msra.mxu1 (%p3159_p10), %v10493_v40 }
0x4221   :  { %4489 = vmatprep.subr.bf16.mxu0 (%p3159_p10), %v10489_v50  ;;  %4528 = vmatprep.subr.bf16.mxu1 (%p3159_p10), %v10498_v42 }
0x4222   : > { %4283 = vst [vmem:[%s4282_s22] sm:$0xf] %v4278_v28 }
0x4224   :  { %4490 = vmatpush1.bf16.msra.mxu0 %v10495_v62  ;;  %4529 = vmatpush1.bf16.msra.mxu1 %v10502_v44 }
0x4225   :  { %4491 = vmatprep.subr.bf16.mxu0 %v10500_v15  ;;  %4530 = vmatprep.subr.bf16.mxu1 %v10505_v45 }
0x4228   :  { %4492 = vmatpush1.bf16.msra.mxu0 %v10509_v46  ;;  %4531 = vmatpush1.bf16.msra.mxu1 %v10512_v1 }
0x4229   :  { %4588 = vmatprep.subr.bf16.mxu0 %v10428_v37  ;;  %4532 = vmatprep.subr.bf16.mxu1 %v10515_v27 }
0x422b   :  { %4510 = vmatmul.mubr.bf16.vlgmr.msra.gmra.mxu0 %v4284_v3 }
0x422c   :  { %4589 = vmatpush1.bf16.msra.mxu0 %v10432_v39  ;;  %4620 = vmatprep.mubr.bf16.mxu0 %v9311_v0 }
0x422d   :  { %4533 = vmatpush1.bf16.msra.mxu1 %v10524_v2  ;;  %4590 = vmatprep.subr.bf16.mxu0 %v10435_v41 }
0x422e   :  { %4629 = vmatprep.subr.bf16.mxu1 %v10443_v16 }
0x4230   :  { %4551 = vmatmul.mubr.bf16.vlgmr.msra.gmra.mxu1 %v4284_v3  ;;  %4591 = vmatpush1.bf16.msra.mxu0 %v10438_v29 }
0x4231   :  { %4630 = vmatpush1.bf16.msra.mxu1 %v10445_v31  ;;  %4592 = vmatprep.subr.bf16.mxu0 %v10441_v30 }
0x4232   :  { %4631 = vmatprep.subr.bf16.mxu1 %v10455_v48  ;;  %4661 = vmatprep.mubr.bf16.mxu1 %v9311_v0 }
0x4234   :  { %4593 = vmatpush1.bf16.msra.mxu0 %v10448_v33 }
0x4235   :  { %4632 = vmatpush1.bf16.msra.mxu1 %v10457_v12  ;;  %4594 = vmatprep.subr.bf16.mxu0 %v10452_v34 }
0x4236   :  { %4633 = vmatprep.subr.bf16.mxu1 %v10465_v53 }
0x4238   :  { %4595 = vmatpush1.bf16.msra.mxu0 %v10461_v54 }
0x4239   :  { %4634 = vmatpush1.bf16.msra.mxu1 %v10469_v63  ;;  %4596 = vmatprep.subr.bf16.mxu0 %v10463_v51 }
0x423a   :  { %4635 = vmatprep.subr.bf16.mxu1 %v10472_v57 }
0x423c   :  { %4597 = vmatpush1.bf16.msra.mxu0 %v10475_v49 }
0x423d   :  { %4636 = vmatpush1.bf16.msra.mxu1 %v10481_v60  ;;  %4598 = vmatprep.subr.bf16.mxu0 %v10478_v61 }
0x423e   :  { %4637 = vmatprep.subr.bf16.mxu1 %v10484_v24 }
0x4240   :  { %4599 = vmatpush1.bf16.msra.mxu0 %v10487_v59 }
0x4241   :  { %4638 = vmatpush1.bf16.msra.mxu1 %v10493_v40  ;;  %4600 = vmatprep.subr.bf16.mxu0 %v10489_v50 }
0x4242   :  { %4639 = vmatprep.subr.bf16.mxu1 %v10498_v42 }
0x4244   :  { %4601 = vmatpush1.bf16.msra.mxu0 %v10495_v62 }
0x4245   :  { %4640 = vmatpush1.bf16.msra.mxu1 %v10502_v44  ;;  %4602 = vmatprep.subr.bf16.mxu0 %v10500_v15 }
0x4246   :  { %4641 = vmatprep.subr.bf16.mxu1 %v10505_v45 }
0x4248   :  { %4603 = vmatpush1.bf16.msra.mxu0 %v10509_v46 }
0x4249   :  { %4642 = vmatpush1.bf16.msra.mxu1 %v10512_v1  ;;  %4699 = vmatprep.subr.bf16.mxu0 %v10428_v37 }
0x424a   :  { %4643 = vmatprep.subr.bf16.mxu1 %v10515_v27 }
0x424d   :  { %4644 = vmatpush1.bf16.msra.mxu1 %v10524_v2 }
0x424e   :  { %4740 = vmatprep.subr.bf16.mxu1 %v10443_v16 }
0x42eb   :  { %v4511_v4 = vpop.f32.mrf.mxu0 }
0x42ec   :  { %v4559_v43 = vadd.f32 %v4511_v4, %v9989_v56 }
0x42ed   :  { %v4513_v5 = vpop.f32.mrf.mxu0 }
0x42ee   :  { %v7567_v7 = vmul.f32 -1.442695, %v4559_v43  ;;  %v4560_v8 = vadd.f32 %v4513_v5, %v9993_v58 }
0x42ef   :  { %v4515_v9 = vpop.f32.mrf.mxu0 }
0x42f0   :  { %8577 = vpow2.f32 %v7567_v7  ;;  %v7568_v10 = vmul.f32 -1.442695, %v4560_v8  ;;  %v4552_v11 = vpop.f32.mrf.mxu1 }
0x42f1   :  { %v4516_v13 = vpop.f32.mrf.mxu0  ;;  %v4561_v35 = vadd.f32 %v4552_v11, %v9991_v55 }
0x42f2   :  { %8579 = vpow2.f32 %v7568_v10  ;;  %v4554_v32 = vpop.f32.mrf.mxu1 }
0x42f3   :  { %v7569_v19 = vmul.f32 -1.442695, %v4561_v35  ;;  %v4562_v36 = vadd.f32 %v4554_v32, %v9995_v18 }
0x42f4   :  { %v4556_v14 = vpop.f32.mrf.mxu1 }
0x42f5   :  { %8581 = vpow2.f32 %v7569_v19 }
0x42f6   :  { %v4557_v17 = vpop.f32.mrf.mxu1  ;;  %8583 = vtanh.f32 %v4562_v36 }
0x42fd   :  { %v8578_v25 = vpop.eup %8577 }
0x42fe   :  { %v4572_v6 = vadd.f32 1.0, %v8578_v25 }
0x42ff   :  { %v8580_v38 = vpop.eup %8579 }
0x4300   :  { %8585 = vrcp.f32 %v4572_v6  ;;  %v4573_v26 = vadd.f32 1.0, %v8580_v38 }
0x4302   :  { %8587 = vrcp.f32 %v4573_v26  ;;  %v8582_v28 = vpop.eup %8581 }
0x4303   :  { %v8584_v3 = vpop.eup %8583  ;;  %v4574_v5 = vadd.f32 1.0, %v8582_v28 }
0x4305   :  { %8589 = vrcp.f32 %v4574_v5 }
0x430d   :  { %v8586_v4 = vpop.eup %8585 }
0x430e   :  { %v4583_v8 = vmul.f32 %v8586_v4, %v8584_v3 }
0x430f   :  { %v8588_v43 = vpop.eup %8587 }
0x4310   :  { %v4582_v7 = vmul.f32 %v8588_v43, %v11411_v22 }
0x4312   :  { %v10569_v9 = vadd.f32 %v4583_v8, %v4582_v7  ;;  %v8590_v10 = vpop.eup %8589 }
0x4314   :  { %8591 = vtanh.f32 %v10569_v9 }
0x4321   :  { %v8592_v11 = vpop.eup %8591 }
0x4322   :  { %v10572_v13 = vmul.f32 %v8592_v11, %v8590_v10 }
0x4324   :  { %v4587_v32 = vpack.c.bf16 %v10572_v13, %v10572_v13 }
0x4326   :  { %4621 = vmatmul.mubr.bf16.vlgmr.msra.gmra.mxu0 %v4587_v32  ;;  %4662 = vmatmul.mubr.bf16.vlgmr.msra.gmra.mxu1 %v4587_v32 }
0x4327   :  { %4700 = vmatpush1.bf16.msra.mxu0 %v10432_v39  ;;  %4741 = vmatpush1.bf16.msra.mxu1 %v10445_v31 }
0x4328   :  { %4701 = vmatprep.subr.bf16.mxu0 %v10435_v41  ;;  %4742 = vmatprep.subr.bf16.mxu1 %v10455_v48 }
0x4329   :  { %4731 = vmatprep.mubr.bf16.mxu0 %v9311_v0  ;;  %4772 = vmatprep.mubr.bf16.mxu1 %v9311_v0 }
0x432b   :  { %4702 = vmatpush1.bf16.msra.mxu0 %v10438_v29  ;;  %4743 = vmatpush1.bf16.msra.mxu1 %v10457_v12 }
0x432c   :  { %4703 = vmatprep.subr.bf16.mxu0 %v10441_v30  ;;  %4744 = vmatprep.subr.bf16.mxu1 %v10465_v53 }
0x432f   :  { %4704 = vmatpush1.bf16.msra.mxu0 %v10448_v33  ;;  %4745 = vmatpush1.bf16.msra.mxu1 %v10469_v63 }
0x4330   :  { %4705 = vmatprep.subr.bf16.mxu0 %v10452_v34  ;;  %4746 = vmatprep.subr.bf16.mxu1 %v10472_v57 }
0x4333   :  { %4706 = vmatpush1.bf16.msra.mxu0 %v10461_v54  ;;  %4747 = vmatpush1.bf16.msra.mxu1 %v10481_v60 }
0x4334   :  { %4707 = vmatprep.subr.bf16.mxu0 %v10463_v51  ;;  %4748 = vmatprep.subr.bf16.mxu1 %v10484_v24 }
0x4337   :  { %4708 = vmatpush1.bf16.msra.mxu0 %v10475_v49  ;;  %4749 = vmatpush1.bf16.msra.mxu1 %v10493_v40 }
0x4338   :  { %4709 = vmatprep.subr.bf16.mxu0 %v10478_v61  ;;  %4750 = vmatprep.subr.bf16.mxu1 %v10498_v42 }
0x433b   :  { %4710 = vmatpush1.bf16.msra.mxu0 %v10487_v59  ;;  %4751 = vmatpush1.bf16.msra.mxu1 %v10502_v44 }
0x433c   :  { %4711 = vmatprep.subr.bf16.mxu0 %v10489_v50  ;;  %4752 = vmatprep.subr.bf16.mxu1 %v10505_v45 }
0x433f   :  { %4712 = vmatpush1.bf16.msra.mxu0 %v10495_v62  ;;  %4753 = vmatpush1.bf16.msra.mxu1 %v10512_v1 }
0x4340   :  { %4713 = vmatprep.subr.bf16.mxu0 %v10500_v15  ;;  %4754 = vmatprep.subr.bf16.mxu1 %v10515_v27 }
0x4343   :  { %4714 = vmatpush1.bf16.msra.mxu0 %v10509_v46  ;;  %4755 = vmatpush1.bf16.msra.mxu1 %v10524_v2 }
0x4344   :  { %4810 = vmatprep.subr.bf16.mxu0 %v10428_v37  ;;  %4851 = vmatprep.subr.bf16.mxu1 %v10443_v16 }
0x43e6   :  { %v4622_v22 = vpop.f32.mrf.mxu0  ;;  %v4663_v14 = vpop.f32.mrf.mxu1 }
0x43e7   :  { %v4670_v35 = vadd.f32 %v4622_v22, %v9989_v56  ;;  %v4672_v37 = vadd.f32 %v4663_v14, %v9991_v55 }
0x43e8   :  { %v4624_v17 = vpop.f32.mrf.mxu0  ;;  %v4665_v19 = vpop.f32.mrf.mxu1 }
0x43e9   :  { %v7570_v36 = vmul.f32 -1.442695, %v4670_v35  ;;  %v4671_v25 = vadd.f32 %v4624_v17, %v9993_v58  ;;  %v7572_v4 = vmul.f32 -1.442695, %v4672_v37  ;;  %v4673_v43 = vadd.f32 %v4665_v19, %v9995_v18 }
0x43ea   :  { %v4626_v6 = vpop.f32.mrf.mxu0  ;;  %v4667_v38 = vpop.f32.mrf.mxu1 }
0x43eb   :  { %8593 = vpow2.f32 %v7570_v36  ;;  %v7571_v26 = vmul.f32 -1.442695, %v4671_v25 }
0x43ec   :  { %v4627_v28 = vpop.f32.mrf.mxu0  ;;  %v4668_v3 = vpop.f32.mrf.mxu1 }
0x43ed   :  { %8595 = vpow2.f32 %v7571_v26 }
0x43ee   :  { %8597 = vpow2.f32 %v7572_v4  ;;  %v8529_v4 = vld [vmem:[#allocation20 + $0xe4] ss:$16 sps:$4 sm:$0xff]  }
0x43f8   :  { %v8594_v16 = vpop.eup %8593 }
0x43f9   :  { %v4683_v5 = vadd.f32 1.0, %v8594_v16  ;;  %v8532_v16 = vld [vmem:[#allocation20 + $0xec] ss:$16 sps:$4 sm:$0xff]  }
0x43fa   :  { %v8596_v7 = vpop.eup %8595 }
0x43fb   :  { %8599 = vrcp.f32 %v4683_v5  ;;  %v4684_v8 = vadd.f32 1.0, %v8596_v7  ;;  %v8598_v10 = vpop.eup %8597  ;;  %v8530_v5 = vld [vmem:[#allocation20 + $0xe8] ss:$16 sps:$4 sm:$0xff]   ;;  %v8535_v7 = vld [vmem:[#allocation20 + $0xc4] ss:$16 sps:$4 sm:$0xff]  }
0x43fc   :  { %8601 = vtanh.f32 %v4673_v43  ;;  %v4685_v35 = vadd.f32 1.0, %v8598_v10  ;;  %v8527_v43 = vld [vmem:[#allocation20 + $0xe0] ss:$16 sps:$4 sm:$0xff]   ;;  %v8536_v10 = vld [vmem:[#allocation20 + $0xc8] ss:$16 sps:$4 sm:$0xff]  }
0x43fd   :  { %8603 = vrcp.f32 %v4684_v8  ;;  %v8538_v8 = vld [vmem:[#allocation20 + $0xcc] ss:$16 sps:$4 sm:$0xff]  }
0x43fe   :  { %8605 = vrcp.f32 %v4685_v35  ;;  %v8542_v35 = vld [vmem:[#allocation20 + $0xa8] ss:$16 sps:$4 sm:$0xff]  }
0x4408   :  { %v8600_v11 = vpop.eup %8599 }
0x4409   :  { %v8602_v32 = vpop.eup %8601 }
0x440a   :  { %v8604_v22 = vpop.eup %8603  ;;  %v4694_v36 = vmul.f32 %v8602_v32, %v8600_v11  ;;  %v8541_v11 = vld [vmem:[#allocation20 + $0xa4] ss:$16 sps:$4 sm:$0xff]   ;;  %v8544_v32 = vld [vmem:[#allocation20 + $0xac] ss:$16 sps:$4 sm:$0xff]  }
0x440b   :  { %v4693_v17 = vmul.f32 %v8604_v22, %v10569_v9  ;;  %v8606_v19 = vpop.eup %8605  ;;  %v8539_v22 = vld [vmem:[#allocation20 + $0xa0] ss:$16 sps:$4 sm:$0xff]  }
0x440d   :  { %v10615_v14 = vadd.f32 %v4694_v36, %v4693_v17  ;;  %v8547_v17 = vld [vmem:[#allocation20 + $0x84] ss:$16 sps:$4 sm:$0xff]   ;;  %v8550_v36 = vld [vmem:[#allocation20 + $0x8c] ss:$16 sps:$4 sm:$0xff]  }
0x440f   :  { %8607 = vtanh.f32 %v10615_v14 }
0x441c   :  { %v8608_v25 = vpop.eup %8607 }
0x441d   :  { %v10618_v6 = vmul.f32 %v8608_v25, %v8606_v19  ;;  %v8548_v19 = vld [vmem:[#allocation20 + $0x88] ss:$16 sps:$4 sm:$0xff]   ;;  %v8553_v25 = vld [vmem:[#allocation20 + $0x64] ss:$16 sps:$4 sm:$0xff]  }
0x441f   :  { %v4698_v38 = vpack.c.bf16 %v10618_v6, %v10618_v6 }
0x4421   :  { %4732 = vmatmul.mubr.bf16.vlgmr.msra.gmra.mxu0 %v4698_v38  ;;  %4773 = vmatmul.mubr.bf16.vlgmr.msra.gmra.mxu1 %v4698_v38  ;;  %v8551_v38 = vld [vmem:[#allocation20 + $0x60] ss:$16 sps:$4 sm:$0xff]  }
0x4422   :  { %4811 = vmatpush1.bf16.msra.mxu0 %v10432_v39  ;;  %4852 = vmatpush1.bf16.msra.mxu1 %v10445_v31 }
0x4423   :  { %4812 = vmatprep.subr.bf16.mxu0 %v10435_v41  ;;  %4853 = vmatprep.subr.bf16.mxu1 %v10455_v48 }
0x4424   :  { %4842 = vmatprep.mubr.bf16.mxu0 %v9311_v0  ;;  %4883 = vmatprep.mubr.bf16.mxu1 %v9311_v0 }
0x4426   :  { %4813 = vmatpush1.bf16.msra.mxu0 %v10438_v29  ;;  %4854 = vmatpush1.bf16.msra.mxu1 %v10457_v12 }
0x4427   :  { %4814 = vmatprep.subr.bf16.mxu0 %v10441_v30  ;;  %4855 = vmatprep.subr.bf16.mxu1 %v10465_v53 }
0x442a   :  { %4815 = vmatpush1.bf16.msra.mxu0 %v10448_v33  ;;  %4856 = vmatpush1.bf16.msra.mxu1 %v10469_v63 }
0x442b   :  { %4816 = vmatprep.subr.bf16.mxu0 %v10452_v34  ;;  %4857 = vmatprep.subr.bf16.mxu1 %v10472_v57 }
0x442e   :  { %4817 = vmatpush1.bf16.msra.mxu0 %v10461_v54  ;;  %4858 = vmatpush1.bf16.msra.mxu1 %v10481_v60 }
0x442f   :  { %4818 = vmatprep.subr.bf16.mxu0 %v10463_v51  ;;  %4859 = vmatprep.subr.bf16.mxu1 %v10484_v24 }
0x4432   :  { %4819 = vmatpush1.bf16.msra.mxu0 %v10475_v49  ;;  %4860 = vmatpush1.bf16.msra.mxu1 %v10493_v40 }
0x4433   :  { %4820 = vmatprep.subr.bf16.mxu0 %v10478_v61  ;;  %4861 = vmatprep.subr.bf16.mxu1 %v10498_v42 }
0x4436   :  { %4821 = vmatpush1.bf16.msra.mxu0 %v10487_v59  ;;  %4862 = vmatpush1.bf16.msra.mxu1 %v10502_v44 }
0x4437   :  { %4822 = vmatprep.subr.bf16.mxu0 %v10489_v50  ;;  %4863 = vmatprep.subr.bf16.mxu1 %v10505_v45 }
0x443a   :  { %4823 = vmatpush1.bf16.msra.mxu0 %v10495_v62  ;;  %4864 = vmatpush1.bf16.msra.mxu1 %v10512_v1 }
0x443b   :  { %4824 = vmatprep.subr.bf16.mxu0 %v10500_v15  ;;  %4865 = vmatprep.subr.bf16.mxu1 %v10515_v27 }
0x443e   :  { %4825 = vmatpush1.bf16.msra.mxu0 %v10509_v46  ;;  %4866 = vmatpush1.bf16.msra.mxu1 %v10524_v2  ;;  %v4921_v2 = vrot.slane %v10618_v6, 7  ;;  %v8556_v6 = vld [vmem:[#allocation20 + $0x6c] ss:$16 sps:$4 sm:$0xff]  }
0x443f   :  { %5161 = vmatprep.subr.bf16.mxu0 %v8529_v4  ;;  %5212 = vmatprep.subr.bf16.mxu1 %v8532_v16 }
0x4440   :  { %v4929_v3 = vsel %vm1126_vm1, %v10572_v13, %v4921_v2  ;;  %v8533_v13 = vld [vmem:[#allocation20 + $0xc0] ss:$16 sps:$4 sm:$0xff]  }
0x44e1   :  { %v4733_v39 = vpop.f32.mrf.mxu0  ;;  %v4774_v41 = vpop.f32.mrf.mxu1 }
0x44e2   :  { %v4781_v29 = vadd.f32 %v4733_v39, %v9989_v56  ;;  %v4783_v63 = vadd.f32 %v4774_v41, %v9991_v55  ;;  %v8554_v39 = vld [vmem:[#allocation20 + $0x68] ss:$16 sps:$4 sm:$0xff]   ;;  %v8559_v41 = vld [vmem:[#allocation20 + $0x44] ss:$16 sps:$4 sm:$0xff]  }
0x44e3   :  { %v4735_v30 = vpop.f32.mrf.mxu0  ;;  %v4776_v31 = vpop.f32.mrf.mxu1 }
0x44e4   :  { %v7573_v33 = vmul.f32 -1.442695, %v4781_v29  ;;  %v4782_v34 = vadd.f32 %v4735_v30, %v9993_v58  ;;  %v7575_v57 = vmul.f32 -1.442695, %v4783_v63  ;;  %v4784_v61 = vadd.f32 %v4776_v31, %v9995_v18  ;;  %v8562_v29 = vld [vmem:[#allocation20 + $0x4c] ss:$16 sps:$4 sm:$0xff]  }
0x44e5   :  { %v4737_v48 = vpop.f32.mrf.mxu0  ;;  %v4778_v12 = vpop.f32.mrf.mxu1  ;;  %v8557_v30 = vld [vmem:[#allocation20 + $0x40] ss:$16 sps:$4 sm:$0xff]   ;;  %v8560_v31 = vld [vmem:[#allocation20 + $0x48] ss:$16 sps:$4 sm:$0xff]  }
0x44e6   :  { %8609 = vpow2.f32 %v7573_v33  ;;  %v7574_v54 = vmul.f32 -1.442695, %v4782_v34  ;;  %v8565_v33 = vld [vmem:[#allocation20 + $0x24] ss:$16 sps:$4 sm:$0xff]   ;;  %v8568_v34 = vld [vmem:[#allocation20 + $0x2c] ss:$16 sps:$4 sm:$0xff]  }
0x44e7   :  { %v4738_v51 = vpop.f32.mrf.mxu0  ;;  %v4779_v53 = vpop.f32.mrf.mxu1  ;;  %v8563_v48 = vld [vmem:[#allocation20 + $0x20] ss:$16 sps:$4 sm:$0xff]   ;;  %v8566_v12 = vld [vmem:[#allocation20 + $0x28] ss:$16 sps:$4 sm:$0xff]  }
0x44e8   :  { %8611 = vpow2.f32 %v7574_v54  ;;  %v8571_v54 = vld [vmem:[#allocation20 + $0x4] ss:$16 sps:$4 sm:$0xff]   ;;  %v8574_v51 = vld [vmem:[#allocation20 + $0xc] ss:$16 sps:$4 sm:$0xff]   ;;  %v8569_v53 = vld [vmem:[#allocation20] ss:$16 sps:$4 sm:$0xff]  }
0x44e9   :  { %8613 = vpow2.f32 %v7575_v57  ;;  %v8572_v63 = vld [vmem:[#allocation20 + $0x8] ss:$16 sps:$4 sm:$0xff]  }
0x44ea   :  { %v8575_v57 = vld [vmem:[#allocation5] sm:$0xff]  }
0x44f3   :  { %v8610_v49 = vpop.eup %8609 }
0x44f4   :  { %v4794_v60 = vadd.f32 1.0, %v8610_v49 }
0x44f5   :  { %v8612_v24 = vpop.eup %8611 }
0x44f6   :  { %8615 = vrcp.f32 %v4794_v60  ;;  %v4795_v59 = vadd.f32 1.0, %v8612_v24  ;;  %v8614_v50 = vpop.eup %8613 }
0x44f7   :  { %8617 = vtanh.f32 %v4784_v61  ;;  %v4796_v15 = vadd.f32 1.0, %v8614_v50 }
0x44f8   :  { %8619 = vrcp.f32 %v4795_v59 }
0x44f9   :  { %8621 = vrcp.f32 %v4796_v15 }
0x4503   :  { %v8616_v40 = vpop.eup %8615 }
0x4504   :  { %v8618_v62 = vpop.eup %8617 }
0x4505   :  { %v8620_v42 = vpop.eup %8619  ;;  %v4805_v45 = vmul.f32 %v8618_v62, %v8616_v40 }
0x4506   :  { %v4804_v44 = vmul.f32 %v8620_v42, %v10615_v14  ;;  %v8622_v1 = vpop.eup %8621  ;;  %v8545_v14 = vld [vmem:[#allocation20 + $0x80] ss:$16 sps:$4 sm:$0xff]  }
0x4508   :  { %v10659_v46 = vadd.f32 %v4805_v45, %v4804_v44 }
0x450a   :  { %8623 = vtanh.f32 %v10659_v46 }
0x4517   :  { %v8624_v27 = vpop.eup %8623 }
0x4518   :  { %v4808_v9 = vmul.f32 %v8624_v27, %v8622_v1 }
0x451a   :  { %v4809_v26 = vpack.c.bf16 %v4808_v9, %v4808_v9  ;;  %v4924_v28 = vrot.slane %v4808_v9, 6 }
0x451c   :  { %4843 = vmatmul.mubr.bf16.vlgmr.msra.gmra.mxu0 %v4809_v26  ;;  %v10666_v37 = vsel %vm1128_vm2, %v4929_v3, %v4924_v28  ;;  %4884 = vmatmul.mubr.bf16.vlgmr.msra.gmra.mxu1 %v4809_v26 }
0x451d   :  { %5193 = vmatprep.mubr.bf16.mxu0 %v9311_v0  ;;  %5244 = vmatprep.mubr.bf16.mxu1 %v9311_v0 }
0x451e   :  { %5162 = vmatpush1.bf16.msra.mxu0 %v8527_v43  ;;  %5213 = vmatpush1.bf16.msra.mxu1 %v8530_v5 }
0x451f   :  { %5163 = vmatprep.subr.bf16.mxu0 %v8535_v7  ;;  %5214 = vmatprep.subr.bf16.mxu1 %v8538_v8 }
0x4522   :  { %5164 = vmatpush1.bf16.msra.mxu0 %v8533_v13  ;;  %5215 = vmatpush1.bf16.msra.mxu1 %v8536_v10 }
0x4523   :  { %5165 = vmatprep.subr.bf16.mxu0 %v8541_v11  ;;  %5216 = vmatprep.subr.bf16.mxu1 %v8544_v32 }
0x4526   :  { %5166 = vmatpush1.bf16.msra.mxu0 %v8539_v22  ;;  %5217 = vmatpush1.bf16.msra.mxu1 %v8542_v35 }
0x4527   :  { %5167 = vmatprep.subr.bf16.mxu0 %v8547_v17  ;;  %5218 = vmatprep.subr.bf16.mxu1 %v8550_v36 }
0x452a   :  { %5168 = vmatpush1.bf16.msra.mxu0 %v8545_v14  ;;  %5219 = vmatpush1.bf16.msra.mxu1 %v8548_v19 }
0x452b   :  { %5169 = vmatprep.subr.bf16.mxu0 %v8553_v25  ;;  %5220 = vmatprep.subr.bf16.mxu1 %v8556_v6 }
0x452e   :  { %5170 = vmatpush1.bf16.msra.mxu0 %v8551_v38  ;;  %5221 = vmatpush1.bf16.msra.mxu1 %v8554_v39 }
0x452f   :  { %5171 = vmatprep.subr.bf16.mxu0 %v8559_v41  ;;  %5222 = vmatprep.subr.bf16.mxu1 %v8562_v29 }
0x4532   :  { %5172 = vmatpush1.bf16.msra.mxu0 %v8557_v30  ;;  %5223 = vmatpush1.bf16.msra.mxu1 %v8560_v31 }
0x4533   :  { %5173 = vmatprep.subr.bf16.mxu0 %v8565_v33  ;;  %5224 = vmatprep.subr.bf16.mxu1 %v8568_v34 }
0x4536   :  { %5174 = vmatpush1.bf16.msra.mxu0 %v8563_v48  ;;  %5225 = vmatpush1.bf16.msra.mxu1 %v8566_v12 }
0x4537   :  { %5175 = vmatprep.subr.bf16.mxu0 %v8571_v54  ;;  %5226 = vmatprep.subr.bf16.mxu1 %v8574_v51 }
0x453a   :  { %5176 = vmatpush1.bf16.msra.mxu0 %v8569_v53  ;;  %5227 = vmatpush1.bf16.msra.mxu1 %v8572_v63 }
0x453d   :  { %5194 = vmatmul.mubr.bf16.vlgmr.msra.gmra.mxu0 %v8575_v57  ;;  %5245 = vmatmul.mubr.bf16.vlgmr.msra.gmra.mxu1 %v8575_v57 }
0x453e   :  { %5203 = vmatprep.mubr.bf16.mxu0 %v9311_v0  ;;  %5254 = vmatprep.mubr.bf16.mxu1 %v9311_v0 }
0x45dc   :  { %v4844_v49 = vpop.f32.mrf.mxu0  ;;  %v4885_v61 = vpop.f32.mrf.mxu1 }
0x45dd   :  { %v4892_v60 = vadd.f32 %v4844_v49, %v9989_v56  ;;  %v4894_v1 = vadd.f32 %v4885_v61, %v9991_v55 }
0x45de   :  { %v4846_v24 = vpop.f32.mrf.mxu0  ;;  %v4887_v59 = vpop.f32.mrf.mxu1 }
0x45df   :  { %v7576_v50 = vmul.f32 -1.442695, %v4892_v60  ;;  %v4893_v40 = vadd.f32 %v4846_v24, %v9993_v58  ;;  %v7578_v27 = vmul.f32 -1.442695, %v4894_v1  ;;  %v4895_v9 = vadd.f32 %v4887_v59, %v9995_v18 }
0x45e0   :  { %v4848_v62 = vpop.f32.mrf.mxu0  ;;  %v4889_v42 = vpop.f32.mrf.mxu1  ;;  %v10688_v59 = vmov 0.0  }
0x45e1   :  { %8625 = vpow2.f32 %v7576_v50  ;;  %v7577_v15 = vmul.f32 -1.442695, %v4893_v40  ;;  %v10690_v50 = vmov 0.0  }
0x45e2   :  { %v4849_v44 = vpop.f32.mrf.mxu0  ;;  %v4890_v45 = vpop.f32.mrf.mxu1 }
0x45e3   :  { %8627 = vpow2.f32 %v7577_v15 }
0x45e4   :  { %8629 = vpow2.f32 %v7578_v27 }
0x45ee   :  { %v8626_v2 = vpop.eup %8625 }
0x45ef   :  { %v4905_v26 = vadd.f32 1.0, %v8626_v2 }
0x45f0   :  { %v8628_v56 = vpop.eup %8627 }
0x45f1   :  { %8631 = vrcp.f32 %v4905_v26  ;;  %v4906_v28 = vadd.f32 1.0, %v8628_v56  ;;  %v8630_v58 = vpop.eup %8629 }
0x45f2   :  { %8633 = vtanh.f32 %v4895_v9  ;;  %v4907_v43 = vadd.f32 1.0, %v8630_v58 }
0x45f3   :  { %8635 = vrcp.f32 %v4906_v28 }
0x45f4   :  { %8637 = vrcp.f32 %v4907_v43 }
0x45fd   :  { %v5246_v19 = vpop.f32.mrf.mxu1 }
0x45fe   :  { %v8632_v3 = vpop.eup %8631 }
0x45ff   :  { %v8634_v4 = vpop.eup %8633  ;;  %v5248_v39 = vpop.f32.mrf.mxu1 }
0x4600   :  { %v8636_v16 = vpop.eup %8635  ;;  %v4916_v7 = vmul.f32 %v8634_v4, %v8632_v3 }
0x4601   :  { %v4915_v5 = vmul.f32 %v8636_v16, %v10659_v46  ;;  %v8638_v8 = vpop.eup %8637  ;;  %v4969_v46 = vld [vmem:[%s11403_s12] sm:$0xf]  ;;  %s10692_s12 = smov 0  }
0x4602   :  { %v4974_v35 = vrot.slane %v4969_v46, %v9450_v21  ;;  %v4982_v17 = vrot.slane %v4969_v46, %v3065_v47  ;;  %v4978_v36 = vrot.slane %v4969_v46, %v9453_v23  ;;  %v4986_v14 = vrot.slane %v4969_v46, %v3069_v52  ;;  %v5250_v21 = vpop.f32.mrf.mxu1 }
0x4603   :  { %v4917_v55 = vadd.f32 %v4916_v7, %v4915_v5 }
0x4604   :  { %v5247_v6 = vadd.f32 %v5246_v19, %v4982_v17  ;;  %v5249_v29 = vadd.f32 %v5248_v39, %v4986_v14  ;;  %v5251_v31 = vadd.f32 %v5250_v21, %v4982_v17  ;;  %v5252_v33 = vpop.f32.mrf.mxu1 }
0x4605   :  { %8639 = vtanh.f32 %v4917_v55  ;;  %v5253_v52 = vadd.f32 %v5252_v33, %v4986_v14 }
0x4606   :  { %5265 = vst [vmem:[#allocation4 + $0x10] sm:$0xff] %v5247_v6  ;;  %5266 = vst [vmem:[#allocation4 + $0x18] sm:$0xff] %v5249_v29 }
0x4607   :  { %5269 = vst [vmem:[#allocation4 + $0x30] sm:$0xff] %v5251_v31  ;;  %5270 = vst [vmem:[#allocation4 + $0x38] sm:$0xff] %v5253_v52 }
0x4612   :  { %v8640_v18 = vpop.eup %8639 }
0x4613   :  { %v4919_v13 = vmul.f32 %v8640_v18, %v8638_v8 }
0x4615   :  { %v4927_v10 = vrot.slane %v4919_v13, 5 }
0x4617   :  { %v4931_v11 = vsel %vm1130_vm3, %v10666_v37, %v4927_v10  ;;  %v5195_v37 = vpop.f32.mrf.mxu0 }
0x4618   :  { %v4932_v32 = vpack.c.bf16 %v4931_v11, %v4931_v11  ;;  %v5196_v25 = vadd.f32 %v5195_v37, %v4974_v35 }
0x4619   :  { %v5197_v38 = vpop.f32.mrf.mxu0 }
0x461a   :  { %4933 = vst [vmem:[#allocation5 + $0x8] sm:$0x3] %v4932_v32  ;;  %5263 = vst [vmem:[#allocation4] sm:$0xff] %v5196_v25  ;;  %v5198_v41 = vadd.f32 %v5197_v38, %v4978_v36 }
0x461b   :  { %v5199_v30 = vpop.f32.mrf.mxu0 }
0x461c   :  { %5264 = vst [vmem:[#allocation4 + $0x8] sm:$0xff] %v5198_v41  ;;  %v5200_v47 = vadd.f32 %v5199_v30, %v4974_v35 }
0x461d   :  { %v5201_v23 = vpop.f32.mrf.mxu0 }
0x461e   :  { %5267 = vst [vmem:[#allocation4 + $0x20] sm:$0xff] %v5200_v47  ;;  %v5202_v20 = vadd.f32 %v5201_v23, %v4978_v36 }
0x4620   :  { %5268 = vst [vmem:[#allocation4 + $0x28] sm:$0xff] %v5202_v20 }
0x4621   :  { %v8576_v22 = vld [vmem:[#allocation5 + $0x8] ss:$0 sps:$4 sm:$0x33]  }
0x4622   :  { %5204 = vmatmul.mubr.bf16.gmra.mxu0 %v8576_v22  ;;  %5255 = vmatmul.mubr.bf16.gmra.mxu1 %v8576_v22 }
0x46e2   :  { %v5205_v34 = vpop.f32.mrf.mxu0  ;;  %v5256_v48 = vpop.f32.mrf.mxu1 }
0x46e3   :  { %v5206_v12 = vadd.f32 %v5205_v34, %v4974_v35  ;;  %v5257_v54 = vadd.f32 %v5256_v48, %v4982_v17 }
0x46e4   :  { %v5207_v51 = vpop.f32.mrf.mxu0  ;;  %v5258_v53 = vpop.f32.mrf.mxu1 }
0x46e5   :  { %5271 = vst [vmem:[#allocation4 + $0x40] sm:$0xf] %v5206_v12  ;;  %5273 = vst [vmem:[#allocation4 + $0x50] sm:$0xf] %v5257_v54  ;;  %v5208_v63 = vadd.f32 %v5207_v51, %v4978_v36  ;;  %v5259_v57 = vadd.f32 %v5258_v53, %v4986_v14 }
0x46e6   :  { %v5209_v49 = vpop.f32.mrf.mxu0  ;;  %v5260_v61 = vpop.f32.mrf.mxu1 }
0x46e7   :  { %5272 = vst [vmem:[#allocation4 + $0x48] sm:$0xf] %v5208_v63  ;;  %5274 = vst [vmem:[#allocation4 + $0x58] sm:$0xf] %v5259_v57 }
0x46e8   :  { %v5210_v60 = vpop.f32.mrf.mxu0  ;;  %v5261_v24 = vpop.f32.mrf.mxu1 }
0x46e9 LB: > { %v10701_v40 = vld [vmem:[#allocation21 + $0xe4] ss:$16 sps:$4 sm:$0xff]   ;;  %v10703_v62 = vld [vmem:[#allocation21 + $0xe0] ss:$16 sps:$4 sm:$0xff]   ;;  %v9317_v42 = vmov 0   ;;  %v5293_v11 = vpack.c.bf16 %v9289_v50, %v9289_v50  ;;  %s7613_s7 = sshll.u32 %s9293_s12, 3  ;;  %s9293_s12 = sphi %s10692_s12, %s5280_s12   ;;  %v9289_v50 = vphi %v10690_v50, %v11418_v50   ;;  %v9285_v59 = vphi %v10688_v59, %v11417_v59  }
0x46ea   : > { %5523 = vmatprep.mubr.bf16.mxu0 %v9317_v42  ;;  %5564 = vmatprep.mubr.bf16.mxu1 %v9317_v42  ;;  %v10708_v15 = vld [vmem:[#allocation21 + $0xc4] ss:$16 sps:$4 sm:$0xff]   ;;  %v10711_v44 = vld [vmem:[#allocation21 + $0xc0] ss:$16 sps:$4 sm:$0xff]   ;;  %v10716_v1 = vld [vmem:[#allocation21 + $0xec] ss:$16 sps:$4 sm:$0xff]  }
0x46eb   : > { %5491 = vmatprep.subr.bf16.mxu0 %v10701_v40  ;;  %v10714_v45 = vld [vmem:[#allocation21 + $0xa4] ss:$16 sps:$4 sm:$0xff]   ;;  %v10718_v27 = vld [vmem:[#allocation21 + $0xe8] ss:$16 sps:$4 sm:$0xff]   ;;  %v10721_v2 = vld [vmem:[#allocation21 + $0xa0] ss:$16 sps:$4 sm:$0xff]   ;;  %5532 = vmatprep.subr.bf16.mxu1 %v10716_v1 }
0x46ec   : > { %5492 = vmatpush1.bf16.msra.mxu0 %v10703_v62  ;;  %v10725_v9 = vld [vmem:[#allocation21 + $0x84] ss:$16 sps:$4 sm:$0xff]   ;;  %5533 = vmatpush1.bf16.msra.mxu1 %v10718_v27  ;;  %v10728_v26 = vld [vmem:[#allocation21 + $0xcc] ss:$16 sps:$4 sm:$0xff]   ;;  %v10730_v56 = vld [vmem:[#allocation21 + $0xc8] ss:$16 sps:$4 sm:$0xff]  }
0x46ed   : > { %5493 = vmatprep.subr.bf16.mxu0 %v10708_v15  ;;  %5534 = vmatprep.subr.bf16.mxu1 %v10728_v26  ;;  %v10734_v28 = vld [vmem:[#allocation21 + $0x80] ss:$16 sps:$4 sm:$0xff]   ;;  %v10736_v58 = vld [vmem:[#allocation21 + $0x64] ss:$16 sps:$4 sm:$0xff]   ;;  %v10738_v3 = vld [vmem:[#allocation21 + $0xac] ss:$16 sps:$4 sm:$0xff]  }
0x46ee   : > { %v10742_v4 = vld [vmem:[#allocation21 + $0xa8] ss:$16 sps:$4 sm:$0xff]   ;;  %v10745_v16 = vld [vmem:[#allocation21 + $0x8c] ss:$16 sps:$4 sm:$0xff]   ;;  %v10748_v43 = vld [vmem:[#allocation21 + $0x60] ss:$16 sps:$4 sm:$0xff]  }
0x46ef   : > { %v10751_v5 = vld [vmem:[#allocation21 + $0x44] ss:$16 sps:$4 sm:$0xff]   ;;  %v10754_v7 = vld [vmem:[#allocation21 + $0x88] ss:$16 sps:$4 sm:$0xff]   ;;  %v10757_v55 = vld [vmem:[#allocation21 + $0x6c] ss:$16 sps:$4 sm:$0xff]  }
0x46f0   : > { %5494 = vmatpush1.bf16.msra.mxu0 %v10711_v44  ;;  %5535 = vmatpush1.bf16.msra.mxu1 %v10730_v56  ;;  %v10760_v8 = vld [vmem:[#allocation21 + $0x40] ss:$16 sps:$4 sm:$0xff]   ;;  %v10762_v18 = vld [vmem:[#allocation21 + $0x24] ss:$16 sps:$4 sm:$0xff]   ;;  %v10766_v13 = vld [vmem:[#allocation21 + $0x68] ss:$16 sps:$4 sm:$0xff]  }
0x46f1   : > { %5495 = vmatprep.subr.bf16.mxu0 %v10714_v45  ;;  %5536 = vmatprep.subr.bf16.mxu1 %v10738_v3  ;;  %v10769_v10 = vld [vmem:[#allocation21 + $0x4c] ss:$16 sps:$4 sm:$0xff]   ;;  %v10772_v32 = vld [vmem:[#allocation21 + $0x20] ss:$16 sps:$4 sm:$0xff]   ;;  %v10775_v22 = vld [vmem:[#allocation21 + $0x4] ss:$16 sps:$4 sm:$0xff]  }
0x46f2   : > { %v10778_v46 = vld [vmem:[#allocation21 + $0x48] ss:$16 sps:$4 sm:$0xff]   ;;  %v10781_v35 = vld [vmem:[#allocation21 + $0x2c] ss:$16 sps:$4 sm:$0xff]   ;;  %v5327_v17 = vshrl.u32 %v5293_v11, 16  ;;  %s5284_s23 = sshra.s32 %s7613_s7, 3 }
0x46f3   : > { %v10784_v36 = vld [vmem:[#allocation21] ss:$16 sps:$4 sm:$0xff]   ;;  %v10788_v14 = vld [vmem:[#allocation21 + $0x28] ss:$16 sps:$4 sm:$0xff]   ;;  %v10791_v37 = vld [vmem:[#allocation21 + $0xc] ss:$16 sps:$4 sm:$0xff]  }
0x46f4   : > { %5496 = vmatpush1.bf16.msra.mxu0 %v10721_v2  ;;  %5537 = vmatpush1.bf16.msra.mxu1 %v10742_v4  ;;  %v5329_v19 = vrot.slane %v5327_v17, 3  ;;  %v10795_v25 = vld [vmem:[#allocation21 + $0x8] ss:$16 sps:$4 sm:$0xff]   ;;  %s7718_s10 = sshll.u32 %s5284_s23, 5  ;;  %v5597_v50 = vrot.slane %v9285_v59, 7  ;;  %s6520_s30 = scalar_lea.vmem [#allocation23], %s7613_s7 }
0x46f5   : > { %5497 = vmatprep.subr.bf16.mxu0 %v10725_v9  ;;  %5538 = vmatprep.subr.bf16.mxu1 %v10745_v16  ;;  %s10838_s11 = scalar_lea.vmem [#allocation4], %s7718_s10  ;;  %s5280_s12 = sadd.s32 1, %s9293_s12  }
0x46f6   : > { %v10841_v6 = vld [vmem:[%s10838_s11] sm:$0xff]  ;;  %v10844_v39 = vld [vmem:[%s10838_s11 + $0x8] sm:$0xff]  ;;  %v10849_v52 = vld [vmem:[%s10838_s11 + $0x10] sm:$0xff]  ;;  %p5277_p11 = scmp.ge.s32.totalorder %s5280_s12, 2  }
0x46f7   : > { %v10853_v54 = vld [vmem:[%s10838_s11 + $0x18] sm:$0xff]  ;;  %s9318_s14 = smov (%p5277_p11), [#allocation23]  }
0x46f8   : > { %5498 = vmatpush1.bf16.msra.mxu0 %v10734_v28  ;;  %5539 = vmatpush1.bf16.msra.mxu1 %v10754_v7  ;;  %s7231_s24 = sshll.u32 (%p5277_p11), %s9318_s14, 4  ;;  %s7232_s24 = int_to_ptr.vmem [resolvable:$true] %s7231_s24 }
0x46f9   : > { %5499 = vmatprep.subr.bf16.mxu0 %v10736_v58  ;;  %5540 = vmatprep.subr.bf16.mxu1 %v10757_v55  ;;  %s9165_s25 = scalar_lea.vmem (%p5277_p11), %s7232_s24, 384  ;;  %p9170_p13 = scmp.lt.s32.totalorder (%p5277_p11), %s7232_s24, %s7232_s24 }
0x46fa   :  { %p9166_p12 = scmp.ne.s32.totalorder (%p5277_p11), %s7232_s24, %s9165_s25  ;;  %p9171_p0 = scmp.lt.s32.totalorder (%p5277_p11), %s9165_s25, %s9165_s25 }
0x46fc   : > { %5500 = vmatpush1.bf16.msra.mxu0 %v10748_v43  ;;  %5541 = vmatpush1.bf16.msra.mxu1 %v10766_v13  ;;  %p9172_p1 = por (%p5277_p11), %p9171_p0, %p9170_p13 }
0x46fd   : > { %5501 = vmatprep.subr.bf16.mxu0 %v10751_v5  ;;  %5542 = vmatprep.subr.bf16.mxu1 %v10769_v10 }
0x46fe   :  { %p9173_p2 = pnand (%p5277_p11), %p9172_p1, %p9166_p12 }
0x4700   : > { %5502 = vmatpush1.bf16.msra.mxu0 %v10760_v8  ;;  %5543 = vmatpush1.bf16.msra.mxu1 %v10778_v46 }
0x4701   : > { %5503 = vmatprep.subr.bf16.mxu0 %v10762_v18  ;;  %5544 = vmatprep.subr.bf16.mxu1 %v10781_v35 }
0x4704   : > { %5504 = vmatpush1.bf16.msra.mxu0 %v10772_v32  ;;  %5545 = vmatpush1.bf16.msra.mxu1 %v10788_v14 }
0x4705   : > { %5505 = vmatprep.subr.bf16.mxu0 %v10775_v22  ;;  %5546 = vmatprep.subr.bf16.mxu1 %v10791_v37 }
0x4708   : > { %5506 = vmatpush1.bf16.msra.mxu0 %v10784_v36  ;;  %5547 = vmatpush1.bf16.msra.mxu1 %v10795_v25 }
0x4709   : > { %5605 = vmatprep.subr.bf16.mxu0 %v10701_v40  ;;  %5646 = vmatprep.subr.bf16.mxu1 %v10716_v1 }
0x470b   : > { %5524 = vmatmul.mubr.bf16.vlgmr.msra.gmra.mxu0 %v5329_v19  ;;  %5565 = vmatmul.mubr.bf16.vlgmr.msra.gmra.mxu1 %v5329_v19 }
0x470c   : > { %5606 = vmatpush1.bf16.msra.mxu0 %v10703_v62  ;;  %5637 = vmatprep.mubr.bf16.mxu0 %v9317_v42 }
0x470d   : > { %5607 = vmatprep.subr.bf16.mxu0 %v10708_v15  ;;  %5647 = vmatpush1.bf16.msra.mxu1 %v10718_v27 }
0x470e   : > { %5648 = vmatprep.subr.bf16.mxu1 %v10728_v26  ;;  %5678 = vmatprep.mubr.bf16.mxu1 %v9317_v42 }
0x4710   : > { %5608 = vmatpush1.bf16.msra.mxu0 %v10711_v44 }
0x4711   : > { %5609 = vmatprep.subr.bf16.mxu0 %v10714_v45  ;;  %5649 = vmatpush1.bf16.msra.mxu1 %v10730_v56 }
0x4712   : > { %5650 = vmatprep.subr.bf16.mxu1 %v10738_v3 }
0x4714   : > { %5610 = vmatpush1.bf16.msra.mxu0 %v10721_v2 }
0x4715   : > { %5611 = vmatprep.subr.bf16.mxu0 %v10725_v9  ;;  %5651 = vmatpush1.bf16.msra.mxu1 %v10742_v4 }
0x4716   : > { %5652 = vmatprep.subr.bf16.mxu1 %v10745_v16 }
0x4718   : > { %5612 = vmatpush1.bf16.msra.mxu0 %v10734_v28 }
0x4719   : > { %5613 = vmatprep.subr.bf16.mxu0 %v10736_v58  ;;  %5653 = vmatpush1.bf16.msra.mxu1 %v10754_v7 }
0x471a   : > { %5654 = vmatprep.subr.bf16.mxu1 %v10757_v55 }
0x471c   : > { %5614 = vmatpush1.bf16.msra.mxu0 %v10748_v43 }
0x471d   : > { %5615 = vmatprep.subr.bf16.mxu0 %v10751_v5  ;;  %5655 = vmatpush1.bf16.msra.mxu1 %v10766_v13 }
0x471e   : > { %5656 = vmatprep.subr.bf16.mxu1 %v10769_v10 }
0x4720   : > { %5616 = vmatpush1.bf16.msra.mxu0 %v10760_v8 }
0x4721   : > { %5617 = vmatprep.subr.bf16.mxu0 %v10762_v18  ;;  %5657 = vmatpush1.bf16.msra.mxu1 %v10778_v46 }
0x4722   : > { %5658 = vmatprep.subr.bf16.mxu1 %v10781_v35 }
0x4724   : > { %5618 = vmatpush1.bf16.msra.mxu0 %v10772_v32 }
0x4725   : > { %5619 = vmatprep.subr.bf16.mxu0 %v10775_v22  ;;  %5659 = vmatpush1.bf16.msra.mxu1 %v10788_v14 }
0x4726   : > { %5660 = vmatprep.subr.bf16.mxu1 %v10791_v37 }
0x4728   : > { %5620 = vmatpush1.bf16.msra.mxu0 %v10784_v36 }
0x4729   : > { %5735 = vmatprep.subr.bf16.mxu0 %v10701_v40  ;;  %5661 = vmatpush1.bf16.msra.mxu1 %v10795_v25 }
0x472a   : > { %5776 = vmatprep.subr.bf16.mxu1 %v10716_v1 }
0x47cb   : > { %v5525_v38 = vpop.f32.mrf.mxu0  ;;  %v5566_v23 = vpop.f32.mrf.mxu1 }
0x47cc   : > { %v5573_v41 = vadd.f32 %v5525_v38, %v10841_v6  ;;  %v5575_v48 = vadd.f32 %v5566_v23, %v10849_v52 }
0x47cd   : > { %v5527_v29 = vpop.f32.mrf.mxu0  ;;  %v5568_v20 = vpop.f32.mrf.mxu1 }
0x47ce   : > { %v7648_v30 = vmul.f32 -1.442695, %v5573_v41  ;;  %v5574_v21 = vadd.f32 %v5527_v29, %v10844_v39  ;;  %v7650_v51 = vmul.f32 -1.442695, %v5575_v48  ;;  %v5576_v53 = vadd.f32 %v5568_v20, %v10853_v54 }
0x47cf   : > { %v5529_v47 = vpop.f32.mrf.mxu0  ;;  %v5570_v34 = vpop.f32.mrf.mxu1 }
0x47d0   : > { %8689 = vpow2.f32 %v7648_v30  ;;  %v7649_v31 = vmul.f32 -1.442695, %v5574_v21 }
0x47d1   : > { %v5530_v33 = vpop.f32.mrf.mxu0  ;;  %v5571_v12 = vpop.f32.mrf.mxu1 }
0x47d2   : > { %8691 = vpow2.f32 %v7649_v31 }
0x47d3   : > { %8693 = vpow2.f32 %v7650_v51 }
0x47d4   : > { %8695 = vtanh.f32 %v5576_v53 }
0x47dd   : > { %v8690_v63 = vpop.eup %8689 }
0x47de   : > { %v5586_v57 = vadd.f32 1.0, %v8690_v63 }
0x47df   : > { %v8692_v49 = vpop.eup %8691 }
0x47e0   : > { %8697 = vrcp.f32 %v5586_v57  ;;  %v5587_v61 = vadd.f32 1.0, %v8692_v49  ;;  %v8694_v60 = vpop.eup %8693 }
0x47e1   : > { %v8696_v24 = vpop.eup %8695  ;;  %v5588_v19 = vadd.f32 1.0, %v8694_v60 }
0x47e2   : > { %8699 = vrcp.f32 %v5587_v61 }
0x47e3   : > { %8701 = vrcp.f32 %v5588_v19 }
0x47ed   : > { %v8698_v11 = vpop.eup %8697 }
0x47ee   : > { %v5600_v41 = vmul.f32 %v8698_v11, %v8696_v24 }
0x47ef   : > { %v8700_v17 = vpop.eup %8699 }
0x47f0   : > { %v5599_v38 = vmul.f32 %v8700_v17, %v5597_v50  ;;  %v8702_v30 = vpop.eup %8701 }
0x47f2   : > { %v10857_v29 = vadd.f32 %v5600_v41, %v5599_v38 }
0x47f4   : > { %8703 = vtanh.f32 %v10857_v29 }
0x4801   : > { %v8704_v21 = vpop.eup %8703 }
0x4802   : > { %v10860_v47 = vmul.f32 %v8704_v21, %v8702_v30 }
0x4804   : > { %v5604_v31 = vpack.c.bf16 %v10860_v47, %v10860_v47 }
0x4806   : > { %5638 = vmatmul.mubr.bf16.vlgmr.msra.gmra.mxu0 %v5604_v31  ;;  %5679 = vmatmul.mubr.bf16.vlgmr.msra.gmra.mxu1 %v5604_v31 }
0x4807   : > { %5736 = vmatpush1.bf16.msra.mxu0 %v10703_v62  ;;  %5777 = vmatpush1.bf16.msra.mxu1 %v10718_v27 }
0x4808   : > { %5737 = vmatprep.subr.bf16.mxu0 %v10708_v15  ;;  %5778 = vmatprep.subr.bf16.mxu1 %v10728_v26 }
0x4809   : > { %5767 = vmatprep.mubr.bf16.mxu0 %v9317_v42  ;;  %5808 = vmatprep.mubr.bf16.mxu1 %v9317_v42 }
0x480b   : > { %5738 = vmatpush1.bf16.msra.mxu0 %v10711_v44  ;;  %5779 = vmatpush1.bf16.msra.mxu1 %v10730_v56 }
0x480c   : > { %5739 = vmatprep.subr.bf16.mxu0 %v10714_v45  ;;  %5780 = vmatprep.subr.bf16.mxu1 %v10738_v3 }
0x480f   : > { %5740 = vmatpush1.bf16.msra.mxu0 %v10721_v2  ;;  %5781 = vmatpush1.bf16.msra.mxu1 %v10742_v4 }
0x4810   : > { %5741 = vmatprep.subr.bf16.mxu0 %v10725_v9  ;;  %5782 = vmatprep.subr.bf16.mxu1 %v10745_v16 }
0x4813   : > { %5742 = vmatpush1.bf16.msra.mxu0 %v10734_v28  ;;  %5783 = vmatpush1.bf16.msra.mxu1 %v10754_v7 }
0x4814   : > { %5743 = vmatprep.subr.bf16.mxu0 %v10736_v58  ;;  %5784 = vmatprep.subr.bf16.mxu1 %v10757_v55 }
0x4817   : > { %5744 = vmatpush1.bf16.msra.mxu0 %v10748_v43  ;;  %5785 = vmatpush1.bf16.msra.mxu1 %v10766_v13 }
0x4818   : > { %5745 = vmatprep.subr.bf16.mxu0 %v10751_v5  ;;  %5786 = vmatprep.subr.bf16.mxu1 %v10769_v10 }
0x481b   : > { %5746 = vmatpush1.bf16.msra.mxu0 %v10760_v8  ;;  %5787 = vmatpush1.bf16.msra.mxu1 %v10778_v46 }
0x481c   : > { %5747 = vmatprep.subr.bf16.mxu0 %v10762_v18  ;;  %5788 = vmatprep.subr.bf16.mxu1 %v10781_v35 }
0x481f   : > { %5748 = vmatpush1.bf16.msra.mxu0 %v10772_v32  ;;  %5789 = vmatpush1.bf16.msra.mxu1 %v10788_v14 }
0x4820   : > { %5749 = vmatprep.subr.bf16.mxu0 %v10775_v22  ;;  %5790 = vmatprep.subr.bf16.mxu1 %v10791_v37 }
0x4823   : > { %5750 = vmatpush1.bf16.msra.mxu0 %v10784_v36  ;;  %5791 = vmatpush1.bf16.msra.mxu1 %v10795_v25 }
0x4824   : > { %5864 = vmatprep.subr.bf16.mxu0 %v10701_v40  ;;  %5905 = vmatprep.subr.bf16.mxu1 %v10716_v1 }
0x48c6   : > { %v5639_v59 = vpop.f32.mrf.mxu0  ;;  %v5680_v23 = vpop.f32.mrf.mxu1 }
0x48c7   : > { %v5691_v33 = vrot.slane %v5639_v59, 7  ;;  %v5693_v24 = vrot.slane %v5680_v23, 7 }
0x48c8   : > { %v5641_v20 = vpop.f32.mrf.mxu0  ;;  %v5682_v34 = vpop.f32.mrf.mxu1 }
0x48c9   : > { %v5699_v48 = vadd.f32 %v5691_v33, %v10841_v6  ;;  %v5692_v12 = vrot.slane %v5641_v20, 7  ;;  %v5701_v50 = vadd.f32 %v5693_v24, %v10849_v52  ;;  %v5694_v11 = vrot.slane %v5682_v34, 7 }
0x48ca   : > { %v5643_v51 = vpop.f32.mrf.mxu0  ;;  %v5684_v53 = vpop.f32.mrf.mxu1  ;;  %v5723_v20 = vrot.slane %v10857_v29, 7 }
0x48cb   : > { %v7651_v63 = vmul.f32 -1.442695, %v5699_v48  ;;  %v5700_v57 = vadd.f32 %v5692_v12, %v10844_v39  ;;  %v7653_v17 = vmul.f32 -1.442695, %v5701_v50  ;;  %v5702_v38 = vadd.f32 %v5694_v11, %v10853_v54 }
0x48cc   : > { %v5644_v49 = vpop.f32.mrf.mxu0  ;;  %v5685_v61 = vpop.f32.mrf.mxu1 }
0x48cd   : > { %8705 = vpow2.f32 %v7651_v63  ;;  %v7652_v60 = vmul.f32 -1.442695, %v5700_v57 }
0x48cf   : > { %8707 = vpow2.f32 %v7652_v60 }
0x48d0   : > { %8709 = vpow2.f32 %v7653_v17 }
0x48da   : > { %v8706_v19 = vpop.eup %8705 }
0x48db   : > { %v5712_v41 = vadd.f32 1.0, %v8706_v19 }
0x48dc   : > { %v8708_v30 = vpop.eup %8707 }
0x48dd   : > { %8711 = vrcp.f32 %v5712_v41  ;;  %v5713_v21 = vadd.f32 1.0, %v8708_v30  ;;  %v8710_v31 = vpop.eup %8709 }
0x48de   : > { %8713 = vtanh.f32 %v5702_v38  ;;  %v5714_v48 = vadd.f32 1.0, %v8710_v31 }
0x48df   : > { %8715 = vrcp.f32 %v5713_v21 }
0x48e0   : > { %8717 = vrcp.f32 %v5714_v48 }
0x48ea   : > { %v8712_v59 = vpop.eup %8711 }
0x48eb   : > { %v8714_v33 = vpop.eup %8713 }
0x48ec   : > { %v8716_v23 = vpop.eup %8715  ;;  %v5726_v34 = vmul.f32 %v8714_v33, %v8712_v59 }
0x48ed   : > { %v5725_v12 = vmul.f32 %v8716_v23, %v5723_v20  ;;  %v8718_v53 = vpop.eup %8717 }
0x48ef   : > { %v10903_v51 = vadd.f32 %v5726_v34, %v5725_v12 }
0x48f1   : > { %8719 = vtanh.f32 %v10903_v51 }
0x48fe   : > { %v8720_v63 = vpop.eup %8719 }
0x48ff   : > { %v10906_v57 = vmul.f32 %v8720_v63, %v8718_v53 }
0x4901   : > { %v5730_v49 = vpack.c.bf16 %v10906_v57, %v10906_v57 }
0x4903   : > { %v5732_v61 = vshrl.u32 %v5730_v49, 16 }
0x4905   : > { %5768 = vmatmul.mubr.bf16.vlgmr.msra.gmra.mxu0 %v5732_v61  ;;  %5809 = vmatmul.mubr.bf16.vlgmr.msra.gmra.mxu1 %v5732_v61 }
0x4906   : > { %5865 = vmatpush1.bf16.msra.mxu0 %v10703_v62  ;;  %5906 = vmatpush1.bf16.msra.mxu1 %v10718_v27 }
0x4907   : > { %5866 = vmatprep.subr.bf16.mxu0 %v10708_v15  ;;  %5907 = vmatprep.subr.bf16.mxu1 %v10728_v26 }
0x4908   : > { %5896 = vmatprep.mubr.bf16.mxu0 %v9317_v42  ;;  %5937 = vmatprep.mubr.bf16.mxu1 %v9317_v42 }
0x490a   : > { %5867 = vmatpush1.bf16.msra.mxu0 %v10711_v44  ;;  %5908 = vmatpush1.bf16.msra.mxu1 %v10730_v56 }
0x490b   : > { %5868 = vmatprep.subr.bf16.mxu0 %v10714_v45  ;;  %5909 = vmatprep.subr.bf16.mxu1 %v10738_v3 }
0x490e   : > { %5869 = vmatpush1.bf16.msra.mxu0 %v10721_v2  ;;  %5910 = vmatpush1.bf16.msra.mxu1 %v10742_v4 }
0x490f   : > { %5870 = vmatprep.subr.bf16.mxu0 %v10725_v9  ;;  %5911 = vmatprep.subr.bf16.mxu1 %v10745_v16 }
0x4912   : > { %5871 = vmatpush1.bf16.msra.mxu0 %v10734_v28  ;;  %5912 = vmatpush1.bf16.msra.mxu1 %v10754_v7 }
0x4913   : > { %5872 = vmatprep.subr.bf16.mxu0 %v10736_v58  ;;  %5913 = vmatprep.subr.bf16.mxu1 %v10757_v55 }
0x4916   : > { %5873 = vmatpush1.bf16.msra.mxu0 %v10748_v43  ;;  %5914 = vmatpush1.bf16.msra.mxu1 %v10766_v13 }
0x4917   : > { %5874 = vmatprep.subr.bf16.mxu0 %v10751_v5  ;;  %5915 = vmatprep.subr.bf16.mxu1 %v10769_v10 }
0x491a   : > { %5875 = vmatpush1.bf16.msra.mxu0 %v10760_v8  ;;  %5916 = vmatpush1.bf16.msra.mxu1 %v10778_v46 }
0x491b   : > { %5876 = vmatprep.subr.bf16.mxu0 %v10762_v18  ;;  %5917 = vmatprep.subr.bf16.mxu1 %v10781_v35 }
0x491e   : > { %5877 = vmatpush1.bf16.msra.mxu0 %v10772_v32  ;;  %5918 = vmatpush1.bf16.msra.mxu1 %v10788_v14 }
0x491f   : > { %5878 = vmatprep.subr.bf16.mxu0 %v10775_v22  ;;  %5919 = vmatprep.subr.bf16.mxu1 %v10791_v37 }
0x4922   : > { %5879 = vmatpush1.bf16.msra.mxu0 %v10784_v36  ;;  %5920 = vmatpush1.bf16.msra.mxu1 %v10795_v25 }
0x4923   : > { %5995 = vmatprep.subr.bf16.mxu0 %v10701_v40  ;;  %6036 = vmatprep.subr.bf16.mxu1 %v10716_v1 }
0x49c5   : > { %v5769_v29 = vpop.f32.mrf.mxu0  ;;  %v5810_v60 = vpop.f32.mrf.mxu1 }
0x49c6   : > { %v5821_v24 = vrot.slane %v5769_v29, 6  ;;  %v5823_v20 = vrot.slane %v5810_v60, 6 }
0x49c7   : > { %v5771_v50 = vpop.f32.mrf.mxu0  ;;  %v5812_v11 = vpop.f32.mrf.mxu1 }
0x49c8   : > { %v5829_v17 = vadd.f32 %v5821_v24, %v10841_v6  ;;  %v5822_v19 = vrot.slane %v5771_v50, 6  ;;  %v5831_v23 = vadd.f32 %v5823_v20, %v10849_v52  ;;  %v5824_v48 = vrot.slane %v5812_v11, 6 }
0x49c9   : > { %v5773_v38 = vpop.f32.mrf.mxu0  ;;  %v5814_v41 = vpop.f32.mrf.mxu1 }
0x49ca   : > { %v7654_v30 = vmul.f32 -1.442695, %v5829_v17  ;;  %v5830_v21 = vadd.f32 %v5822_v19, %v10844_v39  ;;  %v7656_v12 = vmul.f32 -1.442695, %v5831_v23  ;;  %v5832_v53 = vadd.f32 %v5824_v48, %v10853_v54 }
0x49cb   : > { %v5774_v31 = vpop.f32.mrf.mxu0  ;;  %v5815_v59 = vpop.f32.mrf.mxu1  ;;  %v5853_v17 = vrot.slane %v10903_v51, 7 }
0x49cc   : > { %8721 = vpow2.f32 %v7654_v30  ;;  %v7655_v33 = vmul.f32 -1.442695, %v5830_v21  ;;  %v6509_v59 = vsel %vm1126_vm1, %v10860_v47, %v10906_v57 }
0x49ce   : > { %8723 = vpow2.f32 %v7655_v33 }
0x49cf   : > { %8725 = vpow2.f32 %v7656_v12 }
0x49d9   : > { %v8722_v34 = vpop.eup %8721 }
0x49da   : > { %v5842_v63 = vadd.f32 1.0, %v8722_v34 }
0x49db   : > { %v8724_v49 = vpop.eup %8723 }
0x49dc   : > { %8727 = vrcp.f32 %v5842_v63  ;;  %v5843_v61 = vadd.f32 1.0, %v8724_v49  ;;  %v8726_v29 = vpop.eup %8725 }
0x49dd   : > { %8729 = vtanh.f32 %v5832_v53  ;;  %v5844_v19 = vadd.f32 1.0, %v8726_v29 }
0x49de   : > { %8731 = vrcp.f32 %v5843_v61 }
0x49df   : > { %8733 = vrcp.f32 %v5844_v19 }
0x49e9   : > { %v8728_v24 = vpop.eup %8727 }
0x49ea   : > { %v8730_v50 = vpop.eup %8729 }
0x49eb   : > { %v8732_v60 = vpop.eup %8731  ;;  %v5856_v11 = vmul.f32 %v8730_v50, %v8728_v24 }
0x49ec   : > { %v5855_v38 = vmul.f32 %v8732_v60, %v5853_v17  ;;  %v8734_v30 = vpop.eup %8733 }
0x49ee   : > { %v10949_v41 = vadd.f32 %v5856_v11, %v5855_v38 }
0x49f0   : > { %8735 = vtanh.f32 %v10949_v41 }
0x49fd   : > { %v8736_v21 = vpop.eup %8735 }
0x49fe   : > { %v5859_v31 = vmul.f32 %v8736_v21, %v8734_v30 }
0x4a00   : > { %v5860_v33 = vpack.c.bf16 %v5859_v31, %v5859_v31  ;;  %v10956_v20 = vsel %vm1128_vm2, %v6509_v59, %v5859_v31 }
0x4a02   : > { %v5862_v51 = vrot.slane %v5860_v33, 1 }
0x4a04   : > { %5897 = vmatmul.mubr.bf16.vlgmr.msra.gmra.mxu0 %v5862_v51  ;;  %5938 = vmatmul.mubr.bf16.vlgmr.msra.gmra.mxu1 %v5862_v51 }
0x4a05   : > { %5996 = vmatpush1.bf16.msra.mxu0 %v10703_v62  ;;  %6037 = vmatpush1.bf16.msra.mxu1 %v10718_v27 }
0x4a06   : > { %5997 = vmatprep.subr.bf16.mxu0 %v10708_v15  ;;  %6038 = vmatprep.subr.bf16.mxu1 %v10728_v26 }
0x4a07   : > { %6027 = vmatprep.mubr.bf16.mxu0 %v9317_v42  ;;  %6068 = vmatprep.mubr.bf16.mxu1 %v9317_v42 }
0x4a09   : > { %5998 = vmatpush1.bf16.msra.mxu0 %v10711_v44  ;;  %6039 = vmatpush1.bf16.msra.mxu1 %v10730_v56 }
0x4a0a   : > { %5999 = vmatprep.subr.bf16.mxu0 %v10714_v45  ;;  %6040 = vmatprep.subr.bf16.mxu1 %v10738_v3 }
0x4a0d   : > { %6000 = vmatpush1.bf16.msra.mxu0 %v10721_v2  ;;  %6041 = vmatpush1.bf16.msra.mxu1 %v10742_v4 }
0x4a0e   : > { %6001 = vmatprep.subr.bf16.mxu0 %v10725_v9  ;;  %6042 = vmatprep.subr.bf16.mxu1 %v10745_v16 }
0x4a11   : > { %6002 = vmatpush1.bf16.msra.mxu0 %v10734_v28  ;;  %6043 = vmatpush1.bf16.msra.mxu1 %v10754_v7 }
0x4a12   : > { %6003 = vmatprep.subr.bf16.mxu0 %v10736_v58  ;;  %6044 = vmatprep.subr.bf16.mxu1 %v10757_v55 }
0x4a15   : > { %6004 = vmatpush1.bf16.msra.mxu0 %v10748_v43  ;;  %6045 = vmatpush1.bf16.msra.mxu1 %v10766_v13 }
0x4a16   : > { %6005 = vmatprep.subr.bf16.mxu0 %v10751_v5  ;;  %6046 = vmatprep.subr.bf16.mxu1 %v10769_v10 }
0x4a19   : > { %6006 = vmatpush1.bf16.msra.mxu0 %v10760_v8  ;;  %6047 = vmatpush1.bf16.msra.mxu1 %v10778_v46 }
0x4a1a   : > { %6007 = vmatprep.subr.bf16.mxu0 %v10762_v18  ;;  %6048 = vmatprep.subr.bf16.mxu1 %v10781_v35 }
0x4a1d   : > { %6008 = vmatpush1.bf16.msra.mxu0 %v10772_v32  ;;  %6049 = vmatpush1.bf16.msra.mxu1 %v10788_v14 }
0x4a1e   : > { %6009 = vmatprep.subr.bf16.mxu0 %v10775_v22  ;;  %6050 = vmatprep.subr.bf16.mxu1 %v10791_v37 }
0x4a21   : > { %6010 = vmatpush1.bf16.msra.mxu0 %v10784_v36  ;;  %6051 = vmatpush1.bf16.msra.mxu1 %v10795_v25 }
0x4a22   : > { %6124 = vmatprep.subr.bf16.mxu0 %v10701_v40  ;;  %6165 = vmatprep.subr.bf16.mxu1 %v10716_v1 }
0x4ac4   : > { %v5898_v47 = vpop.f32.mrf.mxu0  ;;  %v5939_v57 = vpop.f32.mrf.mxu1 }
0x4ac5   : > { %v5950_v23 = vrot.slane %v5898_v47, 5  ;;  %v5952_v60 = vrot.slane %v5939_v57, 5 }
0x4ac6   : > { %v5900_v48 = vpop.f32.mrf.mxu0  ;;  %v5941_v12 = vpop.f32.mrf.mxu1 }
0x4ac7   : > { %v5958_v34 = vadd.f32 %v5950_v23, %v10841_v6  ;;  %v5951_v53 = vrot.slane %v5900_v48, 5  ;;  %v5960_v19 = vadd.f32 %v5952_v60, %v10849_v52  ;;  %v5953_v38 = vrot.slane %v5941_v12, 5 }
0x4ac8   : > { %v5902_v63 = vpop.f32.mrf.mxu0  ;;  %v5943_v49 = vpop.f32.mrf.mxu1  ;;  %v5982_v48 = vrot.slane %v10949_v41, 7 }
0x4ac9   : > { %v7657_v61 = vmul.f32 -1.442695, %v5958_v34  ;;  %v5959_v29 = vadd.f32 %v5951_v53, %v10844_v39  ;;  %v7659_v11 = vmul.f32 -1.442695, %v5960_v19  ;;  %v5961_v21 = vadd.f32 %v5953_v38, %v10853_v54 }
0x4aca   : > { %v5903_v24 = vpop.f32.mrf.mxu0  ;;  %v5944_v50 = vpop.f32.mrf.mxu1 }
0x4acb   : > { %8737 = vpow2.f32 %v7657_v61  ;;  %v7658_v17 = vmul.f32 -1.442695, %v5959_v29 }
0x4acd   : > { %8739 = vpow2.f32 %v7658_v17 }
0x4ace   : > { %8741 = vpow2.f32 %v7659_v11 }
0x4ad8   : > { %v8738_v30 = vpop.eup %8737 }
0x4ad9   : > { %v5971_v31 = vadd.f32 1.0, %v8738_v30 }
0x4ada   : > { %v8740_v59 = vpop.eup %8739 }
0x4adb   : > { %8743 = vrcp.f32 %v5971_v31  ;;  %v5972_v33 = vadd.f32 1.0, %v8740_v59  ;;  %v8742_v51 = vpop.eup %8741 }
0x4adc   : > { %8745 = vtanh.f32 %v5961_v21  ;;  %v5973_v34 = vadd.f32 1.0, %v8742_v51 }
0x4add   : > { %8747 = vrcp.f32 %v5972_v33 }
0x4ade   : > { %8749 = vrcp.f32 %v5973_v34 }
0x4ae8   : > { %v8744_v47 = vpop.eup %8743 }
0x4ae9   : > { %v8746_v23 = vpop.eup %8745 }
0x4aea   : > { %v8748_v57 = vpop.eup %8747  ;;  %v5985_v12 = vmul.f32 %v8746_v23, %v8744_v47 }
0x4aeb   : > { %v5984_v53 = vmul.f32 %v8748_v57, %v5982_v48  ;;  %v8750_v49 = vpop.eup %8749 }
0x4aed   : > { %v10997_v63 = vadd.f32 %v5985_v12, %v5984_v53 }
0x4aef   : > { %8751 = vtanh.f32 %v10997_v63 }
0x4afc   : > { %v8752_v61 = vpop.eup %8751 }
0x4afd   : > { %v5988_v29 = vmul.f32 %v8752_v61, %v8750_v49 }
0x4aff   : > { %v5989_v24 = vpack.c.bf16 %v5988_v29, %v5988_v29  ;;  %v11002_v50 = vsel %vm1130_vm3, %v10956_v20, %v5988_v29  ;;  %v6113_v29 = vrot.slane %v10997_v63, 7  ;;  %v11050_v63 = vld [vmem:[#allocation21 + $0xe0] ss:$16 sps:$4 sm:$0xff]  }
0x4b01   : > { %v5991_v17 = vshrl.u32 %v5989_v24, 16 }
0x4b03   : > { %v5993_v60 = vrot.slane %v5991_v17, 1 }
0x4b05   : > { %6028 = vmatmul.mubr.bf16.vlgmr.msra.gmra.mxu0 %v5993_v60  ;;  %6069 = vmatmul.mubr.bf16.vlgmr.msra.gmra.mxu1 %v5993_v60 }
0x4b06   : > { %6125 = vmatpush1.bf16.msra.mxu0 %v10703_v62  ;;  %6166 = vmatpush1.bf16.msra.mxu1 %v10718_v27 }
0x4b07   : > { %6126 = vmatprep.subr.bf16.mxu0 %v10708_v15  ;;  %6167 = vmatprep.subr.bf16.mxu1 %v10728_v26 }
0x4b08   : > { %6156 = vmatprep.mubr.bf16.mxu0 %v9317_v42  ;;  %6197 = vmatprep.mubr.bf16.mxu1 %v9317_v42 }
0x4b0a   : > { %6127 = vmatpush1.bf16.msra.mxu0 %v10711_v44  ;;  %6168 = vmatpush1.bf16.msra.mxu1 %v10730_v56 }
0x4b0b   : > { %6128 = vmatprep.subr.bf16.mxu0 %v10714_v45  ;;  %6169 = vmatprep.subr.bf16.mxu1 %v10738_v3 }
0x4b0e   : > { %6129 = vmatpush1.bf16.msra.mxu0 %v10721_v2  ;;  %6170 = vmatpush1.bf16.msra.mxu1 %v10742_v4 }
0x4b0f   : > { %6130 = vmatprep.subr.bf16.mxu0 %v10725_v9  ;;  %6171 = vmatprep.subr.bf16.mxu1 %v10745_v16 }
0x4b12   : > { %6131 = vmatpush1.bf16.msra.mxu0 %v10734_v28  ;;  %6172 = vmatpush1.bf16.msra.mxu1 %v10754_v7 }
0x4b13   : > { %6132 = vmatprep.subr.bf16.mxu0 %v10736_v58  ;;  %6173 = vmatprep.subr.bf16.mxu1 %v10757_v55 }
0x4b16   : > { %6133 = vmatpush1.bf16.msra.mxu0 %v10748_v43  ;;  %6174 = vmatpush1.bf16.msra.mxu1 %v10766_v13 }
0x4b17   : > { %6134 = vmatprep.subr.bf16.mxu0 %v10751_v5  ;;  %6175 = vmatprep.subr.bf16.mxu1 %v10769_v10 }
0x4b1a   : > { %6135 = vmatpush1.bf16.msra.mxu0 %v10760_v8  ;;  %6176 = vmatpush1.bf16.msra.mxu1 %v10778_v46 }
0x4b1b   : > { %6136 = vmatprep.subr.bf16.mxu0 %v10762_v18  ;;  %6177 = vmatprep.subr.bf16.mxu1 %v10781_v35 }
0x4b1e   : > { %6137 = vmatpush1.bf16.msra.mxu0 %v10772_v32  ;;  %6178 = vmatpush1.bf16.msra.mxu1 %v10788_v14 }
0x4b1f   : > { %6138 = vmatprep.subr.bf16.mxu0 %v10775_v22  ;;  %6179 = vmatprep.subr.bf16.mxu1 %v10791_v37 }
0x4b22   : > { %6139 = vmatpush1.bf16.msra.mxu0 %v10784_v36  ;;  %6180 = vmatpush1.bf16.msra.mxu1 %v10795_v25 }
0x4b23   : > { %6255 = vmatprep.subr.bf16.mxu0 %v10701_v40  ;;  %6296 = vmatprep.subr.bf16.mxu1 %v10716_v1 }
0x4bc5   : > { %v6029_v62 = vpop.f32.mrf.mxu0  ;;  %v6070_v15 = vpop.f32.mrf.mxu1 }
0x4bc6   : > { %v6081_v44 = vrot.slane %v6029_v62, 4  ;;  %v6083_v40 = vrot.slane %v6070_v15, 4 }
0x4bc7   : > { %v6031_v45 = vpop.f32.mrf.mxu0  ;;  %v6072_v41 = vpop.f32.mrf.mxu1 }
0x4bc8   : > { %v6089_v20 = vadd.f32 %v6081_v44, %v10841_v6  ;;  %v6082_v19 = vrot.slane %v6031_v45, 4  ;;  %v6091_v1 = vadd.f32 %v6083_v40, %v10849_v52  ;;  %v6084_v51 = vrot.slane %v6072_v41, 4 }
0x4bc9   : > { %v6033_v38 = vpop.f32.mrf.mxu0  ;;  %v6074_v11 = vpop.f32.mrf.mxu1 }
0x4bca   : > { %v7660_v30 = vmul.f32 -1.442695, %v6089_v20  ;;  %v6090_v21 = vadd.f32 %v6082_v19, %v10844_v39  ;;  %v7662_v47 = vmul.f32 -1.442695, %v6091_v1  ;;  %v6092_v48 = vadd.f32 %v6084_v51, %v10853_v54  ;;  %v11054_v11 = vld [vmem:[#allocation21 + $0xc4] ss:$16 sps:$4 sm:$0xff]  }
0x4bcb   : > { %v6034_v31 = vpop.f32.mrf.mxu0  ;;  %v6075_v59 = vpop.f32.mrf.mxu1 }
0x4bcc   : > { %8753 = vpow2.f32 %v7660_v30  ;;  %v7661_v33 = vmul.f32 -1.442695, %v6090_v21  ;;  %v11064_v30 = vld [vmem:[#allocation21 + $0xa4] ss:$16 sps:$4 sm:$0xff]  }
0x4bce   : > { %8755 = vpow2.f32 %v7661_v33 }
0x4bcf   : > { %8757 = vpow2.f32 %v7662_v47 }
0x4bd9   : > { %v8754_v23 = vpop.eup %8753 }
0x4bda   : > { %v6102_v57 = vadd.f32 1.0, %v8754_v23 }
0x4bdb   : > { %v8756_v34 = vpop.eup %8755 }
0x4bdc   : > { %8759 = vrcp.f32 %v6102_v57  ;;  %v6103_v53 = vadd.f32 1.0, %v8756_v34  ;;  %v8758_v12 = vpop.eup %8757 }
0x4bdd   : > { %8761 = vtanh.f32 %v6092_v48  ;;  %v6104_v17 = vadd.f32 1.0, %v8758_v12 }
0x4bde   : > { %8763 = vrcp.f32 %v6103_v53 }
0x4bdf   : > { %8765 = vrcp.f32 %v6104_v17  ;;  %v8826_v17 = vld [vmem:[#allocation21 + $0xac] ss:$16 sps:$4 sm:$0xff]  }
0x4be9   : > { %v8760_v49 = vpop.eup %8759 }
0x4bea   : > { %v8762_v61 = vpop.eup %8761 }
0x4beb   : > { %v8764_v24 = vpop.eup %8763  ;;  %v6116_v62 = vmul.f32 %v8762_v61, %v8760_v49  ;;  %v8823_v61 = vld [vmem:[#allocation21 + $0xe8] ss:$16 sps:$4 sm:$0xff]  }
0x4bec   : > { %v6115_v60 = vmul.f32 %v8764_v24, %v6113_v29  ;;  %v8766_v44 = vpop.eup %8765  ;;  %v8824_v29 = vld [vmem:[#allocation21 + $0xcc] ss:$16 sps:$4 sm:$0xff]   ;;  %v8825_v24 = vld [vmem:[#allocation21 + $0xc8] ss:$16 sps:$4 sm:$0xff]  }
0x4bee   : > { %v11043_v15 = vadd.f32 %v6116_v62, %v6115_v60  ;;  %v8827_v60 = vld [vmem:[#allocation21 + $0xa0] ss:$16 sps:$4 sm:$0xff]   ;;  %v8828_v62 = vld [vmem:[#allocation21 + $0xa8] ss:$16 sps:$4 sm:$0xff]  }
0x4bf0   : > { %8767 = vtanh.f32 %v11043_v15  ;;  %v6242_v59 = vrot.slane %v11043_v15, 7  ;;  %v8829_v15 = vld [vmem:[#allocation21 + $0x84] ss:$16 sps:$4 sm:$0xff]  }
0x4bfd   : > { %v8768_v45 = vpop.eup %8767 }
0x4bfe   : > { %v6119_v41 = vmul.f32 %v8768_v45, %v8766_v44  ;;  %v8830_v44 = vld [vmem:[#allocation21 + $0x8c] ss:$16 sps:$4 sm:$0xff]   ;;  %v8831_v45 = vld [vmem:[#allocation21 + $0x80] ss:$16 sps:$4 sm:$0xff]  }
0x4c00   : > { %v6120_v20 = vpack.c.bf16 %v6119_v41, %v6119_v41  ;;  %v11048_v19 = vsel %vm1132_vm4, %v11002_v50, %v6119_v41  ;;  %v11060_v50 = vld [vmem:[#allocation21 + $0xc0] ss:$16 sps:$4 sm:$0xff]   ;;  %v8832_v41 = vld [vmem:[#allocation21 + $0x88] ss:$16 sps:$4 sm:$0xff]  }
0x4c02   : > { %v6122_v38 = vrot.slane %v6120_v20, 2  ;;  %v8834_v20 = vld [vmem:[#allocation21 + $0x6c] ss:$16 sps:$4 sm:$0xff]  }
0x4c04   : > { %6157 = vmatmul.mubr.bf16.vlgmr.msra.gmra.mxu0 %v6122_v38  ;;  %6198 = vmatmul.mubr.bf16.vlgmr.msra.gmra.mxu1 %v6122_v38  ;;  %v8836_v38 = vld [vmem:[#allocation21 + $0x68] ss:$16 sps:$4 sm:$0xff]  }
0x4c05   : > { %6256 = vmatpush1.bf16.msra.mxu0 %v11050_v63  ;;  %6297 = vmatpush1.bf16.msra.mxu1 %v10718_v27  ;;  %v8821_v27 = vld [vmem:[#allocation21 + $0xe4] ss:$16 sps:$4 sm:$0xff]  }
0x4c06   : > { %6257 = vmatprep.subr.bf16.mxu0 %v11054_v11  ;;  %6298 = vmatprep.subr.bf16.mxu1 %v10728_v26 }
0x4c07   : > { %6287 = vmatprep.mubr.bf16.mxu0 %v9317_v42  ;;  %6328 = vmatprep.mubr.bf16.mxu1 %v9317_v42 }
0x4c09   : > { %6258 = vmatpush1.bf16.msra.mxu0 %v11060_v50  ;;  %6299 = vmatpush1.bf16.msra.mxu1 %v10730_v56 }
0x4c0a   : > { %6259 = vmatprep.subr.bf16.mxu0 %v11064_v30  ;;  %6300 = vmatprep.subr.bf16.mxu1 %v10738_v3 }
0x4c0d   : > { %6260 = vmatpush1.bf16.msra.mxu0 %v10721_v2  ;;  %6301 = vmatpush1.bf16.msra.mxu1 %v10742_v4  ;;  %v8822_v2 = vld [vmem:[#allocation21 + $0xec] ss:$16 sps:$4 sm:$0xff]  }
0x4c0e   : > { %6261 = vmatprep.subr.bf16.mxu0 %v10725_v9  ;;  %6302 = vmatprep.subr.bf16.mxu1 %v10745_v16 }
0x4c11   : > { %6262 = vmatpush1.bf16.msra.mxu0 %v10734_v28  ;;  %6303 = vmatpush1.bf16.msra.mxu1 %v10754_v7 }
0x4c12   : > { %6263 = vmatprep.subr.bf16.mxu0 %v10736_v58  ;;  %6304 = vmatprep.subr.bf16.mxu1 %v10757_v55 }
0x4c15   : > { %6264 = vmatpush1.bf16.msra.mxu0 %v10748_v43  ;;  %6305 = vmatpush1.bf16.msra.mxu1 %v10766_v13 }
0x4c16   : > { %6265 = vmatprep.subr.bf16.mxu0 %v10751_v5  ;;  %6306 = vmatprep.subr.bf16.mxu1 %v10769_v10 }
0x4c19   : > { %6266 = vmatpush1.bf16.msra.mxu0 %v10760_v8  ;;  %6307 = vmatpush1.bf16.msra.mxu1 %v10778_v46 }
0x4c1a   : > { %6267 = vmatprep.subr.bf16.mxu0 %v10762_v18  ;;  %6308 = vmatprep.subr.bf16.mxu1 %v10781_v35 }
0x4c1d   : > { %6268 = vmatpush1.bf16.msra.mxu0 %v10772_v32  ;;  %6309 = vmatpush1.bf16.msra.mxu1 %v10788_v14 }
0x4c1e   : > { %6269 = vmatprep.subr.bf16.mxu0 %v10775_v22  ;;  %6310 = vmatprep.subr.bf16.mxu1 %v10791_v37 }
0x4c21   : > { %6270 = vmatpush1.bf16.msra.mxu0 %v10784_v36  ;;  %6311 = vmatpush1.bf16.msra.mxu1 %v10795_v25 }
0x4c22   : > { %6384 = vmatprep.subr.bf16.mxu0 %v8821_v27  ;;  %6425 = vmatprep.subr.bf16.mxu1 %v8822_v2  ;;  %v8841_v27 = vld [vmem:[#allocation21 + $0x24] ss:$16 sps:$4 sm:$0xff]   ;;  %v8842_v2 = vld [vmem:[#allocation21 + $0x2c] ss:$16 sps:$4 sm:$0xff]  }
0x4cc4   : > { %v6158_v9 = vpop.f32.mrf.mxu0  ;;  %v6199_v26 = vpop.f32.mrf.mxu1 }
0x4cc5   : > { %v6210_v56 = vrot.slane %v6158_v9, 3  ;;  %v6212_v13 = vrot.slane %v6199_v26, 3  ;;  %v8843_v9 = vld [vmem:[#allocation21 + $0x20] ss:$16 sps:$4 sm:$0xff]   ;;  %v8844_v26 = vld [vmem:[#allocation21 + $0x28] ss:$16 sps:$4 sm:$0xff]  }
0x4cc6   : > { %v6160_v28 = vpop.f32.mrf.mxu0  ;;  %v6201_v58 = vpop.f32.mrf.mxu1 }
0x4cc7   : > { %v6218_v3 = vadd.f32 %v6210_v56, %v10841_v6  ;;  %v6211_v4 = vrot.slane %v6160_v28, 3  ;;  %v6220_v10 = vadd.f32 %v6212_v13, %v10849_v52  ;;  %v6213_v32 = vrot.slane %v6201_v58, 3  ;;  %v8845_v56 = vld [vmem:[#allocation21 + $0x4] ss:$16 sps:$4 sm:$0xff]   ;;  %v8846_v28 = vld [vmem:[#allocation21 + $0xc] ss:$16 sps:$4 sm:$0xff]  }
0x4cc8   : > { %v6162_v16 = vpop.f32.mrf.mxu0  ;;  %v6203_v43 = vpop.f32.mrf.mxu1  ;;  %v8847_v58 = vld [vmem:[#allocation21] ss:$16 sps:$4 sm:$0xff]  }
0x4cc9   : > { %v7663_v5 = vmul.f32 -1.442695, %v6218_v3  ;;  %v6219_v7 = vadd.f32 %v6211_v4, %v10844_v39  ;;  %v7665_v22 = vmul.f32 -1.442695, %v6220_v10  ;;  %v6221_v35 = vadd.f32 %v6213_v32, %v10853_v54  ;;  %v8848_v3 = vld [vmem:[#allocation21 + $0x8] ss:$16 sps:$4 sm:$0xff]  }
0x4cca   : > { %v6163_v55 = vpop.f32.mrf.mxu0  ;;  %v6204_v8 = vpop.f32.mrf.mxu1 }
0x4ccb   : > { %8769 = vpow2.f32 %v7663_v5  ;;  %v7664_v18 = vmul.f32 -1.442695, %v6219_v7 }
0x4ccd   : > { %8771 = vpow2.f32 %v7664_v18 }
0x4cce   : > { %8773 = vpow2.f32 %v7665_v22 }
0x4cd8   : > { %v8770_v46 = vpop.eup %8769 }
0x4cd9   : > { %v6231_v36 = vadd.f32 1.0, %v8770_v46 }
0x4cda   : > { %v8772_v14 = vpop.eup %8771 }
0x4cdb   : > { %8775 = vrcp.f32 %v6231_v36  ;;  %v6232_v37 = vadd.f32 1.0, %v8772_v14  ;;  %v8774_v25 = vpop.eup %8773 }
0x4cdc   : > { %8777 = vtanh.f32 %v6221_v35  ;;  %v6233_v40 = vadd.f32 1.0, %v8774_v25 }
0x4cdd   : > { %8779 = vrcp.f32 %v6232_v37 }
0x4cde   : > { %8781 = vrcp.f32 %v6233_v40 }
0x4ce8   : > { %v8776_v21 = vpop.eup %8775 }
0x4ce9   : > { %v8778_v31 = vpop.eup %8777 }
0x4cea   : > { %v8780_v33 = vpop.eup %8779  ;;  %v6245_v51 = vmul.f32 %v8778_v31, %v8776_v21 }
0x4ceb   : > { %v6244_v1 = vmul.f32 %v8780_v33, %v6242_v59  ;;  %v8782_v23 = vpop.eup %8781 }
0x4ced   : > { %v11095_v47 = vadd.f32 %v6245_v51, %v6244_v1 }
0x4cef   : > { %8783 = vtanh.f32 %v11095_v47  ;;  %v6373_v51 = vrot.slane %v11095_v47, 7 }
0x4cfc   : > { %v8784_v48 = vpop.eup %8783 }
0x4cfd   : > { %v6248_v57 = vmul.f32 %v8784_v48, %v8782_v23 }
0x4cff   : > { %v6249_v34 = vpack.c.bf16 %v6248_v57, %v6248_v57  ;;  %v11100_v53 = vsel %vm1134_vm5, %v11048_v19, %v6248_v57  ;;  %v8835_v19 = vld [vmem:[#allocation21 + $0x60] ss:$16 sps:$4 sm:$0xff]  }
0x4d01   : > { %v6251_v12 = vshrl.u32 %v6249_v34, 16 }
0x4d03   : > { %v6253_v49 = vrot.slane %v6251_v12, 2 }
0x4d05   : > { %6288 = vmatmul.mubr.bf16.vlgmr.msra.gmra.mxu0 %v6253_v49  ;;  %6329 = vmatmul.mubr.bf16.vlgmr.msra.gmra.mxu1 %v6253_v49 }
0x4d06   : > { %6385 = vmatpush1.bf16.msra.mxu0 %v11050_v63  ;;  %6426 = vmatpush1.bf16.msra.mxu1 %v8823_v61  ;;  %v8837_v63 = vld [vmem:[#allocation21 + $0x44] ss:$16 sps:$4 sm:$0xff]  }
0x4d07   : > { %6386 = vmatprep.subr.bf16.mxu0 %v11054_v11  ;;  %6427 = vmatprep.subr.bf16.mxu1 %v8824_v29  ;;  %v8838_v11 = vld [vmem:[#allocation21 + $0x4c] ss:$16 sps:$4 sm:$0xff]  }
0x4d08   : > { %6416 = vmatprep.mubr.bf16.mxu0 %v9317_v42  ;;  %6457 = vmatprep.mubr.bf16.mxu1 %v9317_v42  ;;  %v8833_v42 = vld [vmem:[#allocation21 + $0x64] ss:$16 sps:$4 sm:$0xff]  }
0x4d0a   : > { %6387 = vmatpush1.bf16.msra.mxu0 %v11060_v50  ;;  %6428 = vmatpush1.bf16.msra.mxu1 %v8825_v24  ;;  %v8839_v50 = vld [vmem:[#allocation21 + $0x40] ss:$16 sps:$4 sm:$0xff]  }
0x4d0b   : > { %6388 = vmatprep.subr.bf16.mxu0 %v11064_v30  ;;  %6429 = vmatprep.subr.bf16.mxu1 %v8826_v17  ;;  %v8840_v30 = vld [vmem:[#allocation21 + $0x48] ss:$16 sps:$4 sm:$0xff]  }
0x4d0e   : > { %6389 = vmatpush1.bf16.msra.mxu0 %v8827_v60  ;;  %6430 = vmatpush1.bf16.msra.mxu1 %v8828_v62 }
0x4d0f   : > { %6390 = vmatprep.subr.bf16.mxu0 %v8829_v15  ;;  %6431 = vmatprep.subr.bf16.mxu1 %v8830_v44  ;;  %v8849_v44 = vld [vmem:[%s10838_s11] sm:$0xff] }
0x4d12   : > { %6391 = vmatpush1.bf16.msra.mxu0 %v8831_v45  ;;  %6432 = vmatpush1.bf16.msra.mxu1 %v8832_v41 }
0x4d13   : > { %6392 = vmatprep.subr.bf16.mxu0 %v8833_v42  ;;  %6433 = vmatprep.subr.bf16.mxu1 %v8834_v20 }
0x4d16   : > { %6393 = vmatpush1.bf16.msra.mxu0 %v8835_v19  ;;  %6434 = vmatpush1.bf16.msra.mxu1 %v8836_v38  ;;  %v8850_v38 = vld [vmem:[%s10838_s11 + $0x8] sm:$0xff] }
0x4d17   : > { %6394 = vmatprep.subr.bf16.mxu0 %v8837_v63  ;;  %6435 = vmatprep.subr.bf16.mxu1 %v8838_v11 }
0x4d1a   : > { %6395 = vmatpush1.bf16.msra.mxu0 %v8839_v50  ;;  %6436 = vmatpush1.bf16.msra.mxu1 %v8840_v30 }
0x4d1b   : > { %6396 = vmatprep.subr.bf16.mxu0 %v8841_v27  ;;  %6437 = vmatprep.subr.bf16.mxu1 %v8842_v2  ;;  %v8851_v27 = vld [vmem:[%s10838_s11 + $0x10] sm:$0xff] }
0x4d1e   : > { %6397 = vmatpush1.bf16.msra.mxu0 %v8843_v9  ;;  %6438 = vmatpush1.bf16.msra.mxu1 %v8844_v26 }
0x4d1f   : > { %6398 = vmatprep.subr.bf16.mxu0 %v8845_v56  ;;  %6439 = vmatprep.subr.bf16.mxu1 %v8846_v28  ;;  %v8852_v28 = vld [vmem:[%s10838_s11 + $0x18] sm:$0xff] }
0x4d22   : > { %6399 = vmatpush1.bf16.msra.mxu0 %v8847_v58  ;;  %6440 = vmatpush1.bf16.msra.mxu1 %v8848_v3 }
0x4dc5   : > { %v6289_v4 = vpop.f32.mrf.mxu0  ;;  %v6330_v16 = vpop.f32.mrf.mxu1 }
0x4dc6   : > { %v6341_v43 = vrot.slane %v6289_v4, 2  ;;  %v6343_v36 = vrot.slane %v6330_v16, 2 }
0x4dc7   : > { %v6291_v5 = vpop.f32.mrf.mxu0  ;;  %v6332_v7 = vpop.f32.mrf.mxu1 }
0x4dc8   : > { %v6349_v55 = vadd.f32 %v6341_v43, %v10841_v6  ;;  %v6342_v8 = vrot.slane %v6291_v5, 2  ;;  %v6351_v14 = vadd.f32 %v6343_v36, %v10849_v52  ;;  %v6344_v37 = vrot.slane %v6332_v7, 2 }
0x4dc9   : > { %v6293_v18 = vpop.f32.mrf.mxu0  ;;  %v6334_v13 = vpop.f32.mrf.mxu1 }
0x4dca   : > { %v7666_v10 = vmul.f32 -1.442695, %v6349_v55  ;;  %v6350_v32 = vadd.f32 %v6342_v8, %v10844_v39  ;;  %v7668_v25 = vmul.f32 -1.442695, %v6351_v14  ;;  %v6352_v31 = vadd.f32 %v6344_v37, %v10853_v54  ;;  %v11137_v14 = vld [vmem:[#allocation21 + $0xe4] ss:$16 sps:$4 sm:$0xff] (%p5277_p11)  }
0x4dcb   : > { %v6294_v22 = vpop.f32.mrf.mxu0  ;;  %v6335_v46 = vpop.f32.mrf.mxu1  ;;  %v11141_v37 = vld [vmem:[#allocation21 + $0xe0] ss:$16 sps:$4 sm:$0xff] (%p5277_p11)   ;;  %6724 = vmatprep.subr.bf16.mxu0 (%p5277_p11), %v11137_v14 }
0x4dcc   : > { %8785 = vpow2.f32 %v7666_v10  ;;  %v7667_v35 = vmul.f32 -1.442695, %v6350_v32 }
0x4dce   : > { %8787 = vpow2.f32 %v7667_v35 }
0x4dcf   : > { %8789 = vpow2.f32 %v7668_v25  ;;  %v11144_v25 = vld [vmem:[#allocation21 + $0xc4] ss:$16 sps:$4 sm:$0xff] (%p5277_p11)  }
0x4dd9   : > { %v8786_v21 = vpop.eup %8785 }
0x4dda   : > { %v6362_v6 = vadd.f32 1.0, %v8786_v21  ;;  %v11147_v21 = vld [vmem:[#allocation21 + $0xc0] ss:$16 sps:$4 sm:$0xff] (%p5277_p11)  }
0x4ddb   : > { %v8788_v59 = vpop.eup %8787 }
0x4ddc   : > { %8791 = vrcp.f32 %v6362_v6  ;;  %v6363_v33 = vadd.f32 1.0, %v8788_v59  ;;  %v8790_v39 = vpop.eup %8789  ;;  %v11152_v6 = vld [vmem:[#allocation21 + $0xec] ss:$16 sps:$4 sm:$0xff] (%p5277_p11)  }
0x4ddd   : > { %8793 = vtanh.f32 %v6352_v31  ;;  %v6364_v48 = vadd.f32 1.0, %v8790_v39  ;;  %v11150_v31 = vld [vmem:[#allocation21 + $0xa4] ss:$16 sps:$4 sm:$0xff] (%p5277_p11)   ;;  %6765 = vmatprep.subr.bf16.mxu1 (%p5277_p11), %v11152_v6 }
0x4dde   : > { %8795 = vrcp.f32 %v6363_v33  ;;  %v11157_v33 = vld [vmem:[#allocation21 + $0xa0] ss:$16 sps:$4 sm:$0xff] (%p5277_p11)   ;;  %v11161_v39 = vld [vmem:[#allocation21 + $0x84] ss:$16 sps:$4 sm:$0xff] (%p5277_p11)  }
0x4ddf   : > { %8797 = vrcp.f32 %v6364_v48  ;;  %v11174_v48 = vld [vmem:[#allocation21 + $0xac] ss:$16 sps:$4 sm:$0xff] (%p5277_p11)  }
0x4de9   : > { %v8792_v40 = vpop.eup %8791 }
0x4dea   : > { %v8794_v1 = vpop.eup %8793 }
0x4deb   : > { %v8796_v23 = vpop.eup %8795  ;;  %v6376_v57 = vmul.f32 %v8794_v1, %v8792_v40  ;;  %v11164_v40 = vld [vmem:[#allocation21 + $0xcc] ss:$16 sps:$4 sm:$0xff] (%p5277_p11)   ;;  %v11166_v1 = vld [vmem:[#allocation21 + $0xc8] ss:$16 sps:$4 sm:$0xff] (%p5277_p11)  }
0x4dec   : > { %v6375_v52 = vmul.f32 %v8796_v23, %v6373_v51  ;;  %v8798_v54 = vpop.eup %8797  ;;  %v11170_v51 = vld [vmem:[#allocation21 + $0x80] ss:$16 sps:$4 sm:$0xff] (%p5277_p11)   ;;  %v11172_v23 = vld [vmem:[#allocation21 + $0x64] ss:$16 sps:$4 sm:$0xff] (%p5277_p11)  }
0x4dee   : > { %v6377_v34 = vadd.f32 %v6376_v57, %v6375_v52  ;;  %v11178_v52 = vld [vmem:[#allocation21 + $0xa8] ss:$16 sps:$4 sm:$0xff] (%p5277_p11)   ;;  %v11181_v57 = vld [vmem:[#allocation21 + $0x8c] ss:$16 sps:$4 sm:$0xff] (%p5277_p11)  }
0x4df0   : > { %8799 = vtanh.f32 %v6377_v34  ;;  %v6502_v55 = vrot.slane %v6377_v34, 7  ;;  %v11184_v34 = vld [vmem:[#allocation21 + $0x60] ss:$16 sps:$4 sm:$0xff] (%p5277_p11)  }
0x4dfd   : > { %v8800_v12 = vpop.eup %8799 }
0x4dfe   : > { %v6379_v49 = vmul.f32 %v8800_v12, %v8798_v54  ;;  %v11187_v54 = vld [vmem:[#allocation21 + $0x44] ss:$16 sps:$4 sm:$0xff] (%p5277_p11)   ;;  %v11190_v12 = vld [vmem:[#allocation21 + $0x88] ss:$16 sps:$4 sm:$0xff] (%p5277_p11)  }
0x4e00   : > { %v6380_v61 = vpack.c.bf16 %v6379_v49, %v6379_v49  ;;  %v6517_v29 = vsel %vm1136_vm6, %v11100_v53, %v6379_v49  ;;  %v11193_v49 = vld [vmem:[#allocation21 + $0x6c] ss:$16 sps:$4 sm:$0xff] (%p5277_p11)  }
0x4e02   : > { %v6382_v24 = vrot.slane %v6380_v61, 3  ;;  %v11196_v61 = vld [vmem:[#allocation21 + $0x40] ss:$16 sps:$4 sm:$0xff] (%p5277_p11)  }
0x4e04   : > { %6417 = vmatmul.mubr.bf16.vlgmr.msra.gmra.mxu0 %v6382_v24  ;;  %6458 = vmatmul.mubr.bf16.vlgmr.msra.gmra.mxu1 %v6382_v24  ;;  %v11202_v24 = vld [vmem:[#allocation21 + $0x68] ss:$16 sps:$4 sm:$0xff] (%p5277_p11)  }
0x4e05   :  { %6756 = vmatprep.mubr.bf16.mxu0 (%p5277_p11), %v9311_v0  ;;  %6797 = vmatprep.mubr.bf16.mxu1 (%p5277_p11), %v9311_v0 }
0x4e06   :  { %6725 = vmatpush1.bf16.msra.mxu0 (%p5277_p11), %v11141_v37 }
0x4e07   :  { %6726 = vmatprep.subr.bf16.mxu0 (%p5277_p11), %v11144_v25 }
0x4e0a   :  { %6727 = vmatpush1.bf16.msra.mxu0 (%p5277_p11), %v11147_v21 }
0x4e0b   :  { %6728 = vmatprep.subr.bf16.mxu0 (%p5277_p11), %v11150_v31 }
0x4e0e   :  { %6729 = vmatpush1.bf16.msra.mxu0 (%p5277_p11), %v11157_v33 }
0x4e0f   :  { %6730 = vmatprep.subr.bf16.mxu0 (%p5277_p11), %v11161_v39 }
0x4e12   :  { %6731 = vmatpush1.bf16.msra.mxu0 (%p5277_p11), %v11170_v51 }
0x4e13   :  { %6732 = vmatprep.subr.bf16.mxu0 (%p5277_p11), %v11172_v23 }
0x4e16   :  { %6733 = vmatpush1.bf16.msra.mxu0 (%p5277_p11), %v11184_v34 }
0x4e17   :  { %6734 = vmatprep.subr.bf16.mxu0 (%p5277_p11), %v11187_v54 }
0x4e1a   :  { %6735 = vmatpush1.bf16.msra.mxu0 (%p5277_p11), %v11196_v61 }
0x4ec4   : > { %v6418_v47 = vpop.f32.mrf.mxu0  ;;  %v6459_v17 = vpop.f32.mrf.mxu1 }
0x4ec5   : > { %v6470_v60 = vrot.slane %v6418_v47, 1  ;;  %v6472_v30 = vrot.slane %v6459_v17, 1  ;;  %v11205_v47 = vld [vmem:[#allocation21 + $0x4c] ss:$16 sps:$4 sm:$0xff] (%p5277_p11)  }
0x4ec6   : > { %v6420_v62 = vpop.f32.mrf.mxu0  ;;  %v6461_v15 = vpop.f32.mrf.mxu1 }
0x4ec7   : > { %v6478_v45 = vadd.f32 %v8849_v44, %v6470_v60  ;;  %v6471_v41 = vrot.slane %v6420_v62, 1  ;;  %v6480_v2 = vadd.f32 %v8851_v27, %v6472_v30  ;;  %v6473_v9 = vrot.slane %v6461_v15, 1  ;;  %v11210_v60 = vld [vmem:[#allocation21 + $0x20] ss:$16 sps:$4 sm:$0xff] (%p5277_p11)   ;;  %v11213_v62 = vld [vmem:[#allocation21 + $0x4] ss:$16 sps:$4 sm:$0xff] (%p5277_p11)  }
0x4ec8   : > { %v6422_v42 = vpop.f32.mrf.mxu0  ;;  %v6463_v20 = vpop.f32.mrf.mxu1  ;;  %v11216_v15 = vld [vmem:[#allocation21 + $0x48] ss:$16 sps:$4 sm:$0xff] (%p5277_p11)   ;;  %v11219_v44 = vld [vmem:[#allocation21 + $0x2c] ss:$16 sps:$4 sm:$0xff] (%p5277_p11)  }
0x4ec9   : > { %v7669_v19 = vmul.f32 -1.442695, %v6478_v45  ;;  %v6479_v63 = vadd.f32 %v8850_v38, %v6471_v41  ;;  %v7671_v26 = vmul.f32 -1.442695, %v6480_v2  ;;  %v6481_v58 = vadd.f32 %v8852_v28, %v6473_v9  ;;  %v11222_v41 = vld [vmem:[#allocation21] ss:$16 sps:$4 sm:$0xff] (%p5277_p11)  }
0x4eca   : > { %v6423_v11 = vpop.f32.mrf.mxu0  ;;  %v6464_v53 = vpop.f32.mrf.mxu1  ;;  %v11226_v42 = vld [vmem:[#allocation21 + $0x28] ss:$16 sps:$4 sm:$0xff] (%p5277_p11)   ;;  %v11229_v20 = vld [vmem:[#allocation21 + $0xc] ss:$16 sps:$4 sm:$0xff] (%p5277_p11)  }
0x4ecb   : > { %8801 = vpow2.f32 %v7669_v19  ;;  %v7670_v50 = vmul.f32 -1.442695, %v6479_v63  ;;  %v11233_v38 = vld [vmem:[#allocation21 + $0x8] ss:$16 sps:$4 sm:$0xff] (%p5277_p11)   ;;  %v11275_v53 = vld [vmem:[#allocation4 + $0x48] sm:$0xf] (%p5277_p11) }
0x4ecc   :  { %v11273_v63 = vld [vmem:[#allocation4 + $0x40] sm:$0xf] (%p5277_p11) }
0x4ecd   : > { %8803 = vpow2.f32 %v7670_v50 }
0x4ece   : > { %8805 = vpow2.f32 %v7671_v26 }
0x4ed8   : > { %v8802_v56 = vpop.eup %8801 }
0x4ed9   : > { %v6491_v3 = vadd.f32 1.0, %v8802_v56 }
0x4eda   : > { %v8804_v4 = vpop.eup %8803 }
0x4edb   : > { %8807 = vrcp.f32 %v6491_v3  ;;  %v6492_v16 = vadd.f32 1.0, %v8804_v4  ;;  %v8806_v43 = vpop.eup %8805  ;;  %v11279_v3 = vld [vmem:[#allocation4 + $0x50] sm:$0xf] (%p5277_p11) }
0x4edc   : > { %8809 = vtanh.f32 %v6481_v58  ;;  %v6493_v18 = vadd.f32 1.0, %v8806_v43 }
0x4edd   : > { %8811 = vrcp.f32 %v6492_v16 }
0x4ede   : > { %8813 = vrcp.f32 %v6493_v18 }
0x4ee8   : > { %v8808_v5 = vpop.eup %8807 }
0x4ee9   : > { %v8810_v7 = vpop.eup %8809 }
0x4eea   : > { %v8812_v8 = vpop.eup %8811  ;;  %v6505_v10 = vmul.f32 %v8810_v7, %v8808_v5  ;;  %v11282_v5 = vld [vmem:[#allocation4 + $0x58] sm:$0xf] (%p5277_p11) }
0x4eeb   : > { %v6504_v13 = vmul.f32 %v8812_v8, %v6502_v55  ;;  %v8814_v22 = vpop.eup %8813 }
0x4eed   : > { %v11119_v59 = vadd.f32 %v6505_v10, %v6504_v13  }
0x4eef   : > { %v11415_v32 = vmov %v11119_v59 }
0x4ef0   : > { %8815 = vtanh.f32 %v11415_v32  ;;  %v11417_v59 = vmov %v11415_v32 }
0x4ef1   :  { %v11154_v59 = vld [vmem:[#allocation21 + $0xe8] ss:$16 sps:$4 sm:$0xff] (%p5277_p11)  }
0x4ef2   :  { %6766 = vmatpush1.bf16.msra.mxu1 (%p5277_p11), %v11154_v59 }
0x4ef3   :  { %6767 = vmatprep.subr.bf16.mxu1 (%p5277_p11), %v11164_v40 }
0x4ef6   :  { %6768 = vmatpush1.bf16.msra.mxu1 (%p5277_p11), %v11166_v1 }
0x4ef7   :  { %6769 = vmatprep.subr.bf16.mxu1 (%p5277_p11), %v11174_v48 }
0x4efa   :  { %6770 = vmatpush1.bf16.msra.mxu1 (%p5277_p11), %v11178_v52 }
0x4efb   :  { %6771 = vmatprep.subr.bf16.mxu1 (%p5277_p11), %v11181_v57 }
0x4efd   : > { %v8816_v46 = vpop.eup %8815 }
0x4efe   : > { %v11122_v50 = vmul.f32 %v8816_v46, %v8814_v22   ;;  %5279 = sbr.rel (!%p5277_p11) target bundleno = 18153 (0x46e9), region = 179  ;;  %6772 = vmatpush1.bf16.msra.mxu1 (%p5277_p11), %v11190_v12 }
0x4eff   :  { %6773 = vmatprep.subr.bf16.mxu1 (%p5277_p11), %v11193_v49 }
0x4f00   : > { %v11416_v35 = vmov %v11122_v50 }
0x4f01   : > { %v6519_v36 = vsel %vm1138_vm7, %v6517_v29, %v11416_v35  ;;  %v11418_v50 = vmov %v11416_v35  ;;  %v11198_v29 = vld [vmem:[#allocation21 + $0x24] ss:$16 sps:$4 sm:$0xff] (%p5277_p11)   ;;  %v6526_v17 = vpack.c.bf16 (%p5277_p11), %v11416_v35, %v11416_v35  ;;  %v6830_v35 = vrot.slane (%p5277_p11), %v11415_v32, 7 }
0x4f02   : > { %6521 = vst [vmem:[%s6520_s30] sm:$0xff] %v6519_v36  ;;  %6736 = vmatprep.subr.bf16.mxu0 (%p5277_p11), %v11198_v29  ;;  %6774 = vmatpush1.bf16.msra.mxu1 (%p5277_p11), %v11202_v24 }
0x4f03   :  { %6775 = vmatprep.subr.bf16.mxu1 %v11205_v47  ;;  %v6560_v45 = vshrl.u32 %v6526_v17, 16  ;;  %6737 = vmatpush1.bf16.msra.mxu0 %v11210_v60 }
0x4f04   :  { %6738 = vmatprep.subr.bf16.mxu0 %v11213_v62 }
0x4f05   :  { %v6562_v19 = vrot.slane %v6560_v45, 3 }
0x4f06   :  { %6776 = vmatpush1.bf16.msra.mxu1 %v11216_v15 }
0x4f07   :  { %6777 = vmatprep.subr.bf16.mxu1 %v11219_v44  ;;  %6739 = vmatpush1.bf16.msra.mxu0 %v11222_v41 }
0x4f08   :  { %6838 = vmatprep.subr.bf16.mxu0 %v11137_v14 }
0x4f0a   :  { %6778 = vmatpush1.bf16.msra.mxu1 %v11226_v42  ;;  %6757 = vmatmul.mubr.bf16.vlgmr.msra.gmra.mxu0 %v6562_v19 }
0x4f0b   :  { %6779 = vmatprep.subr.bf16.mxu1 %v11229_v20  ;;  %6839 = vmatpush1.bf16.msra.mxu0 %v11141_v37 }
0x4f0c   :  { %6870 = vmatprep.mubr.bf16.mxu0 %v9311_v0  ;;  %6840 = vmatprep.subr.bf16.mxu0 %v11144_v25 }
0x4f0e   :  { %6780 = vmatpush1.bf16.msra.mxu1 %v11233_v38 }
0x4f0f   :  { %6879 = vmatprep.subr.bf16.mxu1 %v11152_v6  ;;  %6841 = vmatpush1.bf16.msra.mxu0 %v11147_v21 }
0x4f10   :  { %6842 = vmatprep.subr.bf16.mxu0 %v11150_v31 }
0x4f11   :  { %6798 = vmatmul.mubr.bf16.vlgmr.msra.gmra.mxu1 %v6562_v19 }
0x4f12   :  { %6880 = vmatpush1.bf16.msra.mxu1 %v11154_v59  ;;  %6911 = vmatprep.mubr.bf16.mxu1 %v9311_v0 }
0x4f13   :  { %6881 = vmatprep.subr.bf16.mxu1 %v11164_v40  ;;  %6843 = vmatpush1.bf16.msra.mxu0 %v11157_v33 }
0x4f14   :  { %6844 = vmatprep.subr.bf16.mxu0 %v11161_v39 }
0x4f16   :  { %6882 = vmatpush1.bf16.msra.mxu1 %v11166_v1 }
0x4f17   :  { %6883 = vmatprep.subr.bf16.mxu1 %v11174_v48  ;;  %6845 = vmatpush1.bf16.msra.mxu0 %v11170_v51 }
0x4f18   :  { %6846 = vmatprep.subr.bf16.mxu0 %v11172_v23 }
0x4f1a   :  { %6884 = vmatpush1.bf16.msra.mxu1 %v11178_v52 }
0x4f1b   :  { %6885 = vmatprep.subr.bf16.mxu1 %v11181_v57  ;;  %6847 = vmatpush1.bf16.msra.mxu0 %v11184_v34 }
0x4f1c   :  { %6848 = vmatprep.subr.bf16.mxu0 %v11187_v54 }
0x4f1e   :  { %6886 = vmatpush1.bf16.msra.mxu1 %v11190_v12 }
0x4f1f   :  { %6887 = vmatprep.subr.bf16.mxu1 %v11193_v49  ;;  %6849 = vmatpush1.bf16.msra.mxu0 %v11196_v61 }
0x4f20   :  { %6850 = vmatprep.subr.bf16.mxu0 %v11198_v29 }
0x4f22   :  { %6888 = vmatpush1.bf16.msra.mxu1 %v11202_v24 }
0x4f23   :  { %6889 = vmatprep.subr.bf16.mxu1 %v11205_v47  ;;  %6851 = vmatpush1.bf16.msra.mxu0 %v11210_v60 }
0x4f24   :  { %6852 = vmatprep.subr.bf16.mxu0 %v11213_v62 }
0x4f26   :  { %6890 = vmatpush1.bf16.msra.mxu1 %v11216_v15 }
0x4f27   :  { %6891 = vmatprep.subr.bf16.mxu1 %v11219_v44  ;;  %6853 = vmatpush1.bf16.msra.mxu0 %v11222_v41 }
0x4f28   :  { %6968 = vmatprep.subr.bf16.mxu0 %v11137_v14 }
0x4f2a   :  { %6892 = vmatpush1.bf16.msra.mxu1 %v11226_v42 }
0x4f2b   :  { %6893 = vmatprep.subr.bf16.mxu1 %v11229_v20 }
0x4f2e   :  { %6894 = vmatpush1.bf16.msra.mxu1 %v11233_v38 }
0x4f2f   :  { %7009 = vmatprep.subr.bf16.mxu1 %v11152_v6 }
0x4fca   :  { %v6758_v11 = vpop.f32.mrf.mxu0 }
0x4fcb   :  { %v6806_v50 = vadd.f32 %v6758_v11, %v11273_v63 }
0x4fcc   :  { %v6760_v30 = vpop.f32.mrf.mxu0 }
0x4fcd   :  { %v7704_v27 = vmul.f32 -1.442695, %v6806_v50  ;;  %v6807_v2 = vadd.f32 %v6760_v30, %v11275_v53 }
0x4fce   :  { %v6762_v9 = vpop.f32.mrf.mxu0 }
0x4fcf   :  { %8901 = vpow2.f32 %v7704_v27  ;;  %v7705_v26 = vmul.f32 -1.442695, %v6807_v2 }
0x4fd0   :  { %v6763_v28 = vpop.f32.mrf.mxu0 }
0x4fd1   :  { %v6799_v56 = vpop.f32.mrf.mxu1  ;;  %8903 = vpow2.f32 %v7705_v26 }
0x4fd2   :  { %v6808_v16 = vadd.f32 %v6799_v56, %v11279_v3 }
0x4fd3   :  { %v6801_v58 = vpop.f32.mrf.mxu1 }
0x4fd4   :  { %v7706_v7 = vmul.f32 -1.442695, %v6808_v16  ;;  %v6809_v55 = vadd.f32 %v6801_v58, %v11282_v5 }
0x4fd5   :  { %v6803_v4 = vpop.f32.mrf.mxu1 }
0x4fd6   :  { %8905 = vpow2.f32 %v7706_v7 }
0x4fd7   :  { %v6804_v43 = vpop.f32.mrf.mxu1  ;;  %8907 = vtanh.f32 %v6809_v55 }
0x4fdc   :  { %v8902_v8 = vpop.eup %8901 }
0x4fdd   :  { %v6819_v18 = vadd.f32 1.0, %v8902_v8 }
0x4fde   :  { %v8904_v13 = vpop.eup %8903 }
0x4fdf   :  { %8909 = vrcp.f32 %v6819_v18  ;;  %v6820_v10 = vadd.f32 1.0, %v8904_v13 }
0x4fe1   :  { %8911 = vrcp.f32 %v6820_v10 }
0x4fe3   :  { %v8906_v22 = vpop.eup %8905 }
0x4fe4   :  { %v8908_v46 = vpop.eup %8907  ;;  %v6821_v45 = vadd.f32 1.0, %v8906_v22 }
0x4fe6   :  { %8913 = vrcp.f32 %v6821_v45 }
0x4fec   :  { %v8910_v36 = vpop.eup %8909 }
0x4fed   :  { %v6833_v11 = vmul.f32 %v8910_v36, %v8908_v46 }
0x4fee   :  { %v8912_v17 = vpop.eup %8911 }
0x4fef   :  { %v6832_v19 = vmul.f32 %v8912_v17, %v6830_v35 }
0x4ff1   :  { %v11286_v50 = vadd.f32 %v6833_v11, %v6832_v19 }
0x4ff3   :  { %8915 = vtanh.f32 %v11286_v50  ;;  %v8914_v30 = vpop.eup %8913 }
0x5000   :  { %v8916_v27 = vpop.eup %8915 }
0x5001   :  { %v11289_v2 = vmul.f32 %v8916_v27, %v8914_v30 }
0x5003   :  { %v6837_v9 = vpack.c.bf16 %v11289_v2, %v11289_v2 }
0x5005   :  { %6871 = vmatmul.mubr.bf16.vlgmr.msra.gmra.mxu0 %v6837_v9  ;;  %6912 = vmatmul.mubr.bf16.vlgmr.msra.gmra.mxu1 %v6837_v9  ;;  %v6956_v9 = vrot.slane %v11286_v50, 7 }
0x5006   :  { %6969 = vmatpush1.bf16.msra.mxu0 %v11141_v37  ;;  %7010 = vmatpush1.bf16.msra.mxu1 %v11154_v59 }
0x5007   :  { %6970 = vmatprep.subr.bf16.mxu0 %v11144_v25  ;;  %7011 = vmatprep.subr.bf16.mxu1 %v11164_v40 }
0x5008   :  { %7000 = vmatprep.mubr.bf16.mxu0 %v9311_v0  ;;  %7041 = vmatprep.mubr.bf16.mxu1 %v9311_v0 }
0x500a   :  { %6971 = vmatpush1.bf16.msra.mxu0 %v11147_v21  ;;  %7012 = vmatpush1.bf16.msra.mxu1 %v11166_v1 }
0x500b   :  { %6972 = vmatprep.subr.bf16.mxu0 %v11150_v31  ;;  %7013 = vmatprep.subr.bf16.mxu1 %v11174_v48 }
0x500e   :  { %6973 = vmatpush1.bf16.msra.mxu0 %v11157_v33  ;;  %7014 = vmatpush1.bf16.msra.mxu1 %v11178_v52 }
0x500f   :  { %6974 = vmatprep.subr.bf16.mxu0 %v11161_v39  ;;  %7015 = vmatprep.subr.bf16.mxu1 %v11181_v57 }
0x5012   :  { %6975 = vmatpush1.bf16.msra.mxu0 %v11170_v51  ;;  %7016 = vmatpush1.bf16.msra.mxu1 %v11190_v12 }
0x5013   :  { %6976 = vmatprep.subr.bf16.mxu0 %v11172_v23  ;;  %7017 = vmatprep.subr.bf16.mxu1 %v11193_v49 }
0x5016   :  { %6977 = vmatpush1.bf16.msra.mxu0 %v11184_v34  ;;  %7018 = vmatpush1.bf16.msra.mxu1 %v11202_v24 }
0x5017   :  { %6978 = vmatprep.subr.bf16.mxu0 %v11187_v54  ;;  %7019 = vmatprep.subr.bf16.mxu1 %v11205_v47 }
0x501a   :  { %6979 = vmatpush1.bf16.msra.mxu0 %v11196_v61  ;;  %7020 = vmatpush1.bf16.msra.mxu1 %v11216_v15 }
0x501b   :  { %6980 = vmatprep.subr.bf16.mxu0 %v11198_v29  ;;  %7021 = vmatprep.subr.bf16.mxu1 %v11219_v44 }
0x501e   :  { %6981 = vmatpush1.bf16.msra.mxu0 %v11210_v60  ;;  %7022 = vmatpush1.bf16.msra.mxu1 %v11226_v42 }
0x501f   :  { %6982 = vmatprep.subr.bf16.mxu0 %v11213_v62  ;;  %7023 = vmatprep.subr.bf16.mxu1 %v11229_v20 }
0x5022   :  { %6983 = vmatpush1.bf16.msra.mxu0 %v11222_v41  ;;  %7024 = vmatpush1.bf16.msra.mxu1 %v11233_v38 }
0x5023   :  { %7097 = vmatprep.subr.bf16.mxu0 %v11137_v14  ;;  %7138 = vmatprep.subr.bf16.mxu1 %v11152_v6 }
0x50c5   :  { %v6872_v32 = vpop.f32.mrf.mxu0  ;;  %v6913_v26 = vpop.f32.mrf.mxu1 }
0x50c6   :  { %v6924_v56 = vrot.slane %v6872_v32, 7  ;;  %v6926_v14 = vrot.slane %v6913_v26, 7 }
0x50c7   :  { %v6874_v28 = vpop.f32.mrf.mxu0  ;;  %v6915_v58 = vpop.f32.mrf.mxu1 }
0x50c8   :  { %v6932_v4 = vadd.f32 %v6924_v56, %v11273_v63  ;;  %v6925_v16 = vrot.slane %v6874_v28, 7  ;;  %v6934_v6 = vadd.f32 %v6926_v14, %v11279_v3  ;;  %v6927_v22 = vrot.slane %v6915_v58, 7 }
0x50c9   :  { %v6876_v43 = vpop.f32.mrf.mxu0  ;;  %v6917_v7 = vpop.f32.mrf.mxu1 }
0x50ca   :  { %v7707_v55 = vmul.f32 -1.442695, %v6932_v4  ;;  %v6933_v8 = vadd.f32 %v6925_v16, %v11275_v53  ;;  %v7709_v46 = vmul.f32 -1.442695, %v6934_v6  ;;  %v6935_v36 = vadd.f32 %v6927_v22, %v11282_v5 }
0x50cb   :  { %v6877_v18 = vpop.f32.mrf.mxu0  ;;  %v6918_v13 = vpop.f32.mrf.mxu1 }
0x50cc   :  { %8917 = vpow2.f32 %v7707_v55  ;;  %v7708_v10 = vmul.f32 -1.442695, %v6933_v8 }
0x50ce   :  { %8919 = vpow2.f32 %v7708_v10 }
0x50cf   :  { %8921 = vpow2.f32 %v7709_v46 }
0x50d9   :  { %v8918_v35 = vpop.eup %8917 }
0x50da   :  { %v6945_v17 = vadd.f32 1.0, %v8918_v35 }
0x50db   :  { %v8920_v45 = vpop.eup %8919 }
0x50dc   :  { %8923 = vrcp.f32 %v6945_v17  ;;  %v6946_v19 = vadd.f32 1.0, %v8920_v45  ;;  %v8922_v11 = vpop.eup %8921 }
0x50dd   :  { %8925 = vtanh.f32 %v6935_v36  ;;  %v6947_v26 = vadd.f32 1.0, %v8922_v11 }
0x50de   :  { %8927 = vrcp.f32 %v6946_v19 }
0x50df   :  { %8929 = vrcp.f32 %v6947_v26 }
0x50e9   :  { %v8924_v30 = vpop.eup %8923 }
0x50ea   :  { %v8926_v27 = vpop.eup %8925 }
0x50eb   :  { %v8928_v32 = vpop.eup %8927  ;;  %v6959_v28 = vmul.f32 %v8926_v27, %v8924_v30 }
0x50ec   :  { %v6958_v56 = vmul.f32 %v8928_v32, %v6956_v9  ;;  %v8930_v4 = vpop.eup %8929 }
0x50ee   :  { %v11332_v58 = vadd.f32 %v6959_v28, %v6958_v56 }
0x50f0   :  { %8931 = vtanh.f32 %v11332_v58 }
0x50fd   :  { %v8932_v16 = vpop.eup %8931 }
0x50fe   :  { %v11335_v43 = vmul.f32 %v8932_v16, %v8930_v4 }
0x5100   :  { %v6963_v7 = vpack.c.bf16 %v11335_v43, %v11335_v43  ;;  %v7222_v10 = vsel %vm1126_vm1, %v11289_v2, %v11335_v43 }
0x5102   :  { %v6965_v55 = vshrl.u32 %v6963_v7, 16 }
0x5104   :  { %7001 = vmatmul.mubr.bf16.vlgmr.msra.gmra.mxu0 %v6965_v55  ;;  %7042 = vmatmul.mubr.bf16.vlgmr.msra.gmra.mxu1 %v6965_v55 }
0x5105   :  { %7098 = vmatpush1.bf16.msra.mxu0 %v11141_v37  ;;  %7139 = vmatpush1.bf16.msra.mxu1 %v11154_v59 }
0x5106   :  { %7099 = vmatprep.subr.bf16.mxu0 %v11144_v25  ;;  %7140 = vmatprep.subr.bf16.mxu1 %v11164_v40 }
0x5107   :  { %7129 = vmatprep.mubr.bf16.mxu0 %v9311_v0  ;;  %7170 = vmatprep.mubr.bf16.mxu1 %v9311_v0 }
0x5109   :  { %7100 = vmatpush1.bf16.msra.mxu0 %v11147_v21  ;;  %7141 = vmatpush1.bf16.msra.mxu1 %v11166_v1 }
0x510a   :  { %7101 = vmatprep.subr.bf16.mxu0 %v11150_v31  ;;  %7142 = vmatprep.subr.bf16.mxu1 %v11174_v48 }
0x510d   :  { %7102 = vmatpush1.bf16.msra.mxu0 %v11157_v33  ;;  %7143 = vmatpush1.bf16.msra.mxu1 %v11178_v52 }
0x510e   :  { %7103 = vmatprep.subr.bf16.mxu0 %v11161_v39  ;;  %7144 = vmatprep.subr.bf16.mxu1 %v11181_v57 }
0x5111   :  { %7104 = vmatpush1.bf16.msra.mxu0 %v11170_v51  ;;  %7145 = vmatpush1.bf16.msra.mxu1 %v11190_v12 }
0x5112   :  { %7105 = vmatprep.subr.bf16.mxu0 %v11172_v23  ;;  %7146 = vmatprep.subr.bf16.mxu1 %v11193_v49 }
0x5115   :  { %7106 = vmatpush1.bf16.msra.mxu0 %v11184_v34  ;;  %7147 = vmatpush1.bf16.msra.mxu1 %v11202_v24 }
0x5116   :  { %7107 = vmatprep.subr.bf16.mxu0 %v11187_v54  ;;  %7148 = vmatprep.subr.bf16.mxu1 %v11205_v47 }
0x5119   :  { %7108 = vmatpush1.bf16.msra.mxu0 %v11196_v61  ;;  %7149 = vmatpush1.bf16.msra.mxu1 %v11216_v15 }
0x511a   :  { %7109 = vmatprep.subr.bf16.mxu0 %v11198_v29  ;;  %7150 = vmatprep.subr.bf16.mxu1 %v11219_v44  ;;  %v7086_v44 = vrot.slane %v11332_v58, 7 }
0x511d   :  { %7110 = vmatpush1.bf16.msra.mxu0 %v11210_v60  ;;  %7151 = vmatpush1.bf16.msra.mxu1 %v11226_v42 }
0x511e   :  { %7111 = vmatprep.subr.bf16.mxu0 %v11213_v62  ;;  %7152 = vmatprep.subr.bf16.mxu1 %v11229_v20 }
0x5121   :  { %7112 = vmatpush1.bf16.msra.mxu0 %v11222_v41  ;;  %7153 = vmatpush1.bf16.msra.mxu1 %v11233_v38 }
0x51c4   :  { %v7002_v0 = vpop.f32.mrf.mxu0  ;;  %v7043_v37 = vpop.f32.mrf.mxu1 }
0x51c5   :  { %v7054_v25 = vrot.slane %v7002_v0, 6  ;;  %v7056_v57 = vrot.slane %v7043_v37, 6 }
0x51c6   :  { %v7004_v21 = vpop.f32.mrf.mxu0  ;;  %v7045_v31 = vpop.f32.mrf.mxu1 }
0x51c7   :  { %v7062_v59 = vadd.f32 %v7054_v25, %v11273_v63  ;;  %v7055_v33 = vrot.slane %v7004_v21, 6  ;;  %v7064_v34 = vadd.f32 %v7056_v57, %v11279_v3  ;;  %v7057_v54 = vrot.slane %v7045_v31, 6 }
0x51c8   :  { %v7006_v39 = vpop.f32.mrf.mxu0  ;;  %v7047_v40 = vpop.f32.mrf.mxu1 }
0x51c9   :  { %v7710_v1 = vmul.f32 -1.442695, %v7062_v59  ;;  %v7063_v51 = vadd.f32 %v7055_v33, %v11275_v53  ;;  %v7712_v12 = vmul.f32 -1.442695, %v7064_v34  ;;  %v7065_v61 = vadd.f32 %v7057_v54, %v11282_v5 }
0x51ca   :  { %v7007_v23 = vpop.f32.mrf.mxu0  ;;  %v7048_v48 = vpop.f32.mrf.mxu1 }
0x51cb   :  { %8933 = vpow2.f32 %v7710_v1  ;;  %v7711_v52 = vmul.f32 -1.442695, %v7063_v51 }
0x51cd   :  { %8935 = vpow2.f32 %v7711_v52 }
0x51ce   :  { %8937 = vpow2.f32 %v7712_v12 }
0x51d8   :  { %v8934_v49 = vpop.eup %8933 }
0x51d9   :  { %v7075_v29 = vadd.f32 1.0, %v8934_v49 }
0x51da   :  { %v8936_v24 = vpop.eup %8935 }
0x51db   :  { %8939 = vrcp.f32 %v7075_v29  ;;  %v7076_v47 = vadd.f32 1.0, %v8936_v24  ;;  %v8938_v60 = vpop.eup %8937 }
0x51dc   :  { %8941 = vtanh.f32 %v7065_v61  ;;  %v7077_v42 = vadd.f32 1.0, %v8938_v60 }
0x51dd   :  { %8943 = vrcp.f32 %v7076_v47 }
0x51de   :  { %8945 = vrcp.f32 %v7077_v42 }
0x51e8   :  { %v8940_v62 = vpop.eup %8939 }
0x51e9   :  { %v8942_v15 = vpop.eup %8941 }
0x51ea   :  { %v8944_v41 = vpop.eup %8943  ;;  %v7089_v38 = vmul.f32 %v8942_v15, %v8940_v62 }
0x51eb   :  { %v7088_v20 = vmul.f32 %v8944_v41, %v7086_v44  ;;  %v8946_v8 = vpop.eup %8945 }
0x51ed   :  { %v7090_v50 = vadd.f32 %v7089_v38, %v7088_v20 }
0x51ef   :  { %8947 = vtanh.f32 %v7090_v50  ;;  %v7215_v21 = vrot.slane %v7090_v50, 7 }
0x51fc   :  { %v8948_v18 = vpop.eup %8947 }
0x51fd   :  { %v7092_v13 = vmul.f32 %v8948_v18, %v8946_v8 }
0x51ff   :  { %v7093_v14 = vpack.c.bf16 %v7092_v13, %v7092_v13  ;;  %v7223_v6 = vsel %vm1128_vm2, %v7222_v10, %v7092_v13 }
0x5201   :  { %v7095_v22 = vrot.slane %v7093_v14, 1 }
0x5203   :  { %7130 = vmatmul.mubr.bf16.vlgmr.msra.gmra.mxu0 %v7095_v22  ;;  %7171 = vmatmul.mubr.bf16.vlgmr.msra.gmra.mxu1 %v7095_v22 }
0x52c3   :  { %v7131_v46 = vpop.f32.mrf.mxu0  ;;  %v7172_v35 = vpop.f32.mrf.mxu1 }
0x52c4   :  { %v7183_v36 = vrot.slane %v7131_v46, 5  ;;  %v7185_v28 = vrot.slane %v7172_v35, 5 }
0x52c5   :  { %v7133_v17 = vpop.f32.mrf.mxu0  ;;  %v7174_v45 = vpop.f32.mrf.mxu1 }
0x52c6   :  { %v7191_v19 = vadd.f32 %v7183_v36, %v11273_v63  ;;  %v7184_v11 = vrot.slane %v7133_v17, 5  ;;  %v7193_v58 = vadd.f32 %v7185_v28, %v11279_v3  ;;  %v7186_v4 = vrot.slane %v7174_v45, 5 }
0x52c7   :  { %v7135_v30 = vpop.f32.mrf.mxu0  ;;  %v7176_v27 = vpop.f32.mrf.mxu1 }
0x52c8   :  { %v7713_v9 = vmul.f32 -1.442695, %v7191_v19  ;;  %v7192_v32 = vadd.f32 %v7184_v11, %v11275_v53  ;;  %v7715_v16 = vmul.f32 -1.442695, %v7193_v58  ;;  %v7194_v7 = vadd.f32 %v7186_v4, %v11282_v5 }
0x52c9   :  { %v7136_v2 = vpop.f32.mrf.mxu0  ;;  %v7177_v26 = vpop.f32.mrf.mxu1 }
0x52ca   :  { %8949 = vpow2.f32 %v7713_v9  ;;  %v7714_v56 = vmul.f32 -1.442695, %v7192_v32 }
0x52cc   :  { %8951 = vpow2.f32 %v7714_v56 }
0x52cd   :  { %8953 = vpow2.f32 %v7715_v16 }
0x52d7   :  { %v8950_v43 = vpop.eup %8949 }
0x52d8   :  { %v7204_v63 = vadd.f32 1.0, %v8950_v43 }
0x52d9   :  { %v8952_v55 = vpop.eup %8951 }
0x52da   :  { %8955 = vrcp.f32 %v7204_v63  ;;  %v7205_v0 = vadd.f32 1.0, %v8952_v55  ;;  %v8954_v53 = vpop.eup %8953 }
0x52db   :  { %8957 = vtanh.f32 %v7194_v7  ;;  %v7206_v59 = vadd.f32 1.0, %v8954_v53 }
0x52dc   :  { %8959 = vrcp.f32 %v7205_v0 }
0x52dd   :  { %8961 = vrcp.f32 %v7206_v59 }
0x52e7   :  { %v8956_v37 = vpop.eup %8955 }
0x52e8   :  { %v8958_v25 = vpop.eup %8957 }
0x52e9   :  { %v8960_v31 = vpop.eup %8959  ;;  %v7218_v33 = vmul.f32 %v8958_v25, %v8956_v37 }
0x52ea   :  { %v7217_v3 = vmul.f32 %v8960_v31, %v7215_v21  ;;  %v8962_v40 = vpop.eup %8961 }
0x52ec   :  { %v7219_v39 = vadd.f32 %v7218_v33, %v7217_v3 }
0x52ee   :  { %8963 = vtanh.f32 %v7219_v39 }
0x52fb   :  { %v8964_v5 = vpop.eup %8963 }
0x52fc   :  { %v7221_v1 = vmul.f32 %v8964_v5, %v8962_v40 }
0x52fe   :  { %v7224_v51 = vsel %vm1130_vm3, %v7223_v6, %v7221_v1 }
0x52ff   :  { %7225 = vst [vmem:[#allocation23 + $0x10] sm:$0xf] %v7224_v51 }
0x5300   :  { %9176 = shalt.err (!%p9173_p2)
}
0x5301   :  { %7237 = dma.vmem_to_hbm [thread:$0]  %s7232_s24, 384, %s11404_s13, [#allocation8], %s9296_s28, %s9296_s28, %s9297_s29  }
0x5302   :  { %9245 = dma.done.wait [#allocation8], 384  }
0x5303   :  { %9246 = vsyncadd [#allocation8], 4294966912 }
0x5304   :  { %7241 = vsyncpa [#allocation7], 1 }
0x5305   :  { %7242 = vsyncpa [#allocation10], 1 }
0x5306   :  { %7243 = vsyncpa [#allocation13], 1 }
0x5307   :  { %7244 = vsyncpa [#allocation16], 1 }
0x5308   :  { %7245 = vsyncpa [#allocation19], 1 }
0x5309   :  { %7246 = vsyncpa [#allocation22], 1 }
0x530a   :  { %7247 = vsyncpa [#allocation8], 1 }

</bundles_post_ra>
